<compile_context>
chip_gen: v5e
topology: v5e:2x2
jax: 0.10.0
libtpu: 0.0.40
codegen_flags: <defaults>
</compile_context>

<pallas_src>
import functools

import jax
import jax.numpy as jnp
from jax.experimental import pallas as pl
from jax.experimental.pallas import tpu as pltpu

LN_EPS = 1e-5  # torch nn.LayerNorm default


def _layernorm(x, gamma, beta):
    mean = jnp.mean(x, axis=-1, keepdims=True)
    c = x - mean
    var = jnp.mean(c * c, axis=-1, keepdims=True)
    return c * jax.lax.rsqrt(var + LN_EPS) * gamma + beta


# ----------------------------------------------------------------------------
# Fused per-layer kernel.  One grid step = one transformer layer on one batch tile.
# Grid = (batch_tiles, depth); depth is sequential ("arbitrary"), batch is "parallel".
# ----------------------------------------------------------------------------
def _deepvit_layer_kernel(heads, dim_head, mm_dtype, acc_in_out,
                          x_ref, ln1g_ref, ln1b_ref, wqkv_ref,
                          wre_ref, rg_ref, rb_ref,
                          wo_ref, bo_ref,
                          ln2g_ref, ln2b_ref,
                          w1_ref, b1_ref, w2_ref, b2_ref,
                          o_ref, *scratch):
    layer = pl.program_id(1)
    # Residual stream lives either directly in the (depth-resident) output block (f32 inputs)
    # or in a dedicated f32 VMEM scratch (non-f32 inputs).
    acc_ref = o_ref if acc_in_out else scratch[0]

    @pl.when(layer == 0)
    def _():
        acc_ref[...] = x_ref[...].astype(acc_ref.dtype)

    bt, n, d = acc_ref.shape
    m = bt * n                      # rows presented to the MXU (>= 128 by construction)
    inner = heads * dim_head
    scale = dim_head ** -0.5

    x = acc_ref[...].astype(jnp.float32).reshape(m, d)   # lane-dense (m, d) slab

    # ---------------- attention (PreNorm, re-attention) ----------------
    xn = _layernorm(x, ln1g_ref[0], ln1b_ref[0])
    qkv = jnp.dot(xn.astype(mm_dtype), wqkv_ref[0],
                  preferred_element_type=jnp.float32)             # (m, 3*inner) f32
    q = qkv[:, :inner] * scale                                    # 128-aligned lane slices
    k = qkv[:, inner:2 * inner]
    v = qkv[:, 2 * inner:]

    # Per-head softmax(q k^T), batched over the batch tile.
    attn = []        # heads x (bt, n, n) f32 attention probabilities
    v_h = []         # heads x (bt, n, dim_head) mm_dtype value blocks
    for h in range(heads):
        hs = slice(h * dim_head, (h + 1) * dim_head)
        qh = q[:, hs].reshape(bt, n, dim_head).astype(mm_dtype)
        kh = k[:, hs].reshape(bt, n, dim_head).astype(mm_dtype)
        v_h.append(v[:, hs].reshape(bt, n, dim_head).astype(mm_dtype))
        s = jnp.einsum('bid,bjd->bij', qh, kh,
                       preferred_element_type=jnp.float32)         # (bt, n, n) f32
        s = s - jnp.max(s, axis=-1, keepdims=True)
        e = jnp.exp(s)
        denom = jnp.sum(e, axis=-1, keepdims=True)
        r = pl.reciprocal(denom, approx=True)                      # EUP seed (off the VALU)
        r = r * (2.0 - denom * r)                                  # one Newton step -> ~f32 accuracy
        attn.append(e * r)

    # Re-attention head mix: mixed_g = sum_h attn_h * wre[h, g].
    # h^2 VPU scale-adds with SMEM scalars (replaces the old kron(wre, I_n) MXU matmul:
    # no per-layer (h*n)^2 weight DMA, no n-times redundant FLOPs, no VMEM blow-up).
    mixed = []
    for g in range(heads):
        mg = attn[0] * wre_ref[layer, 0 * heads + g]
        for h in range(1, heads):
            mg = mg + attn[h] * wre_ref[layer, h * heads + g]
        mixed.append(mg)                                           # (bt, n, n) f32

    # LayerNorm across the heads axis (per (batch, query, key) position), f32.
    inv_h = 1.0 / heads
    hsum = mixed[0]
    for g in range(1, heads):
        hsum = hsum + mixed[g]
    hmean = hsum * inv_h
    cen = [mg - hmean for mg in mixed]                             # centered, computed once
    hvar = cen[0] * cen[0]
    for g in range(1, heads):
        hvar = hvar + cen[g] * cen[g]
    hinv = jax.lax.rsqrt(hvar * inv_h + LN_EPS)

    # reattn @ v per head (batched over the batch tile); head outputs concatenated along lanes
    # into one lane-dense (m, inner) slab, then a single (m, inner) @ (inner, d) projection.
    out_blocks = []
    for g in range(heads):
        reattn_g = (cen[g] * hinv * rg_ref[layer, g] + rb_ref[layer, g]).astype(mm_dtype)
        og = jnp.einsum('bij,bjd->bid', reattn_g, v_h[g],
                        preferred_element_type=jnp.float32)        # (bt, n, dim_head) f32
        out_blocks.append(og.reshape(m, dim_head))
    att = jnp.concatenate(out_blocks, axis=-1)                     # (m, inner) f32

    y1 = jnp.dot(att.astype(mm_dtype), wo_ref[0],
                 preferred_element_type=jnp.float32) + bo_ref[0] + x    # residual

    # ---------------- MLP (PreNorm) ----------------
    xn2 = _layernorm(y1, ln2g_ref[0], ln2b_ref[0])
    h1 = jnp.dot(xn2.astype(mm_dtype), w1_ref[0],
                 preferred_element_type=jnp.float32) + b1_ref[0]
    h1 = 0.5 * h1 * (1.0 + jax.lax.erf(h1 * 0.7071067811865476))   # exact (erf) GELU
    y2 = jnp.dot(h1.astype(mm_dtype), w2_ref[0],
                 preferred_element_type=jnp.float32) + b2_ref[0] + y1   # residual

    acc_ref[...] = y2.reshape(bt, n, d).astype(acc_ref.dtype)

    if not acc_in_out:
        @pl.when(layer == pl.num_programs(1) - 1)
        def _():
            o_ref[...] = acc_ref[...].astype(o_ref.dtype)


# ----------------------------------------------------------------------------
# pallas_call wrapper: one call for the whole transformer.
# ----------------------------------------------------------------------------
def transformer_forward(x, layers, heads, dim_head, mlp_dim, *,
                        mm_dtype=jnp.bfloat16, batch_tile=None):
    b, n, d = x.shape
    depth = len(layers)
    inner = heads * dim_head

    # --- batch tiling: target ~1024 MXU rows per grid step; keep >= 2 tiles for v7x megacore
    #     when that still leaves >= 128 rows per tile.
    if batch_tile is None:
        target_rows = 1024
        bt = max(1, min(b, max(1, target_rows // max(n, 1))))
        while b % bt:
            bt -= 1
        if b // bt < 2:
            for cand in range(bt - 1, 0, -1):
                if b % cand == 0 and b // cand >= 2 and cand * n >= 128:
                    bt = cand
                    break
    else:
        bt = batch_tile
    assert b % bt == 0, "batch_tile must divide batch"

    # Layout guards for the kernel's lane-dense / full-MXU-row assumptions (perf cliffs otherwise).
    assert d % 128 == 0 and inner % 128 == 0 and mlp_dim % 128 == 0, (
        "dim, heads*dim_head and mlp_dim must be multiples of 128 for lane-dense MXU tiles")
    assert (bt * n) % 8 == 0 and bt * n >= 128, (
        "batch_tile * seq must be a multiple of 8 and >= 128 MXU rows")

    attn_ps = [a for a, _ in layers]
    mlp_ps = [mp for _, mp in layers]
    st = lambda key_, ps: jnp.stack([p[key_] for p in ps], axis=0)
    cast = lambda t: t.astype(mm_dtype)

    args = (
        x,
        st("ln_g", attn_ps), st("ln_b", attn_ps),
        cast(st("wqkv", attn_ps)),
        jnp.stack([a["wre"].reshape(-1) for a in attn_ps], axis=0).astype(jnp.float32),
        st("rg", attn_ps), st("rb", attn_ps),
        cast(st("wo", attn_ps)), st("bo", attn_ps),
        st("ln_g", mlp_ps), st("ln_b", mlp_ps),
        cast(st("w1", mlp_ps)), st("b1", mlp_ps),
        cast(st("w2", mlp_ps)), st("b2", mlp_ps),
    )

    def wspec(shape):
        return pl.BlockSpec(shape, lambda bi, l: (l, 0, 0))    # per-layer weight block (streamed)

    smem = pl.BlockSpec(memory_space=pltpu.MemorySpace.SMEM)   # scalar tables, whole array in SMEM
    in_specs = [
        pl.BlockSpec((bt, n, d), lambda bi, l: (bi, 0, 0)),    # x (fetched once per batch tile)
        wspec((1, 1, d)), wspec((1, 1, d)),                    # attn LN gamma/beta
        wspec((1, d, 3 * inner)),                              # Wqkv
        smem,                                                  # reattn_weights (depth, heads*heads)
        smem, smem,                                            # reattn_norm gamma/beta (scalars)
        wspec((1, inner, d)), wspec((1, 1, d)),                # Wo, bo
        wspec((1, 1, d)), wspec((1, 1, d)),                    # mlp LN gamma/beta
        wspec((1, d, mlp_dim)), wspec((1, 1, mlp_dim)),        # W1, b1
        wspec((1, mlp_dim, d)), wspec((1, 1, d)),              # W2, b2
    ]

    acc_in_out = (x.dtype == jnp.float32)
    scratch_shapes = [] if acc_in_out else [pltpu.VMEM((bt, n, d), jnp.float32)]

    kern = functools.partial(_deepvit_layer_kernel, heads, dim_head, mm_dtype, acc_in_out)
    return pl.pallas_call(
        kern,
        out_shape=jax.ShapeDtypeStruct((b, n, d), x.dtype),
        grid=(b // bt, depth),
        in_specs=in_specs,
        out_specs=pl.BlockSpec((bt, n, d), lambda bi, l: (bi, 0, 0)),
        scratch_shapes=scratch_shapes,
        compiler_params=pltpu.CompilerParams(
            dimension_semantics=("parallel", "arbitrary"),
            vmem_limit_bytes=32 * 1024 * 1024),
    )(*args)


# ----------------------------------------------------------------------------
# deterministic parameter init (torch-equivalent shapes; weights stored (in, out))
# ----------------------------------------------------------------------------
def init_layer(key, dim, heads, dim_head, mlp_dim):
    inner = heads * dim_head
    ks = jax.random.split(key, 14)
    nrm = lambda k, shp, s: s * jax.random.normal(k, shp, jnp.float32)
    attn = dict(
        ln_g=1.0 + 0.1 * nrm(ks[0], (1, dim), 1.0),
        ln_b=0.1 * nrm(ks[1], (1, dim), 1.0),
        wqkv=nrm(ks[2], (dim, 3 * inner), dim ** -0.5),
        wre=nrm(ks[3], (heads, heads), 1.0),          # torch.randn(heads, heads)
        rg=1.0 + 0.1 * nrm(ks[4], (heads,), 1.0),
        rb=0.1 * nrm(ks[5], (heads,), 1.0),
        wo=nrm(ks[6], (inner, dim), inner ** -0.5),
        bo=0.02 * nrm(ks[7], (1, dim), 1.0),
    )
    mlp = dict(
        ln_g=1.0 + 0.1 * nrm(ks[8], (1, dim), 1.0),
        ln_b=0.1 * nrm(ks[9], (1, dim), 1.0),
        w1=nrm(ks[10], (dim, mlp_dim), dim ** -0.5),
        b1=0.02 * nrm(ks[11], (1, mlp_dim), 1.0),
        w2=nrm(ks[12], (mlp_dim, dim), mlp_dim ** -0.5),
        b2=0.02 * nrm(ks[13], (1, dim), 1.0),
    )
    return attn, mlp


# ----------------------------------------------------------------------------
# pure-JAX reference (mirrors the PyTorch forward exactly)
# ----------------------------------------------------------------------------
def _ref_ln(x, g, b):
    m = x.mean(-1, keepdims=True)
    v = ((x - m) ** 2).mean(-1, keepdims=True)
    return (x - m) / jnp.sqrt(v + LN_EPS) * g + b


def _ref_attn(x, p, heads, dim_head):
    b, n, d = x.shape
    inner = heads * dim_head
    xn = _ref_ln(x, p["ln_g"], p["ln_b"])
    qkv = xn @ p["wqkv"]
    q, k, v = jnp.split(qkv, 3, axis=-1)
    sh = lambda t: t.reshape(b, n, heads, dim_head).transpose(0, 2, 1, 3)
    q, k, v = sh(q), sh(k), sh(v)
    dots = jnp.einsum("bhid,bhjd->bhij", q, k) * dim_head ** -0.5
    attn = jax.nn.softmax(dots, axis=-1)
    attn = jnp.einsum("bhij,hg->bgij", attn, p["wre"])
    re = attn.transpose(0, 2, 3, 1)                 # b i j h
    re = _ref_ln(re, p["rg"], p["rb"])
    re = re.transpose(0, 3, 1, 2)                   # b h i j
    out = jnp.einsum("bhij,bhjd->bhid", re, v)
    out = out.transpose(0, 2, 1, 3).reshape(b, n, inner)
    return out @ p["wo"] + p["bo"]


def _ref_mlp(x, p):
    xn = _ref_ln(x, p["ln_g"], p["ln_b"])
    h = jax.nn.gelu(xn @ p["w1"] + p["b1"], approximate=False)
    return h @ p["w2"] + p["b2"]


def reference_forward(x, layers, heads, dim_head):
    for attn_p, mlp_p in layers:
        x = _ref_attn(x, attn_p, heads, dim_head) + x
        x = _ref_mlp(x, mlp_p) + x
    return x


if __name__ == "__main__":
    # Transformer(dim=128, depth=2, heads=4, dim_head=32, mlp_dim=256, dropout=0.0)
    # Shapes chosen TPU-friendly but small: b*n = 128 MXU rows, all lane dims multiples of 128.
    b, n, dim, heads, dim_head, mlp_dim, depth = 2, 64, 128, 4, 32, 256, 2

    key = jax.random.PRNGKey(0)
    kx, kp = jax.random.split(key)
    x = jax.random.normal(kx, (b, n, dim), jnp.float32)
    layers = [init_layer(jax.random.fold_in(kp, l), dim, heads, dim_head, mlp_dim)
              for l in range(depth)]

    # Default throughput configuration: bf16 MXU operands, f32 accumulation.
    out_bf16 = transformer_forward(x, layers, heads, dim_head, mlp_dim)
    out_bf16 = jax.block_until_ready(out_bf16)
    assert out_bf16.shape == (b, n, dim)

    # f32-operand variant (accuracy check path).
    out_f32 = transformer_forward(x, layers, heads, dim_head, mlp_dim, mm_dtype=jnp.float32)
    out_f32 = jax.block_until_ready(out_f32)

    with jax.default_matmul_precision("highest"):
        ref = jax.block_until_ready(reference_forward(x, layers, heads, dim_head))

    def rel_rms(a, r):
        return float(jnp.sqrt(jnp.mean((a - r) ** 2) / (jnp.mean(r ** 2) + 1e-12)))

    e32 = rel_rms(out_f32, ref)
    e16 = rel_rms(out_bf16, ref)
    assert e32 < 3e-2, f"f32 kernel mismatch vs reference: rel-RMS = {e32}"
    assert e16 < 1.2e-1, f"bf16 kernel mismatch vs reference: rel-RMS = {e16}"

    print("KERNEL_OK")
</pallas_src>

<mosaic_0001>
module attributes {stable_mosaic.version = 11 : i64} {
  func.func @_deepvit_layer_kernel(%arg0: i32, %arg1: i32, %arg2: memref<2x64x128xf32, #tpu.memory_space<vmem>>, %arg3: memref<1x1x128xf32, #tpu.memory_space<vmem>>, %arg4: memref<1x1x128xf32, #tpu.memory_space<vmem>>, %arg5: memref<1x128x384xbf16, #tpu.memory_space<vmem>>, %arg6: memref<2x16xf32, #tpu.memory_space<smem>>, %arg7: memref<2x4xf32, #tpu.memory_space<smem>>, %arg8: memref<2x4xf32, #tpu.memory_space<smem>>, %arg9: memref<1x128x128xbf16, #tpu.memory_space<vmem>>, %arg10: memref<1x1x128xf32, #tpu.memory_space<vmem>>, %arg11: memref<1x1x128xf32, #tpu.memory_space<vmem>>, %arg12: memref<1x1x128xf32, #tpu.memory_space<vmem>>, %arg13: memref<1x128x256xbf16, #tpu.memory_space<vmem>>, %arg14: memref<1x1x256xf32, #tpu.memory_space<vmem>>, %arg15: memref<1x256x128xbf16, #tpu.memory_space<vmem>>, %arg16: memref<1x1x128xf32, #tpu.memory_space<vmem>>, %arg17: memref<2x64x128xf32, #tpu.memory_space<vmem>>) attributes {dimension_semantics = [#tpu.dimension_semantics<parallel>, #tpu.dimension_semantics<arbitrary>], iteration_bounds = array<i64: 1, 2>, scalar_prefetch = 0 : i64, scratch_operands = 0 : i64, tpu.core_type = #tpu.core_type<tc>, window_params = [{transform_indices = @transform_0, window_bounds = array<i64: 2, 64, 128>}, {transform_indices = @transform_1, window_bounds = array<i64: 1, 1, 128>}, {transform_indices = @transform_2, window_bounds = array<i64: 1, 1, 128>}, {transform_indices = @transform_3, window_bounds = array<i64: 1, 128, 384>}, {transform_indices = @transform_4, window_bounds = array<i64: 2, 16>}, {transform_indices = @transform_5, window_bounds = array<i64: 2, 4>}, {transform_indices = @transform_6, window_bounds = array<i64: 2, 4>}, {transform_indices = @transform_7, window_bounds = array<i64: 1, 128, 128>}, {transform_indices = @transform_8, window_bounds = array<i64: 1, 1, 128>}, {transform_indices = @transform_9, window_bounds = array<i64: 1, 1, 128>}, {transform_indices = @transform_10, window_bounds = array<i64: 1, 1, 128>}, {transform_indices = @transform_11, window_bounds = array<i64: 1, 128, 256>}, {transform_indices = @transform_12, window_bounds = array<i64: 1, 1, 256>}, {transform_indices = @transform_13, window_bounds = array<i64: 1, 256, 128>}, {transform_indices = @transform_14, window_bounds = array<i64: 1, 1, 128>}, {transform_indices = @transform_15, window_bounds = array<i64: 2, 64, 128>}]} {
    %c0_i32 = arith.constant 0 : i32
    %0 = arith.cmpi eq, %arg1, %c0_i32 : i32
    %1 = arith.extui %0 : i1 to i32
    %c0_i32_0 = arith.constant 0 : i32
    %2 = arith.cmpi ne, %1, %c0_i32_0 : i32
    scf.if %2 {
      %c0_88 = arith.constant 0 : index
      %c0_89 = arith.constant 0 : index
      %c0_90 = arith.constant 0 : index
      %340 = vector.load %arg2[%c0_88, %c0_89, %c0_90] : memref<2x64x128xf32, #tpu.memory_space<vmem>>, vector<2x64x128xf32>
      %c0_91 = arith.constant 0 : index
      %c0_92 = arith.constant 0 : index
      %c0_93 = arith.constant 0 : index
      %341 = vector.load %arg17[%c0_91, %c0_92, %c0_93] : memref<2x64x128xf32, #tpu.memory_space<vmem>>, vector<2x64x128xf32>
      tpu.vector_store %arg17[%c0_91, %c0_92, %c0_93], %340 {strides = array<i32>} : memref<2x64x128xf32, #tpu.memory_space<vmem>>, vector<2x64x128xf32>,
    } else {
    }
    %c0 = arith.constant 0 : index
    %c0_1 = arith.constant 0 : index
    %c0_2 = arith.constant 0 : index
    %3 = vector.load %arg17[%c0, %c0_1, %c0_2] : memref<2x64x128xf32, #tpu.memory_space<vmem>>, vector<2x64x128xf32>
    %4 = vector.shape_cast %3 : vector<2x64x128xf32> to vector<128x128xf32>
    %c0_3 = arith.constant 0 : index
    %c0_4 = arith.constant 0 : index
    %c0_5 = arith.constant 0 : index
    %5 = vector.load %arg3[%c0_3, %c0_4, %c0_5] : memref<1x1x128xf32, #tpu.memory_space<vmem>>, vector<1x1x128xf32>
    %6 = vector.shape_cast %5 : vector<1x1x128xf32> to vector<1x128xf32>
    %c0_6 = arith.constant 0 : index
    %c0_7 = arith.constant 0 : index
    %c0_8 = arith.constant 0 : index
    %7 = vector.load %arg4[%c0_6, %c0_7, %c0_8] : memref<1x1x128xf32, #tpu.memory_space<vmem>>, vector<1x1x128xf32>
    %8 = vector.shape_cast %7 : vector<1x1x128xf32> to vector<1x128xf32>
    %cst = arith.constant dense<0.000000e+00> : vector<128xf32>
    %9 = vector.multi_reduction <add>, %4, %cst [1] : vector<128x128xf32> to vector<128xf32>
    %10 = vector.shape_cast %9 : vector<128xf32> to vector<128x1xf32>
    %cst_9 = arith.constant 1.280000e+02 : f32
    %11 = vector.broadcast %cst_9 : f32 to vector<128x1xf32>
    %12 = arith.divf %10, %11 : vector<128x1xf32>
    %13 = vector.broadcast %12 : vector<128x1xf32> to vector<128x128xf32>
    %14 = arith.subf %4, %13 : vector<128x128xf32>
    %15 = arith.mulf %14, %14 : vector<128x128xf32>
    %cst_10 = arith.constant dense<0.000000e+00> : vector<128xf32>
    %16 = vector.multi_reduction <add>, %15, %cst_10 [1] : vector<128x128xf32> to vector<128xf32>
    %17 = vector.shape_cast %16 : vector<128xf32> to vector<128x1xf32>
    %cst_11 = arith.constant 1.280000e+02 : f32
    %18 = vector.broadcast %cst_11 : f32 to vector<128x1xf32>
    %19 = arith.divf %17, %18 : vector<128x1xf32>
    %cst_12 = arith.constant 9.99999974E-6 : f32
    %20 = vector.broadcast %cst_12 : f32 to vector<128x1xf32>
    %21 = arith.addf %19, %20 : vector<128x1xf32>
    %22 = math.rsqrt %21 : vector<128x1xf32>
    %23 = vector.broadcast %22 : vector<128x1xf32> to vector<128x128xf32>
    %24 = arith.mulf %14, %23 : vector<128x128xf32>
    %25 = vector.broadcast %6 : vector<1x128xf32> to vector<128x128xf32>
    %26 = arith.mulf %24, %25 : vector<128x128xf32>
    %27 = vector.broadcast %8 : vector<1x128xf32> to vector<128x128xf32>
    %28 = arith.addf %26, %27 : vector<128x128xf32>
    %29 = arith.truncf %28 : vector<128x128xf32> to vector<128x128xbf16>
    %c0_13 = arith.constant 0 : index
    %c0_14 = arith.constant 0 : index
    %c0_15 = arith.constant 0 : index
    %30 = vector.load %arg5[%c0_13, %c0_14, %c0_15] : memref<1x128x384xbf16, #tpu.memory_space<vmem>>, vector<1x128x384xbf16>
    %31 = vector.shape_cast %30 : vector<1x128x384xbf16> to vector<128x384xbf16>
    %cst_16 = arith.constant dense<0.000000e+00> : vector<128x384xf32>
    %32 = tpu.matmul %29, %31, %cst_16 {dimension_numbers = #tpu.dot_dimension_numbers<[1], [0], [0], [1], [0, 0, 1, 1], [], []>} : vector<128x128xbf16>, vector<128x384xbf16>, vector<128x384xf32> -> vector<128x384xf32>
    %33 = vector.extract_strided_slice %32 {offsets = [0, 0], sizes = [128, 128], strides = [1, 1]} : vector<128x384xf32> to vector<128x128xf32>
    %cst_17 = arith.constant 0.176776692 : f32
    %34 = vector.broadcast %cst_17 : f32 to vector<128x128xf32>
    %35 = arith.mulf %33, %34 : vector<128x128xf32>
    %36 = vector.extract_strided_slice %32 {offsets = [0, 128], sizes = [128, 128], strides = [1, 1]} : vector<128x384xf32> to vector<128x128xf32>
    %37 = vector.extract_strided_slice %32 {offsets = [0, 256], sizes = [128, 128], strides = [1, 1]} : vector<128x384xf32> to vector<128x128xf32>
    %38 = vector.extract_strided_slice %35 {offsets = [0, 0], sizes = [128, 32], strides = [1, 1]} : vector<128x128xf32> to vector<128x32xf32>
    %39 = vector.shape_cast %38 : vector<128x32xf32> to vector<2x64x32xf32>
    %40 = arith.truncf %39 : vector<2x64x32xf32> to vector<2x64x32xbf16>
    %41 = vector.extract_strided_slice %36 {offsets = [0, 0], sizes = [128, 32], strides = [1, 1]} : vector<128x128xf32> to vector<128x32xf32>
    %42 = vector.shape_cast %41 : vector<128x32xf32> to vector<2x64x32xf32>
    %43 = arith.truncf %42 : vector<2x64x32xf32> to vector<2x64x32xbf16>
    %44 = vector.extract_strided_slice %37 {offsets = [0, 0], sizes = [128, 32], strides = [1, 1]} : vector<128x128xf32> to vector<128x32xf32>
    %45 = vector.shape_cast %44 : vector<128x32xf32> to vector<2x64x32xf32>
    %46 = arith.truncf %45 : vector<2x64x32xf32> to vector<2x64x32xbf16>
    "tpu.trace_start"() <{level = 10 : i32, message = "bid,bjd->bij"}> : () -> ()
    %cst_18 = arith.constant dense<0.000000e+00> : vector<2x64x64xf32>
    %47 = tpu.matmul %40, %43, %cst_18 {dimension_numbers = #tpu.dot_dimension_numbers<[2], [2], [1], [1], [0, 0, 0, 1, 1, 1], [0], [0]>} : vector<2x64x32xbf16>, vector<2x64x32xbf16>, vector<2x64x64xf32> -> vector<2x64x64xf32>
    "tpu.trace_stop"() : () -> ()
    %cst_19 = arith.constant dense<0xFF800000> : vector<2x64xf32>
    %48 = vector.multi_reduction <maximumf>, %47, %cst_19 [2] : vector<2x64x64xf32> to vector<2x64xf32>
    %49 = vector.shape_cast %48 : vector<2x64xf32> to vector<2x64x1xf32>
    %50 = vector.broadcast %49 : vector<2x64x1xf32> to vector<2x64x64xf32>
    %51 = arith.subf %47, %50 : vector<2x64x64xf32>
    %52 = math.exp %51 : vector<2x64x64xf32>
    %cst_20 = arith.constant dense<0.000000e+00> : vector<2x64xf32>
    %53 = vector.multi_reduction <add>, %52, %cst_20 [2] : vector<2x64x64xf32> to vector<2x64xf32>
    %54 = vector.shape_cast %53 : vector<2x64xf32> to vector<2x64x1xf32>
    %55 = tpu.reciprocal %54 {approx = true} : vector<2x64x1xf32> -> vector<2x64x1xf32>
    %56 = arith.mulf %54, %55 : vector<2x64x1xf32>
    %cst_21 = arith.constant 2.000000e+00 : f32
    %57 = vector.broadcast %cst_21 : f32 to vector<2x64x1xf32>
    %58 = arith.subf %57, %56 : vector<2x64x1xf32>
    %59 = arith.mulf %55, %58 : vector<2x64x1xf32>
    %60 = vector.broadcast %59 : vector<2x64x1xf32> to vector<2x64x64xf32>
    %61 = arith.mulf %52, %60 : vector<2x64x64xf32>
    %62 = vector.extract_strided_slice %35 {offsets = [0, 32], sizes = [128, 32], strides = [1, 1]} : vector<128x128xf32> to vector<128x32xf32>
    %63 = vector.shape_cast %62 : vector<128x32xf32> to vector<2x64x32xf32>
    %64 = arith.truncf %63 : vector<2x64x32xf32> to vector<2x64x32xbf16>
    %65 = vector.extract_strided_slice %36 {offsets = [0, 32], sizes = [128, 32], strides = [1, 1]} : vector<128x128xf32> to vector<128x32xf32>
    %66 = vector.shape_cast %65 : vector<128x32xf32> to vector<2x64x32xf32>
    %67 = arith.truncf %66 : vector<2x64x32xf32> to vector<2x64x32xbf16>
    %68 = vector.extract_strided_slice %37 {offsets = [0, 32], sizes = [128, 32], strides = [1, 1]} : vector<128x128xf32> to vector<128x32xf32>
    %69 = vector.shape_cast %68 : vector<128x32xf32> to vector<2x64x32xf32>
    %70 = arith.truncf %69 : vector<2x64x32xf32> to vector<2x64x32xbf16>
    "tpu.trace_start"() <{level = 10 : i32, message = "bid,bjd->bij"}> : () -> ()
    %cst_22 = arith.constant dense<0.000000e+00> : vector<2x64x64xf32>
    %71 = tpu.matmul %64, %67, %cst_22 {dimension_numbers = #tpu.dot_dimension_numbers<[2], [2], [1], [1], [0, 0, 0, 1, 1, 1], [0], [0]>} : vector<2x64x32xbf16>, vector<2x64x32xbf16>, vector<2x64x64xf32> -> vector<2x64x64xf32>
    "tpu.trace_stop"() : () -> ()
    %cst_23 = arith.constant dense<0xFF800000> : vector<2x64xf32>
    %72 = vector.multi_reduction <maximumf>, %71, %cst_23 [2] : vector<2x64x64xf32> to vector<2x64xf32>
    %73 = vector.shape_cast %72 : vector<2x64xf32> to vector<2x64x1xf32>
    %74 = vector.broadcast %73 : vector<2x64x1xf32> to vector<2x64x64xf32>
    %75 = arith.subf %71, %74 : vector<2x64x64xf32>
    %76 = math.exp %75 : vector<2x64x64xf32>
    %cst_24 = arith.constant dense<0.000000e+00> : vector<2x64xf32>
    %77 = vector.multi_reduction <add>, %76, %cst_24 [2] : vector<2x64x64xf32> to vector<2x64xf32>
    %78 = vector.shape_cast %77 : vector<2x64xf32> to vector<2x64x1xf32>
    %79 = tpu.reciprocal %78 {approx = true} : vector<2x64x1xf32> -> vector<2x64x1xf32>
    %80 = arith.mulf %78, %79 : vector<2x64x1xf32>
    %cst_25 = arith.constant 2.000000e+00 : f32
    %81 = vector.broadcast %cst_25 : f32 to vector<2x64x1xf32>
    %82 = arith.subf %81, %80 : vector<2x64x1xf32>
    %83 = arith.mulf %79, %82 : vector<2x64x1xf32>
    %84 = vector.broadcast %83 : vector<2x64x1xf32> to vector<2x64x64xf32>
    %85 = arith.mulf %76, %84 : vector<2x64x64xf32>
    %86 = vector.extract_strided_slice %35 {offsets = [0, 64], sizes = [128, 32], strides = [1, 1]} : vector<128x128xf32> to vector<128x32xf32>
    %87 = vector.shape_cast %86 : vector<128x32xf32> to vector<2x64x32xf32>
    %88 = arith.truncf %87 : vector<2x64x32xf32> to vector<2x64x32xbf16>
    %89 = vector.extract_strided_slice %36 {offsets = [0, 64], sizes = [128, 32], strides = [1, 1]} : vector<128x128xf32> to vector<128x32xf32>
    %90 = vector.shape_cast %89 : vector<128x32xf32> to vector<2x64x32xf32>
    %91 = arith.truncf %90 : vector<2x64x32xf32> to vector<2x64x32xbf16>
    %92 = vector.extract_strided_slice %37 {offsets = [0, 64], sizes = [128, 32], strides = [1, 1]} : vector<128x128xf32> to vector<128x32xf32>
    %93 = vector.shape_cast %92 : vector<128x32xf32> to vector<2x64x32xf32>
    %94 = arith.truncf %93 : vector<2x64x32xf32> to vector<2x64x32xbf16>
    "tpu.trace_start"() <{level = 10 : i32, message = "bid,bjd->bij"}> : () -> ()
    %cst_26 = arith.constant dense<0.000000e+00> : vector<2x64x64xf32>
    %95 = tpu.matmul %88, %91, %cst_26 {dimension_numbers = #tpu.dot_dimension_numbers<[2], [2], [1], [1], [0, 0, 0, 1, 1, 1], [0], [0]>} : vector<2x64x32xbf16>, vector<2x64x32xbf16>, vector<2x64x64xf32> -> vector<2x64x64xf32>
    "tpu.trace_stop"() : () -> ()
    %cst_27 = arith.constant dense<0xFF800000> : vector<2x64xf32>
    %96 = vector.multi_reduction <maximumf>, %95, %cst_27 [2] : vector<2x64x64xf32> to vector<2x64xf32>
    %97 = vector.shape_cast %96 : vector<2x64xf32> to vector<2x64x1xf32>
    %98 = vector.broadcast %97 : vector<2x64x1xf32> to vector<2x64x64xf32>
    %99 = arith.subf %95, %98 : vector<2x64x64xf32>
    %100 = math.exp %99 : vector<2x64x64xf32>
    %cst_28 = arith.constant dense<0.000000e+00> : vector<2x64xf32>
    %101 = vector.multi_reduction <add>, %100, %cst_28 [2] : vector<2x64x64xf32> to vector<2x64xf32>
    %102 = vector.shape_cast %101 : vector<2x64xf32> to vector<2x64x1xf32>
    %103 = tpu.reciprocal %102 {approx = true} : vector<2x64x1xf32> -> vector<2x64x1xf32>
    %104 = arith.mulf %102, %103 : vector<2x64x1xf32>
    %cst_29 = arith.constant 2.000000e+00 : f32
    %105 = vector.broadcast %cst_29 : f32 to vector<2x64x1xf32>
    %106 = arith.subf %105, %104 : vector<2x64x1xf32>
    %107 = arith.mulf %103, %106 : vector<2x64x1xf32>
    %108 = vector.broadcast %107 : vector<2x64x1xf32> to vector<2x64x64xf32>
    %109 = arith.mulf %100, %108 : vector<2x64x64xf32>
    %110 = vector.extract_strided_slice %35 {offsets = [0, 96], sizes = [128, 32], strides = [1, 1]} : vector<128x128xf32> to vector<128x32xf32>
    %111 = vector.shape_cast %110 : vector<128x32xf32> to vector<2x64x32xf32>
    %112 = arith.truncf %111 : vector<2x64x32xf32> to vector<2x64x32xbf16>
    %113 = vector.extract_strided_slice %36 {offsets = [0, 96], sizes = [128, 32], strides = [1, 1]} : vector<128x128xf32> to vector<128x32xf32>
    %114 = vector.shape_cast %113 : vector<128x32xf32> to vector<2x64x32xf32>
    %115 = arith.truncf %114 : vector<2x64x32xf32> to vector<2x64x32xbf16>
    %116 = vector.extract_strided_slice %37 {offsets = [0, 96], sizes = [128, 32], strides = [1, 1]} : vector<128x128xf32> to vector<128x32xf32>
    %117 = vector.shape_cast %116 : vector<128x32xf32> to vector<2x64x32xf32>
    %118 = arith.truncf %117 : vector<2x64x32xf32> to vector<2x64x32xbf16>
    "tpu.trace_start"() <{level = 10 : i32, message = "bid,bjd->bij"}> : () -> ()
    %cst_30 = arith.constant dense<0.000000e+00> : vector<2x64x64xf32>
    %119 = tpu.matmul %112, %115, %cst_30 {dimension_numbers = #tpu.dot_dimension_numbers<[2], [2], [1], [1], [0, 0, 0, 1, 1, 1], [0], [0]>} : vector<2x64x32xbf16>, vector<2x64x32xbf16>, vector<2x64x64xf32> -> vector<2x64x64xf32>
    "tpu.trace_stop"() : () -> ()
    %cst_31 = arith.constant dense<0xFF800000> : vector<2x64xf32>
    %120 = vector.multi_reduction <maximumf>, %119, %cst_31 [2] : vector<2x64x64xf32> to vector<2x64xf32>
    %121 = vector.shape_cast %120 : vector<2x64xf32> to vector<2x64x1xf32>
    %122 = vector.broadcast %121 : vector<2x64x1xf32> to vector<2x64x64xf32>
    %123 = arith.subf %119, %122 : vector<2x64x64xf32>
    %124 = math.exp %123 : vector<2x64x64xf32>
    %cst_32 = arith.constant dense<0.000000e+00> : vector<2x64xf32>
    %125 = vector.multi_reduction <add>, %124, %cst_32 [2] : vector<2x64x64xf32> to vector<2x64xf32>
    %126 = vector.shape_cast %125 : vector<2x64xf32> to vector<2x64x1xf32>
    %127 = tpu.reciprocal %126 {approx = true} : vector<2x64x1xf32> -> vector<2x64x1xf32>
    %128 = arith.mulf %126, %127 : vector<2x64x1xf32>
    %cst_33 = arith.constant 2.000000e+00 : f32
    %129 = vector.broadcast %cst_33 : f32 to vector<2x64x1xf32>
    %130 = arith.subf %129, %128 : vector<2x64x1xf32>
    %131 = arith.mulf %127, %130 : vector<2x64x1xf32>
    %132 = vector.broadcast %131 : vector<2x64x1xf32> to vector<2x64x64xf32>
    %133 = arith.mulf %124, %132 : vector<2x64x64xf32>
    %134 = arith.index_cast %arg1 : i32 to index
    %c0_34 = arith.constant 0 : index
    %135 = memref.load %arg6[%134, %c0_34] : memref<2x16xf32, #tpu.memory_space<smem>>
    %136 = vector.broadcast %135 : f32 to vector<2x64x64xf32>
    %137 = arith.mulf %61, %136 : vector<2x64x64xf32>
    %138 = arith.index_cast %arg1 : i32 to index
    %c4 = arith.constant 4 : index
    %139 = memref.load %arg6[%138, %c4] : memref<2x16xf32, #tpu.memory_space<smem>>
    %140 = vector.broadcast %139 : f32 to vector<2x64x64xf32>
    %141 = arith.mulf %85, %140 : vector<2x64x64xf32>
    %142 = arith.addf %137, %141 : vector<2x64x64xf32>
    %143 = arith.index_cast %arg1 : i32 to index
    %c8 = arith.constant 8 : index
    %144 = memref.load %arg6[%143, %c8] : memref<2x16xf32, #tpu.memory_space<smem>>
    %145 = vector.broadcast %144 : f32 to vector<2x64x64xf32>
    %146 = arith.mulf %109, %145 : vector<2x64x64xf32>
    %147 = arith.addf %142, %146 : vector<2x64x64xf32>
    %148 = arith.index_cast %arg1 : i32 to index
    %c12 = arith.constant 12 : index
    %149 = memref.load %arg6[%148, %c12] : memref<2x16xf32, #tpu.memory_space<smem>>
    %150 = vector.broadcast %149 : f32 to vector<2x64x64xf32>
    %151 = arith.mulf %133, %150 : vector<2x64x64xf32>
    %152 = arith.addf %147, %151 : vector<2x64x64xf32>
    %153 = arith.index_cast %arg1 : i32 to index
    %c1 = arith.constant 1 : index
    %154 = memref.load %arg6[%153, %c1] : memref<2x16xf32, #tpu.memory_space<smem>>
    %155 = vector.broadcast %154 : f32 to vector<2x64x64xf32>
    %156 = arith.mulf %61, %155 : vector<2x64x64xf32>
    %157 = arith.index_cast %arg1 : i32 to index
    %c5 = arith.constant 5 : index
    %158 = memref.load %arg6[%157, %c5] : memref<2x16xf32, #tpu.memory_space<smem>>
    %159 = vector.broadcast %158 : f32 to vector<2x64x64xf32>
    %160 = arith.mulf %85, %159 : vector<2x64x64xf32>
    %161 = arith.addf %156, %160 : vector<2x64x64xf32>
    %162 = arith.index_cast %arg1 : i32 to index
    %c9 = arith.constant 9 : index
    %163 = memref.load %arg6[%162, %c9] : memref<2x16xf32, #tpu.memory_space<smem>>
    %164 = vector.broadcast %163 : f32 to vector<2x64x64xf32>
    %165 = arith.mulf %109, %164 : vector<2x64x64xf32>
    %166 = arith.addf %161, %165 : vector<2x64x64xf32>
    %167 = arith.index_cast %arg1 : i32 to index
    %c13 = arith.constant 13 : index
    %168 = memref.load %arg6[%167, %c13] : memref<2x16xf32, #tpu.memory_space<smem>>
    %169 = vector.broadcast %168 : f32 to vector<2x64x64xf32>
    %170 = arith.mulf %133, %169 : vector<2x64x64xf32>
    %171 = arith.addf %166, %170 : vector<2x64x64xf32>
    %172 = arith.index_cast %arg1 : i32 to index
    %c2 = arith.constant 2 : index
    %173 = memref.load %arg6[%172, %c2] : memref<2x16xf32, #tpu.memory_space<smem>>
    %174 = vector.broadcast %173 : f32 to vector<2x64x64xf32>
    %175 = arith.mulf %61, %174 : vector<2x64x64xf32>
    %176 = arith.index_cast %arg1 : i32 to index
    %c6 = arith.constant 6 : index
    %177 = memref.load %arg6[%176, %c6] : memref<2x16xf32, #tpu.memory_space<smem>>
    %178 = vector.broadcast %177 : f32 to vector<2x64x64xf32>
    %179 = arith.mulf %85, %178 : vector<2x64x64xf32>
    %180 = arith.addf %175, %179 : vector<2x64x64xf32>
    %181 = arith.index_cast %arg1 : i32 to index
    %c10 = arith.constant 10 : index
    %182 = memref.load %arg6[%181, %c10] : memref<2x16xf32, #tpu.memory_space<smem>>
    %183 = vector.broadcast %182 : f32 to vector<2x64x64xf32>
    %184 = arith.mulf %109, %183 : vector<2x64x64xf32>
    %185 = arith.addf %180, %184 : vector<2x64x64xf32>
    %186 = arith.index_cast %arg1 : i32 to index
    %c14 = arith.constant 14 : index
    %187 = memref.load %arg6[%186, %c14] : memref<2x16xf32, #tpu.memory_space<smem>>
    %188 = vector.broadcast %187 : f32 to vector<2x64x64xf32>
    %189 = arith.mulf %133, %188 : vector<2x64x64xf32>
    %190 = arith.addf %185, %189 : vector<2x64x64xf32>
    %191 = arith.index_cast %arg1 : i32 to index
    %c3 = arith.constant 3 : index
    %192 = memref.load %arg6[%191, %c3] : memref<2x16xf32, #tpu.memory_space<smem>>
    %193 = vector.broadcast %192 : f32 to vector<2x64x64xf32>
    %194 = arith.mulf %61, %193 : vector<2x64x64xf32>
    %195 = arith.index_cast %arg1 : i32 to index
    %c7 = arith.constant 7 : index
    %196 = memref.load %arg6[%195, %c7] : memref<2x16xf32, #tpu.memory_space<smem>>
    %197 = vector.broadcast %196 : f32 to vector<2x64x64xf32>
    %198 = arith.mulf %85, %197 : vector<2x64x64xf32>
    %199 = arith.addf %194, %198 : vector<2x64x64xf32>
    %200 = arith.index_cast %arg1 : i32 to index
    %c11 = arith.constant 11 : index
    %201 = memref.load %arg6[%200, %c11] : memref<2x16xf32, #tpu.memory_space<smem>>
    %202 = vector.broadcast %201 : f32 to vector<2x64x64xf32>
    %203 = arith.mulf %109, %202 : vector<2x64x64xf32>
    %204 = arith.addf %199, %203 : vector<2x64x64xf32>
    %205 = arith.index_cast %arg1 : i32 to index
    %c15 = arith.constant 15 : index
    %206 = memref.load %arg6[%205, %c15] : memref<2x16xf32, #tpu.memory_space<smem>>
    %207 = vector.broadcast %206 : f32 to vector<2x64x64xf32>
    %208 = arith.mulf %133, %207 : vector<2x64x64xf32>
    %209 = arith.addf %204, %208 : vector<2x64x64xf32>
    %210 = arith.addf %152, %171 : vector<2x64x64xf32>
    %211 = arith.addf %210, %190 : vector<2x64x64xf32>
    %212 = arith.addf %211, %209 : vector<2x64x64xf32>
    %cst_35 = arith.constant 2.500000e-01 : f32
    %213 = vector.broadcast %cst_35 : f32 to vector<2x64x64xf32>
    %214 = arith.mulf %212, %213 : vector<2x64x64xf32>
    %215 = arith.subf %152, %214 : vector<2x64x64xf32>
    %216 = arith.subf %171, %214 : vector<2x64x64xf32>
    %217 = arith.subf %190, %214 : vector<2x64x64xf32>
    %218 = arith.subf %209, %214 : vector<2x64x64xf32>
    %219 = arith.mulf %215, %215 : vector<2x64x64xf32>
    %220 = arith.mulf %216, %216 : vector<2x64x64xf32>
    %221 = arith.addf %219, %220 : vector<2x64x64xf32>
    %222 = arith.mulf %217, %217 : vector<2x64x64xf32>
    %223 = arith.addf %221, %222 : vector<2x64x64xf32>
    %224 = arith.mulf %218, %218 : vector<2x64x64xf32>
    %225 = arith.addf %223, %224 : vector<2x64x64xf32>
    %cst_36 = arith.constant 2.500000e-01 : f32
    %226 = vector.broadcast %cst_36 : f32 to vector<2x64x64xf32>
    %227 = arith.mulf %225, %226 : vector<2x64x64xf32>
    %cst_37 = arith.constant 9.99999974E-6 : f32
    %228 = vector.broadcast %cst_37 : f32 to vector<2x64x64xf32>
    %229 = arith.addf %227, %228 : vector<2x64x64xf32>
    %230 = math.rsqrt %229 : vector<2x64x64xf32>
    %231 = arith.mulf %215, %230 : vector<2x64x64xf32>
    %232 = arith.index_cast %arg1 : i32 to index
    %c0_38 = arith.constant 0 : index
    %233 = memref.load %arg7[%232, %c0_38] : memref<2x4xf32, #tpu.memory_space<smem>>
    %234 = vector.broadcast %233 : f32 to vector<2x64x64xf32>
    %235 = arith.mulf %231, %234 : vector<2x64x64xf32>
    %236 = arith.index_cast %arg1 : i32 to index
    %c0_39 = arith.constant 0 : index
    %237 = memref.load %arg8[%236, %c0_39] : memref<2x4xf32, #tpu.memory_space<smem>>
    %238 = vector.broadcast %237 : f32 to vector<2x64x64xf32>
    %239 = arith.addf %235, %238 : vector<2x64x64xf32>
    %240 = arith.truncf %239 : vector<2x64x64xf32> to vector<2x64x64xbf16>
    "tpu.trace_start"() <{level = 10 : i32, message = "bij,bjd->bid"}> : () -> ()
    %cst_40 = arith.constant dense<0.000000e+00> : vector<2x64x32xf32>
    %241 = tpu.matmul %240, %46, %cst_40 {dimension_numbers = #tpu.dot_dimension_numbers<[2], [1], [1], [2], [0, 0, 0, 1, 1, 2], [0], [0]>} : vector<2x64x64xbf16>, vector<2x64x32xbf16>, vector<2x64x32xf32> -> vector<2x64x32xf32>
    "tpu.trace_stop"() : () -> ()
    %242 = vector.shape_cast %241 : vector<2x64x32xf32> to vector<128x32xf32>
    %243 = arith.mulf %216, %230 : vector<2x64x64xf32>
    %244 = arith.index_cast %arg1 : i32 to index
    %c1_41 = arith.constant 1 : index
    %245 = memref.load %arg7[%244, %c1_41] : memref<2x4xf32, #tpu.memory_space<smem>>
    %246 = vector.broadcast %245 : f32 to vector<2x64x64xf32>
    %247 = arith.mulf %243, %246 : vector<2x64x64xf32>
    %248 = arith.index_cast %arg1 : i32 to index
    %c1_42 = arith.constant 1 : index
    %249 = memref.load %arg8[%248, %c1_42] : memref<2x4xf32, #tpu.memory_space<smem>>
    %250 = vector.broadcast %249 : f32 to vector<2x64x64xf32>
    %251 = arith.addf %247, %250 : vector<2x64x64xf32>
    %252 = arith.truncf %251 : vector<2x64x64xf32> to vector<2x64x64xbf16>
    "tpu.trace_start"() <{level = 10 : i32, message = "bij,bjd->bid"}> : () -> ()
    %cst_43 = arith.constant dense<0.000000e+00> : vector<2x64x32xf32>
    %253 = tpu.matmul %252, %70, %cst_43 {dimension_numbers = #tpu.dot_dimension_numbers<[2], [1], [1], [2], [0, 0, 0, 1, 1, 2], [0], [0]>} : vector<2x64x64xbf16>, vector<2x64x32xbf16>, vector<2x64x32xf32> -> vector<2x64x32xf32>
    "tpu.trace_stop"() : () -> ()
    %254 = vector.shape_cast %253 : vector<2x64x32xf32> to vector<128x32xf32>
    %255 = arith.mulf %217, %230 : vector<2x64x64xf32>
    %256 = arith.index_cast %arg1 : i32 to index
    %c2_44 = arith.constant 2 : index
    %257 = memref.load %arg7[%256, %c2_44] : memref<2x4xf32, #tpu.memory_space<smem>>
    %258 = vector.broadcast %257 : f32 to vector<2x64x64xf32>
    %259 = arith.mulf %255, %258 : vector<2x64x64xf32>
    %260 = arith.index_cast %arg1 : i32 to index
    %c2_45 = arith.constant 2 : index
    %261 = memref.load %arg8[%260, %c2_45] : memref<2x4xf32, #tpu.memory_space<smem>>
    %262 = vector.broadcast %261 : f32 to vector<2x64x64xf32>
    %263 = arith.addf %259, %262 : vector<2x64x64xf32>
    %264 = arith.truncf %263 : vector<2x64x64xf32> to vector<2x64x64xbf16>
    "tpu.trace_start"() <{level = 10 : i32, message = "bij,bjd->bid"}> : () -> ()
    %cst_46 = arith.constant dense<0.000000e+00> : vector<2x64x32xf32>
    %265 = tpu.matmul %264, %94, %cst_46 {dimension_numbers = #tpu.dot_dimension_numbers<[2], [1], [1], [2], [0, 0, 0, 1, 1, 2], [0], [0]>} : vector<2x64x64xbf16>, vector<2x64x32xbf16>, vector<2x64x32xf32> -> vector<2x64x32xf32>
    "tpu.trace_stop"() : () -> ()
    %266 = vector.shape_cast %265 : vector<2x64x32xf32> to vector<128x32xf32>
    %267 = arith.mulf %218, %230 : vector<2x64x64xf32>
    %268 = arith.index_cast %arg1 : i32 to index
    %c3_47 = arith.constant 3 : index
    %269 = memref.load %arg7[%268, %c3_47] : memref<2x4xf32, #tpu.memory_space<smem>>
    %270 = vector.broadcast %269 : f32 to vector<2x64x64xf32>
    %271 = arith.mulf %267, %270 : vector<2x64x64xf32>
    %272 = arith.index_cast %arg1 : i32 to index
    %c3_48 = arith.constant 3 : index
    %273 = memref.load %arg8[%272, %c3_48] : memref<2x4xf32, #tpu.memory_space<smem>>
    %274 = vector.broadcast %273 : f32 to vector<2x64x64xf32>
    %275 = arith.addf %271, %274 : vector<2x64x64xf32>
    %276 = arith.truncf %275 : vector<2x64x64xf32> to vector<2x64x64xbf16>
    "tpu.trace_start"() <{level = 10 : i32, message = "bij,bjd->bid"}> : () -> ()
    %cst_49 = arith.constant dense<0.000000e+00> : vector<2x64x32xf32>
    %277 = tpu.matmul %276, %118, %cst_49 {dimension_numbers = #tpu.dot_dimension_numbers<[2], [1], [1], [2], [0, 0, 0, 1, 1, 2], [0], [0]>} : vector<2x64x64xbf16>, vector<2x64x32xbf16>, vector<2x64x32xf32> -> vector<2x64x32xf32>
    "tpu.trace_stop"() : () -> ()
    %278 = vector.shape_cast %277 : vector<2x64x32xf32> to vector<128x32xf32>
    %279 = tpu.concatenate %242, %254, %266, %278 in 1 : vector<128x32xf32>, vector<128x32xf32>, vector<128x32xf32>, vector<128x32xf32> -> vector<128x128xf32>
    %280 = arith.truncf %279 : vector<128x128xf32> to vector<128x128xbf16>
    %c0_50 = arith.constant 0 : index
    %c0_51 = arith.constant 0 : index
    %c0_52 = arith.constant 0 : index
    %281 = vector.load %arg9[%c0_50, %c0_51, %c0_52] : memref<1x128x128xbf16, #tpu.memory_space<vmem>>, vector<1x128x128xbf16>
    %282 = vector.shape_cast %281 : vector<1x128x128xbf16> to vector<128x128xbf16>
    %cst_53 = arith.constant dense<0.000000e+00> : vector<128x128xf32>
    %283 = tpu.matmul %280, %282, %cst_53 {dimension_numbers = #tpu.dot_dimension_numbers<[1], [0], [0], [1], [0, 0, 1, 1], [], []>} : vector<128x128xbf16>, vector<128x128xbf16>, vector<128x128xf32> -> vector<128x128xf32>
    %c0_54 = arith.constant 0 : index
    %c0_55 = arith.constant 0 : index
    %c0_56 = arith.constant 0 : index
    %284 = vector.load %arg10[%c0_54, %c0_55, %c0_56] : memref<1x1x128xf32, #tpu.memory_space<vmem>>, vector<1x1x128xf32>
    %285 = vector.shape_cast %284 : vector<1x1x128xf32> to vector<1x128xf32>
    %286 = vector.broadcast %285 : vector<1x128xf32> to vector<128x128xf32>
    %287 = arith.addf %283, %286 : vector<128x128xf32>
    %288 = arith.addf %287, %4 : vector<128x128xf32>
    %c0_57 = arith.constant 0 : index
    %c0_58 = arith.constant 0 : index
    %c0_59 = arith.constant 0 : index
    %289 = vector.load %arg11[%c0_57, %c0_58, %c0_59] : memref<1x1x128xf32, #tpu.memory_space<vmem>>, vector<1x1x128xf32>
    %290 = vector.shape_cast %289 : vector<1x1x128xf32> to vector<1x128xf32>
    %c0_60 = arith.constant 0 : index
    %c0_61 = arith.constant 0 : index
    %c0_62 = arith.constant 0 : index
    %291 = vector.load %arg12[%c0_60, %c0_61, %c0_62] : memref<1x1x128xf32, #tpu.memory_space<vmem>>, vector<1x1x128xf32>
    %292 = vector.shape_cast %291 : vector<1x1x128xf32> to vector<1x128xf32>
    %cst_63 = arith.constant dense<0.000000e+00> : vector<128xf32>
    %293 = vector.multi_reduction <add>, %288, %cst_63 [1] : vector<128x128xf32> to vector<128xf32>
    %294 = vector.shape_cast %293 : vector<128xf32> to vector<128x1xf32>
    %cst_64 = arith.constant 1.280000e+02 : f32
    %295 = vector.broadcast %cst_64 : f32 to vector<128x1xf32>
    %296 = arith.divf %294, %295 : vector<128x1xf32>
    %297 = vector.broadcast %296 : vector<128x1xf32> to vector<128x128xf32>
    %298 = arith.subf %288, %297 : vector<128x128xf32>
    %299 = arith.mulf %298, %298 : vector<128x128xf32>
    %cst_65 = arith.constant dense<0.000000e+00> : vector<128xf32>
    %300 = vector.multi_reduction <add>, %299, %cst_65 [1] : vector<128x128xf32> to vector<128xf32>
    %301 = vector.shape_cast %300 : vector<128xf32> to vector<128x1xf32>
    %cst_66 = arith.constant 1.280000e+02 : f32
    %302 = vector.broadcast %cst_66 : f32 to vector<128x1xf32>
    %303 = arith.divf %301, %302 : vector<128x1xf32>
    %cst_67 = arith.constant 9.99999974E-6 : f32
    %304 = vector.broadcast %cst_67 : f32 to vector<128x1xf32>
    %305 = arith.addf %303, %304 : vector<128x1xf32>
    %306 = math.rsqrt %305 : vector<128x1xf32>
    %307 = vector.broadcast %306 : vector<128x1xf32> to vector<128x128xf32>
    %308 = arith.mulf %298, %307 : vector<128x128xf32>
    %309 = vector.broadcast %290 : vector<1x128xf32> to vector<128x128xf32>
    %310 = arith.mulf %308, %309 : vector<128x128xf32>
    %311 = vector.broadcast %292 : vector<1x128xf32> to vector<128x128xf32>
    %312 = arith.addf %310, %311 : vector<128x128xf32>
    %313 = arith.truncf %312 : vector<128x128xf32> to vector<128x128xbf16>
    %c0_68 = arith.constant 0 : index
    %c0_69 = arith.constant 0 : index
    %c0_70 = arith.constant 0 : index
    %314 = vector.load %arg13[%c0_68, %c0_69, %c0_70] : memref<1x128x256xbf16, #tpu.memory_space<vmem>>, vector<1x128x256xbf16>
    %315 = vector.shape_cast %314 : vector<1x128x256xbf16> to vector<128x256xbf16>
    %cst_71 = arith.constant dense<0.000000e+00> : vector<128x256xf32>
    %316 = tpu.matmul %313, %315, %cst_71 {dimension_numbers = #tpu.dot_dimension_numbers<[1], [0], [0], [1], [0, 0, 1, 1], [], []>} : vector<128x128xbf16>, vector<128x256xbf16>, vector<128x256xf32> -> vector<128x256xf32>
    %c0_72 = arith.constant 0 : index
    %c0_73 = arith.constant 0 : index
    %c0_74 = arith.constant 0 : index
    %317 = vector.load %arg14[%c0_72, %c0_73, %c0_74] : memref<1x1x256xf32, #tpu.memory_space<vmem>>, vector<1x1x256xf32>
    %318 = vector.shape_cast %317 : vector<1x1x256xf32> to vector<1x256xf32>
    %319 = vector.broadcast %318 : vector<1x256xf32> to vector<128x256xf32>
    %320 = arith.addf %316, %319 : vector<128x256xf32>
    %cst_75 = arith.constant 5.000000e-01 : f32
    %321 = vector.broadcast %cst_75 : f32 to vector<128x256xf32>
    %322 = arith.mulf %321, %320 : vector<128x256xf32>
    %cst_76 = arith.constant 0.707106769 : f32
    %323 = vector.broadcast %cst_76 : f32 to vector<128x256xf32>
    %324 = arith.mulf %320, %323 : vector<128x256xf32>
    %325 = math.erf %324 : vector<128x256xf32>
    %cst_77 = arith.constant 1.000000e+00 : f32
    %326 = vector.broadcast %cst_77 : f32 to vector<128x256xf32>
    %327 = arith.addf %326, %325 : vector<128x256xf32>
    %328 = arith.mulf %322, %327 : vector<128x256xf32>
    %329 = arith.truncf %328 : vector<128x256xf32> to vector<128x256xbf16>
    %c0_78 = arith.constant 0 : index
    %c0_79 = arith.constant 0 : index
    %c0_80 = arith.constant 0 : index
    %330 = vector.load %arg15[%c0_78, %c0_79, %c0_80] : memref<1x256x128xbf16, #tpu.memory_space<vmem>>, vector<1x256x128xbf16>
    %331 = vector.shape_cast %330 : vector<1x256x128xbf16> to vector<256x128xbf16>
    %cst_81 = arith.constant dense<0.000000e+00> : vector<128x128xf32>
    %332 = tpu.matmul %329, %331, %cst_81 {dimension_numbers = #tpu.dot_dimension_numbers<[1], [0], [0], [1], [0, 0, 1, 1], [], []>} : vector<128x256xbf16>, vector<256x128xbf16>, vector<128x128xf32> -> vector<128x128xf32>
    %c0_82 = arith.constant 0 : index
    %c0_83 = arith.constant 0 : index
    %c0_84 = arith.constant 0 : index
    %333 = vector.load %arg16[%c0_82, %c0_83, %c0_84] : memref<1x1x128xf32, #tpu.memory_space<vmem>>, vector<1x1x128xf32>
    %334 = vector.shape_cast %333 : vector<1x1x128xf32> to vector<1x128xf32>
    %335 = vector.broadcast %334 : vector<1x128xf32> to vector<128x128xf32>
    %336 = arith.addf %332, %335 : vector<128x128xf32>
    %337 = arith.addf %336, %288 : vector<128x128xf32>
    %338 = vector.shape_cast %337 : vector<128x128xf32> to vector<2x64x128xf32>
    %c0_85 = arith.constant 0 : index
    %c0_86 = arith.constant 0 : index
    %c0_87 = arith.constant 0 : index
    %339 = vector.load %arg17[%c0_85, %c0_86, %c0_87] : memref<2x64x128xf32, #tpu.memory_space<vmem>>, vector<2x64x128xf32>
    tpu.vector_store %arg17[%c0_85, %c0_86, %c0_87], %338 {strides = array<i32>} : memref<2x64x128xf32, #tpu.memory_space<vmem>>, vector<2x64x128xf32>,
    return
  }
  func.func @transform_0(%arg0: i32, %arg1: i32) -> (i32, i32, i32) {
    %c0_i32 = arith.constant 0 : i32
    %c0_i32_0 = arith.constant 0 : i32
    %c0_i32_1 = arith.constant 0 : i32
    return %arg0, %c0_i32, %c0_i32_0 : i32, i32, i32
  }
  func.func @transform_1(%arg0: i32, %arg1: i32) -> (i32, i32, i32) {
    %c0_i32 = arith.constant 0 : i32
    %c0_i32_0 = arith.constant 0 : i32
    %c0_i32_1 = arith.constant 0 : i32
    return %arg1, %c0_i32, %c0_i32_0 : i32, i32, i32
  }
  func.func @transform_2(%arg0: i32, %arg1: i32) -> (i32, i32, i32) {
    %c0_i32 = arith.constant 0 : i32
    %c0_i32_0 = arith.constant 0 : i32
    %c0_i32_1 = arith.constant 0 : i32
    return %arg1, %c0_i32, %c0_i32_0 : i32, i32, i32
  }
  func.func @transform_3(%arg0: i32, %arg1: i32) -> (i32, i32, i32) {
    %c0_i32 = arith.constant 0 : i32
    %c0_i32_0 = arith.constant 0 : i32
    %c0_i32_1 = arith.constant 0 : i32
    return %arg1, %c0_i32, %c0_i32_0 : i32, i32, i32
  }
  func.func @transform_4(%arg0: i32, %arg1: i32) -> (i32, i32) {
    %c0_i32 = arith.constant 0 : i32
    %c0_i32_0 = arith.constant 0 : i32
    %c0_i32_1 = arith.constant 0 : i32
    return %c0_i32, %c0_i32_0 : i32, i32
  }
  func.func @transform_5(%arg0: i32, %arg1: i32) -> (i32, i32) {
    %c0_i32 = arith.constant 0 : i32
    %c0_i32_0 = arith.constant 0 : i32
    %c0_i32_1 = arith.constant 0 : i32
    return %c0_i32, %c0_i32_0 : i32, i32
  }
  func.func @transform_6(%arg0: i32, %arg1: i32) -> (i32, i32) {
    %c0_i32 = arith.constant 0 : i32
    %c0_i32_0 = arith.constant 0 : i32
    %c0_i32_1 = arith.constant 0 : i32
    return %c0_i32, %c0_i32_0 : i32, i32
  }
  func.func @transform_7(%arg0: i32, %arg1: i32) -> (i32, i32, i32) {
    %c0_i32 = arith.constant 0 : i32
    %c0_i32_0 = arith.constant 0 : i32
    %c0_i32_1 = arith.constant 0 : i32
    return %arg1, %c0_i32, %c0_i32_0 : i32, i32, i32
  }
  func.func @transform_8(%arg0: i32, %arg1: i32) -> (i32, i32, i32) {
    %c0_i32 = arith.constant 0 : i32
    %c0_i32_0 = arith.constant 0 : i32
    %c0_i32_1 = arith.constant 0 : i32
    return %arg1, %c0_i32, %c0_i32_0 : i32, i32, i32
  }
  func.func @transform_9(%arg0: i32, %arg1: i32) -> (i32, i32, i32) {
    %c0_i32 = arith.constant 0 : i32
    %c0_i32_0 = arith.constant 0 : i32
    %c0_i32_1 = arith.constant 0 : i32
    return %arg1, %c0_i32, %c0_i32_0 : i32, i32, i32
  }
  func.func @transform_10(%arg0: i32, %arg1: i32) -> (i32, i32, i32) {
    %c0_i32 = arith.constant 0 : i32
    %c0_i32_0 = arith.constant 0 : i32
    %c0_i32_1 = arith.constant 0 : i32
    return %arg1, %c0_i32, %c0_i32_0 : i32, i32, i32
  }
  func.func @transform_11(%arg0: i32, %arg1: i32) -> (i32, i32, i32) {
    %c0_i32 = arith.constant 0 : i32
    %c0_i32_0 = arith.constant 0 : i32
    %c0_i32_1 = arith.constant 0 : i32
    return %arg1, %c0_i32, %c0_i32_0 : i32, i32, i32
  }
  func.func @transform_12(%arg0: i32, %arg1: i32) -> (i32, i32, i32) {
    %c0_i32 = arith.constant 0 : i32
    %c0_i32_0 = arith.constant 0 : i32
    %c0_i32_1 = arith.constant 0 : i32
    return %arg1, %c0_i32, %c0_i32_0 : i32, i32, i32
  }
  func.func @transform_13(%arg0: i32, %arg1: i32) -> (i32, i32, i32) {
    %c0_i32 = arith.constant 0 : i32
    %c0_i32_0 = arith.constant 0 : i32
    %c0_i32_1 = arith.constant 0 : i32
    return %arg1, %c0_i32, %c0_i32_0 : i32, i32, i32
  }
  func.func @transform_14(%arg0: i32, %arg1: i32) -> (i32, i32, i32) {
    %c0_i32 = arith.constant 0 : i32
    %c0_i32_0 = arith.constant 0 : i32
    %c0_i32_1 = arith.constant 0 : i32
    return %arg1, %c0_i32, %c0_i32_0 : i32, i32, i32
  }
  func.func @transform_15(%arg0: i32, %arg1: i32) -> (i32, i32, i32) {
    %c0_i32 = arith.constant 0 : i32
    %c0_i32_0 = arith.constant 0 : i32
    %c0_i32_1 = arith.constant 0 : i32
    return %arg0, %c0_i32, %c0_i32_0 : i32, i32, i32
  }
}

</mosaic_0001>

<bundles_post_ra>
// kernel: tpu_custom_call.1
= control target key start
LH: loop header
LB: loop body
LE: loop exit
PB: predicated region body
PF: predicated region fallthrough
CT: control target
= control target key end

     0   :  { %s15695_s0 = inlined_call_operand.hbm [shape: f32[2,64,128], index: 0, kind: input, shape index: {}]   ;;  %s15696_s1 = inlined_call_operand.hbm [shape: f32[2,1,128], index: 1, kind: input, shape index: {}]   ;;  %s15697_s2 = inlined_call_operand.hbm [shape: f32[2,1,128], index: 2, kind: input, shape index: {}]   ;;  %s15698_s3 = inlined_call_operand.hbm [shape: bf16[2,128,384], index: 3, kind: input, shape index: {}]   ;;  %s15699_s4 = inlined_call_operand.vmem [shape: f32[2,16], index: 4, kind: input, shape index: {}]   ;;  %s15700_s5 = inlined_call_operand.hbm [shape: f32[2,4], index: 5, kind: input, shape index: {}]   ;;  %s15701_s6 = inlined_call_operand.hbm [shape: f32[2,4], index: 6, kind: input, shape index: {}]   ;;  %s15702_s7 = inlined_call_operand.hbm [shape: bf16[2,128,128], index: 7, kind: input, shape index: {}]   ;;  %s15703_s8 = inlined_call_operand.hbm [shape: f32[2,1,128], index: 8, kind: input, shape index: {}]   ;;  %s15704_s9 = inlined_call_operand.vmem [shape: f32[2,1,128], index: 9, kind: input, shape index: {}]   ;;  %s15705_s10 = inlined_call_operand.hbm [shape: f32[2,1,128], index: 10, kind: input, shape index: {}]   ;;  %s15706_s11 = inlined_call_operand.hbm [shape: bf16[2,128,256], index: 11, kind: input, shape index: {}]   ;;  %s15707_s12 = inlined_call_operand.vmem [shape: f32[2,1,256], index: 12, kind: input, shape index: {}]   ;;  %s15708_s13 = inlined_call_operand.hbm [shape: bf16[2,256,128], index: 13, kind: input, shape index: {}]   ;;  %s15709_s14 = inlined_call_operand.vmem [shape: f32[2,1,128], index: 14, kind: input, shape index: {}]   ;;  %s15710_s15 = inlined_call_operand.hbm [shape: f32[2,64,128], index: 15, kind: output, shape index: {}]  }
   0x1   :  { %15893 = sst [smem:[#allocation135_spill]] %s15695_s0 }
   0x2   :  { %15894 = sst [smem:[#allocation136_spill]] %s15696_s1 }
   0x3   :  { %15895 = sst [smem:[#allocation137_spill]] %s15698_s3 }
   0x4   :  { %15896 = sst [smem:[#allocation138_spill]] %s15699_s4 }
   0x5   :  { %15897 = sst [smem:[#allocation139_spill]] %s15700_s5 }
   0x6   :  { %15898 = sst [smem:[#allocation140_spill]] %s15703_s8 }
   0x7   :  { %15899 = sst [smem:[#allocation141_spill]] %s15704_s9 }
   0x8   :  { %15900 = sst [smem:[#allocation142_spill]] %s15705_s10 }
   0x9   :  { %15901 = sst [smem:[#allocation143_spill]] %s15706_s11 }
   0xa   :  { %15902 = sst [smem:[#allocation144_spill]] %s15707_s12 }
   0xb   :  { %15903 = sst [smem:[#allocation145_spill]] %s15709_s14 }
   0xc   :  { %15904 = sst [smem:[#allocation146_spill]] %s15710_s15 }
   0xd   :  { %20 = vsyncpa [#allocation3], 0 }
   0xe   :  { %21 = vsyncpa [#allocation8], 0 }
   0xf   :  { %23 = vsyncpa [#allocation8 + $0x1], 0 }
  0x10   :  { %24 = vsyncpa [#allocation11], 0 }
  0x11   :  { %26 = vsyncpa [#allocation11 + $0x1], 0 }
  0x12   :  { %27 = vsyncpa [#allocation6], 0 }
  0x13   :  { %28 = vsyncpa [#allocation5], 0 }
  0x14   :  { %29 = vsyncpa [#allocation15], 0 }
  0x15   :  { %30 = vsyncpa [#allocation18], 0 }
  0x16   :  { %32 = vsyncpa [#allocation18 + $0x1], 0 }
  0x17   :  { %33 = vsyncpa [#allocation21], 0 }
  0x18   :  { %35 = vsyncpa [#allocation21 + $0x1], 0 }
  0x19   :  { %36 = vsyncpa [#allocation4], 0  ;;  %s9617_s18 = smov 0   ;;  %s9619_s19 = smov 0  }
  0x1a   :  { %s9621_s20 = smov 0   ;;  %s9623_s21 = smov 0  }
  0x1b   :  { %s9625_s22 = smov 0   ;;  %s9627_s23 = smov 0  }
  0x1c LB: > { %15905 = sst [smem:[#allocation34_spill]] %s9506_s20  ;;  %s51_s24 = sadd.s32 1, %s9514_s22  ;;  %s9518_s23 = sphi %s9627_s23, %s42_s23   ;;  %s9514_s22 = sphi %s9625_s22, %s16539_s22   ;;  %s9510_s21 = sphi %s9623_s21, %s16538_s21   ;;  %s9506_s20 = sphi %s9621_s20, %s16534_s20   ;;  %s9502_s19 = sphi %s9619_s19, %s16537_s19   ;;  %s9498_s18 = sphi %s9617_s18, %s16536_s18  }
  0x1d   : > { %15906 = sst [smem:[#allocation35_spill]] %s9510_s21  ;;  %s87_s25 = sadd.s32 1, %s9506_s20 }
  0x1e   : > { %p52_p0 = scmp.ge.s32.totalorder %s51_s24, 2  ;;  %p94_p1 = scmp.ne.s32.totalorder %s9506_s20, %s9502_s19 }
  0x1f   : > { %p95_p2 = scmp.eq.s32.totalorder %s9518_s23, 0  ;;  %p8455_p4 = scmp.lt.s32.totalorder %s9518_s23, 2 }
  0x20   : > { %s16541_s24 = smov (%p52_p0, %s51_s24), 0  ;;  %s9662_s28 = sand.u32 1, %s9518_s23  }
  0x21   : > { %15907 = sst [smem:[#allocation36_spill]] %s16541_s24  ;;  %p9654_p3 = por %p95_p2, %p94_p1 }
  0x22   : > { %s84_s27 = ssub.s32 %s9514_s22, %s16541_s24  ;;  %s9665_s29 = sand.u32 1, %s9506_s20  }
  0x23   : > { %p85_p5 = scmp.eq.s32.totalorder %s84_s27, 0  ;;  %s15909_s1 = sld [smem:[#allocation136_spill]] }
  0x24   : > { %s524_s12 = scalar_lea.vmem [#allocation7], %s9665_s29  ;;  %p9677_p6 = pnand %p8455_p4, %p9654_p3 }
  0x25   : > { %s9672_s15 = scalar_select %p85_p5, %s9506_s20, %s87_s25  }
  0x26   : > { %s531_s24 = sshll.u32 %s524_s12, 4  ;;  %s8374_s30 = smul.u32 192, %s9665_s29  ;;  %s532_s24 = int_to_ptr.vmem [resolvable:$true] %s531_s24 }
  0x27   : > { %15910 = sst [smem:[#allocation37_spill]] %s9672_s15  ;;  %s8375_s16 = smul.u32 192, %s9514_s22 }
  0x28   : > { %s15714_s25 = scalar_lea.sflag [#allocation8], %s9662_s28  ;;  %s15912_s3 = sld [smem:[#allocation137_spill]] }
  0x29   : > { %s527_s17 = scalar_lea.hbm %s15909_s1, %s9514_s22  ;;  %s559_s15 = scalar_lea.vmem [#allocation10], %s8374_s30 }
  0x2a   : > { %s529_s14 = sshll.u32 %s527_s17, 4  ;;  %s567_s20 = sshll.u32 %s559_s15, 4  ;;  %s530_s14 = int_to_ptr.hbm [resolvable:$true] %s529_s14  ;;  %s568_s20 = int_to_ptr.vmem [resolvable:$true] %s567_s20 }
  0x2b   : > { %8429 = dma.hbm_to_vmem [thread:$0]  (!%p9677_p6), %s530_s14, 16, %s532_s24, %s15714_s25  }
  0x2c   : > { %s15717_s9 = scalar_lea.sflag [#allocation11], %s9662_s28  ;;  %s9520_s21 = smov 192  }
  0x2d   : > { %s9521_s10 = smov 12   ;;  %s15913_s8 = sld [smem:[#allocation140_spill]] }
  0x2e   : > { %s564_s12 = scalar_lea.hbm %s15912_s3, %s8375_s16  ;;  %s602_s16 = scalar_lea.vmem [#allocation17], %s9665_s29 }
  0x2f   : > { %s565_s26 = sshll.u32 %s564_s12, 4  ;;  %s609_s17 = sshll.u32 %s602_s16, 4  ;;  %s566_s26 = int_to_ptr.hbm [resolvable:$true] %s565_s26  ;;  %s610_s17 = int_to_ptr.vmem [resolvable:$true] %s609_s17 }
  0x30   : > { %8435 = dma.hbm_to_vmem [thread:$0]  (!%p9677_p6), %s566_s26, 3072, %s568_s20, %s15717_s9, %s9520_s21, %s9520_s21, %s9521_s10  }
  0x31   : > { %s15715_s15 = scalar_lea.sflag [#allocation18], %s9662_s28  ;;  %s7926_s30 = sshll.u32 %s9665_s29, 7 }
  0x32   : > { %s8300_s25 = sshll.u32 %s9514_s22, 7  ;;  %s15914_s11 = sld [smem:[#allocation143_spill]] }
  0x33   : > { %s605_s1 = scalar_lea.hbm %s15913_s8, %s9514_s22  ;;  %s643_s26 = scalar_lea.vmem [#allocation20], %s7926_s30 }
  0x34   : > { %s607_s12 = sshll.u32 %s605_s1, 4  ;;  %s651_s14 = sshll.u32 %s643_s26, 4  ;;  %s608_s12 = int_to_ptr.hbm [resolvable:$true] %s607_s12  ;;  %s652_s14 = int_to_ptr.vmem [resolvable:$true] %s651_s14 }
  0x35   : > { %8441 = dma.hbm_to_vmem [thread:$0]  (!%p9677_p6), %s608_s12, 16, %s610_s17, %s15715_s15  }
  0x36   : > { %s15716_s24 = scalar_lea.sflag [#allocation21], %s9662_s28  ;;  %s9522_s1 = smov 128  }
  0x37   : > { %s9523_s16 = smov 8   ;;  %s677_s12 = scalar_lea.hbm %s15708_s13, %s8300_s25 }
  0x38   : > { %s648_s20 = scalar_lea.hbm %s15914_s11, %s8300_s25  ;;  %s678_s10 = sshll.u32 %s677_s12, 4  ;;  %s9722_s10 = int_to_ptr.hbm [resolvable:$true] %s678_s10 }
  0x39   : > { %s649_s21 = sshll.u32 %s648_s20, 4  ;;  %s672_s20 = scalar_lea.vmem [#allocation22], %s7926_s30  ;;  %s650_s21 = int_to_ptr.hbm [resolvable:$true] %s649_s21 }
  0x3a   : > { %8447 = dma.hbm_to_vmem [thread:$0]  (!%p9677_p6), %s650_s21, 2048, %s652_s14, %s15716_s24, %s9522_s1, %s9522_s1, %s9523_s16  }
  0x3b   : > { %s680_s26 = sshll.u32 %s672_s20, 4  ;;  %s9727_s15 = sadd.s32 4294967295, %s9518_s23   ;;  %s9724_s26 = int_to_ptr.vmem [resolvable:$true] %s680_s26 }
  0x3c   : > { %p100_p7 = scmp.ne.s32.totalorder %s9502_s19, %s9498_s18  ;;  %p101_p8 = scmp.eq.s32.totalorder %s9727_s15, 0 }
  0x3d   : > { %p7916_p9 = scmp.ge.s32.totalorder %s9518_s23, 1  ;;  %p460_p10 = scmp.lt.s32.totalorder %s9518_s23, 3 }
  0x3e   : > { %p9736_p11 = por %p101_p8, %p100_p7  ;;  %s15916_s0 = sld [smem:[#allocation135_spill]] }
  0x3f   : > { %p9743_p12 = pnand %p7916_p9, %p460_p10  ;;  %s15918_s4 = sld [smem:[#allocation138_spill]] }
  0x40   : > { %s9524_s20 = smov [#allocation2]   ;;  %s15919_s5 = sld [smem:[#allocation139_spill]] }
  0x41   : > { %p8413_p13 = pneg %p9743_p12  ;;  %s477_s24 = sshll.u32 %s9524_s20, 4  ;;  %s478_s24 = int_to_ptr.vmem [resolvable:$true] %s477_s24 }
  0x42   : > { %s9525_s17 = smov [#allocation12]   ;;  %s9526_s18 = smov [#allocation13]  }
  0x43   : > { %p8414_p0 = pnand %p8413_p13, %p101_p8  ;;  %s9527_s25 = smov [#allocation14]  }
  0x44   : > { %s475_s14 = sshll.u32 %s15916_s0, 4  ;;  %s544_s8 = scalar_lea.hbm %s15697_s2, %s9514_s22  ;;  %s476_s14 = int_to_ptr.hbm [resolvable:$true] %s475_s14 }
  0x45   : > { %s490_s12 = sshll.u32 %s15918_s4, 4  ;;  %s510_s4 = sshll.u32 %s15701_s6, 4  ;;  %s491_s12 = int_to_ptr.vmem [resolvable:$true] %s490_s12  ;;  %s511_s4 = int_to_ptr.hbm [resolvable:$true] %s510_s4 }
  0x46   : > { %s500_s9 = sshll.u32 %s15919_s5, 4  ;;  %s541_s11 = scalar_lea.vmem [#allocation9], %s9665_s29  ;;  %s501_s9 = int_to_ptr.hbm [resolvable:$true] %s500_s9 }
  0x47   : > { %8416 = dma.hbm_to_vmem [thread:$0]  (!%p8414_p0), %s476_s14, 2048, %s478_s24, [#allocation3], %s9522_s1, %s9522_s1, %s9523_s16  }
  0x48   : > { %8419 = dma.vmem_to_smem (!%p8414_p0), %s491_s12, 32, %s9525_s17, [#allocation6]  }
  0x49   : > { %8422 = dma.hbm_to_smem (!%p8414_p0), %s501_s9, 32, %s9526_s18, [#allocation5]  }
  0x4a   : > { %8425 = dma.hbm_to_smem (!%p8414_p0), %s511_s4, 32, %s9527_s25, [#allocation15]  }
  0x4b   : > { %s548_s24 = sshll.u32 %s541_s11, 4  ;;  %s546_s1 = sshll.u32 %s544_s8, 4  ;;  %s549_s24 = int_to_ptr.vmem [resolvable:$true] %s548_s24  ;;  %s547_s1 = int_to_ptr.hbm [resolvable:$true] %s546_s1 }
  0x4c   : > { %s7923_s9 = sshll.u32 %s9665_s29, 6  ;;  %s15920_s0 = scalar_lea.sflag [#allocation8], %s9662_s28 }
  0x4d   : > { %8432 = dma.hbm_to_vmem [thread:$0]  (!%p9677_p6), %s547_s1, 16, %s549_s24, %s15920_s0  }
  0x4e   : > { %s8299_s16 = sshll.u32 %s9514_s22, 6  ;;  %s581_s11 = scalar_lea.vmem [#allocation16], %s7923_s9 }
  0x4f   : > { %s586_s5 = scalar_lea.hbm %s15702_s7, %s8299_s16  ;;  %s589_s8 = sshll.u32 %s581_s11, 4  ;;  %s590_s8 = int_to_ptr.vmem [resolvable:$true] %s589_s8 }
  0x50   : > { %s587_s12 = sshll.u32 %s586_s5, 4  ;;  %s9528_s17 = smov 64   ;;  %s588_s12 = int_to_ptr.hbm [resolvable:$true] %s587_s12 }
  0x51   : > { %s9529_s18 = smov 4   ;;  %s15921_s20 = scalar_lea.sflag [#allocation11], %s9662_s28 }
  0x52   : > { %8438 = dma.hbm_to_vmem [thread:$0]  (!%p9677_p6), %s588_s12, 1024, %s590_s8, %s15921_s20, %s9528_s17, %s9528_s17, %s9529_s18  }
  0x53   : > { %s15922_s24 = sld [smem:[#allocation142_spill]]  ;;  %s625_s0 = scalar_lea.vmem [#allocation19], %s9665_s29 }
  0x54   : > { %s632_s16 = sshll.u32 %s625_s0, 4  ;;  %s15923_s9 = scalar_lea.sflag [#allocation18], %s9662_s28  ;;  %s633_s16 = int_to_ptr.vmem [resolvable:$true] %s632_s16 }
  0x55   : > { %s15924_s4 = scalar_lea.sflag [#allocation21], %s9662_s28 }
  0x56   : > { %8450 = dma.hbm_to_vmem [thread:$0]  (!%p9677_p6), %s9722_s10, 2048, %s9724_s26, %s15924_s4, %s9528_s17, %s9528_s17, %s9529_s18  }
  0x57   : > { %698 = sbr.rel (%p9743_p12) target bundleno = 2984 (0xba8), region = 80 }
  0x59   : > { %s628_s1 = scalar_lea.hbm %s15922_s24, %s9514_s22 }
  0x5a   : > { %s630_s14 = sshll.u32 %s628_s1, 4  ;;  %s631_s14 = int_to_ptr.hbm [resolvable:$true] %s630_s14 }
  0x5b   : > { %8444 = dma.hbm_to_vmem [thread:$0]  (!%p9677_p6), %s631_s14, 16, %s633_s16, %s15923_s9  }
  0x5c   : > { %9457 = dma.done.wait (%p101_p8), [#allocation3], 2048  }
  0x5d   : > { %9459 = vsyncadd (%p101_p8), [#allocation3], 4294965248  ;;  %s9803_s29 = sand.u32 1, %s9727_s15   ;;  %s9806_s5 = sand.u32 1, %s9502_s19  }
  0x5e   : > { %s706_s28 = scalar_lea.sflag [#allocation8], %s9803_s29  ;;  %s708_s27 = scalar_lea.vmem [#allocation7], %s9806_s5 }
  0x5f   : > { %9461 = dma.done.wait (%p9736_p11), %s706_s28, 32  }
  0x60   : > { %9463 = vsyncadd (%p9736_p11), %s706_s28, 4294967264  ;;  %s8376_s10 = smul.u32 192, %s9806_s5  ;;  %s717_s26 = scalar_lea.vmem [#allocation9], %s9806_s5 }
  0x61   : > { %s724_s3 = scalar_lea.sflag [#allocation11], %s9803_s29 }
  0x62   : > { %s9817_s11 = scalar_lea.vmem [#allocation10], %s8376_s10 }
  0x63   : > { %9465 = dma.done.wait (%p9736_p11), %s724_s3, 3072  }
  0x64   : > { %9467 = vsyncadd (%p9736_p11), %s724_s3, 4294964224 }
  0x65   : > { %9469 = dma.done.wait (%p101_p8), [#allocation6], 32  }
  0x66   : > { %9471 = vsyncadd (%p101_p8), [#allocation6], 4294967264 }
  0x67   : > { %9473 = dma.done.wait (%p101_p8), [#allocation5], 32  }
  0x68   : > { %9475 = vsyncadd (%p101_p8), [#allocation5], 4294967264 }
  0x69   : > { %9477 = dma.done.wait (%p101_p8), [#allocation15], 32  }
  0x6a   : > { %9479 = vsyncadd (%p101_p8), [#allocation15], 4294967264  ;;  %s7937_s8 = sshll.u32 %s9806_s5, 6 }
  0x6b   : > { %s9836_s12 = scalar_lea.vmem [#allocation16], %s7937_s8 }
  0x6c   : > { %9481 = dma.done.wait (%p9736_p11), %s724_s3, 1024  }
  0x6d   : > { %9483 = vsyncadd (%p9736_p11), %s724_s3, 4294966272  ;;  %s759_s17 = scalar_lea.sflag [#allocation18], %s9803_s29 }
  0x6e   : > { %9485 = dma.done.wait (%p9736_p11), %s759_s17, 32  }
  0x6f   : > { %9487 = vsyncadd (%p9736_p11), %s759_s17, 4294967264  ;;  %s7938_s20 = sshll.u32 %s9806_s5, 7  ;;  %s777_s30 = scalar_lea.sflag [#allocation21], %s9803_s29 }
  0x70   : > { %s9851_s24 = scalar_lea.vmem [#allocation20], %s7938_s20 }
  0x71   : > { %9489 = dma.done.wait (%p9736_p11), %s777_s30, 4096  }
  0x72   : > { %9491 = vsyncadd (%p9736_p11), %s777_s30, 4294963200  ;;  %s9857_s1 = scalar_lea.vmem [#allocation22], %s7938_s20 }
  0x73   : > { %796 = sfence }
  0x74   : > { %s15925_s0 = sld [smem:[#allocation35_spill]] }
  0x75   : > { %s15926_s4 = sld [smem:[#allocation141_spill]] }
  0x76   : > { %s15927_s3 = sld [smem:[#allocation144_spill]] }
  0x7a   : > { %p876_p1 = scmp.lt.s32.totalorder %s15925_s0, 1  ;;  %p7941_p2 = scmp.ne.s32.totalorder %s15925_s0, 0 }
  0x7c   : > { %s9861_s16 = scalar_select %p876_p1, %s15925_s0, 1 }
  0x7d   : > { %891 = sbr.rel (%p7941_p2) target bundleno = 147 (0x93), region = 132 }
  0x7e   : > { %s9867_s29 = scalar_lea.vmem %s15926_s4, %s9861_s16  ;;  %s7940_s28 = sshll.u32 %s9861_s16, 1 }
  0x7f   : > { %s9873_s8 = scalar_lea.vmem %s15927_s3, %s7940_s28 }
  0x82   : > { %v892_v0 = vld [vmem:[#allocation2] sm:$0xff]  ;;  %v893_v1 = vld [vmem:[#allocation2 + $0x8] sm:$0xff]  ;;  %v894_v2 = vld [vmem:[#allocation2 + $0x10] sm:$0xff] }
  0x83   : > { %908 = vst [vmem:[#allocation23] sm:$0xff] %v892_v0  ;;  %v895_v3 = vld [vmem:[#allocation2 + $0x18] sm:$0xff]  ;;  %v896_v4 = vld [vmem:[#allocation2 + $0x20] sm:$0xff]  ;;  %v897_v5 = vld [vmem:[#allocation2 + $0x28] sm:$0xff] }
  0x84   : > { %909 = vst [vmem:[#allocation23 + $0x8] sm:$0xff] %v893_v1  ;;  %v898_v6 = vld [vmem:[#allocation2 + $0x30] sm:$0xff]  ;;  %v899_v7 = vld [vmem:[#allocation2 + $0x38] sm:$0xff]  ;;  %v900_v8 = vld [vmem:[#allocation2 + $0x40] sm:$0xff] }
  0x85   : > { %910 = vst [vmem:[#allocation23 + $0x10] sm:$0xff] %v894_v2  ;;  %v901_v9 = vld [vmem:[#allocation2 + $0x48] sm:$0xff]  ;;  %v902_v10 = vld [vmem:[#allocation2 + $0x50] sm:$0xff]  ;;  %v903_v11 = vld [vmem:[#allocation2 + $0x58] sm:$0xff] }
  0x86   : > { %911 = vst [vmem:[#allocation23 + $0x18] sm:$0xff] %v895_v3  ;;  %v904_v12 = vld [vmem:[#allocation2 + $0x60] sm:$0xff]  ;;  %v905_v13 = vld [vmem:[#allocation2 + $0x68] sm:$0xff]  ;;  %v906_v14 = vld [vmem:[#allocation2 + $0x70] sm:$0xff] }
  0x87   : > { %912 = vst [vmem:[#allocation23 + $0x20] sm:$0xff] %v896_v4  ;;  %v907_v15 = vld [vmem:[#allocation2 + $0x78] sm:$0xff] }
  0x88   : > { %913 = vst [vmem:[#allocation23 + $0x28] sm:$0xff] %v897_v5 }
  0x89   : > { %914 = vst [vmem:[#allocation23 + $0x30] sm:$0xff] %v898_v6 }
  0x8a   : > { %915 = vst [vmem:[#allocation23 + $0x38] sm:$0xff] %v899_v7 }
  0x8b   : > { %916 = vst [vmem:[#allocation23 + $0x40] sm:$0xff] %v900_v8 }
  0x8c   : > { %917 = vst [vmem:[#allocation23 + $0x48] sm:$0xff] %v901_v9 }
  0x8d   : > { %918 = vst [vmem:[#allocation23 + $0x50] sm:$0xff] %v902_v10 }
  0x8e   : > { %919 = vst [vmem:[#allocation23 + $0x58] sm:$0xff] %v903_v11 }
  0x8f   : > { %920 = vst [vmem:[#allocation23 + $0x60] sm:$0xff] %v904_v12 }
  0x90   : > { %921 = vst [vmem:[#allocation23 + $0x68] sm:$0xff] %v905_v13 }
  0x91   : > { %922 = vst [vmem:[#allocation23 + $0x70] sm:$0xff] %v906_v14 }
  0x92   : > { %923 = vst [vmem:[#allocation23 + $0x78] sm:$0xff] %v907_v15 }
  0x93 PF: > { %v926_v16 = vld [vmem:[#allocation23 + $0x10] sm:$0xff]  ;;  %v924_v17 = vld [vmem:[#allocation23] sm:$0xff]  ;;  %v927_v19 = vld [vmem:[#allocation23 + $0x18] sm:$0xff]  ;;  %v9530_v23 = vmov 128.0   ;;  %s15986_s0 = sld [smem:[#allocation35_spill]]  ;;  %p8460_p3 = scmp.eq.s32.totalorder %s9727_s15, 1 }
  0x94   : > { %946 = vadd.xlane.f32.xlu1 %v926_v16  ;;  %942 = vadd.xlane.f32.xlu0 %v924_v17  ;;  %v928_v18 = vld [vmem:[#allocation23 + $0x20] sm:$0xff]  ;;  %v925_v20 = vld [vmem:[#allocation23 + $0x8] sm:$0xff]  ;;  %v930_v22 = vld [vmem:[#allocation23 + $0x30] sm:$0xff]  ;;  %8653 = vrcp.f32 %v9530_v23 }
  0x95   : > { %950 = vadd.xlane.f32.xlu2 %v928_v18  ;;  %v929_v21 = vld [vmem:[#allocation23 + $0x28] sm:$0xff]  ;;  %v9894_v43 = vld [vmem:[#allocation23 + $0x38] sm:$0xff]  ;;  %v9906_v50 = vld [vmem:[#allocation23 + $0x40] sm:$0xff] }
  0x96   : > { %v9908_v51 = vld [vmem:[#allocation23 + $0x48] sm:$0xff]  ;;  %v9920_v58 = vld [vmem:[#allocation23 + $0x58] sm:$0xff]  ;;  %v9929_v62 = vld [vmem:[#allocation23 + $0x60] sm:$0xff] }
  0x97   : > { %v9931_v63 = vld [vmem:[#allocation23 + $0x50] sm:$0xff]  ;;  %v9935_v0 = vld [vmem:[#allocation23 + $0x68] sm:$0xff]  ;;  %v8028_v3 = vld [vmem:[%s9817_s11 + $0xa8] sm:$0xf] }
  0x98   : > { %v9941_v2 = vld [vmem:[#allocation23 + $0x70] sm:$0xff]  ;;  %v8323_v5 = vld [vmem:[%s9817_s11 + $0xac] sm:$0xf]  ;;  %v8036_v8 = vld [vmem:[%s9817_s11 + $0xb0] sm:$0xf] }
  0x99   : > { %v9937_v1 = vld [vmem:[#allocation23 + $0x78] sm:$0xff]  ;;  %v8324_v4 = vld [vmem:[%s9817_s11 + $0xb0] sm:$0xf0]  ;;  %v8030_v7 = vld [vmem:[%s9817_s11 + $0xb4] sm:$0xf0]  ;;  %s11158_s14 = sshll.u32 %s15986_s0, 7 }
  0x9a   : > { %v8654_v24 = vpop.eup %8653  ;;  %v8029_v6 = vor.u32 %v8324_v4, %v8028_v3  ;;  %v8325_v9 = vld [vmem:[%s9817_s11 + $0xb8] sm:$0xf0]  ;;  %v8033_v10 = vor.u32 %v8323_v5, %v8030_v7  ;;  %v8016_v12 = vld [vmem:[%s9817_s11 + $0x90] sm:$0xf]  ;;  %v8320_v14 = vld [vmem:[%s9817_s11 + $0x94] sm:$0xf] }
  0x9b   : > { %v975_v25 = vmul.f32 128.0, %v8654_v24  ;;  %vm979_vm0 = vweird.f32 %v8654_v24  ;;  %v8037_v11 = vor.u32 %v8325_v9, %v8036_v8  ;;  %v8321_v13 = vld [vmem:[%s9817_s11 + $0x98] sm:$0xf0]  ;;  %v8308_v3 = vld [vmem:[%s9817_s11 + $0x34] sm:$0xf]  ;;  %s11166_s9 = sadd.s32 1, %s11158_s14 }
  0x9c   : > { %948 = vadd.xlane.f32.xlu1 %v927_v19  ;;  %944 = vadd.xlane.f32.xlu0 %v925_v20  ;;  %v8017_v15 = vor.u32 %v8321_v13, %v8016_v12  ;;  %v8317_v23 = vld [vmem:[%s9817_s11 + $0x7c] sm:$0xf]  ;;  %v7970_v5 = vld [vmem:[%s9817_s11 + $0x3c] sm:$0xf0]  ;;  %v8310_v7 = vld [vmem:[%s9817_s11 + $0x40] sm:$0xf0] }
  0x9d   : > { %952 = vadd.xlane.f32.xlu2 %v929_v21  ;;  %v976_v26 = vsub.f32 1.0, %v975_v25  ;;  %1475 = vmatpush.bf16.msra.mxu0 %v8029_v6  ;;  %v8006_v25 = vld [vmem:[%s9817_s11 + $0x84] sm:$0xf0]  ;;  %v7976_v6 = vld [vmem:[%s9817_s11 + $0x38] sm:$0xf]  ;;  %v7973_v8 = vor.u32 %v8308_v3, %v7970_v5  ;;  %s11175_s4 = sadd.s32 2, %s11158_s14 }
  0x9e   : > { %1524 = vmatpush.bf16.msra.mxu1 %v8033_v10  ;;  %1573 = vmatpush.bf16.msra.mxu2 %v8037_v11  ;;  %v7977_v9 = vor.u32 %v8310_v7, %v7976_v6  ;;  %v7956_v10 = vld [vmem:[%s9817_s11 + $0x18] sm:$0xf]  ;;  %v8305_v12 = vld [vmem:[%s9817_s11 + $0x1c] sm:$0xf]  ;;  %s11183_s28 = sld [smem:[#allocation12 + %s11158_s14]]  ;;  %s11186_s10 = sadd.s32 3, %s11158_s14 }
  0x9f   : > { %v977_v27 = vmul.f32 %v8654_v24, %v976_v26  ;;  %8366 = vmatpush.bf16.msra.mxu3 %v8037_v11  ;;  %v8012_v26 = vld [vmem:[%s9817_s11 + $0x80] sm:$0xf]  ;;  %v8306_v11 = vld [vmem:[%s9817_s11 + $0x20] sm:$0xf0]  ;;  %s11191_s21 = sld [smem:[#allocation12 + %s11166_s9]]  ;;  %s3238_s20 = sadd.s32 8, %s11158_s14 }
  0xa0   : > { %v7957_v13 = vor.u32 %v8306_v11, %v7956_v10  ;;  %s11196_s3 = sld [smem:[#allocation12 + %s11175_s4]]  ;;  %s3362_s30 = sadd.s32 9, %s11158_s14 }
  0xa1   : > { %v978_v28 = vadd.f32 %v8654_v24, %v977_v27  ;;  %1476 = vmatpush.bf16.msra.mxu0 %v8017_v15  ;;  %v8319_v27 = vld [vmem:[%s9817_s11 + $0x88] sm:$0xf0]  ;;  %v7964_v15 = vld [vmem:[%s9817_s11 + $0x20] sm:$0xf]  ;;  %s11203_s17 = sld [smem:[#allocation12 + %s11186_s10]]  ;;  %s3486_s0 = sadd.s32 10, %s11158_s14 }
  0xa2   : > { %s3327_s25 = sadd.s32 5, %s11158_s14 }
  0xa3   : > { %v9880_v29 = vsel %vm979_vm0, %v8654_v24, %v978_v28  ;;  %v8009_v28 = vor.u32 %v8317_v23, %v8006_v25  ;;  %v8302_v23 = vld [vmem:[%s9817_s11 + $0x4] sm:$0xf] }
  0xa4   : > { %15929 = vst [vmem:[#allocation38_spill] sm:$0xff] %v9880_v29 }
  0xa5   : > { %954 = vadd.xlane.f32.xlu2 %v930_v22 }
 0x107   : > { %v947_v30 = vpop.xlane.xlu1 %946  ;;  %v943_v31 = vpop.xlane.xlu0 %942 }
 0x108   : > { %v981_v32 = vmul.f32 %v9880_v29, %v943_v31  ;;  %v951_v34 = vpop.xlane.xlu2 %950  ;;  %v983_v52 = vmul.f32 %v9880_v29, %v947_v30  ;;  %v8013_v30 = vor.u32 %v8319_v27, %v8012_v26  ;;  %v7992_v31 = vld [vmem:[%s9817_s11 + $0x60] sm:$0xf]  ;;  %v7946_v26 = vld [vmem:[%s9817_s11 + $0xc] sm:$0xf0]  ;;  %v7952_v27 = vld [vmem:[%s9817_s11 + $0x8] sm:$0xf] }
 0x109   : > { %v985_v42 = vmul.f32 %v9880_v29, %v951_v34  ;;  %v8314_v34 = vld [vmem:[%s9817_s11 + $0x64] sm:$0xf] }
 0x10a   : > { %v9883_v33 = vsub.f32 %v924_v17, %v981_v32  ;;  %v9915_v55 = vsub.f32 %v926_v16, %v983_v52  ;;  %v8018_v16 = vld [vmem:[%s9817_s11 + $0x9c] sm:$0xf0]  ;;  %v8024_v17 = vld [vmem:[%s9817_s11 + $0x98] sm:$0xf]  ;;  %v8315_v32 = vld [vmem:[%s9817_s11 + $0x68] sm:$0xf0] }
 0x10b   : > { %v9901_v47 = vsub.f32 %v928_v18, %v985_v42  ;;  %v8322_v18 = vld [vmem:[%s9817_s11 + $0xa0] sm:$0xf0]  ;;  %v7988_v52 = vld [vmem:[%s9817_s11 + $0x50] sm:$0xf] }
 0x10c   : > { %v1013_v35 = vmul.f32 %v9883_v33, %v9883_v33  ;;  %v1015_v59 = vmul.f32 %v9915_v55, %v9915_v55 }
 0x10d   : > { %v1017_v48 = vmul.f32 %v9901_v47, %v9901_v47 }
 0x10e   : > { %1029 = vadd.xlane.f32.xlu0 %v1013_v35  ;;  %v7993_v35 = vor.u32 %v8315_v32, %v7992_v31 }
 0x10f   : > { %v949_v36 = vpop.xlane.xlu1 %948  ;;  %v945_v37 = vpop.xlane.xlu0 %944 }
 0x110   : > { %v984_v38 = vmul.f32 %v9880_v29, %v949_v36  ;;  %v982_v39 = vmul.f32 %v9880_v29, %v945_v37  ;;  %v953_v46 = vpop.xlane.xlu2 %952  ;;  %v7994_v36 = vld [vmem:[%s9817_s11 + $0x6c] sm:$0xf0]  ;;  %v8000_v37 = vld [vmem:[%s9817_s11 + $0x68] sm:$0xf] }
 0x111   : > { %v986_v49 = vmul.f32 %v9880_v29, %v953_v46  ;;  %v8311_v46 = vld [vmem:[%s9817_s11 + $0x4c] sm:$0xf] }
 0x112   : > { %v9889_v40 = vsub.f32 %v927_v19, %v984_v38  ;;  %v9891_v41 = vsub.f32 %v925_v20, %v982_v39  ;;  %v8021_v19 = vor.u32 %v8320_v14, %v8018_v16  ;;  %v8025_v20 = vor.u32 %v8322_v18, %v8024_v17  ;;  %v8316_v38 = vld [vmem:[%s9817_s11 + $0x70] sm:$0xf0]  ;;  %v7958_v14 = vld [vmem:[%s9817_s11 + $0x24] sm:$0xf0]  ;;  %v8307_v16 = vld [vmem:[%s9817_s11 + $0x28] sm:$0xf0] }
 0x113   : > { %v9912_v53 = vsub.f32 %v929_v21, %v986_v49  ;;  %v8004_v21 = vld [vmem:[%s9817_s11 + $0x78] sm:$0xf]  ;;  %v7997_v39 = vor.u32 %v8314_v34, %v7994_v36  ;;  %v8001_v42 = vor.u32 %v8316_v38, %v8000_v37  ;;  %v7961_v18 = vor.u32 %v8305_v12, %v7958_v14 }
 0x114   : > { %v1016_v44 = vmul.f32 %v9889_v40, %v9889_v40  ;;  %v1014_v45 = vmul.f32 %v9891_v41, %v9891_v41  ;;  %1525 = vmatpush.bf16.msra.mxu1 %v8021_v19  ;;  %1574 = vmatpush.bf16.msra.mxu2 %v8025_v20  ;;  %v7982_v49 = vld [vmem:[%s9817_s11 + $0x54] sm:$0xf0]  ;;  %v7965_v19 = vor.u32 %v8307_v16, %v7964_v15 }
 0x115   : > { %v1018_v56 = vmul.f32 %v9912_v53, %v9912_v53  ;;  %8367 = vmatpush.bf16.msra.mxu3 %v8025_v20 }
 0x116   : > { %1035 = vadd.xlane.f32.xlu2 %v1016_v44  ;;  %956 = vadd.xlane.f32.xlu0 %v9894_v43  ;;  %v7980_v44 = vld [vmem:[%s9817_s11 + $0x48] sm:$0xf] }
 0x117   : > { %1031 = vadd.xlane.f32.xlu1 %v1014_v45  ;;  %v8312_v45 = vld [vmem:[%s9817_s11 + $0x50] sm:$0xf0] }
 0x118   : > { %v955_v54 = vpop.xlane.xlu2 %954  ;;  %1526 = vmatpush.bf16.msra.mxu1 %v8009_v28  ;;  %1575 = vmatpush.bf16.msra.mxu2 %v8013_v30  ;;  %v7949_v28 = vor.u32 %v8302_v23, %v7946_v26 }
 0x119   : > { %v987_v57 = vmul.f32 %v9880_v29, %v955_v54  ;;  %8368 = vmatpush.bf16.msra.mxu3 %v8013_v30  ;;  %v8313_v54 = vld [vmem:[%s9817_s11 + $0x58] sm:$0xf0]  ;;  %v8304_v30 = vld [vmem:[%s9817_s11 + $0x10] sm:$0xf0] }
 0x11a   : > { %v7953_v31 = vor.u32 %v8304_v30, %v7952_v27 }
 0x11b   : > { %v9925_v60 = vsub.f32 %v930_v22, %v987_v57  ;;  %v8318_v22 = vld [vmem:[%s9817_s11 + $0x80] sm:$0xf0]  ;;  %v7989_v57 = vor.u32 %v8313_v54, %v7988_v52 }
 0x11c   : > { %v8005_v24 = vor.u32 %v8318_v22, %v8004_v21  ;;  %1527 = vmatpush.bf16.msra.mxu1 %v7997_v39  ;;  %1576 = vmatpush.bf16.msra.mxu2 %v8001_v42  ;;  %v7944_v21 = vld [vmem:[%s9817_s11] sm:$0xf]  ;;  %v8303_v22 = vld [vmem:[%s9817_s11 + $0x8] sm:$0xf0] }
 0x11d   : > { %v1019_v61 = vmul.f32 %v9925_v60, %v9925_v60  ;;  %8369 = vmatpush.bf16.msra.mxu3 %v8001_v42  ;;  %v7945_v25 = vor.u32 %v8303_v22, %v7944_v21 }
 0x11e   : > { %1037 = vadd.xlane.f32.xlu2 %v1017_v48  ;;  %958 = vadd.xlane.f32.xlu0 %v9906_v50  ;;  %v7981_v48 = vor.u32 %v8312_v45, %v7980_v44 }
 0x11f   : > { %960 = vadd.xlane.f32.xlu1 %v9908_v51  ;;  %1477 = vmatpush.bf16.msra.mxu0 %v8005_v24 }
 0x120   : > { %1577 = vmatpush.bf16.msra.mxu2 %v7989_v57 }
 0x121   : > { %8370 = vmatpush.bf16.msra.mxu3 %v7989_v57 }
 0x123   : > { %1478 = vmatpush.bf16.msra.mxu0 %v7993_v35 }
 0x124   : > { %1578 = vmatpush.bf16.msra.mxu2 %v7977_v9 }
 0x125   : > { %8371 = vmatpush.bf16.msra.mxu3 %v7977_v9 }
 0x126   : > { %964 = vadd.xlane.f32.xlu2 %v9920_v58  ;;  %1039 = vadd.xlane.f32.xlu0 %v1018_v56  ;;  %v7985_v56 = vor.u32 %v8311_v46, %v7982_v49 }
 0x127   : > { %1033 = vadd.xlane.f32.xlu1 %v1015_v59  ;;  %1479 = vmatpush.bf16.msra.mxu0 %v7981_v48  ;;  %v7968_v59 = vld [vmem:[%s9817_s11 + $0x30] sm:$0xf] }
 0x128   : > { %1528 = vmatpush.bf16.msra.mxu1 %v7985_v56  ;;  %1579 = vmatpush.bf16.msra.mxu2 %v7965_v19 }
 0x129   : > { %8372 = vmatpush.bf16.msra.mxu3 %v7965_v19 }
 0x12c   : > { %1529 = vmatpush.bf16.msra.mxu1 %v7973_v8  ;;  %1580 = vmatpush.bf16.msra.mxu2 %v7953_v31 }
 0x12d   : > { %8373 = vmatpush.bf16.msra.mxu3 %v7953_v31 }
 0x12e   : > { %966 = vadd.xlane.f32.xlu2 %v9929_v62  ;;  %1041 = vadd.xlane.f32.xlu0 %v1019_v61  ;;  %v8309_v61 = vld [vmem:[%s9817_s11 + $0x38] sm:$0xf0]  ;;  %s15772_s11 = smov 32  }
 0x12f   : > { %962 = vadd.xlane.f32.xlu1 %v9931_v63  ;;  %v7969_v4 = vor.u32 %v8309_v61, %v7968_v59 }
 0x130   : > { %1530 = vmatpush.bf16.msra.mxu1 %v7961_v18 }
 0x131   : > { %1480 = vmatpush.bf16.msra.mxu0 %v7969_v4 }
 0x134   : > { %1531 = vmatpush.bf16.msra.mxu1 %v7949_v28 }
 0x135   : > { %1481 = vmatpush.bf16.msra.mxu0 %v7957_v13 }
 0x136   : > { %968 = vadd.xlane.f32.xlu0 %v9935_v0 }
 0x137   : > { %972 = vadd.xlane.f32.xlu1 %v9937_v1 }
 0x139   : > { %1482 = vmatpush.bf16.msra.mxu0 %v7945_v25 }
 0x13e   : > { %970 = vadd.xlane.f32.xlu0 %v9941_v2 }
 0x181   : > { %v1030_v17 = vpop.xlane.xlu0 %1029 }
 0x182   : > { %v1061_v20 = vmul.f32 %v1030_v17, %v9880_v29 }
 0x184   : > { %v1077_v24 = vadd.f32 1e-05, %v1061_v20 }
 0x186   : > { %8655 = vrsqrt.f32 %v1077_v24  ;;  %vm1099_vm2 = vweird.f32 %v1077_v24 }
 0x189   : > { %v1036_v32 = vpop.xlane.xlu2 %1035  ;;  %v957_v34 = vpop.xlane.xlu0 %956 }
 0x18a   : > { %v1064_v35 = vmul.f32 %v1036_v32, %v9880_v29  ;;  %v1032_v36 = vpop.xlane.xlu1 %1031  ;;  %v988_v37 = vmul.f32 %v9880_v29, %v957_v34  ;;  %v10045_v32 = vld [vmem:[%s708_s27] ss:$0 sm:$0xff]  ;;  %s15778_s27 = smov 96  }
 0x18b   : > { %v1062_v38 = vmul.f32 %v1032_v36, %v9880_v29 }
 0x18c   : > { %v8656_v39 = vpop.eup %8655  ;;  %v9996_v42 = vadd.f32 1e-05, %v1064_v35  ;;  %v9999_v44 = vsub.f32 %v9894_v43, %v988_v37 }
 0x18d   : > { %v1094_v45 = vmul.f32 %v8656_v39, %v1077_v24  ;;  %v1078_v46 = vadd.f32 1e-05, %v1062_v38  ;;  %vm1100_vm1 = vweird.f32 %v8656_v39 }
 0x18e   : > { %8657 = vrsqrt.f32 %v9996_v42  ;;  %v1020_v48 = vmul.f32 %v9999_v44, %v9999_v44  ;;  %vm10026_vm3 = vmor %vm1099_vm2, %vm1100_vm1  ;;  %vm1129_vm7 = vweird.f32 %v9996_v42 }
 0x18f   : > { %v1095_v49 = vmul.f32 %v8656_v39, %v1094_v45  ;;  %8659 = vrsqrt.f32 %v1078_v46  ;;  %vm1109_vm5 = vweird.f32 %v1078_v46 }
 0x190   : > { %1043 = vadd.xlane.f32.xlu1 %v1020_v48 }
 0x191   : > { %v1096_v52 = vmul.f32 0.5, %v1095_v49  ;;  %v1038_v54 = vpop.xlane.xlu2 %1037  ;;  %v959_v56 = vpop.xlane.xlu0 %958  ;;  %v10058_v49 = vld [vmem:[%s717_s26] ss:$0 sm:$0xff]  ;;  %s9532_s26 = smov 64  }
 0x192   : > { %v961_v57 = vpop.xlane.xlu1 %960  ;;  %v989_v59 = vmul.f32 %v9880_v29, %v959_v56  ;;  %v1065_v6 = vmul.f32 %v1038_v54, %v9880_v29 }
 0x193   : > { %v990_v61 = vmul.f32 %v9880_v29, %v961_v57  ;;  %v1097_v3 = vsub.f32 1.5, %v1096_v52 }
 0x194   : > { %v10006_v43 = vpop.eup %8657  ;;  %v10009_v4 = vsub.f32 %v9906_v50, %v989_v59  ;;  %v10021_v13 = vadd.f32 1e-05, %v1065_v6 }
 0x195   : > { %v8660_v5 = vpop.eup %8659  ;;  %v10013_v7 = vsub.f32 %v9908_v51, %v990_v61  ;;  %v1124_v8 = vmul.f32 %v10006_v43, %v9996_v42  ;;  %v1098_v12 = vmul.f32 %v8656_v39, %v1097_v3  ;;  %vm1130_vm8 = vweird.f32 %v10006_v43 }
 0x196   : > { %v1104_v9 = vmul.f32 %v8660_v5, %v1078_v46  ;;  %v1021_v11 = vmul.f32 %v10009_v4, %v10009_v4  ;;  %vm1110_vm4 = vweird.f32 %v8660_v5  ;;  %8661 = vrsqrt.f32 %v10021_v13  ;;  %vm10081_vm9 = vmor %vm1129_vm7, %vm1130_vm8 }
 0x197   : > { %v1022_v10 = vmul.f32 %v10013_v7, %v10013_v7  ;;  %v1125_v15 = vmul.f32 %v10006_v43, %v1124_v8  ;;  %v1102_v22 = vsel %vm10026_vm3, %v8656_v39, %v1098_v12  ;;  %vm1111_vm6 = vmor %vm1109_vm5, %vm1110_vm4  ;;  %vm1139_vm15 = vweird.f32 %v10021_v13 }
 0x198   : > { %v1105_v50 = vmul.f32 %v8660_v5, %v1104_v9  ;;  %1045 = vadd.xlane.f32.xlu1 %v1021_v11  ;;  %v1253_v31 = vmul.f32 %v1102_v22, %v9883_v33 }
 0x199   : > { %1047 = vadd.xlane.f32.xlu2 %v1022_v10  ;;  %v965_v51 = vpop.xlane.xlu2 %964  ;;  %v1040_v14 = vpop.xlane.xlu0 %1039  ;;  %v1126_v27 = vmul.f32 0.5, %v1125_v15 }
 0x19a   : > { %v1106_v16 = vmul.f32 0.5, %v1105_v50  ;;  %v992_v17 = vmul.f32 %v9880_v29, %v965_v51  ;;  %v1034_v18 = vpop.xlane.xlu1 %1033  ;;  %v1066_v19 = vmul.f32 %v1040_v14, %v9880_v29  ;;  %v1272_v33 = vmul.f32 %v10045_v32, %v1253_v31 }
 0x19b   : > { %v1063_v21 = vmul.f32 %v1034_v18, %v9880_v29  ;;  %v1127_v37 = vsub.f32 1.5, %v1126_v27 }
 0x19c   : > { %v1107_v23 = vsub.f32 1.5, %v1106_v16  ;;  %v10033_v24 = vadd.f32 1e-05, %v1066_v19  ;;  %v10036_v25 = vsub.f32 %v9920_v58, %v992_v17  ;;  %v10051_v45 = vpop.eup %8661 }
 0x19d   : > { %v1079_v26 = vadd.f32 1e-05, %v1063_v21  ;;  %v1128_v57 = vmul.f32 %v10006_v43, %v1127_v37  ;;  %v1134_v42 = vmul.f32 %v10051_v45, %v10021_v13  ;;  %vm1140_vm0 = vweird.f32 %v10051_v45 }
 0x19e   : > { %v1108_v28 = vmul.f32 %v8660_v5, %v1107_v23  ;;  %8663 = vrsqrt.f32 %v10033_v24  ;;  %v1024_v30 = vmul.f32 %v10036_v25, %v10036_v25  ;;  %vm1149_vm13 = vweird.f32 %v10033_v24  ;;  %vm1141_vm2 = vmor %vm1139_vm15, %vm1140_vm0 }
 0x19f   : > { %8665 = vrsqrt.f32 %v1079_v26  ;;  %v1132_v11 = vsel %vm10081_vm9, %v10006_v43, %v1128_v57  ;;  %v1135_v16 = vmul.f32 %v10051_v45, %v1134_v42  ;;  %vm1119_vm11 = vweird.f32 %v1079_v26 }
 0x1a0   : > { %v1112_v58 = vsel %vm1111_vm6, %v8660_v5, %v1108_v28  ;;  %1051 = vadd.xlane.f32.xlu0 %v1024_v30  ;;  %v1256_v19 = vmul.f32 %v1132_v11, %v9889_v40 }
 0x1a1   : > { %v967_v34 = vpop.xlane.xlu2 %966  ;;  %v10047_v35 = vpop.xlane.xlu0 %1041  ;;  %v1254_v36 = vmul.f32 %v1112_v58, %v9891_v41  ;;  %v1136_v27 = vmul.f32 0.5, %v1135_v16 }
 0x1a2   : > { %v993_v38 = vmul.f32 %v9880_v29, %v967_v34  ;;  %v963_v39 = vpop.xlane.xlu1 %962 }
 0x1a3   : > { %v991_v46 = vmul.f32 %v9880_v29, %v963_v39  ;;  %v1273_v48 = vmul.f32 %v10045_v32, %v1254_v36  ;;  %v1137_v58 = vsub.f32 1.5, %v1136_v27 }
 0x1a4   : > { %v10060_v52 = vpop.eup %8663  ;;  %v10063_v54 = vsub.f32 %v9929_v62, %v993_v38  ;;  %v1291_v62 = vadd.f32 %v10058_v49, %v1272_v33 }
 0x1a5   : > { %v8666_v41 = vpop.eup %8665  ;;  %v10067_v56 = vsub.f32 %v9931_v63, %v991_v46  ;;  %v1144_v61 = vmul.f32 %v10060_v52, %v10033_v24  ;;  %v1292_v5 = vadd.f32 %v10058_v49, %v1273_v48  ;;  %vm1150_vm14 = vweird.f32 %v10060_v52 }
 0x1a6   : > { %v1114_v59 = vmul.f32 %v8666_v41, %v1079_v26  ;;  %v1025_v6 = vmul.f32 %v10063_v54, %v10063_v54  ;;  %vm1120_vm10 = vweird.f32 %v8666_v41  ;;  %v1138_v46 = vmul.f32 %v10051_v45, %v1137_v58  ;;  %vm1151_vm1 = vmor %vm1149_vm13, %vm1150_vm14 }
 0x1a7   : > { %v1023_v3 = vmul.f32 %v10067_v56, %v10067_v56  ;;  %v1307_v9 = vpack.c.bf16 %v1292_v5, %v1291_v62  ;;  %v1145_v50 = vmul.f32 %v10060_v52, %v1144_v61  ;;  %vm1121_vm12 = vmor %vm1119_vm11, %vm1120_vm10 }
 0x1a8   : > { %v1115_v63 = vmul.f32 %v8666_v41, %v1114_v59  ;;  %1053 = vadd.xlane.f32.xlu1 %v1025_v6  ;;  %v1142_v24 = vsel %vm1141_vm2, %v10051_v45, %v1138_v46  ;;  %v1067_v45 = vmul.f32 %v10047_v35, %v9880_v29 }
 0x1a9   : > { %1049 = vadd.xlane.f32.xlu2 %v1023_v3  ;;  %v969_v10 = vpop.xlane.xlu0 %968  ;;  %1483 = vmatmul.bf16.vlgmr.msra.gmra.mxu0 %v1307_v9  ;;  %v1146_v21 = vmul.f32 0.5, %v1145_v50  ;;  %v1257_v48 = vmul.f32 %v1142_v24, %v9901_v47 }
 0x1aa   : > { %v1116_v12 = vmul.f32 0.5, %v1115_v63  ;;  %v973_v51 = vpop.xlane.xlu1 %972  ;;  %v994_v14 = vmul.f32 %v9880_v29, %v969_v10  ;;  %1532 = vmatmul.bf16.vlgmr.msra.gmra.mxu1 %v1307_v9  ;;  %1581 = vmatmul.bf16.vlgmr.msra.gmra.mxu2 %v1307_v9 }
 0x1ab   : > { %v996_v15 = vmul.f32 %v9880_v29, %v973_v51  ;;  %v1147_v31 = vsub.f32 1.5, %v1146_v21  ;;  %v1276_v13 = vmul.f32 %v10045_v32, %v1257_v48 }
 0x1ac   : > { %v1117_v17 = vsub.f32 1.5, %v1116_v12  ;;  %v10093_v18 = vsub.f32 %v9935_v0, %v994_v14 }
 0x1ad   : > { %v10096_v43 = vsub.f32 %v9937_v1, %v996_v15  ;;  %v1275_v1 = vmul.f32 %v10045_v32, %v1256_v19  ;;  %v1148_v38 = vmul.f32 %v10060_v52, %v1147_v31  ;;  %v1295_v59 = vadd.f32 %v10058_v49, %v1276_v13 }
 0x1ae   : > { %v1118_v20 = vmul.f32 %v8666_v41, %v1117_v17  ;;  %v1026_v22 = vmul.f32 %v10093_v18, %v10093_v18 }
 0x1af   : > { %v1028_v23 = vmul.f32 %v10096_v43, %v10096_v43  ;;  %v1294_v37 = vadd.f32 %v10058_v49, %v1275_v1 }
 0x1b0   : > { %v1122_v28 = vsel %vm1121_vm12, %v8666_v41, %v1118_v20 }
 0x1b1   : > { %1055 = vadd.xlane.f32.xlu2 %v1026_v22  ;;  %v971_v0 = vpop.xlane.xlu0 %970  ;;  %v1255_v30 = vmul.f32 %v1122_v28, %v9915_v55  ;;  %1059 = vadd.xlane.f32.xlu1 %v1028_v23 }
 0x1b2   : > { %v995_v40 = vmul.f32 %v9880_v29, %v971_v0 }
 0x1b3   : > { %v1274_v26 = vmul.f32 %v10045_v32, %v1255_v30 }
 0x1b4   : > { %v10108_v34 = vsub.f32 %v9941_v2, %v995_v40  ;;  %v1152_v2 = vsel %vm1151_vm1, %v10060_v52, %v1148_v38  ;;  %v1083_v52 = vadd.f32 1e-05, %v1067_v45 }
 0x1b5   : > { %v1293_v36 = vadd.f32 %v10058_v49, %v1274_v26  ;;  %v1258_v33 = vmul.f32 %v1152_v2, %v9912_v53 }
 0x1b6   : > { %v1027_v55 = vmul.f32 %v10108_v34, %v10108_v34  ;;  %8667 = vrsqrt.f32 %v1083_v52  ;;  %vm1159_vm3 = vweird.f32 %v1083_v52 }
 0x1b7   : > { %v1308_v39 = vpack.c.bf16 %v1294_v37, %v1293_v36  ;;  %v1277_v41 = vmul.f32 %v10045_v32, %v1258_v33 }
 0x1b8   : > { %1057 = vadd.xlane.f32.xlu0 %v1027_v55 }
 0x1b9   : > { %1488 = vmatmul.bf16.gmra.mxu0 %v1308_v39  ;;  %v1296_v57 = vadd.f32 %v10058_v49, %v1277_v41 }
 0x1ba   : > { %1537 = vmatmul.bf16.gmra.mxu1 %v1308_v39  ;;  %1586 = vmatmul.bf16.gmra.mxu2 %v1308_v39 }
 0x1bb   : > { %v1309_v61 = vpack.c.bf16 %v1296_v57, %v1295_v59 }
 0x1bc   : > { %v8668_v53 = vpop.eup %8667 }
 0x1bd   : > { %v1154_v3 = vmul.f32 %v8668_v53, %v1083_v52  ;;  %vm1160_vm4 = vweird.f32 %v8668_v53 }
 0x1be   : > { %vm1161_vm5 = vmor %vm1159_vm3, %vm1160_vm4 }
 0x1bf   : > { %v1155_v47 = vmul.f32 %v8668_v53, %v1154_v3 }
 0x1c1   : > { %v1156_v42 = vmul.f32 0.5, %v1155_v47 }
 0x1c3   : > { %v1157_v6 = vsub.f32 1.5, %v1156_v42 }
 0x1c5   : > { %v1158_v35 = vmul.f32 %v8668_v53, %v1157_v6 }
 0x1c7   : > { %v1162_v16 = vsel %vm1161_vm5, %v8668_v53, %v1158_v35 }
 0x1c8   : > { %v1259_v22 = vmul.f32 %v1162_v16, %v9925_v60 }
 0x1c9   : > { %1493 = vmatmul.bf16.gmra.mxu0 %v1309_v61 }
 0x1ca   : > { %1542 = vmatmul.bf16.gmra.mxu1 %v1309_v61  ;;  %1591 = vmatmul.bf16.gmra.mxu2 %v1309_v61  ;;  %v1278_v40 = vmul.f32 %v10045_v32, %v1259_v22 }
 0x1cc   : > { %v1297_v2 = vadd.f32 %v10058_v49, %v1278_v40 }
 0x203   : > { %v1044_v62 = vpop.xlane.xlu1 %1043 }
 0x204   : > { %v1068_v5 = vmul.f32 %v1044_v62, %v9880_v29 }
 0x206   : > { %v1084_v63 = vadd.f32 1e-05, %v1068_v5 }
 0x208   : > { %8669 = vrsqrt.f32 %v1084_v63  ;;  %vm1169_vm7 = vweird.f32 %v1084_v63 }
 0x20b   : > { %v1046_v9 = vpop.xlane.xlu1 %1045 }
 0x20c   : > { %v1048_v8 = vpop.xlane.xlu2 %1047  ;;  %v1069_v11 = vmul.f32 %v1046_v9, %v9880_v29 }
 0x20d   : > { %v1070_v10 = vmul.f32 %v1048_v8, %v9880_v29 }
 0x20e   : > { %v8670_v12 = vpop.eup %8669  ;;  %v1085_v14 = vadd.f32 1e-05, %v1069_v11 }
 0x20f   : > { %v1164_v50 = vmul.f32 %v8670_v12, %v1084_v63  ;;  %v1086_v51 = vadd.f32 1e-05, %v1070_v10  ;;  %vm1170_vm6 = vweird.f32 %v8670_v12 }
 0x210   : > { %vm1171_vm8 = vmor %vm1169_vm7, %vm1170_vm6  ;;  %vm1179_vm13 = vweird.f32 %v1085_v14 }
 0x211   : > { %v1165_v15 = vmul.f32 %v8670_v12, %v1164_v50  ;;  %8671 = vrsqrt.f32 %v1086_v51  ;;  %vm1189_vm11 = vweird.f32 %v1086_v51 }
 0x212   : > { %8673 = vrsqrt.f32 %v1085_v14 }
 0x213   : > { %v1166_v17 = vmul.f32 0.5, %v1165_v15  ;;  %v1052_v19 = vpop.xlane.xlu0 %1051 }
 0x214   : > { %v1072_v20 = vmul.f32 %v1052_v19, %v9880_v29 }
 0x215   : > { %v1167_v21 = vsub.f32 1.5, %v1166_v17 }
 0x216   : > { %v10135_v23 = vadd.f32 1e-05, %v1072_v20 }
 0x217   : > { %v8672_v27 = vpop.eup %8671  ;;  %v1168_v28 = vmul.f32 %v8670_v12, %v1167_v21 }
 0x218   : > { %v8674_v0 = vpop.eup %8673  ;;  %v1184_v30 = vmul.f32 %v8672_v27, %v1086_v51  ;;  %8675 = vrsqrt.f32 %v10135_v23  ;;  %vm1190_vm9 = vweird.f32 %v8672_v27  ;;  %vm1209_vm15 = vweird.f32 %v10135_v23 }
 0x219   : > { %v1172_v1 = vsel %vm1171_vm8, %v8670_v12, %v1168_v28  ;;  %v1174_v31 = vmul.f32 %v8674_v0, %v1085_v14  ;;  %vm1180_vm10 = vweird.f32 %v8674_v0  ;;  %vm1191_vm12 = vmor %vm1189_vm11, %vm1190_vm9 }
 0x21a   : > { %v1185_v26 = vmul.f32 %v8672_v27, %v1184_v30  ;;  %v1260_v58 = vmul.f32 %v1172_v1, %v9999_v44  ;;  %vm1181_vm14 = vmor %vm1179_vm13, %vm1180_vm10 }
 0x21b   : > { %v1175_v36 = vmul.f32 %v8674_v0, %v1174_v31  ;;  %v1054_v46 = vpop.xlane.xlu1 %1053 }
 0x21c   : > { %v1186_v37 = vmul.f32 0.5, %v1185_v26  ;;  %v1050_v60 = vpop.xlane.xlu2 %1049  ;;  %v1279_v38 = vmul.f32 %v10045_v32, %v1260_v58  ;;  %v1073_v48 = vmul.f32 %v1054_v46, %v9880_v29 }
 0x21d   : > { %v1176_v55 = vmul.f32 0.5, %v1175_v36  ;;  %v1071_v39 = vmul.f32 %v1050_v60, %v9880_v29 }
 0x21e   : > { %v10143_v24 = vpop.eup %8675  ;;  %v1187_v33 = vsub.f32 1.5, %v1186_v37  ;;  %v1298_v41 = vadd.f32 %v10058_v49, %v1279_v38  ;;  %v10149_v61 = vadd.f32 1e-05, %v1073_v48 }
 0x21f   : > { %v1177_v44 = vsub.f32 1.5, %v1176_v55  ;;  %v1204_v13 = vmul.f32 %v10143_v24, %v10135_v23  ;;  %v1087_v57 = vadd.f32 1e-05, %v1071_v39  ;;  %vm1210_vm0 = vweird.f32 %v10143_v24 }
 0x220   : > { %v1188_v59 = vmul.f32 %v8672_v27, %v1187_v33  ;;  %v1310_v45 = vpack.c.bf16 %v1298_v41, %v1297_v2  ;;  %vm10172_vm1 = vmor %vm1209_vm15, %vm1210_vm0  ;;  %vm1219_vm5 = vweird.f32 %v10149_v61 }
 0x221   : > { %v1178_v52 = vmul.f32 %v8674_v0, %v1177_v44  ;;  %v1205_v53 = vmul.f32 %v10143_v24, %v1204_v13  ;;  %8677 = vrsqrt.f32 %v1087_v57  ;;  %vm1199_vm3 = vweird.f32 %v1087_v57 }
 0x222   : > { %v1192_v3 = vsel %vm1191_vm12, %v8672_v27, %v1188_v59  ;;  %8679 = vrsqrt.f32 %v10149_v61  ;;  %1498 = vmatmul.bf16.gmra.mxu0 %v1310_v45  ;;  %1547 = vmatmul.bf16.gmra.mxu1 %v1310_v45 }
 0x223   : > { %v1182_v47 = vsel %vm1181_vm14, %v8674_v0, %v1178_v52  ;;  %v1206_v62 = vmul.f32 0.5, %v1205_v53  ;;  %1596 = vmatmul.bf16.gmra.mxu2 %v1310_v45  ;;  %v1262_v5 = vmul.f32 %v1192_v3, %v10013_v7 }
 0x224   : > { %v1056_v42 = vpop.xlane.xlu2 %1055  ;;  %v1261_v63 = vmul.f32 %v1182_v47, %v10009_v4  ;;  %v1060_v12 = vpop.xlane.xlu1 %1059 }
 0x225   : > { %v1074_v6 = vmul.f32 %v1056_v42, %v9880_v29  ;;  %v1281_v8 = vmul.f32 %v10045_v32, %v1262_v5  ;;  %v1207_v11 = vsub.f32 1.5, %v1206_v62  ;;  %v1076_v17 = vmul.f32 %v1060_v12, %v9880_v29 }
 0x226   : > { %v1280_v9 = vmul.f32 %v10045_v32, %v1261_v63  ;;  %v1484_v7 = vpop.f32.mrf.mxu0 }
 0x227   : > { %v8678_v10 = vpop.eup %8677  ;;  %v10158_v35 = vadd.f32 1e-05, %v1074_v6  ;;  %v1300_v50 = vadd.f32 %v10058_v49, %v1281_v8  ;;  %v1533_v15 = vpop.f32.mrf.mxu1  ;;  %v1208_v19 = vmul.f32 %v10143_v24, %v1207_v11  ;;  %v10176_v30 = vadd.f32 1e-05, %v1076_v17 }
 0x228   : > { %v10161_v51 = vpop.eup %8679  ;;  %v1194_v14 = vmul.f32 %v8678_v10, %v1087_v57  ;;  %v1299_v4 = vadd.f32 %v10058_v49, %v1280_v9  ;;  %vm1200_vm2 = vweird.f32 %v8678_v10  ;;  %v1654_v55 = vpack.c.bf16 %v1533_v15, %v1533_v15 }
 0x229   : > { %8681 = vrsqrt.f32 %v10158_v35  ;;  %v1214_v20 = vmul.f32 %v10161_v51, %v10149_v61  ;;  %v1212_v40 = vsel %vm10172_vm1, %v10143_v24, %v1208_v19  ;;  %vm1201_vm4 = vmor %vm1199_vm3, %vm1200_vm2  ;;  %v1622_v13 = vmul.f32 0.17677669, %v1484_v7 }
 0x22a   : > { %v1195_v16 = vmul.f32 %v8678_v10, %v1194_v14  ;;  %v1311_v21 = vpack.c.bf16 %v1300_v50, %v1299_v4  ;;  %v1264_v2 = vmul.f32 %v1212_v40, %v10036_v25  ;;  %v1714_v57 = vunpack.c.l.b16 %v1654_v55 }
 0x22b   : > { %v1058_v22 = vpop.xlane.xlu0 %1057  ;;  %v1215_v26 = vmul.f32 %v10161_v51, %v1214_v20  ;;  %vm1220_vm6 = vweird.f32 %v10161_v51  ;;  %vm1229_vm7 = vweird.f32 %v10158_v35  ;;  %v1638_v8 = vpack.c.bf16 %v1622_v13, %v1622_v13 }
 0x22c   : > { %v1196_v27 = vmul.f32 0.5, %v1195_v16  ;;  %v1075_v28 = vmul.f32 %v1058_v22, %v9880_v29  ;;  %1601 = vmatmul.bf16.vlgmr.msra.gmra.mxu3 %v1311_v21  ;;  %v1283_v53 = vmul.f32 %v10045_v32, %v1264_v2  ;;  %vm10223_vm9 = vmor %vm1219_vm5, %vm1220_vm6  ;;  %vm1249_vm13 = vweird.f32 %v10176_v30 }
 0x22d   : > { %v10186_v58 = vpop.f32.mrf.mxu2  ;;  %v1216_v24 = vmul.f32 0.5, %v1215_v26  ;;  %v1694_v16 = vunpack.c.l.b16 %v1638_v8  ;;  %vm1726_vm1 = vcmask 261120   ;;  %vm1873_vm2 = vcmask 523264  }
 0x22e   : > { %v1197_v23 = vsub.f32 1.5, %v1196_v27  ;;  %v10178_v1 = vadd.f32 1e-05, %v1075_v28  ;;  %v1486_v60 = vpop.f32.mrf.mxu0  ;;  %v1302_v11 = vadd.f32 %v10058_v49, %v1283_v53 }
 0x22f   : > { %v10180_v31 = vpop.eup %8681  ;;  %v1535_v38 = vpop.f32.mrf.mxu1  ;;  %v1623_v33 = vmul.f32 0.17677669, %v1486_v60  ;;  %v1217_v47 = vsub.f32 1.5, %v1216_v24 }
 0x230   : > { %v1198_v36 = vmul.f32 %v8678_v10, %v1197_v23  ;;  %v1224_v37 = vmul.f32 %v10180_v31, %v10158_v35  ;;  %8683 = vrsqrt.f32 %v10178_v1  ;;  %v1655_v48 = vpack.c.bf16 %v1535_v38, %v1535_v38 }
 0x231   : > { %8685 = vrsqrt.f32 %v10176_v30  ;;  %v1639_v62 = vpack.c.bf16 %v1623_v33, %v1623_v33  ;;  %vm1230_vm8 = vweird.f32 %v10180_v31  ;;  %v1218_v12 = vmul.f32 %v10161_v51, %v1217_v47 }
 0x232   : > { %v1202_v39 = vsel %vm1201_vm4, %v8678_v10, %v1198_v36  ;;  %v1225_v46 = vmul.f32 %v10180_v31, %v1224_v37  ;;  %1503 = vmatmul.bf16.gmra.mxu0 %v1311_v21  ;;  %1552 = vmatmul.bf16.gmra.mxu1 %v1311_v21  ;;  %v1715_v59 = vunpack.c.l.b16 %v1655_v48  ;;  %vm1231_vm10 = vmor %vm1229_vm7, %vm1230_vm8  ;;  %vm1239_vm11 = vweird.f32 %v10178_v1 }
 0x233   : > { %v1263_v44 = vmul.f32 %v1202_v39, %v10067_v56  ;;  %v1695_v7 = vunpack.c.l.b16 %v1639_v62  ;;  %v1222_v61 = vsel %vm10223_vm9, %v10161_v51, %v1218_v12 }
 0x234   : > { %v1226_v41 = vmul.f32 0.5, %v1225_v46  ;;  %v10199_v5 = vpack.c.b16 %v1715_v59, %v1714_v57  ;;  %v1265_v23 = vmul.f32 %v1222_v61, %v10063_v54 }
 0x235   : > { %v1282_v52 = vmul.f32 %v10045_v32, %v1263_v44  ;;  %v10201_v25 = vpop.f32.mrf.mxu2  ;;  %v10237_v20 = vpack.c.b16 %v1695_v7, %v1694_v16 }
 0x236   : > { %v1227_v45 = vsub.f32 1.5, %v1226_v41  ;;  %v10197_v3 = vpop.eup %8683  ;;  %v1489_v56 = vpop.f32.mrf.mxu0  ;;  %2106 = vrot.lane.b32.xlu2 %v10199_v5, %s15778_s27  ;;  %2468 = vrot.lane.b32.xlu0 %v10199_v5, %s9532_s26  ;;  %v1284_v55 = vmul.f32 %v10045_v32, %v1265_v23  ;;  %v1671_v47 = vpack.c.bf16 %v10201_v25, %v10201_v25 }
 0x237   : > { %v10203_v42 = vpop.eup %8685  ;;  %v1538_v63 = vpop.f32.mrf.mxu1  ;;  %v1234_v9 = vmul.f32 %v10197_v3, %v10178_v1  ;;  %v1301_v10 = vadd.f32 %v10058_v49, %v1282_v52  ;;  %v1624_v60 = vmul.f32 0.17677669, %v1489_v56  ;;  %vm1240_vm12 = vweird.f32 %v10197_v3 }
 0x238   : > { %v1228_v6 = vmul.f32 %v10180_v31, %v1227_v45  ;;  %v1244_v14 = vmul.f32 %v10203_v42, %v10176_v30  ;;  %v1656_v21 = vpack.c.bf16 %v1538_v63, %v1538_v63  ;;  %vm1250_vm14 = vweird.f32 %v10203_v42  ;;  %vm10265_vm15 = vmor %vm1239_vm11, %vm1240_vm12 }
 0x239   : > { %v1312_v15 = vpack.c.bf16 %v1302_v11, %v1301_v10  ;;  %v1235_v17 = vmul.f32 %v10197_v3, %v1234_v9  ;;  %v1640_v41 = vpack.c.bf16 %v1624_v60, %v1624_v60  ;;  %v1303_v44 = vadd.f32 %v10058_v49, %v1284_v55  ;;  %vm10271_vm0 = vmor %vm1249_vm13, %vm1250_vm14 }
 0x23a   : > { %v1232_v4 = vsel %vm1231_vm10, %v10180_v31, %v1228_v6  ;;  %v1245_v19 = vmul.f32 %v10203_v42, %v1244_v14  ;;  %v1716_v40 = vunpack.c.l.b16 %v1656_v21  ;;  %v1670_v9 = vpack.c.bf16 %v10186_v58, %v10186_v58 }
 0x23b   : > { %v1266_v28 = vmul.f32 %v1232_v4, %v10093_v18  ;;  %v1236_v0 = vmul.f32 0.5, %v1235_v17  ;;  %v1696_v52 = vunpack.c.l.b16 %v1640_v41  ;;  %v4209_v11 = vunpack.c.l.b16 %v1671_v47 }
 0x23c   : > { %1606 = vmatmul.bf16.gmra.mxu3 %v1312_v15  ;;  %v1246_v31 = vmul.f32 0.5, %v1245_v19  ;;  %v4208_v7 = vunpack.c.l.b16 %v1670_v9 }
 0x23d   : > { %v10239_v22 = vpop.f32.mrf.mxu2  ;;  %v1285_v37 = vmul.f32 %v10045_v32, %v1266_v28  ;;  %v1237_v18 = vsub.f32 1.5, %v1236_v0 }
 0x23e   : > { %v1491_v35 = vpop.f32.mrf.mxu0  ;;  %2830 = vrot.lane.b32.xlu2 %v10199_v5, %s15772_s11  ;;  %2098 = vrot.lane.b32.xlu0 %v10237_v20, %s15778_s27  ;;  %v1247_v39 = vsub.f32 1.5, %v1246_v31  ;;  %v10299_v16 = vpack.c.b16 %v4209_v11, %v4208_v7  ;;  %v1672_v23 = vpack.c.bf16 %v10239_v22, %v10239_v22  ;;  %v1740_v7 = vsel %vm1726_vm1, %v10199_v5, 0 }
 0x23f   : > { %v1540_v27 = vpop.f32.mrf.mxu1  ;;  %v1625_v26 = vmul.f32 0.17677669, %v1491_v35  ;;  %v1304_v33 = vadd.f32 %v10058_v49, %v1285_v37  ;;  %v1238_v48 = vmul.f32 %v10197_v3, %v1237_v18 }
 0x240   : > { %v1657_v51 = vpack.c.bf16 %v1540_v27, %v1540_v27  ;;  %v1248_v13 = vmul.f32 %v10203_v42, %v1247_v39  ;;  %15942 = vst [vmem:[#allocation39_spill] sm:$0xff] %v10299_v16 }
 0x241   : > { %v1641_v46 = vpack.c.bf16 %v1625_v26, %v1625_v26  ;;  %v1313_v59 = vpack.c.bf16 %v1304_v33, %v1303_v44  ;;  %v1242_v45 = vsel %vm10265_vm15, %v10197_v3, %v1238_v48  ;;  %v4210_v26 = vunpack.c.l.b16 %v1672_v23 }
 0x242   : > { %1508 = vmatmul.bf16.gmra.mxu0 %v1312_v15  ;;  %1557 = vmatmul.bf16.gmra.mxu1 %v1312_v15  ;;  %v1717_v36 = vunpack.c.l.b16 %v1657_v51  ;;  %v1252_v53 = vsel %vm10271_vm0, %v10203_v42, %v1248_v13  ;;  %v1267_v3 = vmul.f32 %v1242_v45, %v10108_v34 }
 0x243   : > { %v1697_v30 = vunpack.c.l.b16 %v1641_v46  ;;  %v1268_v10 = vmul.f32 %v1252_v53, %v10096_v43 }
 0x244   : > { %v10248_v38 = vpack.c.b16 %v1717_v36, %v1716_v40  ;;  %v1286_v34 = vmul.f32 %v10045_v32, %v1267_v3 }
 0x245   : > { %v10253_v2 = vpop.f32.mrf.mxu2  ;;  %v10283_v62 = vpack.c.b16 %v1697_v30, %v1696_v52  ;;  %v1287_v4 = vmul.f32 %v10045_v32, %v1268_v10 }
 0x246   : > { %2108 = vrot.lane.b32.xlu1 %v10248_v38, %s15778_s27  ;;  %v1494_v54 = vpop.f32.mrf.mxu0  ;;  %2832 = vrot.lane.b32.xlu2 %v10248_v38, %s15772_s11  ;;  %v1305_v43 = vadd.f32 %v10058_v49, %v1286_v34  ;;  %v1673_v0 = vpack.c.bf16 %v10253_v2, %v10253_v2 }
 0x247   : > { %v1543_v24 = vpop.f32.mrf.mxu1  ;;  %2460 = vrot.lane.b32.xlu0 %v10237_v20, %s9532_s26  ;;  %v1626_v12 = vmul.f32 0.17677669, %v1494_v54  ;;  %v1306_v21 = vadd.f32 %v10058_v49, %v1287_v4 }
 0x248   : > { %v1658_v56 = vpack.c.bf16 %v1543_v24, %v1543_v24  ;;  %v4211_v49 = vunpack.c.l.b16 %v1673_v0 }
 0x249   : > { %v1642_v17 = vpack.c.bf16 %v1626_v12, %v1626_v12  ;;  %v1314_v32 = vpack.c.bf16 %v1306_v21, %v1305_v43 }
 0x24a   : > { %v1718_v50 = vunpack.c.l.b16 %v1658_v56  ;;  %v10323_v37 = vpack.c.b16 %v4211_v49, %v4210_v26 }
 0x24b   : > { %v1698_v35 = vunpack.c.l.b16 %v1642_v17 }
 0x24c   : > { %1611 = vmatmul.bf16.gmra.mxu3 %v1313_v59  ;;  %15944 = vst [vmem:[#allocation41_spill] sm:$0xff] %v10323_v37 }
 0x24d   : > { %v1592_v63 = vpop.f32.mrf.mxu2 }
 0x24e   : > { %2470 = vrot.lane.b32.xlu1 %v10248_v38, %s9532_s26  ;;  %v1496_v6 = vpop.f32.mrf.mxu0  ;;  %2100 = vrot.lane.b32.xlu2 %v10283_v62, %s15778_s27  ;;  %v1674_v51 = vpack.c.bf16 %v1592_v63, %v1592_v63 }
 0x24f   : > { %v1545_v8 = vpop.f32.mrf.mxu1  ;;  %2822 = vrot.lane.b32.xlu0 %v10237_v20, %s15772_s11  ;;  %v1627_v25 = vmul.f32 0.17677669, %v1496_v6 }
 0x250   : > { %v1659_v42 = vpack.c.bf16 %v1545_v8, %v1545_v8  ;;  %v4212_v40 = vunpack.c.l.b16 %v1674_v51 }
 0x251   : > { %v1643_v58 = vpack.c.bf16 %v1627_v25, %v1627_v25 }
 0x252   : > { %1513 = vmatmul.bf16.gmra.mxu0 %v1313_v59  ;;  %1562 = vmatmul.bf16.gmra.mxu1 %v1313_v59  ;;  %v1719_v14 = vunpack.c.l.b16 %v1659_v42  ;;  %v1743_v42 = vsel %vm1726_vm1, %v10248_v38, 0 }
 0x253   : > { %v1699_v61 = vunpack.c.l.b16 %v1643_v58 }
 0x254   : > { %v10296_v15 = vpack.c.b16 %v1719_v14, %v1718_v50 }
 0x255   : > { %v1594_v19 = vpop.f32.mrf.mxu2  ;;  %v10309_v27 = vpack.c.b16 %v1699_v61, %v1698_v35 }
 0x256   : > { %2472 = vrot.lane.b32.xlu1 %v10296_v15, %s9532_s26  ;;  %2462 = vrot.lane.b32.xlu2 %v10283_v62, %s9532_s26  ;;  %v1675_v28 = vpack.c.bf16 %v1594_v19, %v1594_v19  ;;  %v1746_v47 = vsel %vm1726_vm1, %v10296_v15, 0 }
 0x257   : > { %4438 = vrot.lane.b32.xlu0 %v10299_v16, %s15778_s27 }
 0x258   : > { %v4213_v31 = vunpack.c.l.b16 %v1675_v28 }
 0x25a   : > { %v10321_v36 = vpack.c.b16 %v4213_v31, %v4212_v40 }
 0x25c   : > { %1616 = vmatmul.bf16.gmra.mxu3 %v1314_v32  ;;  %15943 = vst [vmem:[#allocation40_spill] sm:$0xff] %v10321_v36 }
 0x25e   : > { %2826 = vrot.lane.b32.xlu1 %v10309_v27, %s15772_s11  ;;  %2464 = vrot.lane.b32.xlu2 %v10309_v27, %s9532_s26 }
 0x25f   : > { %2824 = vrot.lane.b32.xlu0 %v10283_v62, %s15772_s11 }
 0x262   : > { %1518 = vmatmul.bf16.gmra.mxu0 %v1314_v32  ;;  %1567 = vmatmul.bf16.gmra.mxu1 %v1314_v32 }
 0x266   : > { %4442 = vrot.lane.b32.xlu1 %v10321_v36, %s15778_s27 }
 0x267   : > { %4440 = vrot.lane.b32.xlu0 %v10323_v37, %s15778_s27 }
 0x26e   : > { %4656 = vrot.lane.b32.xlu1 %v10321_v36, %s9532_s26 }
 0x26f   : > { %4654 = vrot.lane.b32.xlu0 %v10323_v37, %s9532_s26 }
 0x277   : > { %2110 = vrot.lane.b32.xlu0 %v10296_v15, %s15778_s27 }
 0x27f   : > { %2834 = vrot.lane.b32.xlu0 %v10296_v15, %s15772_s11 }
 0x287   : > { %2102 = vrot.lane.b32.xlu0 %v10309_v27, %s15778_s27 }
 0x290   : > { %v10385_v17 = vpop.permute.xlu2 %2106 }
 0x298   : > { %v10395_v51 = vpop.permute.xlu2 %2830 }
 0x29f   : > { %v1499_v22 = vpop.f32.mrf.mxu0  ;;  %v1548_v18 = vpop.f32.mrf.mxu1 }
 0x2a0   : > { %v1660_v60 = vpack.c.bf16 %v1548_v18, %v1548_v18  ;;  %v1628_v54 = vmul.f32 0.17677669, %v1499_v22 }
 0x2a2   : > { %v1720_v24 = vunpack.c.l.b16 %v1660_v60  ;;  %v1644_v1 = vpack.c.bf16 %v1628_v54, %v1628_v54 }
 0x2a4   : > { %v1700_v45 = vunpack.c.l.b16 %v1644_v1 }
 0x2a6   : > { %v1597_v13 = vpop.f32.mrf.mxu2 }
 0x2a7   : > { %v1501_v55 = vpop.f32.mrf.mxu0  ;;  %v1550_v39 = vpop.f32.mrf.mxu1  ;;  %v1676_v9 = vpack.c.bf16 %v1597_v13, %v1597_v13 }
 0x2a8   : > { %v1629_v46 = vmul.f32 0.17677669, %v1501_v55  ;;  %v1661_v2 = vpack.c.bf16 %v1550_v39, %v1550_v39  ;;  %v10351_v52 = vpop.permute.xlu0 %2468 }
 0x2a9   : > { %v4214_v14 = vunpack.c.l.b16 %v1676_v9 }
 0x2aa   : > { %v1721_v33 = vunpack.c.l.b16 %v1661_v2  ;;  %v1645_v48 = vpack.c.bf16 %v1629_v46, %v1629_v46 }
 0x2ac   : > { %v10339_v41 = vpack.c.b16 %v1721_v33, %v1720_v24  ;;  %v1701_v57 = vunpack.c.l.b16 %v1645_v48  ;;  %v10409_v48 = vpop.permute.xlu2 %2832 }
 0x2ae   : > { %2112 = vrot.lane.b32.xlu2 %v10339_v41, %s15778_s27  ;;  %2836 = vrot.lane.b32.xlu0 %v10339_v41, %s15772_s11  ;;  %v1749_v44 = vsel %vm1726_vm1, %v10339_v41, 0  ;;  %v10353_v53 = vpack.c.b16 %v1701_v57, %v1700_v45  ;;  %v1599_v8 = vpop.f32.mrf.mxu2 }
 0x2af   : > { %v10347_v30 = vpop.f32.mrf.mxu1  ;;  %1755 = vmatpush.bf16.xpose.msrb.mxu3 %v1749_v44  ;;  %v10349_v59 = vpop.f32.mrf.mxu3  ;;  %v1677_v3 = vpack.c.bf16 %v1599_v8, %v1599_v8 }
 0x2b0   : > { %v1504_v56 = vpop.f32.mrf.mxu0  ;;  %v10365_v25 = vpop.permute.xlu0 %2098 }
 0x2b1   : > { %v4215_v11 = vunpack.c.l.b16 %v1677_v3  ;;  %v1630_v5 = vmul.f32 0.17677669, %v1504_v56  ;;  %v1662_v56 = vpack.c.bf16 %v10347_v30, %v10347_v30 }
 0x2b3   : > { %v10373_v34 = vpack.c.b16 %v4215_v11, %v4214_v14  ;;  %v1646_v28 = vpack.c.bf16 %v1630_v5, %v1630_v5 }
 0x2b5   : > { %v1788_v40 = vunpack.c.l.b16 %v1646_v28 }
 0x2b6   : > { %2104 = vrot.lane.b32.xlu2 %v10353_v53, %s15778_s27  ;;  %2828 = vrot.lane.b32.xlu0 %v10353_v53, %s15772_s11 }
 0x2b7   : > { %v10361_v63 = vpop.f32.mrf.mxu1  ;;  %1756 = vmatpush.bf16.xpose.msrb.mxu3 %v1746_v47  ;;  %v10363_v6 = vpop.f32.mrf.mxu3 }
 0x2b8   : > { %v1506_v12 = vpop.f32.mrf.mxu0  ;;  %v1663_v57 = vpack.c.bf16 %v10361_v63, %v10361_v63 }
 0x2b9   : > { %v10379_v15 = vpop.permute.xlu0 %2460  ;;  %v1631_v61 = vmul.f32 0.17677669, %v1506_v12 }
 0x2bb   : > { %v1647_v35 = vpack.c.bf16 %v1631_v61, %v1631_v61  ;;  %v10423_v61 = vpop.permute.xlu2 %2100 }
 0x2bd   : > { %v1789_v23 = vunpack.c.l.b16 %v1647_v35 }
 0x2be   : > { %2466 = vrot.lane.b32.xlu2 %v10353_v53, %s9532_s26 }
 0x2bf   : > { %v1558_v10 = vpop.f32.mrf.mxu1  ;;  %1757 = vmatpush.bf16.xpose.msrb.mxu3 %v1743_v42  ;;  %v10371_v50 = vpop.f32.mrf.mxu3  ;;  %v10397_v26 = vpack.c.b16 %v1789_v23, %v1788_v40 }
 0x2c0   : > { %v10383_v4 = vpop.f32.mrf.mxu0  ;;  %v1664_v39 = vpack.c.bf16 %v1558_v10, %v1558_v10  ;;  %v1809_v10 = vunpack.c.l.b16 %v1663_v57 }
 0x2c1   : > { %v10391_v21 = vpop.permute.xlu0 %2822 }
 0x2c2   : > { %v1810_v1 = vunpack.c.l.b16 %v1664_v39 }
 0x2c6   : > { %4444 = vrot.lane.b32.xlu2 %v10373_v34, %s15778_s27 }
 0x2c7   : > { %v1560_v58 = vpop.f32.mrf.mxu1  ;;  %1758 = vmatpush.bf16.xpose.msrb.mxu3 %v1740_v7  ;;  %v10381_v38 = vpop.f32.mrf.mxu3 }
 0x2c8   : > { %v1511_v32 = vpop.f32.mrf.mxu0  ;;  %v1665_v18 = vpack.c.bf16 %v1560_v58, %v1560_v58 }
 0x2c9   : > { %v10399_v22 = vpop.permute.xlu0 %4438 }
 0x2ca   : > { %v1811_v24 = vunpack.c.l.b16 %v1665_v18  ;;  %v1632_v18 = vmul.f32 0.17677669, %v10383_v4 }
 0x2cc   : > { %v10411_v44 = vpack.c.b16 %v1811_v24, %v1810_v1  ;;  %v1648_v24 = vpack.c.bf16 %v1632_v18, %v1632_v18 }
 0x2ce   : > { %4658 = vrot.lane.b32.xlu2 %v10373_v34, %s9532_s26  ;;  %8038 = vmatmul.msk.bf16.vlgmr.msrb.gmra.mxu3 %vm1726_vm1, %v10237_v20  ;;  %v1790_v4 = vunpack.c.l.b16 %v1648_v24 }
 0x2cf   : > { %v1563_v43 = vpop.f32.mrf.mxu1  ;;  %v1612_v19 = vpop.f32.mrf.mxu3 }
 0x2d0   : > { %v1682_v31 = vpack.c.bf16 %v1612_v19, %v1612_v19  ;;  %v1514_v2 = vpop.f32.mrf.mxu0  ;;  %v1666_v47 = vpack.c.bf16 %v1563_v43, %v1563_v43  ;;  %v1808_v43 = vunpack.c.l.b16 %v1662_v56 }
 0x2d1   : > { %v10415_v45 = vpop.permute.xlu0 %2824  ;;  %v1634_v40 = vmul.f32 0.17677669, %v1514_v2 }
 0x2d2   : > { %v4297_v60 = vunpack.c.l.b16 %v1682_v31  ;;  %v1812_v12 = vunpack.c.l.b16 %v1666_v47  ;;  %v1816_v28 = vpack.c.b16 %v1809_v10, %v1808_v43 }
 0x2d3   : > { %v1650_v39 = vpack.c.bf16 %v1634_v40, %v1634_v40  ;;  %v2127_v40 = vsel %vm1726_vm1, %v10385_v17, 0  ;;  %v2854_v17 = vsel %vm1726_vm1, %v10409_v48, 0 }
 0x2d5   : > { %v1792_v2 = vunpack.c.l.b16 %v1650_v39 }
 0x2d6   : > { %4872 = vrot.lane.b32.xlu2 %v10373_v34, %s15772_s11 }
 0x2d7   : > { %v1565_v0 = vpop.f32.mrf.mxu1  ;;  %v1614_v49 = vpop.f32.mrf.mxu3 }
 0x2d8   : > { %v1683_v20 = vpack.c.bf16 %v1614_v49, %v1614_v49  ;;  %v1667_v13 = vpack.c.bf16 %v1565_v0, %v1565_v0  ;;  %v1516_v11 = vpop.f32.mrf.mxu0  ;;  %v1633_v49 = vmul.f32 0.17677669, %v1511_v32 }
 0x2d9   : > { %v10434_v23 = vpop.permute.xlu0 %4440  ;;  %v1635_v31 = vmul.f32 0.17677669, %v1516_v11 }
 0x2da   : > { %v4298_v55 = vunpack.c.l.b16 %v1683_v20  ;;  %v1813_v3 = vunpack.c.l.b16 %v1667_v13 }
 0x2dc   : > { %v10401_v46 = vpack.c.b16 %v4298_v55, %v4297_v60  ;;  %v1818_v19 = vpack.c.b16 %v1813_v3, %v1812_v12  ;;  %v1651_v60 = vpack.c.bf16 %v1635_v31, %v1635_v31  ;;  %v10440_v55 = vpop.permute.xlu2 %2462 }
 0x2de   : > { %15945 = vst [vmem:[#allocation42_spill] sm:$0xff] %v10401_v46  ;;  %2891 = vrot.lane.b32.xlu2 %v10397_v26, %s15772_s11  ;;  %8039 = vmatmul.msk.bf16.gmra.mxu3 %vm1726_vm1, %v10283_v62 }
 0x2df   : > { %v1568_v54 = vpop.f32.mrf.mxu1  ;;  %4515 = vrot.lane.b32.xlu1 %v10401_v46, %s15778_s27  ;;  %v1617_v33 = vpop.f32.mrf.mxu3 }
 0x2e0   : > { %v1668_v62 = vpack.c.bf16 %v1568_v54, %v1568_v54  ;;  %v1684_v9 = vpack.c.bf16 %v1617_v33, %v1617_v33  ;;  %v1519_v20 = vpop.f32.mrf.mxu0  ;;  %v1839_v54 = vsel %vm1726_vm1, %v1818_v19, 0  ;;  %v1793_v33 = vunpack.c.l.b16 %v1651_v60 }
 0x2e1   : > { %v10446_v1 = vpop.permute.xlu0 %4654  ;;  %v1636_v3 = vmul.f32 0.17677669, %v1519_v20 }
 0x2e2   : > { %v1814_v14 = vunpack.c.l.b16 %v1668_v62  ;;  %v4299_v5 = vunpack.c.l.b16 %v1684_v9  ;;  %v1798_v13 = vpack.c.b16 %v1793_v33, %v1792_v2  ;;  %v1836_v62 = vsel %vm1726_vm1, %v10411_v44, 0 }
 0x2e3   : > { %v1652_v10 = vpack.c.bf16 %v1636_v3, %v1636_v3 }
 0x2e4   : > { %v10453_v56 = vpop.permute.xlu2 %2464 }
 0x2e6   : > { %2901 = vrot.lane.b32.xlu2 %v10411_v44, %s15772_s11 }
 0x2e7   : > { %v1570_v8 = vpop.f32.mrf.mxu1  ;;  %2474 = vrot.lane.b32.xlu1 %v10339_v41, %s9532_s26  ;;  %v1619_v63 = vpop.f32.mrf.mxu3 }
 0x2e8   : > { %v1669_v42 = vpack.c.bf16 %v1570_v8, %v1570_v8  ;;  %v1685_v7 = vpack.c.bf16 %v1619_v63, %v1619_v63  ;;  %v1521_v57 = vpop.f32.mrf.mxu0 }
 0x2e9   : > { %v1637_v8 = vmul.f32 0.17677669, %v1521_v57  ;;  %v2111_v9 = vpop.permute.xlu0 %2110 }
 0x2ea   : > { %v1815_v58 = vunpack.c.l.b16 %v1669_v42  ;;  %v4300_v30 = vunpack.c.l.b16 %v1685_v7 }
 0x2eb   : > { %v1653_v42 = vpack.c.bf16 %v1637_v8, %v1637_v8 }
 0x2ec   : > { %v10425_v35 = vpack.c.b16 %v1815_v58, %v1814_v14  ;;  %v10427_v0 = vpack.c.b16 %v4300_v30, %v4299_v5  ;;  %v1794_v14 = vunpack.c.l.b16 %v1652_v10  ;;  %v2109_v5 = vpop.permute.xlu1 %2108 }
 0x2ed   : > { %v1795_v11 = vunpack.c.l.b16 %v1653_v42 }
 0x2ee   : > { %15946 = vst [vmem:[#allocation43_spill] sm:$0xff] %v10427_v0  ;;  %2179 = vrot.lane.b32.xlu2 %v1818_v19, %s15778_s27  ;;  %8040 = vmatmul.msk.bf16.gmra.mxu3 %vm1726_vm1, %v10309_v27  ;;  %v1842_v41 = vsel %vm1726_vm1, %v10425_v35, 0  ;;  %v1649_v27 = vpack.c.bf16 %v1633_v49, %v1633_v49 }
 0x2ef   : > { %1848 = vmatpush.bf16.xpose.msra.mxu3 %v1842_v41  ;;  %2175 = vrot.lane.b32.xlu1 %v1816_v28, %s15778_s27  ;;  %v1799_v7 = vpack.c.b16 %v1795_v11, %v1794_v14 }
 0x2f0   : > { %4517 = vrot.lane.b32.xlu0 %v10427_v0, %s15778_s27  ;;  %v1791_v32 = vunpack.c.l.b16 %v1649_v27 }
 0x2f1   : > { %v2835_v58 = vpop.permute.xlu0 %2834 }
 0x2f2   : > { %v1797_v47 = vpack.c.b16 %v1791_v32, %v1790_v4  ;;  %v2857_v18 = vsel %vm1726_vm1, %v2835_v58, 0 }
 0x2f4   : > { %v10483_v49 = vpop.permute.xlu1 %2470 }
 0x2f5   : > { %v2492_v58 = vsel %vm1726_vm1, %v10483_v49, 0 }
 0x2f6   : > { %2541 = vrot.lane.b32.xlu2 %v1818_v19, %s9532_s26 }
 0x2f7   : > { %1849 = vmatpush.bf16.xpose.msra.mxu3 %v1839_v54  ;;  %2537 = vrot.lane.b32.xlu1 %v1816_v28, %s9532_s26 }
 0x2f8   : > { %2899 = vrot.lane.b32.xlu0 %v1816_v28, %s15772_s11 }
 0x2f9   : > { %v2103_v30 = vpop.permute.xlu0 %2102 }
 0x2fc   : > { %v2473_v60 = vpop.permute.xlu1 %2472 }
 0x2fe   : > { %2533 = vrot.lane.b32.xlu2 %v1798_v13, %s9532_s26  ;;  %8041 = vmatmul.msk.bf16.gmra.mxu3 %vm1726_vm1, %v10353_v53  ;;  %v1833_v53 = vsel %vm1726_vm1, %v1816_v28, 0  ;;  %v2130_v28 = vsel %vm1726_vm1, %v2109_v5, 0 }
 0x2ff   : > { %1850 = vmatpush.bf16.xpose.msra.mxu3 %v1836_v62  ;;  %2167 = vrot.lane.b32.xlu1 %v10397_v26, %s15778_s27 }
 0x300   : > { %2893 = vrot.lane.b32.xlu0 %v1797_v47, %s15772_s11 }
 0x304   : > { %v10498_v39 = vpop.permute.xlu1 %2826 }
 0x306   : > { %2181 = vrot.lane.b32.xlu2 %v10425_v35, %s15778_s27 }
 0x307   : > { %1851 = vmatpush.bf16.xpose.msra.mxu3 %v1833_v53  ;;  %2529 = vrot.lane.b32.xlu1 %v10397_v26, %s9532_s26  ;;  %v2495_v53 = vsel %vm1726_vm1, %v2473_v60, 0 }
 0x308   : > { %2903 = vrot.lane.b32.xlu0 %v1818_v19, %s15772_s11  ;;  %v2113_v63 = vpop.permute.xlu2 %2112  ;;  %v2133_v19 = vsel %vm1726_vm1, %v2111_v9, 0 }
 0x309   : > { %v2136_v12 = vsel %vm1726_vm1, %v2113_v63, 0 }
 0x30a   : > { %2142 = vmatpush.bf16.xpose.msrb.mxu0 %v2136_v12 }
 0x30c   : > { %v4443_v24 = vpop.permute.xlu1 %4442 }
 0x30e   : > { %8042 = vmatmul.msk.bf16.vlgmr.msra.gmra.mxu3 %vm1726_vm1, %v10397_v26  ;;  %2173 = vrot.lane.b32.xlu2 %v1799_v7, %s15778_s27 }
 0x30f   : > { %2177 = vrot.lane.b32.xlu1 %v10411_v44, %s15778_s27 }
 0x310   : > { %2171 = vrot.lane.b32.xlu0 %v1798_v13, %s15778_s27  ;;  %v2105_v43 = vpop.permute.xlu2 %2104 }
 0x312   : > { %2143 = vmatpush.bf16.xpose.msrb.mxu0 %v2133_v19 }
 0x316   : > { %2897 = vrot.lane.b32.xlu2 %v1799_v7, %s15772_s11 }
 0x317   : > { %2539 = vrot.lane.b32.xlu1 %v10411_v44, %s9532_s26 }
 0x318   : > { %2905 = vrot.lane.b32.xlu0 %v10425_v35, %s15772_s11  ;;  %v10477_v26 = vpop.permute.xlu2 %2466 }
 0x31a   : > { %2144 = vmatpush.bf16.xpose.msrb.mxu0 %v2130_v28 }
 0x31e   : > { %8043 = vmatmul.msk.bf16.gmra.mxu3 %vm1726_vm1, %v1797_v47 }
 0x31f   : > { %2169 = vrot.lane.b32.xlu1 %v1797_v47, %s15778_s27 }
 0x320   : > { %2535 = vrot.lane.b32.xlu0 %v1799_v7, %s9532_s26  ;;  %v4445_v41 = vpop.permute.xlu2 %4444  ;;  %v2837_v31 = vpop.permute.xlu0 %2836 }
 0x321   : > { %v2860_v44 = vsel %vm1726_vm1, %v2837_v31, 0 }
 0x322   : > { %2145 = vmatpush.bf16.xpose.msrb.mxu0 %v2127_v40 }
 0x327   : > { %2531 = vrot.lane.b32.xlu1 %v1797_v47, %s9532_s26 }
 0x328   : > { %v10489_v20 = vpop.permute.xlu2 %4658 }
 0x329   : > { %8046 = vmatmul.msk.bf16.vlgmr.msrb.gmra.mxu0 %vm1726_vm1, %v10365_v25  ;;  %v2851_v25 = vsel %vm1726_vm1, %v10395_v51, 0 }
 0x32a   : > { %2866 = vmatpush.bf16.xpose.msra.mxu0 %v2860_v44 }
 0x32e   : > { %8044 = vmatmul.msk.bf16.gmra.mxu3 %vm1726_vm1, %v1798_v13 }
 0x32f   : > { %2895 = vrot.lane.b32.xlu1 %v1798_v13, %s15772_s11  ;;  %s3575_s11 = sadd.s32 7, %s11158_s14 }
 0x330   : > { %v4873_v27 = vpop.permute.xlu2 %4872  ;;  %s11402_s27 = sld [smem:[#allocation12 + %s3575_s11]]  ;;  %s3397_s11 = sadd.s32 13, %s11158_s14 }
 0x332   : > { %2867 = vmatpush.bf16.xpose.msra.mxu0 %v2857_v18 }
 0x337   : > { %2543 = vrot.lane.b32.xlu1 %v10425_v35, %s9532_s26  ;;  %v4657_v35 = vpop.permute.xlu1 %4656 }
 0x338   : > { %v10502_v54 = vpop.permute.xlu2 %2891 }
 0x339   : > { %8047 = vmatmul.msk.bf16.gmra.mxu0 %vm1726_vm1, %v10423_v61 }
 0x33a   : > { %2868 = vmatpush.bf16.xpose.msra.mxu0 %v2854_v17 }
 0x33e   : > { %8045 = vmatmul.msk.bf16.gmra.mxu3 %vm1726_vm1, %v1799_v7 }
 0x340   : > { %v10509_v48 = vpop.permute.xlu2 %2901 }
 0x342   : > { %2869 = vmatpush.bf16.xpose.msra.mxu0 %v2851_v25 }
 0x348   : > { %v2180_v33 = vpop.permute.xlu2 %2179 }
 0x349   : > { %8048 = vmatmul.msk.bf16.gmra.mxu0 %vm1726_vm1, %v2103_v30  ;;  %v2202_v63 = vsel %vm1726_vm1, %v2180_v33, 0  ;;  %v2489_v30 = vsel %vm1726_vm1, %v10351_v52, 0 }
 0x34a   : > { %4466 = vmatpush.bf16.msrb.mxu0 %v4445_v41 }
 0x34e   : > { %4467 = vmatpush.bf16.msrb.mxu0 %v4443_v24 }
 0x350   : > { %v10514_v61 = vpop.permute.xlu2 %2541 }
 0x351   : > { %v10516_v32 = vpop.f32.mrf.mxu3  ;;  %v10518_v51 = vpop.permute.xlu1 %4515 }
 0x352   : > { %4468 = vmatpush.bf16.msrb.mxu0 %v10434_v23  ;;  %v10525_v23 = vpop.permute.xlu0 %2828  ;;  %v1874_v62 = vsel %vm1873_vm2, %v10516_v32, -inf }
 0x356   : > { %4469 = vmatpush.bf16.msrb.mxu0 %v10399_v22 }
 0x358   : > { %v10520_v2 = vpop.permute.xlu2 %2533 }
 0x359   : > { %v10522_v4 = vpop.f32.mrf.mxu3  ;;  %8049 = vmatmul.msk.bf16.gmra.mxu0 %vm1726_vm1, %v2105_v43  ;;  %v2475_v13 = vpop.permute.xlu1 %2474 }
 0x35a   : > { %v1877_v22 = vsel %vm1873_vm2, %v10522_v4, -inf  ;;  %v2498_v57 = vsel %vm1726_vm1, %v2475_v13, 0  ;;  %v2923_v13 = vsel %vm1726_vm1, %v10509_v48, 0 }
 0x35b   : > { %1878 = vmax.xlane.f32.xlu0 %v1877_v22  ;;  %2504 = vmatpush.bf16.xpose.msrb.mxu2 %v2498_v57 }
 0x360   : > { %v2182_v47 = vpop.permute.xlu2 %2181 }
 0x361   : > { %v10532_v8 = vpop.f32.mrf.mxu3  ;;  %v2205_v3 = vsel %vm1726_vm1, %v2182_v47, 0  ;;  %v2176_v9 = vpop.permute.xlu1 %2175  ;;  %1875 = vmax.xlane.f32.xlu1 %v1874_v62 }
 0x362   : > { %v10535_v42 = vpop.permute.xlu0 %4517  ;;  %2211 = vmatpush.bf16.xpose.msrb.mxu1 %v2205_v3  ;;  %v1880_v10 = vsel %vm1873_vm2, %v10532_v8, -inf  ;;  %v2196_v17 = vsel %vm1726_vm1, %v2176_v9, 0 }
 0x363   : > { %1881 = vmax.xlane.f32.xlu2 %v1880_v10  ;;  %2505 = vmatpush.bf16.xpose.msrb.mxu2 %v2495_v53 }
 0x369   : > { %v10540_v11 = vpop.f32.mrf.mxu3  ;;  %8062 = vmatmul.msk.bf16.vlgmr.msra.gmra.mxu0 %vm1726_vm1, %v10391_v21  ;;  %v10545_v12 = vpop.permute.xlu1 %2537 }
 0x36a   : > { %v10547_v14 = vpop.permute.xlu0 %2899  ;;  %4894 = vmatpush.bf16.msra.mxu0 %v4873_v27  ;;  %2212 = vmatpush.bf16.xpose.msrb.mxu1 %v2202_v63  ;;  %v1883_v7 = vsel %vm1873_vm2, %v10540_v11, -inf }
 0x36b   : > { %1884 = vmax.xlane.f32.xlu1 %v1883_v7  ;;  %2506 = vmatpush.bf16.xpose.msrb.mxu2 %v2492_v58  ;;  %v2920_v47 = vsel %vm1726_vm1, %v10547_v14, 0 }
 0x371   : > { %v10553_v43 = vpop.f32.mrf.mxu3  ;;  %v2168_v19 = vpop.permute.xlu1 %2167 }
 0x372   : > { %v10555_v21 = vpop.permute.xlu0 %2893  ;;  %v1886_v5 = vsel %vm1873_vm2, %v10553_v43, -inf }
 0x373   : > { %1887 = vmax.xlane.f32.xlu0 %v1886_v5  ;;  %2507 = vmatpush.bf16.xpose.msrb.mxu2 %v2489_v30  ;;  %v1681_v30 = vpack.c.bf16 %v10381_v38, %v10381_v38 }
 0x379   : > { %v10563_v28 = vpop.f32.mrf.mxu3  ;;  %8063 = vmatmul.msk.bf16.gmra.mxu0 %vm1726_vm1, %v10415_v45  ;;  %v10567_v41 = vpop.permute.xlu1 %2529 }
 0x37a   : > { %v2904_v31 = vpop.permute.xlu0 %2903  ;;  %v1889_v49 = vsel %vm1873_vm2, %v10563_v28, -inf  ;;  %8054 = vmatmul.msk.bf16.vlgmr.msrb.gmra.mxu2 %vm1726_vm1, %v10379_v15 }
 0x37b   : > { %4240 = vmatpush.bf16.msra.mxu2 %v10373_v34  ;;  %1890 = vmax.xlane.f32.xlu2 %v1889_v49  ;;  %v2926_v24 = vsel %vm1726_vm1, %v2904_v31, 0  ;;  %v2558_v31 = vsel %vm1726_vm1, %v10545_v12, 0  ;;  %v1680_v49 = vpack.c.bf16 %v10371_v50, %v10371_v50 }
 0x37d   : > { %v4295_v38 = vunpack.c.l.b16 %v1680_v49 }
 0x37f   : > { %4241 = vmatpush.bf16.msra.mxu2 %v10321_v36 }
 0x381   : > { %v10575_v52 = vpop.f32.mrf.mxu3  ;;  %v2178_v34 = vpop.permute.xlu1 %2177 }
 0x382   : > { %v2172_v45 = vpop.permute.xlu0 %2171  ;;  %v1892_v44 = vsel %vm1873_vm2, %v10575_v52, -inf  ;;  %v2199_v40 = vsel %vm1726_vm1, %v2178_v34, 0  ;;  %v1679_v34 = vpack.c.bf16 %v10363_v6, %v10363_v6 }
 0x383   : > { %4242 = vmatpush.bf16.msra.mxu2 %v10323_v37  ;;  %1893 = vmax.xlane.f32.xlu1 %v1892_v44  ;;  %v1678_v44 = vpack.c.bf16 %v10349_v59, %v10349_v59 }
 0x384   : > { %2213 = vmatpush.bf16.xpose.msrb.mxu1 %v2199_v40 }
 0x385   : > { %v4293_v6 = vunpack.c.l.b16 %v1678_v44 }
 0x387   : > { %4243 = vmatpush.bf16.msra.mxu2 %v10299_v16 }
 0x389   : > { %v10581_v15 = vpop.f32.mrf.mxu3  ;;  %8064 = vmatmul.msk.bf16.gmra.mxu0 %vm1726_vm1, %v10498_v39  ;;  %v2540_v18 = vpop.permute.xlu1 %2539 }
 0x38a   : > { %v2906_v60 = vpop.permute.xlu0 %2905  ;;  %8055 = vmatmul.msk.bf16.gmra.mxu2 %vm1726_vm1, %v10440_v55  ;;  %v2561_v58 = vsel %vm1726_vm1, %v2540_v18, 0  ;;  %v4294_v18 = vunpack.c.l.b16 %v1679_v34 }
 0x38b   : > { %4680 = vmatpush.bf16.msrb.mxu2 %v10489_v20  ;;  %v1895_v20 = vsel %vm1873_vm2, %v10581_v15, -inf  ;;  %v2929_v27 = vsel %vm1726_vm1, %v2906_v60, 0 }
 0x38c   : > { %1896 = vmax.xlane.f32.xlu0 %v1895_v20  ;;  %2214 = vmatpush.bf16.xpose.msrb.mxu1 %v2196_v17  ;;  %v10674_v50 = vpack.c.b16 %v4294_v18, %v4293_v6 }
 0x38e   : > { %15948 = vst [vmem:[#allocation45_spill] sm:$0xff] %v10674_v50 }
 0x38f   : > { %4681 = vmatpush.bf16.msrb.mxu2 %v4657_v35 }
 0x391   : > { %v10592_v25 = vpop.f32.mrf.mxu3  ;;  %v2170_v39 = vpop.permute.xlu1 %2169 }
 0x393   : > { %4682 = vmatpush.bf16.msrb.mxu2 %v10446_v1  ;;  %v1898_v1 = vsel %vm1873_vm2, %v10592_v25, -inf  ;;  %8050 = vmatmul.msk.bf16.vlgmr.msrb.gmra.mxu1 %vm1726_vm1, %v2168_v19 }
 0x394   : > { %2935 = vmatpush.bf16.xpose.msra.mxu1 %v2929_v27  ;;  %1899 = vmax.xlane.f32.xlu0 %v1898_v1 }
 0x399   : > { %v10598_v33 = vpop.f32.mrf.mxu3  ;;  %8065 = vmatmul.msk.bf16.gmra.mxu0 %vm1726_vm1, %v10525_v23  ;;  %v10602_v55 = vpop.permute.xlu1 %2531 }
 0x39a   : > { %v1901_v35 = vsel %vm1873_vm2, %v10598_v33, -inf  ;;  %8056 = vmatmul.msk.bf16.gmra.mxu2 %vm1726_vm1, %v10453_v56 }
 0x39b   : > { %1902 = vmax.xlane.f32.xlu2 %v1901_v35 }
 0x39c   : > { %2936 = vmatpush.bf16.xpose.msra.mxu1 %v2926_v24 }
 0x3a1   : > { %v10610_v22 = vpop.f32.mrf.mxu3  ;;  %v10612_v57 = vpop.permute.xlu1 %2895 }
 0x3a2   : > { %v1904_v23 = vsel %vm1873_vm2, %v10610_v22, -inf }
 0x3a3   : > { %8051 = vmatmul.msk.bf16.gmra.mxu1 %vm1726_vm1, %v2170_v39  ;;  %1905 = vmax.xlane.f32.xlu2 %v1904_v23 }
 0x3a4   : > { %2937 = vmatpush.bf16.xpose.msra.mxu1 %v2923_v13 }
 0x3a6   : > { %v10620_v56 = vpop.f32.mrf.mxu0 }
 0x3a7   : > { %v2236_v10 = vsel %vm1873_vm2, %v10620_v56, -inf }
 0x3a9   : > { %v10622_v48 = vpop.f32.mrf.mxu3  ;;  %v2544_v62 = vpop.permute.xlu1 %2543 }
 0x3aa   : > { %v1907_v3 = vsel %vm1873_vm2, %v10622_v48, -inf  ;;  %v2567_v9 = vsel %vm1726_vm1, %v2544_v62, 0  ;;  %8057 = vmatmul.msk.bf16.gmra.mxu2 %vm1726_vm1, %v10477_v26 }
 0x3ab   : > { %1908 = vmax.xlane.f32.xlu1 %v1907_v3  ;;  %2573 = vmatpush.bf16.xpose.msrb.mxu3 %v2567_v9 }
 0x3ac   : > { %2938 = vmatpush.bf16.xpose.msra.mxu1 %v2920_v47  ;;  %2237 = vmax.xlane.f32.xlu2 %v2236_v10 }
 0x3ae   : > { %v10639_v63 = vpop.f32.mrf.mxu0 }
 0x3af   : > { %v2239_v7 = vsel %vm1873_vm2, %v10639_v63, -inf }
 0x3b3   : > { %8052 = vmatmul.msk.bf16.gmra.mxu1 %vm1726_vm1, %v2172_v45  ;;  %v4296_v45 = vunpack.c.l.b16 %v1681_v30 }
 0x3b4   : > { %4539 = vmatpush.bf16.msrb.mxu1 %v10535_v42  ;;  %v10632_v42 = vpop.f32.mrf.mxu3 }
 0x3b5   : > { %v1910_v53 = vsel %vm1873_vm2, %v10632_v42, -inf  ;;  %v10669_v60 = vpack.c.b16 %v4296_v45, %v4295_v38 }
 0x3b6   : > { %1911 = vmax.xlane.f32.xlu1 %v1910_v53 }
 0x3b7   : > { %15947 = vst [vmem:[#allocation44_spill] sm:$0xff] %v10669_v60 }
 0x3b8   : > { %4540 = vmatpush.bf16.msrb.mxu1 %v10518_v51  ;;  %v2564_v51 = vsel %vm1726_vm1, %v10514_v61, 0  ;;  %v2174_v61 = vpop.permute.xlu2 %2173 }
 0x3b9   : > { %2574 = vmatpush.bf16.xpose.msrb.mxu3 %v2564_v51 }
 0x3bc   : > { %v10641_v26 = vpop.f32.mrf.mxu3 }
 0x3bd   : > { %v1913_v14 = vsel %vm1873_vm2, %v10641_v26, -inf }
 0x3be   : > { %1914 = vmax.xlane.f32.xlu0 %v1913_v14  ;;  %2240 = vmax.xlane.f32.xlu1 %v2239_v7 }
 0x3c1   : > { %2575 = vmatpush.bf16.xpose.msrb.mxu3 %v2561_v58 }
 0x3c3   : > { %8053 = vmatmul.msk.bf16.gmra.mxu1 %vm1726_vm1, %v2174_v61 }
 0x3c4   : > { %v10648_v19 = vpop.f32.mrf.mxu3 }
 0x3c5   : > { %v1916_v5 = vsel %vm1873_vm2, %v10648_v19, -inf }
 0x3c6   : > { %1917 = vmax.xlane.f32.xlu0 %v1916_v5 }
 0x3c9   : > { %2576 = vmatpush.bf16.xpose.msrb.mxu3 %v2558_v31 }
 0x3cc   : > { %v10665_v40 = vpop.f32.mrf.mxu3 }
 0x3cd   : > { %v1919_v12 = vsel %vm1873_vm2, %v10665_v40, -inf }
 0x3ce   : > { %1920 = vmax.xlane.f32.xlu2 %v1919_v12 }
 0x3d0   : > { %8058 = vmatmul.msk.bf16.vlgmr.msrb.gmra.mxu3 %vm1726_vm1, %v10567_v41 }
 0x3d1   : > { %4325 = vmatpush.bf16.msra.mxu3 %v10427_v0 }
 0x3d3   : > { %8066 = vmatmul.msk.bf16.vlgmr.msra.gmra.mxu1 %vm1726_vm1, %v10502_v54  ;;  %v10690_v54 = vpop.f32.mrf.mxu0 }
 0x3d4   : > { %v1876_v59 = vpop.xlane.xlu1 %1875  ;;  %v2242_v47 = vsel %vm1873_vm2, %v10690_v54, -inf }
 0x3d5   : > { %4326 = vmatpush.bf16.msra.mxu3 %v10401_v46  ;;  %v1922_v20 = vsub.f32 %v10516_v32, %v1876_v59  ;;  %v2536_v32 = vpop.permute.xlu0 %2535 }
 0x3d7   : > { %v1938_v27 = vmul.f32 1.442695, %v1922_v20 }
 0x3d9   : > { %4327 = vmatpush.bf16.msra.mxu3 %v10669_v60  ;;  %8687 = vpow2.f32 %v1938_v27 }
 0x3db   : > { %v10694_v39 = vpop.f32.mrf.mxu0 }
 0x3dc   : > { %v2245_v51 = vsel %vm1873_vm2, %v10694_v39, -inf }
 0x3dd   : > { %4328 = vmatpush.bf16.msra.mxu3 %v10674_v50  ;;  %v1879_v1 = vpop.xlane.xlu0 %1878 }
 0x3de   : > { %v1885_v58 = vpop.xlane.xlu1 %1884 }
 0x3df   : > { %v10682_v41 = vpop.eup %8687  ;;  %v1925_v61 = vsub.f32 %v10540_v11, %v1885_v58 }
 0x3e0   : > { %8059 = vmatmul.msk.bf16.gmra.mxu3 %vm1726_vm1, %v10602_v55  ;;  %v1970_v17 = vsel %vm1873_vm2, %v10682_v41, 0.0  ;;  %v1923_v55 = vsub.f32 %v10522_v4, %v1879_v1 }
 0x3e1   : > { %1971 = vadd.xlane.f32.xlu1 %v1970_v17  ;;  %v1944_v49 = vmul.f32 1.442695, %v1925_v61 }
 0x3e2   : > { %v1940_v13 = vmul.f32 1.442695, %v1923_v55 }
 0x3e3   : > { %8067 = vmatmul.msk.bf16.gmra.mxu1 %vm1726_vm1, %v10555_v21  ;;  %v10702_v35 = vpop.f32.mrf.mxu0 }
 0x3e4   : > { %8689 = vpow2.f32 %v1940_v13  ;;  %v2248_v30 = vsel %vm1873_vm2, %v10702_v35, -inf }
 0x3e6   : > { %v1888_v12 = vpop.xlane.xlu0 %1887 }
 0x3e7   : > { %v1926_v59 = vsub.f32 %v10553_v43, %v1888_v12 }
 0x3e9   : > { %v1946_v55 = vmul.f32 1.442695, %v1926_v59 }
 0x3ea   : > { %v10711_v62 = vpop.eup %8689 }
 0x3eb   : > { %v10713_v3 = vpop.f32.mrf.mxu0  ;;  %v1973_v14 = vsel %vm1873_vm2, %v10711_v62, 0.0 }
 0x3ec   : > { %v2251_v1 = vsel %vm1873_vm2, %v10713_v3, -inf }
 0x3f0   : > { %8060 = vmatmul.msk.bf16.gmra.mxu3 %vm1726_vm1, %v10520_v2  ;;  %v2898_v2 = vpop.permute.xlu2 %2897 }
 0x3f3   : > { %8068 = vmatmul.msk.bf16.gmra.mxu1 %vm1726_vm1, %v10612_v57 }
 0x3f8   : > { %v1882_v4 = vpop.xlane.xlu2 %1881 }
 0x3f9   : > { %v1924_v10 = vsub.f32 %v10532_v8, %v1882_v4  ;;  %v10727_v8 = vpop.f32.mrf.mxu0 }
 0x3fb   : > { %v1942_v7 = vmul.f32 1.442695, %v1924_v10 }
 0x3fd   : > { %v10697_v24 = vpop.f32.mrf.mxu2  ;;  %8691 = vpow2.f32 %v1942_v7 }
 0x3fe   : > { %v2598_v21 = vsel %vm1873_vm2, %v10697_v24, -inf  ;;  %8693 = vpow2.f32 %v1944_v49 }
 0x3ff   : > { %2599 = vmax.xlane.f32.xlu0 %v2598_v21  ;;  %8695 = vpow2.f32 %v1946_v55 }
 0x400   : > { %8061 = vmatmul.msk.bf16.gmra.mxu3 %vm1726_vm1, %v2536_v32  ;;  %v1891_v18 = vpop.xlane.xlu2 %1890 }
 0x401   : > { %v10741_v38 = vpop.f32.mrf.mxu0  ;;  %v1927_v20 = vsub.f32 %v10563_v28, %v1891_v18  ;;  %v2254_v28 = vsel %vm1873_vm2, %v10727_v8, -inf }
 0x402   : > { %v2257_v13 = vsel %vm1873_vm2, %v10741_v38, -inf }
 0x403   : > { %8069 = vmatmul.msk.bf16.gmra.mxu1 %vm1726_vm1, %v2898_v2  ;;  %v10733_v34 = vpop.eup %8691  ;;  %v1948_v21 = vmul.f32 1.442695, %v1927_v20 }
 0x404   : > { %v1976_v44 = vsel %vm1873_vm2, %v10733_v34, 0.0  ;;  %v10743_v6 = vpop.eup %8693 }
 0x405   : > { %v10705_v57 = vpop.f32.mrf.mxu2  ;;  %v1979_v17 = vsel %vm1873_vm2, %v10743_v6, 0.0  ;;  %8697 = vpow2.f32 %v1948_v21 }
 0x406   : > { %v2601_v23 = vsel %vm1873_vm2, %v10705_v57, -inf }
 0x407   : > { %2602 = vmax.xlane.f32.xlu2 %v2601_v23  ;;  %2243 = vmax.xlane.f32.xlu0 %v2242_v47  ;;  %v10765_v47 = vpop.eup %8695 }
 0x408   : > { %15949 = vst [vmem:[#allocation46_spill] sm:$0xff] %v10765_v47  ;;  %v1982_v58 = vsel %vm1873_vm2, %v10765_v47, 0.0 }
 0x409   : > { %v10755_v2 = vpop.f32.mrf.mxu0 }
 0x40b   : > { %v10769_v10 = vpop.eup %8697 }
 0x40c   : > { %v1985_v7 = vsel %vm1873_vm2, %v10769_v10, 0.0 }
 0x40d   : > { %v10715_v9 = vpop.f32.mrf.mxu2 }
 0x40e   : > { %v2604_v53 = vsel %vm1873_vm2, %v10715_v9, -inf }
 0x40f   : > { %2605 = vmax.xlane.f32.xlu1 %v2604_v53  ;;  %2246 = vmax.xlane.f32.xlu2 %v2245_v51  ;;  %v1897_v53 = vpop.xlane.xlu0 %1896 }
 0x410   : > { %1974 = vadd.xlane.f32.xlu0 %v1973_v14  ;;  %v10767_v4 = vpop.f32.mrf.mxu1  ;;  %v1929_v14 = vsub.f32 %v10581_v15, %v1897_v53 }
 0x411   : > { %v10771_v51 = vpop.f32.mrf.mxu0 }
 0x412   : > { %v2963_v61 = vsel %vm1873_vm2, %v10771_v51, -inf }
 0x415   : > { %v10725_v5 = vpop.f32.mrf.mxu2 }
 0x416   : > { %v2607_v31 = vsel %vm1873_vm2, %v10725_v5, -inf }
 0x417   : > { %2249 = vmax.xlane.f32.xlu1 %v2248_v30  ;;  %v1894_v30 = vpop.xlane.xlu1 %1893  ;;  %v1900_v20 = vpop.xlane.xlu0 %1899 }
 0x418   : > { %2608 = vmax.xlane.f32.xlu0 %v2607_v31  ;;  %v1952_v31 = vmul.f32 1.442695, %v1929_v14  ;;  %v1928_v15 = vsub.f32 %v10575_v52, %v1894_v30  ;;  %v1930_v52 = vsub.f32 %v10592_v25, %v1900_v20  ;;  %v1903_v14 = vpop.xlane.xlu2 %1902 }
 0x41a   : > { %8699 = vpow2.f32 %v1952_v31  ;;  %v1950_v59 = vmul.f32 1.442695, %v1928_v15  ;;  %v1954_v55 = vmul.f32 1.442695, %v1930_v52 }
 0x41c   : > { %8701 = vpow2.f32 %v1950_v59 }
 0x41d   : > { %v10735_v45 = vpop.f32.mrf.mxu2  ;;  %8703 = vpow2.f32 %v1954_v55 }
 0x41e   : > { %v2610_v11 = vsel %vm1873_vm2, %v10735_v45, -inf }
 0x41f   : > { %2611 = vmax.xlane.f32.xlu2 %v2610_v11  ;;  %v10782_v11 = vpop.f32.mrf.mxu1 }
 0x420   : > { %1977 = vadd.xlane.f32.xlu0 %v1976_v44  ;;  %v2960_v44 = vsel %vm1873_vm2, %v10755_v2, -inf  ;;  %v2263_v18 = vsel %vm1873_vm2, %v10782_v11, -inf }
 0x425   : > { %v10747_v27 = vpop.f32.mrf.mxu2 }
 0x426   : > { %v2613_v32 = vsel %vm1873_vm2, %v10747_v27, -inf }
 0x427   : > { %1980 = vadd.xlane.f32.xlu2 %v1979_v17  ;;  %2614 = vmax.xlane.f32.xlu1 %v2613_v32  ;;  %v10791_v17 = vpop.eup %8699  ;;  %v2260_v32 = vsel %vm1873_vm2, %v10767_v4, -inf }
 0x428   : > { %2252 = vmax.xlane.f32.xlu0 %v2251_v1  ;;  %15950 = vst [vmem:[#allocation47_spill] sm:$0xff] %v10791_v17  ;;  %v1991_v1 = vsel %vm1873_vm2, %v10791_v17, 0.0  ;;  %v10798_v21 = vpop.eup %8701 }
 0x429   : > { %15951 = vst [vmem:[#allocation48_spill] sm:$0xff] %v10798_v21 }
 0x42d   : > { %v10757_v43 = vpop.f32.mrf.mxu2 }
 0x42e   : > { %v2616_v23 = vsel %vm1873_vm2, %v10757_v43, -inf }
 0x42f   : > { %2255 = vmax.xlane.f32.xlu2 %v2254_v28  ;;  %2258 = vmax.xlane.f32.xlu1 %v2257_v13  ;;  %v10800_v28 = vpop.f32.mrf.mxu1 }
 0x430   : > { %2617 = vmax.xlane.f32.xlu0 %v2616_v23  ;;  %v1988_v23 = vsel %vm1873_vm2, %v10798_v21, 0.0  ;;  %v2266_v53 = vsel %vm1873_vm2, %v10800_v28, -inf }
 0x435   : > { %v10780_v49 = vpop.f32.mrf.mxu2 }
 0x436   : > { %v2619_v12 = vsel %vm1873_vm2, %v10780_v49, -inf }
 0x437   : > { %1986 = vadd.xlane.f32.xlu1 %v1985_v7  ;;  %1983 = vadd.xlane.f32.xlu2 %v1982_v58  ;;  %v10810_v7 = vpop.f32.mrf.mxu0  ;;  %v10812_v58 = vpop.eup %8703 }
 0x438   : > { %2964 = vmax.xlane.f32.xlu0 %v2963_v61  ;;  %15952 = vst [vmem:[#allocation49_spill] sm:$0xff] %v10812_v58  ;;  %v1931_v61 = vsub.f32 %v10598_v33, %v1903_v14  ;;  %v10815_v30 = vpop.f32.mrf.mxu1 }
 0x439   : > { %v2269_v20 = vsel %vm1873_vm2, %v10815_v30, -inf }
 0x43f   : > { %2961 = vmax.xlane.f32.xlu1 %v2960_v44  ;;  %2620 = vmax.xlane.f32.xlu2 %v2619_v12  ;;  %v2966_v44 = vsel %vm1873_vm2, %v10810_v7, -inf  ;;  %v1994_v12 = vsel %vm1873_vm2, %v10812_v58, 0.0  ;;  %v10835_v55 = vpop.f32.mrf.mxu0 }
 0x440   : > { %2264 = vmax.xlane.f32.xlu0 %v2263_v18  ;;  %v1956_v18 = vmul.f32 1.442695, %v1931_v61  ;;  %v10831_v52 = vpop.f32.mrf.mxu1  ;;  %v2969_v61 = vsel %vm1873_vm2, %v10835_v55, -inf }
 0x442   : > { %8705 = vpow2.f32 %v1956_v18 }
 0x447   : > { %2261 = vmax.xlane.f32.xlu1 %v2260_v32  ;;  %v1909_v32 = vpop.xlane.xlu1 %1908 }
 0x448   : > { %1992 = vadd.xlane.f32.xlu0 %v1991_v1  ;;  %v10833_v1 = vpop.xlane.xlu0 %1914  ;;  %v10848_v18 = vpop.f32.mrf.mxu1  ;;  %v1933_v0 = vsub.f32 %v10622_v48, %v1909_v32 }
 0x44f   : > { %1989 = vadd.xlane.f32.xlu1 %v1988_v23  ;;  %v1906_v23 = vpop.xlane.xlu2 %1905 }
 0x450   : > { %2267 = vmax.xlane.f32.xlu0 %v2266_v53  ;;  %v1932_v53 = vsub.f32 %v10610_v22, %v1906_v23  ;;  %v10852_v22 = vpop.f32.mrf.mxu0  ;;  %v10868_v48 = vpop.f32.mrf.mxu1 }
 0x451   : > { %15955 = vst [vmem:[#allocation52_spill] sm:$0xff] %v10868_v48 }
 0x453   : > { %v10802_v13 = vpop.f32.mrf.mxu3 }
 0x454   : > { %v2622_v25 = vsel %vm1873_vm2, %v10802_v13, -inf }
 0x455   : > { %2623 = vmax.xlane.f32.xlu2 %v2622_v25  ;;  %v10837_v25 = vpop.eup %8705 }
 0x456   : > { %15953 = vst [vmem:[#allocation50_spill] sm:$0xff] %v10837_v25 }
 0x458   : > { %1995 = vadd.xlane.f32.xlu0 %v1994_v12  ;;  %v1958_v12 = vmul.f32 1.442695, %v1932_v53  ;;  %v2272_v53 = vsel %vm1873_vm2, %v10831_v52, -inf  ;;  %v10880_v46 = vpop.f32.mrf.mxu0  ;;  %v10899_v58 = vpop.f32.mrf.mxu1 }
 0x45a   : > { %8707 = vpow2.f32 %v1958_v12 }
 0x45b   : > { %v10817_v31 = vpop.f32.mrf.mxu3 }
 0x45c   : > { %v2625_v15 = vsel %vm1873_vm2, %v10817_v31, -inf }
 0x45d   : > { %2626 = vmax.xlane.f32.xlu1 %v2625_v15  ;;  %2967 = vmax.xlane.f32.xlu2 %v2966_v44  ;;  %v1997_v15 = vsel %vm1873_vm2, %v10837_v25, 0.0 }
 0x460   : > { %v10866_v37 = vpop.eup %8707 }
 0x461   : > { %15954 = vst [vmem:[#allocation51_spill] sm:$0xff] %v10866_v37 }
 0x463   : > { %v10825_v59 = vpop.f32.mrf.mxu3 }
 0x464   : > { %v2628_v33 = vsel %vm1873_vm2, %v10825_v59, -inf }
 0x465   : > { %2629 = vmax.xlane.f32.xlu1 %v2628_v33  ;;  %2270 = vmax.xlane.f32.xlu2 %v2269_v20  ;;  %v1912_v33 = vpop.xlane.xlu1 %1911  ;;  %v10850_v20 = vpop.xlane.xlu0 %1917 }
 0x466   : > { %v1934_v23 = vsub.f32 %v10632_v42, %v1912_v33  ;;  %v1960_v42 = vmul.f32 1.442695, %v1933_v0 }
 0x468   : > { %v1962_v12 = vmul.f32 1.442695, %v1934_v23 }
 0x46a   : > { %8709 = vpow2.f32 %v1962_v12 }
 0x46b   : > { %v10840_v14 = vpop.f32.mrf.mxu3  ;;  %8711 = vpow2.f32 %v1960_v42 }
 0x46c   : > { %v2631_v44 = vsel %vm1873_vm2, %v10840_v14, -inf }
 0x46d   : > { %2970 = vmax.xlane.f32.xlu1 %v2969_v61  ;;  %1998 = vadd.xlane.f32.xlu2 %v1997_v15  ;;  %v2275_v61 = vsel %vm1873_vm2, %v10848_v18, -inf  ;;  %v2972_v15 = vsel %vm1873_vm2, %v10852_v22, -inf  ;;  %v2241_v23 = vpop.xlane.xlu1 %2240 }
 0x46e   : > { %2632 = vmax.xlane.f32.xlu0 %v2631_v44  ;;  %v10864_v44 = vpop.xlane.xlu2 %2237 }
 0x470   : > { %v10884_v42 = vpop.eup %8709 }
 0x471   : > { %15956 = vst [vmem:[#allocation53_spill] sm:$0xff] %v10884_v42  ;;  %v10886_v50 = vpop.eup %8711 }
 0x472   : > { %v2600_v33 = vpop.xlane.xlu0 %2599  ;;  %15957 = vst [vmem:[#allocation54_spill] sm:$0xff] %v10886_v50 }
 0x473   : > { %v10855_v29 = vpop.f32.mrf.mxu3  ;;  %v2646_v36 = vsub.f32 %v10697_v24, %v2600_v33  ;;  %v10903_v33 = vpop.f32.mrf.mxu0 }
 0x474   : > { %v2634_v0 = vsel %vm1873_vm2, %v10855_v29, -inf }
 0x475   : > { %2276 = vmax.xlane.f32.xlu1 %v2275_v61  ;;  %2273 = vmax.xlane.f32.xlu2 %v2272_v53  ;;  %v2278_v61 = vsel %vm1873_vm2, %v10868_v48, -inf  ;;  %v2000_v53 = vsel %vm1873_vm2, %v10866_v37, 0.0  ;;  %v10897_v37 = vpop.xlane.xlu1 %1971  ;;  %v2662_v25 = vmul.f32 1.442695, %v2646_v36 }
 0x476   : > { %2973 = vmax.xlane.f32.xlu0 %v2972_v15  ;;  %v10878_v15 = vpop.xlane.xlu2 %1920 }
 0x477   : > { %8713 = vpow2.f32 %v2662_v25 }
 0x47a   : > { %v10882_v12 = vpop.xlane.xlu0 %2243 }
 0x47b   : > { %v10870_v32 = vpop.f32.mrf.mxu3 }
 0x47c   : > { %v2637_v36 = vsel %vm1873_vm2, %v10870_v32, -inf }
 0x47d   : > { %2279 = vmax.xlane.f32.xlu1 %v2278_v61  ;;  %2001 = vadd.xlane.f32.xlu2 %v2000_v53  ;;  %v2006_v61 = vsel %vm1873_vm2, %v10884_v42, 0.0  ;;  %v2975_v53 = vsel %vm1873_vm2, %v10880_v46, -inf  ;;  %v2285_v42 = vsub.f32 %v10639_v63, %v2241_v23  ;;  %v10916_v17 = vpop.eup %8713 }
 0x47e   : > { %2635 = vmax.xlane.f32.xlu0 %v2634_v0  ;;  %v2003_v0 = vsel %vm1873_vm2, %v10886_v50, 0.0  ;;  %v2603_v16 = vpop.xlane.xlu2 %2602  ;;  %15959 = vst [vmem:[#allocation56_spill] sm:$0xff] %v10916_v17 }
 0x47f   : > { %v2302_v63 = vmul.f32 1.442695, %v2285_v42  ;;  %v2694_v42 = vsel %vm1873_vm2, %v10916_v17, 0.0 }
 0x481   : > { %8715 = vpow2.f32 %v2302_v63 }
 0x482   : > { %v2606_v50 = vpop.xlane.xlu1 %2605 }
 0x483   : > { %v10889_v60 = vpop.f32.mrf.mxu3  ;;  %v10901_v24 = vpop.xlane.xlu0 %1974 }
 0x485   : > { %2007 = vadd.xlane.f32.xlu1 %v2006_v61  ;;  %2976 = vmax.xlane.f32.xlu2 %v2975_v53  ;;  %v1935_v61 = vsub.f32 %v10641_v26, %v10833_v1  ;;  %v2284_v26 = vsub.f32 %v10620_v56, %v10864_v44  ;;  %v10922_v1 = vpop.f32.mrf.mxu1 }
 0x486   : > { %2004 = vadd.xlane.f32.xlu0 %v2003_v0  ;;  %v2978_v0 = vsel %vm1873_vm2, %v10903_v33, -inf  ;;  %v2247_v23 = vpop.xlane.xlu2 %2246 }
 0x487   : > { %v1964_v25 = vmul.f32 1.442695, %v1935_v61  ;;  %v2281_v61 = vsel %vm1873_vm2, %v10899_v58, -inf }
 0x489   : > { %8717 = vpow2.f32 %v1964_v25  ;;  %v10935_v25 = vpop.eup %8715 }
 0x48a   : > { %v10931_v44 = vpop.xlane.xlu1 %2249  ;;  %15960 = vst [vmem:[#allocation57_spill] sm:$0xff] %v10935_v25 }
 0x48b   : > { %v10906_v21 = vpop.f32.mrf.mxu3  ;;  %v10918_v48 = vpop.xlane.xlu0 %2608 }
 0x48c   : > { %15958 = vst [vmem:[#allocation55_spill] sm:$0xff] %v10906_v21  ;;  %v2643_v53 = vsel %vm1873_vm2, %v10906_v21, -inf }
 0x48d   : > { %2644 = vmax.xlane.f32.xlu1 %v2643_v53  ;;  %2638 = vmax.xlane.f32.xlu2 %v2637_v36  ;;  %v2647_v53 = vsub.f32 %v10705_v57, %v2603_v16  ;;  %v2640_v36 = vsel %vm1873_vm2, %v10889_v60, -inf  ;;  %v10937_v16 = vpop.f32.mrf.mxu0 }
 0x48e   : > { %2979 = vmax.xlane.f32.xlu0 %v2978_v0  ;;  %v2300_v0 = vmul.f32 1.442695, %v2284_v26  ;;  %v2648_v26 = vsub.f32 %v10715_v9, %v2606_v50 }
 0x48f   : > { %v2664_v56 = vmul.f32 1.442695, %v2647_v53  ;;  %v10941_v21 = vpop.eup %8717  ;;  %v2981_v53 = vsel %vm1873_vm2, %v10937_v16, -inf }
 0x490   : > { %15961 = vst [vmem:[#allocation58_spill] sm:$0xff] %v10941_v21  ;;  %8719 = vpow2.f32 %v2300_v0  ;;  %v2009_v17 = vsel %vm1873_vm2, %v10941_v21, 0.0  ;;  %v2666_v47 = vmul.f32 1.442695, %v2648_v26 }
 0x491   : > { %8721 = vpow2.f32 %v2664_v56  ;;  %v1936_v56 = vsub.f32 %v10648_v19, %v10850_v20 }
 0x492   : > { %v10933_v63 = vpop.xlane.xlu2 %2611 }
 0x493   : > { %v10939_v57 = vpop.xlane.xlu0 %1977  ;;  %v1966_v19 = vmul.f32 1.442695, %v1936_v56  ;;  %v2984_v56 = vsel %vm1873_vm2, %v10922_v1, -inf }
 0x495   : > { %2641 = vmax.xlane.f32.xlu2 %v2640_v36  ;;  %2695 = vadd.xlane.f32.xlu1 %v2694_v42  ;;  %v1937_v36 = vsub.f32 %v10665_v40, %v10878_v15  ;;  %v2335_v42 = vsel %vm1873_vm2, %v10935_v25, 0.0 }
 0x496   : > { %2282 = vmax.xlane.f32.xlu0 %v2281_v61  ;;  %v10950_v61 = vpop.f32.mrf.mxu1  ;;  %v10954_v15 = vpop.eup %8719 }
 0x497   : > { %v1968_v0 = vmul.f32 1.442695, %v1937_v36  ;;  %15962 = vst [vmem:[#allocation59_spill] sm:$0xff] %v10954_v15  ;;  %v10958_v9 = vpop.eup %8721  ;;  %v2332_v36 = vsel %vm1873_vm2, %v10954_v15, 0.0  ;;  %v2987_v26 = vsel %vm1873_vm2, %v10950_v61, -inf }
 0x498   : > { %15963 = vst [vmem:[#allocation60_spill] sm:$0xff] %v10958_v9 }
 0x499   : > { %8723 = vpow2.f32 %v1968_v0 }
 0x49a   : > { %v2615_v40 = vpop.xlane.xlu1 %2614  ;;  %v10962_v25 = vpop.xlane.xlu2 %1980  ;;  %8725 = vpow2.f32 %v2666_v47 }
 0x49b   : > { %v10956_v50 = vpop.xlane.xlu0 %2252  ;;  %8727 = vpow2.f32 %v1966_v19 }
 0x49d   : > { %2982 = vmax.xlane.f32.xlu2 %v2981_v53  ;;  %2336 = vadd.xlane.f32.xlu1 %v2335_v42  ;;  %v2286_v53 = vsub.f32 %v10690_v54, %v10882_v12  ;;  %v2697_v42 = vsel %vm1873_vm2, %v10958_v9, 0.0 }
 0x49e   : > { %2010 = vadd.xlane.f32.xlu0 %v2009_v17  ;;  %v2287_v17 = vsub.f32 %v10694_v39, %v2247_v23  ;;  %v10973_v20 = vpop.f32.mrf.mxu1 }
 0x49f   : > { %v2304_v0 = vmul.f32 1.442695, %v2286_v53  ;;  %v10977_v39 = vpop.eup %8723 }
 0x4a0   : > { %v2306_v54 = vmul.f32 1.442695, %v2287_v17  ;;  %15964 = vst [vmem:[#allocation61_spill] sm:$0xff] %v10977_v39  ;;  %v10979_v23 = vpop.eup %8725  ;;  %v2015_v53 = vsel %vm1873_vm2, %v10977_v39, 0.0 }
 0x4a1   : > { %15965 = vst [vmem:[#allocation62_spill] sm:$0xff] %v10979_v23  ;;  %8729 = vpow2.f32 %v2304_v0  ;;  %v2700_v17 = vsel %vm1873_vm2, %v10979_v23, 0.0  ;;  %v10991_v19 = vpop.eup %8727 }
 0x4a2   : > { %v10975_v47 = vpop.xlane.xlu1 %2258  ;;  %8731 = vpow2.f32 %v2306_v54  ;;  %15966 = vst [vmem:[#allocation63_spill] sm:$0xff] %v10991_v19 }
 0x4a3   : > { %v2618_v12 = vpop.xlane.xlu0 %2617 }
 0x4a5   : > { %2333 = vadd.xlane.f32.xlu2 %v2332_v36  ;;  %2988 = vmax.xlane.f32.xlu1 %v2987_v26  ;;  %v2649_v36 = vsub.f32 %v10725_v5, %v10918_v48  ;;  %v10983_v26 = vpop.xlane.xlu2 %2255 }
 0x4a6   : > { %2698 = vadd.xlane.f32.xlu0 %v2697_v42  ;;  %v10997_v48 = vpop.f32.mrf.mxu1 }
 0x4a7   : > { %v2668_v42 = vmul.f32 1.442695, %v2649_v36  ;;  %v10995_v5 = vpop.eup %8729  ;;  %v2288_v36 = vsub.f32 %v10702_v35, %v10931_v44  ;;  %v2289_v44 = vsub.f32 %v10713_v3, %v10956_v50 }
 0x4a8   : > { %v11001_v21 = vpop.eup %8731  ;;  %v2338_v39 = vsel %vm1873_vm2, %v10995_v5, 0.0 }
 0x4a9   : > { %8733 = vpow2.f32 %v2668_v42  ;;  %v2341_v23 = vsel %vm1873_vm2, %v11001_v21, 0.0  ;;  %v2652_v42 = vsub.f32 %v10757_v43, %v2618_v12 }
 0x4aa   : > { %v10993_v0 = vpop.xlane.xlu1 %1986 }
 0x4ab   : > { %v10999_v54 = vpop.xlane.xlu0 %2964  ;;  %v2674_v3 = vmul.f32 1.442695, %v2652_v42 }
 0x4ad   : > { %2985 = vmax.xlane.f32.xlu2 %v2984_v56  ;;  %2016 = vadd.xlane.f32.xlu1 %v2015_v53  ;;  %v2650_v56 = vsub.f32 %v10735_v45, %v10933_v63  ;;  %v2651_v53 = vsub.f32 %v10747_v27, %v2615_v40  ;;  %v11014_v15 = vpop.xlane.xlu2 %1983  ;;  %v2308_v27 = vmul.f32 1.442695, %v2288_v36 }
 0x4ae   : > { %2701 = vadd.xlane.f32.xlu0 %v2700_v17  ;;  %v2012_v17 = vsel %vm1873_vm2, %v10991_v19, 0.0  ;;  %v11022_v40 = vpop.f32.mrf.mxu1  ;;  %v2290_v19 = vsub.f32 %v10727_v8, %v10983_v26 }
 0x4af   : > { %v2670_v9 = vmul.f32 1.442695, %v2650_v56  ;;  %v2672_v45 = vmul.f32 1.442695, %v2651_v53  ;;  %v11018_v35 = vpop.eup %8733  ;;  %15968 = vst [vmem:[#allocation65_spill] sm:$0xff] %v11022_v40  ;;  %v2993_v53 = vsel %vm1873_vm2, %v10997_v48, -inf }
 0x4b0   : > { %15967 = vst [vmem:[#allocation64_spill] sm:$0xff] %v11018_v35  ;;  %v2703_v56 = vsel %vm1873_vm2, %v11018_v35, 0.0 }
 0x4b1   : > { %8735 = vpow2.f32 %v2670_v9  ;;  %v2310_v9 = vmul.f32 1.442695, %v2289_v44 }
 0x4b2   : > { %v11016_v63 = vpop.xlane.xlu1 %2961  ;;  %8737 = vpow2.f32 %v2672_v45  ;;  %v2291_v45 = vsub.f32 %v10741_v38, %v10975_v47 }
 0x4b3   : > { %8739 = vpow2.f32 %v2308_v27 }
 0x4b4   : > { %8741 = vpow2.f32 %v2310_v9  ;;  %v2314_v38 = vmul.f32 1.442695, %v2291_v45 }
 0x4b5   : > { %2013 = vadd.xlane.f32.xlu2 %v2012_v17  ;;  %2339 = vadd.xlane.f32.xlu1 %v2338_v39  ;;  %v2265_v39 = vpop.xlane.xlu0 %2264  ;;  %v2621_v36 = vpop.xlane.xlu2 %2620  ;;  %8743 = vpow2.f32 %v2674_v3 }
 0x4b6   : > { %2342 = vadd.xlane.f32.xlu0 %v2341_v23  ;;  %v2990_v23 = vsel %vm1873_vm2, %v10973_v20, -inf  ;;  %v2653_v27 = vsub.f32 %v10780_v49, %v2621_v36  ;;  %8745 = vpow2.f32 %v2314_v38 }
 0x4b7   : > { %v11031_v50 = vpop.eup %8735 }
 0x4b8   : > { %15969 = vst [vmem:[#allocation66_spill] sm:$0xff] %v11031_v50  ;;  %v11033_v12 = vpop.eup %8737  ;;  %v2706_v42 = vsel %vm1873_vm2, %v11031_v50, 0.0  ;;  %v2676_v49 = vmul.f32 1.442695, %v2653_v27  ;;  %v2996_v27 = vsel %vm1873_vm2, %v11022_v40, -inf }
 0x4b9   : > { %15970 = vst [vmem:[#allocation67_spill] sm:$0xff] %v11033_v12  ;;  %v11035_v17 = vpop.eup %8739  ;;  %v2709_v44 = vsel %vm1873_vm2, %v11033_v12, 0.0  ;;  %v16035_v12 = vld [vmem:[#allocation56_spill] sm:$0xff] }
 0x4ba   : > { %v2262_v43 = vpop.xlane.xlu1 %2261  ;;  %15971 = vst [vmem:[#allocation68_spill] sm:$0xff] %v11035_v17  ;;  %v11050_v47 = vpop.eup %8741  ;;  %8747 = vpow2.f32 %v2676_v49 }
 0x4bb   : > { %15973 = vst [vmem:[#allocation70_spill] sm:$0xff] %v11050_v47  ;;  %v11054_v36 = vpop.eup %8743 }
 0x4bc   : > { %15974 = vst [vmem:[#allocation71_spill] sm:$0xff] %v11054_v36  ;;  %v2712_v45 = vsel %vm1873_vm2, %v11054_v36, 0.0  ;;  %v11069_v49 = vpop.eup %8745  ;;  %v2292_v36 = vsub.f32 %v10767_v4, %v2262_v43 }
 0x4bd   : > { %2991 = vmax.xlane.f32.xlu1 %v2990_v23  ;;  %2704 = vadd.xlane.f32.xlu2 %v2703_v56  ;;  %v11044_v23 = vpop.f32.mrf.mxu1  ;;  %v11046_v56 = vpop.xlane.xlu0 %1992  ;;  %15976 = vst [vmem:[#allocation73_spill] sm:$0xff] %v11069_v49 }
 0x4be   : > { %2994 = vmax.xlane.f32.xlu0 %v2993_v53  ;;  %15972 = vst [vmem:[#allocation69_spill] sm:$0xff] %v11044_v23  ;;  %v2344_v53 = vsel %vm1873_vm2, %v11035_v17, 0.0 }
 0x4c2   : > { %v11052_v9 = vpop.xlane.xlu1 %1989 }
 0x4c5   : > { %2710 = vadd.xlane.f32.xlu1 %v2709_v44  ;;  %2707 = vadd.xlane.f32.xlu2 %v2706_v42  ;;  %v2347_v44 = vsel %vm1873_vm2, %v11050_v47, 0.0  ;;  %v11065_v42 = vpop.f32.mrf.mxu1  ;;  %v11067_v8 = vpop.xlane.xlu0 %2267  ;;  %v2293_v47 = vsub.f32 %v10782_v11, %v2265_v39 }
 0x4c6   : > { %2345 = vadd.xlane.f32.xlu0 %v2344_v53  ;;  %15975 = vst [vmem:[#allocation72_spill] sm:$0xff] %v11065_v42  ;;  %v2312_v53 = vmul.f32 1.442695, %v2290_v19  ;;  %v2353_v19 = vsel %vm1873_vm2, %v11069_v49, 0.0  ;;  %v3009_v49 = vsub.f32 %v10771_v51, %v10999_v54 }
 0x4c8   : > { %v2624_v3 = vpop.xlane.xlu2 %2623  ;;  %8749 = vpow2.f32 %v2312_v53 }
 0x4c9   : > { %v2654_v50 = vsub.f32 %v10802_v13, %v2624_v3  ;;  %v11071_v3 = vpop.eup %8747 }
 0x4ca   : > { %15977 = vst [vmem:[#allocation74_spill] sm:$0xff] %v11071_v3 }
 0x4cb   : > { %v2678_v26 = vmul.f32 1.442695, %v2654_v50  ;;  %v2715_v50 = vsel %vm1873_vm2, %v11071_v3, 0.0 }
 0x4cd   : > { %2348 = vadd.xlane.f32.xlu2 %v2347_v44  ;;  %2713 = vadd.xlane.f32.xlu1 %v2712_v45  ;;  %8751 = vpow2.f32 %v2678_v26  ;;  %v2999_v44 = vsel %vm1873_vm2, %v11044_v23, -inf  ;;  %v2316_v45 = vmul.f32 1.442695, %v2292_v36  ;;  %v11085_v11 = vpop.f32.mrf.mxu1  ;;  %v11087_v39 = vpop.xlane.xlu0 %1995 }
 0x4ce   : > { %2997 = vmax.xlane.f32.xlu0 %v2996_v27  ;;  %v2318_v27 = vmul.f32 1.442695, %v2293_v47  ;;  %v11083_v43 = vpop.eup %8749  ;;  %15979 = vst [vmem:[#allocation76_spill] sm:$0xff] %v11085_v11  ;;  %v3005_v36 = vsel %vm1873_vm2, %v11085_v11, -inf }
 0x4cf   : > { %15978 = vst [vmem:[#allocation75_spill] sm:$0xff] %v11083_v43  ;;  %8753 = vpow2.f32 %v2316_v45  ;;  %v2350_v47 = vsel %vm1873_vm2, %v11083_v43, 0.0 }
 0x4d0   : > { %v2627_v38 = vpop.xlane.xlu1 %2626  ;;  %v2968_v13 = vpop.xlane.xlu2 %2967  ;;  %8755 = vpow2.f32 %v2318_v27 }
 0x4d1   : > { %v2655_v43 = vsub.f32 %v10817_v31, %v2627_v38 }
 0x4d3   : > { %v11089_v26 = vpop.eup %8751 }
 0x4d4   : > { %15980 = vst [vmem:[#allocation77_spill] sm:$0xff] %v11089_v26 }
 0x4d5   : > { %3000 = vmax.xlane.f32.xlu2 %v2999_v44  ;;  %2354 = vadd.xlane.f32.xlu1 %v2353_v19  ;;  %v3008_v44 = vsub.f32 %v10755_v2, %v11016_v63  ;;  %v2718_v19 = vsel %vm1873_vm2, %v11089_v26, 0.0  ;;  %v11103_v2 = vpop.eup %8753 }
 0x4d6   : > { %2716 = vadd.xlane.f32.xlu0 %v2715_v50  ;;  %v3026_v50 = vmul.f32 1.442695, %v3009_v49  ;;  %15981 = vst [vmem:[#allocation78_spill] sm:$0xff] %v11103_v2  ;;  %v11106_v27 = vpop.eup %8755  ;;  %v3002_v49 = vsel %vm1873_vm2, %v11065_v42, -inf }
 0x4d7   : > { %v3024_v3 = vmul.f32 1.442695, %v3008_v44  ;;  %15982 = vst [vmem:[#allocation79_spill] sm:$0xff] %v11106_v27  ;;  %v2356_v44 = vsel %vm1873_vm2, %v11103_v2, 0.0 }
 0x4d8   : > { %v11081_v53 = vpop.xlane.xlu1 %2629  ;;  %v2271_v4 = vpop.xlane.xlu2 %2270  ;;  %8757 = vpow2.f32 %v3026_v50 }
 0x4d9   : > { %8759 = vpow2.f32 %v3024_v3 }
 0x4dd   : > { %2351 = vadd.xlane.f32.xlu2 %v2350_v47  ;;  %3006 = vmax.xlane.f32.xlu1 %v3005_v36  ;;  %v3010_v47 = vsub.f32 %v10810_v7, %v2968_v13 }
 0x4de   : > { %2719 = vadd.xlane.f32.xlu0 %v2718_v19  ;;  %v2680_v19 = vmul.f32 1.442695, %v2655_v43  ;;  %v11116_v31 = vpop.eup %8757  ;;  %v2295_v43 = vsub.f32 %v10815_v30, %v2271_v4 }
 0x4df   : > { %v3028_v50 = vmul.f32 1.442695, %v3010_v47  ;;  %15983 = vst [vmem:[#allocation80_spill] sm:$0xff] %v11116_v31  ;;  %v11122_v13 = vpop.eup %8759 }
 0x4e0   : > { %v2971_v51 = vpop.xlane.xlu1 %2970  ;;  %v11101_v54 = vpop.xlane.xlu2 %1998  ;;  %15984 = vst [vmem:[#allocation81_spill] sm:$0xff] %v11122_v13 }
 0x4e1   : > { %v3011_v63 = vsub.f32 %v10835_v55, %v2971_v51  ;;  %v2633_v45 = vpop.xlane.xlu0 %2632  ;;  %v2359_v55 = vsel %vm1873_vm2, %v11106_v27, 0.0  ;;  %v2294_v51 = vsub.f32 %v10800_v28, %v11067_v8 }
 0x4e3   : > { %v3030_v36 = vmul.f32 1.442695, %v3011_v63  ;;  %v2320_v28 = vmul.f32 1.442695, %v2294_v51  ;;  %v2657_v51 = vsub.f32 %v10840_v14, %v2633_v45 }
 0x4e5   : > { %8761 = vpow2.f32 %v3030_v36  ;;  %3003 = vmax.xlane.f32.xlu2 %v3002_v49  ;;  %2357 = vadd.xlane.f32.xlu1 %v2356_v44  ;;  %v3056_v49 = vsel %vm1873_vm2, %v11122_v13, 0.0  ;;  %v3059_v44 = vsel %vm1873_vm2, %v11116_v31, 0.0  ;;  %v2684_v45 = vmul.f32 1.442695, %v2657_v51 }
 0x4e6   : > { %2360 = vadd.xlane.f32.xlu0 %v2359_v55  ;;  %8763 = vpow2.f32 %v2680_v19  ;;  %v11221_v31 = vstv %s11183_s28  ;;  %s11332_s28 = sld [smem:[#allocation12 + %s3238_s20]] }
 0x4e7   : > { %8765 = vpow2.f32 %v3028_v50  ;;  %15994 = vst [vmem:[#allocation90_spill] sm:$0xff] %v11221_v31  ;;  %s11354_s20 = sld [smem:[#allocation12 + %s3486_s0]]  ;;  %s3451_s0 = sadd.s32 6, %s11158_s14 }
 0x4e8   : > { %v11118_v38 = vpop.xlane.xlu1 %2276  ;;  %v11120_v7 = vpop.xlane.xlu2 %2273  ;;  %8767 = vrcp.f32 %v10897_v37 }
 0x4e9   : > { %v2974_v3 = vpop.xlane.xlu0 %2973 }
 0x4ea   : > { %v3012_v63 = vsub.f32 %v10852_v22, %v2974_v3  ;;  %v2322_v22 = vmul.f32 1.442695, %v2295_v43  ;;  %v2656_v3 = vsub.f32 %v10825_v59, %v11081_v53 }
 0x4eb   : > { %v11127_v36 = vpop.eup %8761 }
 0x4ec   : > { %15985 = vst [vmem:[#allocation82_spill] sm:$0xff] %v11127_v36  ;;  %v3032_v47 = vmul.f32 1.442695, %v3012_v63  ;;  %v3065_v55 = vsel %vm1873_vm2, %v11127_v36, 0.0  ;;  %v11137_v30 = vpop.eup %8763  ;;  %v2682_v14 = vmul.f32 1.442695, %v2656_v3 }
 0x4ed   : > { %3057 = vadd.xlane.f32.xlu2 %v3056_v49  ;;  %3060 = vadd.xlane.f32.xlu1 %v3059_v44  ;;  %15987 = vst [vmem:[#allocation83_spill] sm:$0xff] %v11137_v30  ;;  %v11144_v19 = vpop.eup %8765  ;;  %v2721_v43 = vsel %vm1873_vm2, %v11137_v30, 0.0 }
 0x4ee   : > { %3066 = vadd.xlane.f32.xlu0 %v3065_v55  ;;  %8769 = vpow2.f32 %v3032_v47  ;;  %15988 = vst [vmem:[#allocation84_spill] sm:$0xff] %v11144_v19  ;;  %v8768_v63 = vpop.eup %8767  ;;  %v3062_v47 = vsel %vm1873_vm2, %v11144_v19, 0.0 }
 0x4ef   : > { %8771 = vrcp.f32 %v10901_v24  ;;  %v2034_v3 = vmul.f32 %v8768_v63, %v10897_v37  ;;  %v2296_v37 = vsub.f32 %v10831_v52, %v11120_v7 }
 0x4f0   : > { %v11140_v8 = vpop.xlane.xlu1 %2279  ;;  %v11142_v4 = vpop.xlane.xlu2 %2001  ;;  %8773 = vpow2.f32 %v2320_v28 }
 0x4f1   : > { %v11146_v50 = vpop.xlane.xlu0 %2635  ;;  %8775 = vpow2.f32 %v2322_v22  ;;  %v2324_v7 = vmul.f32 1.442695, %v2296_v37 }
 0x4f2   : > { %8777 = vrcp.f32 %v10939_v57  ;;  %v2658_v37 = vsub.f32 %v10855_v29, %v11146_v50  ;;  %v11235_v29 = vstv %s11203_s17  ;;  %s3203_s17 = sadd.s32 4, %s11158_s14 }
 0x4f3   : > { %8779 = vrcp.f32 %v10962_v25  ;;  %15997 = vst [vmem:[#allocation93_spill] sm:$0xff] %v11235_v29  ;;  %s11382_s18 = sld [smem:[#allocation12 + %s3203_s17]] }
 0x4f4   : > { %v11155_v49 = vpop.eup %8769  ;;  %8781 = vpow2.f32 %v2682_v14  ;;  %v2050_v14 = vsub.f32 2.0, %v2034_v3  ;;  %s11394_s17 = sld [smem:[#allocation12 + %s3451_s0]]  ;;  %s3645_s0 = sadd.s32 15, %s11158_s14 }
 0x4f5   : > { %15989 = vst [vmem:[#allocation85_spill] sm:$0xff] %v11155_v49  ;;  %2722 = vadd.xlane.f32.xlu2 %v2721_v43  ;;  %3063 = vadd.xlane.f32.xlu1 %v3062_v47  ;;  %v8772_v59 = vpop.eup %8771  ;;  %v3068_v53 = vsel %vm1873_vm2, %v11155_v49, 0.0  ;;  %v2297_v47 = vsub.f32 %v10848_v18, %v11118_v38  ;;  %8783 = vpow2.f32 %v2684_v45 }
 0x4f6   : > { %3069 = vadd.xlane.f32.xlu0 %v3068_v53  ;;  %v11163_v44 = vpop.eup %8773  ;;  %v2035_v43 = vmul.f32 %v8772_v59, %v10901_v24  ;;  %8785 = vrcp.f32 %v10993_v0  ;;  %v2066_v3 = vmul.f32 %v8768_v63, %v2050_v14  ;;  %v11232_v14 = vstv %s11196_s3  ;;  %s11345_s3 = sld [smem:[#allocation12 + %s3362_s30]] }
 0x4f7   : > { %15990 = vst [vmem:[#allocation86_spill] sm:$0xff] %v11163_v44  ;;  %v11172_v22 = vpop.eup %8775  ;;  %v2362_v49 = vsel %vm1873_vm2, %v11163_v44, 0.0  ;;  %v2326_v38 = vmul.f32 1.442695, %v2297_v47  ;;  %8787 = vrcp.f32 %v11014_v15 }
 0x4f8   : > { %v11168_v55 = vpop.xlane.xlu1 %2007  ;;  %v11170_v28 = vpop.xlane.xlu2 %2976  ;;  %15991 = vst [vmem:[#allocation87_spill] sm:$0xff] %v11172_v22  ;;  %v2365_v24 = vsel %vm1873_vm2, %v11172_v22, 0.0  ;;  %v2051_v19 = vsub.f32 2.0, %v2035_v43 }
 0x4f9   : > { %v11180_v51 = vpop.xlane.xlu0 %2004  ;;  %v8778_v53 = vpop.eup %8777  ;;  %8789 = vpow2.f32 %v2326_v38  ;;  %15996 = vst [vmem:[#allocation92_spill] sm:$0xff] %v11232_v14  ;;  %v2686_v38 = vmul.f32 1.442695, %v2658_v37 }
 0x4fa   : > { %v2036_v18 = vmul.f32 %v8778_v53, %v10939_v57  ;;  %v8780_v52 = vpop.eup %8779  ;;  %8791 = vpow2.f32 %v2324_v7 }
 0x4fb   : > { %v11208_v45 = vpop.eup %8781  ;;  %v2037_v47 = vmul.f32 %v8780_v52, %v10962_v25  ;;  %8793 = vrcp.f32 %v11046_v56  ;;  %v11229_v25 = vstv %s11191_s21  ;;  %s3610_s21 = sadd.s32 11, %s11158_s14 }
 0x4fc   : > { %15992 = vst [vmem:[#allocation88_spill] sm:$0xff] %v11208_v45  ;;  %v11212_v30 = vpop.eup %8783  ;;  %v2052_v43 = vsub.f32 2.0, %v2036_v18  ;;  %8795 = vrcp.f32 %v11052_v9  ;;  %s11371_s30 = sld [smem:[#allocation12 + %s3610_s21]] }
 0x4fd   : > { %2366 = vadd.xlane.f32.xlu2 %v2365_v24  ;;  %2363 = vadd.xlane.f32.xlu1 %v2362_v49  ;;  %15993 = vst [vmem:[#allocation89_spill] sm:$0xff] %v11212_v30  ;;  %v2067_v49 = vmul.f32 %v8772_v59, %v2051_v19  ;;  %v8786_v36 = vpop.eup %8785  ;;  %v2724_v19 = vsel %vm1873_vm2, %v11208_v45, 0.0  ;;  %v2727_v63 = vsel %vm1873_vm2, %v11212_v30, 0.0  ;;  %v2053_v18 = vsub.f32 2.0, %v2037_v47  ;;  %s11390_s21 = sld [smem:[#allocation12 + %s3327_s25]]  ;;  %s16112_s25 = smov 32  }
 0x4fe   : > { %v8788_v59 = vpop.eup %8787  ;;  %15995 = vst [vmem:[#allocation91_spill] sm:$0xff] %v11229_v25  ;;  %v2039_v7 = vmul.f32 %v8786_v36, %v10993_v0  ;;  %8797 = vpow2.f32 %v2686_v38 }
 0x4ff   : > { %v2083_v50 = vmul.f32 %v10711_v62, %v2067_v49  ;;  %v11240_v30 = vpop.eup %8789  ;;  %v2038_v13 = vmul.f32 %v8788_v59, %v11014_v15  ;;  %v2069_v37 = vmul.f32 %v8780_v52, %v2053_v18 }
 0x500   : > { %v11210_v22 = vpop.xlane.xlu1 %2644  ;;  %v2639_v44 = vpop.xlane.xlu2 %2638  ;;  %15998 = vst [vmem:[#allocation94_spill] sm:$0xff] %v11240_v30  ;;  %v2371_v42 = vsel %vm1873_vm2, %v11240_v30, 0.0 }
 0x501   : > { %v11214_v57 = vpop.xlane.xlu0 %2979  ;;  %v2659_v24 = vsub.f32 %v10870_v32, %v2639_v44  ;;  %v2082_v32 = vmul.f32 %v10682_v41, %v2066_v3  ;;  %v2068_v44 = vmul.f32 %v8778_v53, %v2052_v43  ;;  %v11246_v41 = vpop.eup %8791  ;;  %v11263_v43 = vmul.f32 %v11221_v31, %v2083_v50 }
 0x502   : > { %15999 = vst [vmem:[#allocation95_spill] sm:$0xff] %v11246_v41  ;;  %v8794_v49 = vpop.eup %8793  ;;  %v2054_v26 = vsub.f32 2.0, %v2038_v13  ;;  %v2368_v11 = vsel %vm1873_vm2, %v11246_v41, 0.0  ;;  %v3014_v38 = vsub.f32 %v10903_v33, %v11214_v57 }
 0x503   : > { %v2688_v45 = vmul.f32 1.442695, %v2659_v24  ;;  %v11249_v3 = vmul.f32 %v11221_v31, %v2082_v32  ;;  %v11252_v62 = vmul.f32 %v11229_v25, %v2082_v32  ;;  %v11255_v0 = vmul.f32 %v11232_v14, %v2082_v32 }
 0x504   : > { %v11258_v53 = vmul.f32 %v11235_v29, %v2082_v32  ;;  %v2084_v47 = vmul.f32 %v10733_v34, %v2068_v44  ;;  %v2055_v24 = vsub.f32 2.0, %v2039_v7  ;;  %v11270_v32 = vmul.f32 %v11229_v25, %v2083_v50 }
 0x505   : > { %2725 = vadd.xlane.f32.xlu1 %v2724_v19  ;;  %2728 = vadd.xlane.f32.xlu2 %v2727_v63  ;;  %v3013_v19 = vsub.f32 %v10880_v46, %v11170_v28  ;;  %8799 = vpow2.f32 %v2688_v45  ;;  %v11277_v34 = vmul.f32 %v11232_v14, %v2083_v50  ;;  %v2041_v52 = vmul.f32 %v8794_v49, %v11046_v56 }
 0x506   : > { %8801 = vrcp.f32 %v11087_v39  ;;  %v11287_v13 = vmul.f32 %v11221_v31, %v2084_v47  ;;  %v11290_v28 = vmul.f32 %v11229_v25, %v2084_v47  ;;  %v2085_v45 = vmul.f32 %v10743_v6, %v2069_v37 }
 0x507   : > { %v11294_v56 = vmul.f32 %v11232_v14, %v2084_v47  ;;  %v2071_v44 = vmul.f32 %v8786_v36, %v2055_v24  ;;  %v2070_v18 = vmul.f32 %v8788_v59, %v2054_v26  ;;  %v2057_v36 = vsub.f32 2.0, %v2041_v52  ;;  %v16009_v52 = vld [vmem:[#allocation46_spill] sm:$0xff] }
 0x508   : > { %v2642_v27 = vpop.xlane.xlu2 %2641  ;;  %v11244_v2 = vpop.xlane.xlu1 %2695  ;;  %16000 = vst [vmem:[#allocation96_spill] sm:$0xff] %v11287_v13  ;;  %v11315_v33 = vmul.f32 %v11221_v31, %v2085_v45  ;;  %v11318_v57 = vmul.f32 %v11229_v25, %v2085_v45 }
 0x509   : > { %v11260_v15 = vpop.xlane.xlu0 %2282  ;;  %v2660_v63 = vsub.f32 %v10889_v60, %v2642_v27  ;;  %v11281_v60 = vpop.eup %8795  ;;  %v11284_v27 = vmul.f32 %v11235_v29, %v2083_v50  ;;  %16001 = vst [vmem:[#allocation97_spill] sm:$0xff] %v11290_v28  ;;  %v11299_v50 = vmul.f32 %v11235_v29, %v2084_v47 }
 0x50a   : > { %16002 = vst [vmem:[#allocation98_spill] sm:$0xff] %v11294_v56  ;;  %v11308_v24 = vmul.f32 %v11281_v60, %v11052_v9  ;;  %v2299_v9 = vsub.f32 %v10899_v58, %v11260_v15 }
 0x50b   : > { %v2690_v46 = vmul.f32 1.442695, %v2660_v63  ;;  %16004 = vst [vmem:[#allocation100_spill] sm:$0xff] %v11299_v50 }
 0x50c   : > { %16006 = vst [vmem:[#allocation102_spill] sm:$0xff] %v11315_v33 }
 0x50d   : > { %2372 = vadd.xlane.f32.xlu1 %v2371_v42  ;;  %2369 = vadd.xlane.f32.xlu2 %v2368_v11  ;;  %v3034_v42 = vmul.f32 1.442695, %v3013_v19  ;;  %8803 = vpow2.f32 %v2690_v46  ;;  %v11296_v11 = vpop.eup %8797  ;;  %16007 = vst [vmem:[#allocation103_spill] sm:$0xff] %v11318_v57  ;;  %v2087_v19 = vmul.f32 %v10769_v10, %v2071_v44  ;;  %v2086_v46 = vmul.f32 %v16009_v52, %v2070_v18 }
 0x50e   : > { %16003 = vst [vmem:[#allocation99_spill] sm:$0xff] %v11296_v11  ;;  %8805 = vrcp.f32 %v11244_v2  ;;  %v11304_v37 = vpop.eup %8799  ;;  %v2730_v15 = vsel %vm1873_vm2, %v11296_v11, 0.0  ;;  %v11342_v10 = vmul.f32 %v11235_v29, %v2085_v45  ;;  %v2073_v44 = vmul.f32 %v8794_v49, %v2057_v36  ;;  %v16020_v11 = vld [vmem:[#allocation47_spill] sm:$0xff] }
 0x50f   : > { %16005 = vst [vmem:[#allocation101_spill] sm:$0xff] %v11304_v37  ;;  %v11324_v59 = vpop.eup %8801  ;;  %v2733_v58 = vsel %vm1873_vm2, %v11304_v37, 0.0  ;;  %v2330_v49 = vmul.f32 1.442695, %v2299_v9 }
 0x510   : > { %v2983_v7 = vpop.xlane.xlu2 %2982  ;;  %v2337_v6 = vpop.xlane.xlu1 %2336  ;;  %16011 = vst [vmem:[#allocation105_spill] sm:$0xff] %v11342_v10  ;;  %v2089_v37 = vmul.f32 %v16020_v11, %v2073_v44 }
 0x511   : > { %v3015_v47 = vsub.f32 %v10937_v16, %v2983_v7  ;;  %8807 = vrcp.f32 %v2337_v6  ;;  %v11312_v26 = vpop.xlane.xlu0 %2010  ;;  %v11327_v16 = vmul.f32 %v11232_v14, %v2085_v45  ;;  %v3036_v7 = vmul.f32 1.442695, %v3014_v38 }
 0x512   : > { %8809 = vrcp.f32 %v11101_v54  ;;  %v2042_v38 = vmul.f32 %v11324_v59, %v11087_v39  ;;  %v11366_v39 = vmul.f32 %v11232_v14, %v2087_v19 }
 0x513   : > { %16008 = vst [vmem:[#allocation104_spill] sm:$0xff] %v11327_v16  ;;  %8811 = vpow2.f32 %v3034_v42  ;;  %v3038_v63 = vmul.f32 1.442695, %v3015_v47  ;;  %v11339_v41 = vpop.eup %8803  ;;  %v2056_v42 = vsub.f32 2.0, %v11308_v24  ;;  %v16012_v47 = vld [vmem:[#allocation52_spill] sm:$0xff]  ;;  %v11360_v24 = vmul.f32 %v11221_v31, %v2087_v19 }
 0x514   : > { %16010 = vst [vmem:[#allocation46_spill] sm:$0xff] %v11339_v41  ;;  %v11348_v18 = vpop.eup %8805  ;;  %v2298_v52 = vsub.f32 %v16012_v47, %v11140_v8  ;;  %v2736_v45 = vsel %vm1873_vm2, %v11339_v41, 0.0  ;;  %v11369_v8 = vmul.f32 %v11235_v29, %v2087_v19 }
 0x515   : > { %8813 = vpow2.f32 %v3038_v63  ;;  %2734 = vadd.xlane.f32.xlu1 %v2733_v58  ;;  %2731 = vadd.xlane.f32.xlu2 %v2730_v15  ;;  %16013 = vst [vmem:[#allocation52_spill] sm:$0xff] %v11360_v24  ;;  %v11363_v63 = vmul.f32 %v11229_v25, %v2087_v19  ;;  %v11377_v58 = vmul.f32 %v11221_v31, %v2086_v46 }
 0x516   : > { %16015 = vst [vmem:[#allocation107_spill] sm:$0xff] %v11366_v39  ;;  %2737 = vadd.xlane.f32.xlu0 %v2736_v45  ;;  %v11380_v15 = vmul.f32 %v11229_v25, %v2086_v46  ;;  %8815 = vpow2.f32 %v3036_v7  ;;  %v2758_v45 = vmul.f32 %v11348_v18, %v11244_v2  ;;  %v2072_v7 = vmul.f32 %v11281_v60, %v2056_v42 }
 0x517   : > { %v8808_v36 = vpop.eup %8807  ;;  %16014 = vst [vmem:[#allocation106_spill] sm:$0xff] %v11363_v63  ;;  %v2328_v39 = vmul.f32 1.442695, %v2298_v52  ;;  %v11408_v60 = vmul.f32 %v11235_v29, %v2086_v46 }
 0x518   : > { %16016 = vst [vmem:[#allocation108_spill] sm:$0xff] %v11369_v8  ;;  %v11374_v9 = vpop.eup %8809  ;;  %v2397_v47 = vmul.f32 %v8808_v36, %v2337_v6  ;;  %v2334_v41 = vpop.xlane.xlu2 %2333  ;;  %v2058_v8 = vsub.f32 2.0, %v2042_v38  ;;  %v2774_v52 = vsub.f32 2.0, %v2758_v45 }
 0x519   : > { %16017 = vst [vmem:[#allocation109_spill] sm:$0xff] %v11377_v58  ;;  %v2989_v19 = vpop.xlane.xlu1 %2988  ;;  %v11385_v24 = vpop.eup %8811  ;;  %8817 = vrcp.f32 %v2334_v41  ;;  %v11400_v11 = vmul.f32 %v11374_v9, %v11101_v54  ;;  %v11415_v54 = vmul.f32 %v11221_v31, %v2089_v37 }
 0x51a   : > { %16018 = vst [vmem:[#allocation110_spill] sm:$0xff] %v11380_v15  ;;  %v3017_v58 = vsub.f32 %v10950_v61, %v2989_v19  ;;  %v2699_v30 = vpop.xlane.xlu0 %2698  ;;  %8819 = vpow2.f32 %v2330_v49  ;;  %v2413_v2 = vsub.f32 2.0, %v2397_v47  ;;  %v11405_v61 = vmul.f32 %v11232_v14, %v2086_v46  ;;  %v16028_v19 = vld [vmem:[#allocation55_spill] sm:$0xff] }
 0x51b   : > { %16019 = vst [vmem:[#allocation111_spill] sm:$0xff] %v11385_v24  ;;  %v11396_v6 = vpop.eup %8813  ;;  %8821 = vrcp.f32 %v2699_v30  ;;  %v3071_v38 = vsel %vm1873_vm2, %v11385_v24, 0.0  ;;  %v11420_v46 = vmul.f32 %v11229_v25, %v2089_v37  ;;  %v11423_v47 = vmul.f32 %v11232_v14, %v2089_v37 }
 0x51c   : > { %16021 = vst [vmem:[#allocation47_spill] sm:$0xff] %v11396_v6  ;;  %v3042_v44 = vmul.f32 1.442695, %v3017_v58  ;;  %v3077_v42 = vsel %vm1873_vm2, %v11396_v6, 0.0  ;;  %v2429_v49 = vmul.f32 %v8808_v36, %v2413_v2  ;;  %v11417_v58 = vpop.eup %8815  ;;  %v2661_v6 = vsub.f32 %v16028_v19, %v11210_v22  ;;  %v16030_v2 = vld [vmem:[#allocation48_spill] sm:$0xff] }
 0x51d   : > { %16022 = vst [vmem:[#allocation112_spill] sm:$0xff] %v11405_v61  ;;  %3078 = vadd.xlane.f32.xlu1 %v3077_v42  ;;  %3072 = vadd.xlane.f32.xlu2 %v3071_v38  ;;  %v11428_v36 = vmul.f32 %v11235_v29, %v2089_v37  ;;  %v11434_v42 = vmul.f32 %v11324_v59, %v2058_v8  ;;  %v11444_v22 = vstv %s11345_s3  ;;  %v11450_v8 = vstv %s11354_s20  ;;  %v16032_v38 = vld [vmem:[#allocation57_spill] sm:$0xff]  ;;  %s11851_s20 = sld [smem:[#allocation12 + %s3397_s11]] }
 0x51e   : > { %16023 = vst [vmem:[#allocation113_spill] sm:$0xff] %v11408_v60  ;;  %8823 = vpow2.f32 %v3042_v44  ;;  %v11431_v44 = vmul.f32 %v16030_v2, %v2072_v7  ;;  %v2790_v2 = vmul.f32 %v11348_v18, %v2774_v52  ;;  %v11466_v60 = vstv %s11390_s21  ;;  %s11884_s21 = sld [smem:[#allocation12 + %s3645_s0]]  ;;  %s9535_s0 = smov 128  }
 0x51f   : > { %16024 = vst [vmem:[#allocation114_spill] sm:$0xff] %v11415_v54  ;;  %8825 = vpow2.f32 %v2328_v39  ;;  %v8818_v45 = vpop.eup %8817  ;;  %v11441_v39 = vstv %s11332_s28  ;;  %v11458_v54 = vstv %s11371_s30  ;;  %v11469_v61 = vstv %s11394_s17  ;;  %s3521_s28 = sadd.s32 14, %s11158_s14  ;;  %s12309_s17 = sld [smem:[#allocation13 + %s11166_s9]] }
 0x520   : > { %16025 = vst [vmem:[#allocation115_spill] sm:$0xff] %v11417_v58  ;;  %v11437_v24 = vpop.eup %8819  ;;  %8827 = vrcp.f32 %v11142_v4  ;;  %v2396_v37 = vmul.f32 %v8818_v45, %v2334_v41  ;;  %v2986_v7 = vpop.xlane.xlu2 %2985  ;;  %v11461_v41 = vstv %s11382_s18  ;;  %v11472_v15 = vstv %s11402_s27  ;;  %s16106_s18 = smov 96   ;;  %s3273_s27 = sadd.s32 12, %s11158_s14 }
 0x521   : > { %16026 = vst [vmem:[#allocation116_spill] sm:$0xff] %v11420_v46  ;;  %v11446_v19 = vpop.xlane.xlu1 %2016  ;;  %v8822_v59 = vpop.eup %8821  ;;  %8829 = vrcp.f32 %v11168_v55  ;;  %v2692_v46 = vmul.f32 1.442695, %v2661_v6  ;;  %v3074_v18 = vsel %vm1873_vm2, %v11417_v58, 0.0  ;;  %v3016_v6 = vsub.f32 %v10922_v1, %v2986_v7  ;;  %s11845_s3 = sld [smem:[#allocation12 + %s3273_s27]] }
 0x522   : > { %16027 = vst [vmem:[#allocation117_spill] sm:$0xff] %v11423_v47  ;;  %v11454_v47 = vpop.xlane.xlu0 %2701  ;;  %8831 = vrcp.f32 %v11180_v51  ;;  %v2377_v17 = vsel %vm1873_vm2, %v11437_v24, 0.0  ;;  %v2806_v23 = vmul.f32 %v16035_v12, %v2790_v2  ;;  %s11857_s30 = sld [smem:[#allocation12 + %s3521_s28]] }
 0x523   : > { %16029 = vst [vmem:[#allocation55_spill] sm:$0xff] %v11428_v36  ;;  %v2445_v36 = vmul.f32 %v16032_v38, %v2429_v49  ;;  %v2412_v49 = vsub.f32 2.0, %v2396_v37  ;;  %v2759_v38 = vmul.f32 %v8822_v59, %v2699_v30  ;;  %8833 = vrcp.f32 %v11454_v47  ;;  %s12320_s27 = sld [smem:[#allocation13 + %s11158_s14]] }
 0x524   : > { %16031 = vst [vmem:[#allocation48_spill] sm:$0xff] %v11437_v24  ;;  %v11463_v63 = vpop.eup %8823  ;;  %8835 = vpow2.f32 %v2692_v46  ;;  %v3040_v1 = vmul.f32 1.442695, %v3016_v6  ;;  %v16036_v46 = vld [vmem:[#allocation59_spill] sm:$0xff]  ;;  %v3241_v6 = vmul.f32 %v11441_v39, %v2806_v23  ;;  %v3365_v24 = vmul.f32 %v11444_v22, %v2806_v23  ;;  %s12368_s11 = sld [smem:[#allocation14 + %s11158_s14]] }
 0x525   : > { %16033 = vst [vmem:[#allocation57_spill] sm:$0xff] %v11463_v63  ;;  %v11476_v52 = vpop.eup %8825  ;;  %v3207_v40 = vmul.f32 %v11461_v41, %v2445_v36  ;;  %v3083_v10 = vsel %vm1873_vm2, %v11463_v63, 0.0  ;;  %3075 = vadd.xlane.f32.xlu2 %v3074_v18  ;;  %2378 = vadd.xlane.f32.xlu1 %v2377_v17  ;;  %v2428_v30 = vmul.f32 %v8818_v45, %v2412_v49  ;;  %v2775_v37 = vsub.f32 2.0, %v2759_v38  ;;  %s12398_s14 = sld [smem:[#allocation14 + %s11166_s9]] }
 0x526   : > { %16034 = vst [vmem:[#allocation118_spill] sm:$0xff] %v11476_v52  ;;  %v11486_v58 = vpop.eup %8827  ;;  %3084 = vadd.xlane.f32.xlu0 %v3083_v10  ;;  %v3331_v12 = vmul.f32 %v11466_v60, %v2445_v36  ;;  %v3455_v2 = vmul.f32 %v11469_v61, %v2445_v36  ;;  %8837 = vrcp.f32 %v11312_v26  ;;  %v2374_v63 = vsel %vm1873_vm2, %v11476_v52, 0.0  ;;  %s12693_s9 = sld [smem:[#allocation13 + %s11175_s4]] }
 0x527   : > { %v11488_v7 = vpop.eup %8829  ;;  %v3579_v17 = vmul.f32 %v11472_v15, %v2445_v36  ;;  %v2444_v45 = vmul.f32 %v16036_v46, %v2428_v30  ;;  %v2791_v49 = vmul.f32 %v8822_v59, %v2775_v37  ;;  %8839 = vpow2.f32 %v3040_v1  ;;  %s12697_s28 = sld [smem:[#allocation13 + %s11186_s10]] }
 0x528   : > { %v11495_v18 = vpop.eup %8831  ;;  %v11499_v10 = vpop.xlane.xlu2 %2013  ;;  %v3489_v16 = vmul.f32 %v11450_v8, %v2806_v23  ;;  %v3223_v57 = vadd.f32 %v3207_v40, %v11263_v43  ;;  %v3347_v1 = vadd.f32 %v3331_v12, %v11270_v32  ;;  %v3471_v46 = vadd.f32 %v3455_v2, %v11277_v34 }
 0x529   : > { %16037 = vst [vmem:[#allocation56_spill] sm:$0xff] %v11499_v10  ;;  %v2340_v38 = vpop.xlane.xlu1 %2339  ;;  %v3206_v33 = vmul.f32 %v11461_v41, %v2444_v45  ;;  %v3330_v36 = vmul.f32 %v11466_v60, %v2444_v45  ;;  %v3454_v30 = vmul.f32 %v11469_v61, %v2444_v45  ;;  %v3578_v59 = vmul.f32 %v11472_v15, %v2444_v45  ;;  %v8834_v37 = vpop.eup %8833  ;;  %v16038_v10 = vld [vmem:[#allocation60_spill] sm:$0xff] }
 0x52a   : > { %v2343_v52 = vpop.xlane.xlu0 %2342  ;;  %v2807_v35 = vmul.f32 %v16038_v10, %v2791_v49  ;;  %8841 = vrcp.f32 %v2340_v38  ;;  %v11512_v50 = vpop.eup %8835  ;;  %v3595_v40 = vadd.f32 %v3579_v17, %v11284_v27 }
 0x52b   : > { %16039 = vst [vmem:[#allocation59_spill] sm:$0xff] %v11512_v50  ;;  %v3222_v43 = vadd.f32 %v3206_v33, %v11249_v3  ;;  %v3346_v56 = vadd.f32 %v3330_v36, %v11252_v62  ;;  %v3470_v28 = vadd.f32 %v3454_v30, %v11255_v0  ;;  %v3594_v27 = vadd.f32 %v3578_v59, %v11258_v53 }
 0x52c   : > { %v11518_v13 = vpop.eup %8837  ;;  %v3242_v45 = vmul.f32 %v11441_v39, %v2807_v35  ;;  %v3366_v32 = vmul.f32 %v11444_v22, %v2807_v35  ;;  %v3490_v34 = vmul.f32 %v11450_v8, %v2807_v35  ;;  %v3614_v12 = vmul.f32 %v11458_v54, %v2807_v35 }
 0x52d   : > { %2375 = vadd.xlane.f32.xlu2 %v2374_v63  ;;  %v11524_v2 = vpop.eup %8839  ;;  %v2760_v3 = vmul.f32 %v8834_v37, %v11454_v47  ;;  %8843 = vrcp.f32 %v2343_v52  ;;  %v11528_v62 = vadd.f32 %v3241_v6, %v3222_v43  ;;  %v2044_v35 = vmul.f32 %v11486_v58, %v11142_v4 }
 0x52e   : > { %16040 = vst [vmem:[#allocation60_spill] sm:$0xff] %v11524_v2  ;;  %v11530_v0 = vadd.f32 %v3242_v45, %v3223_v57  ;;  %v11532_v33 = vadd.f32 %v3366_v32, %v3347_v1  ;;  %v11534_v17 = vadd.f32 %v3490_v34, %v3471_v46  ;;  %v11536_v49 = vadd.f32 %v3614_v12, %v3595_v40 }
 0x52f   : > { %v3613_v63 = vmul.f32 %v11458_v54, %v2806_v23  ;;  %v2776_v10 = vsub.f32 2.0, %v2760_v3  ;;  %v3080_v53 = vsel %vm1873_vm2, %v11524_v2, 0.0  ;;  %v11544_v59 = vadd.f32 %v3365_v24, %v3346_v56  ;;  %v16059_v2 = vld [vmem:[#allocation100_spill] sm:$0xff] }
 0x530   : > { %16041 = vst [vmem:[#allocation119_spill] sm:$0xff] %v11530_v0  ;;  %v2705_v6 = vpop.xlane.xlu2 %2704  ;;  %v8842_v36 = vpop.eup %8841  ;;  %3081 = vadd.xlane.f32.xlu1 %v3080_v53  ;;  %v11546_v1 = vadd.f32 %v3489_v16, %v3470_v28  ;;  %v11550_v4 = vmul.f32 %v11221_v31, %v11431_v44  ;;  %v11554_v23 = vmul.f32 %v11229_v25, %v11431_v44  ;;  %v16050_v32 = vsub.f32 2.0, %v11400_v11 }
 0x531   : > { %16042 = vst [vmem:[#allocation120_spill] sm:$0xff] %v11532_v33  ;;  %v2992_v47 = vpop.xlane.xlu1 %2991  ;;  %8845 = vrcp.f32 %v2705_v6  ;;  %v2046_v46 = vmul.f32 %v11488_v7, %v11168_v55  ;;  %v2398_v40 = vmul.f32 %v8842_v36, %v2340_v38  ;;  %v11561_v28 = vadd.f32 %v3613_v63, %v3594_v27  ;;  %v16065_v33 = vld [vmem:[#allocation105_spill] sm:$0xff] }
 0x532   : > { %16043 = vst [vmem:[#allocation121_spill] sm:$0xff] %v11534_v17  ;;  %v3018_v57 = vsub.f32 %v10973_v20, %v2992_v47  ;;  %v2995_v30 = vpop.xlane.xlu0 %2994  ;;  %v16048_v20 = vld [vmem:[#allocation49_spill] sm:$0xff]  ;;  %v11565_v24 = vmul.f32 %v11232_v14, %v11431_v44  ;;  %v2075_v34 = vmul.f32 %v11374_v9, %v16050_v32  ;;  %v2792_v12 = vmul.f32 %v8834_v37, %v2776_v10  ;;  %v16051_v10 = vld [vmem:[#allocation62_spill] sm:$0xff]  ;;  %v16063_v17 = vld [vmem:[#allocation103_spill] sm:$0xff] }
 0x533   : > { %16044 = vst [vmem:[#allocation122_spill] sm:$0xff] %v11536_v49  ;;  %v2090_v43 = vmul.f32 %v16048_v20, %v11434_v42  ;;  %v3019_v56 = vsub.f32 %v10997_v48, %v2995_v30  ;;  %v8844_v16 = vpop.eup %8843  ;;  %v2739_v55 = vsel %vm1873_vm2, %v11512_v50, 0.0  ;;  %v2060_v38 = vsub.f32 2.0, %v2044_v35 }
 0x534   : > { %16045 = vst [vmem:[#allocation123_spill] sm:$0xff] %v11544_v59  ;;  %v3044_v45 = vmul.f32 1.442695, %v3018_v57  ;;  %v11574_v42 = vmul.f32 %v11495_v18, %v11180_v51  ;;  %v2414_v48 = vsub.f32 2.0, %v2398_v40  ;;  %v2399_v27 = vmul.f32 %v8844_v16, %v2343_v52  ;;  %v16052_v40 = vld [vmem:[#allocation50_spill] sm:$0xff] }
 0x535   : > { %16046 = vst [vmem:[#allocation124_spill] sm:$0xff] %v11546_v1  ;;  %2740 = vadd.xlane.f32.xlu2 %v2739_v55  ;;  %v2062_v3 = vsub.f32 2.0, %v2046_v46  ;;  %v11578_v63 = vmul.f32 %v11518_v13, %v11312_v26  ;;  %v3046_v11 = vmul.f32 1.442695, %v3019_v56  ;;  %v11582_v37 = vmul.f32 %v11235_v29, %v11431_v44  ;;  %v16064_v1 = vld [vmem:[#allocation104_spill] sm:$0xff] }
 0x536   : > { %16047 = vst [vmem:[#allocation125_spill] sm:$0xff] %v11550_v4  ;;  %8847 = vpow2.f32 %v3044_v45  ;;  %v11585_v35 = vmul.f32 %v11221_v31, %v2090_v43  ;;  %v11588_v51 = vmul.f32 %v11229_v25, %v2090_v43  ;;  %v11591_v52 = vmul.f32 %v11232_v14, %v2090_v43  ;;  %v16058_v4 = vld [vmem:[#allocation98_spill] sm:$0xff] }
 0x537   : > { %16049 = vst [vmem:[#allocation49_spill] sm:$0xff] %v11561_v28  ;;  %v8846_v9 = vpop.eup %8845  ;;  %v11594_v53 = vmul.f32 %v16051_v10, %v2792_v12  ;;  %v2430_v26 = vmul.f32 %v8842_v36, %v2414_v48  ;;  %v2415_v47 = vsub.f32 2.0, %v2399_v27  ;;  %v11597_v44 = vmul.f32 %v11235_v29, %v2090_v43  ;;  %v16053_v43 = vld [vmem:[#allocation39_spill] sm:$0xff] }
 0x538   : > { %v2761_v57 = vmul.f32 %v8846_v9, %v2705_v6  ;;  %v2708_v46 = vpop.xlane.xlu2 %2707  ;;  %v11600_v20 = vmul.f32 %v16052_v40, %v2075_v34  ;;  %v11603_v45 = vmul.f32 %v11486_v58, %v2060_v38  ;;  %8849 = vpow2.f32 %v3046_v11  ;;  %v16057_v40 = vld [vmem:[#allocation97_spill] sm:$0xff] }
 0x539   : > { %v2711_v30 = vpop.xlane.xlu1 %2710  ;;  %v11608_v32 = vmul.f32 %v11488_v7, %v2062_v3  ;;  %v2061_v36 = vsub.f32 2.0, %v11574_v42  ;;  %8851 = vrcp.f32 %v11446_v19  ;;  %v2446_v34 = vmul.f32 %v10995_v5, %v2430_v26 }
 0x53a   : > { %v11605_v56 = vpop.xlane.xlu0 %2345  ;;  %4652 = vrot.lane.b32.xlu0 %v16053_v43, %s9532_s26  ;;  %v2431_v12 = vmul.f32 %v8844_v16, %v2415_v47  ;;  %v2777_v58 = vsub.f32 2.0, %v2761_v57  ;;  %8853 = vrcp.f32 %v2711_v30  ;;  %v3243_v7 = vmul.f32 %v11441_v39, %v11594_v53  ;;  %v16056_v47 = vld [vmem:[#allocation96_spill] sm:$0xff] }
 0x53b   : > { %v3367_v38 = vmul.f32 %v11444_v22, %v11594_v53  ;;  %v3491_v42 = vmul.f32 %v11450_v8, %v11594_v53  ;;  %8855 = vrcp.f32 %v2708_v46  ;;  %v3208_v48 = vmul.f32 %v11461_v41, %v2446_v34 }
 0x53c   : > { %v11616_v55 = vpop.eup %8847  ;;  %v3332_v27 = vmul.f32 %v11466_v60, %v2446_v34  ;;  %v3456_v5 = vmul.f32 %v11469_v61, %v2446_v34  ;;  %v3580_v16 = vmul.f32 %v11472_v15, %v2446_v34  ;;  %v2447_v3 = vmul.f32 %v11001_v21, %v2431_v12 }
 0x53d   : > { %16054 = vst [vmem:[#allocation62_spill] sm:$0xff] %v11616_v55  ;;  %v2793_v11 = vmul.f32 %v8846_v9, %v2777_v58  ;;  %8857 = vrcp.f32 %v11605_v56  ;;  %v3086_v10 = vsel %vm1873_vm2, %v11616_v55, 0.0  ;;  %v3224_v57 = vadd.f32 %v3208_v48, %v16056_v47  ;;  %v16060_v47 = vld [vmem:[#allocation64_spill] sm:$0xff] }
 0x53e   : > { %v11632_v26 = vpop.eup %8849  ;;  %v3348_v6 = vadd.f32 %v3332_v27, %v16057_v40  ;;  %v3472_v50 = vadd.f32 %v3456_v5, %v16058_v4  ;;  %v3596_v43 = vadd.f32 %v3580_v16, %v16059_v2  ;;  %3087 = vadd.xlane.f32.xlu1 %v3086_v10  ;;  %v3209_v21 = vmul.f32 %v11461_v41, %v2447_v3  ;;  %v16062_v10 = vld [vmem:[#allocation102_spill] sm:$0xff] }
 0x53f   : > { %16055 = vst [vmem:[#allocation50_spill] sm:$0xff] %v11632_v26  ;;  %v11638_v34 = vpop.eup %8851  ;;  %v3333_v9 = vmul.f32 %v11466_v60, %v2447_v3  ;;  %v3457_v12 = vmul.f32 %v11469_v61, %v2447_v3  ;;  %v3581_v58 = vmul.f32 %v11472_v15, %v2447_v3  ;;  %v2809_v27 = vmul.f32 %v16060_v47, %v2793_v11 }
 0x540   : > { %v2349_v55 = vpop.xlane.xlu2 %2348  ;;  %v8854_v48 = vpop.eup %8853  ;;  %v3089_v4 = vsel %vm1873_vm2, %v11632_v26, 0.0  ;;  %v11649_v5 = vadd.f32 %v3367_v38, %v3348_v6  ;;  %v3225_v40 = vadd.f32 %v3209_v21, %v16062_v10  ;;  %v3615_v38 = vmul.f32 %v11458_v54, %v11594_v53 }
 0x541   : > { %v2714_v49 = vpop.xlane.xlu1 %2713  ;;  %8859 = vrcp.f32 %v2349_v55  ;;  %v8856_v16 = vpop.eup %8855  ;;  %v3349_v28 = vadd.f32 %v3333_v9, %v16063_v17  ;;  %v3473_v3 = vadd.f32 %v3457_v12, %v16064_v1  ;;  %v3597_v0 = vadd.f32 %v3581_v58, %v16065_v33  ;;  %3090 = vadd.xlane.f32.xlu2 %v3089_v4 }
 0x542   : > { %v11647_v2 = vpop.xlane.xlu0 %2997  ;;  %16061 = vst [vmem:[#allocation96_spill] sm:$0xff] %v11649_v5  ;;  %v3244_v11 = vmul.f32 %v11441_v39, %v2809_v27  ;;  %v3368_v47 = vmul.f32 %v11444_v22, %v2809_v27  ;;  %v3492_v26 = vmul.f32 %v11450_v8, %v2809_v27  ;;  %v3616_v59 = vmul.f32 %v11458_v54, %v2809_v27 }
 0x543   : > { %v8858_v6 = vpop.eup %8857  ;;  %v2763_v21 = vmul.f32 %v8854_v48, %v2711_v30  ;;  %v2762_v10 = vmul.f32 %v8856_v16, %v2708_v46  ;;  %8861 = vrcp.f32 %v2714_v49  ;;  %v11671_v12 = vmul.f32 %v11221_v31, %v11600_v20 }
 0x544   : > { %v11661_v17 = vadd.f32 %v3244_v11, %v3225_v40  ;;  %v11663_v1 = vadd.f32 %v3368_v47, %v3349_v28  ;;  %v11665_v33 = vadd.f32 %v3492_v26, %v3473_v3  ;;  %v11667_v9 = vadd.f32 %v3616_v59, %v3597_v0  ;;  %v16070_v59 = vld [vmem:[#allocation51_spill] sm:$0xff] }
 0x545   : > { %v11675_v58 = vmul.f32 %v11229_v25, %v11600_v20  ;;  %v2077_v53 = vmul.f32 %v11495_v18, %v2061_v36  ;;  %v2400_v30 = vmul.f32 %v8858_v6, %v11605_v56  ;;  %v2779_v27 = vsub.f32 2.0, %v2763_v21 }
 0x546   : > { %16066 = vst [vmem:[#allocation97_spill] sm:$0xff] %v11661_v17  ;;  %v11679_v28 = vadd.f32 %v3491_v42, %v3472_v50  ;;  %v11681_v26 = vadd.f32 %v3615_v38, %v3596_v43  ;;  %v11683_v0 = vadd.f32 %v3243_v7, %v3224_v57  ;;  %v2092_v4 = vmul.f32 %v16070_v59, %v11603_v45  ;;  %v16072_v50 = vld [vmem:[#allocation53_spill] sm:$0xff]  ;;  %v16074_v7 = vld [vmem:[#allocation56_spill] sm:$0xff] }
 0x547   : > { %v8860_v46 = vpop.eup %8859  ;;  %v16071_v40 = vsub.f32 2.0, %v11578_v63  ;;  %v2416_v11 = vsub.f32 2.0, %v2400_v30  ;;  %v11692_v56 = vmul.f32 %v11232_v14, %v11600_v20  ;;  %v11696_v43 = vmul.f32 %v16072_v50, %v11608_v32  ;;  %v16076_v32 = vld [vmem:[#allocation65_spill] sm:$0xff] }
 0x548   : > { %16067 = vst [vmem:[#allocation98_spill] sm:$0xff] %v11679_v28  ;;  %v2401_v47 = vmul.f32 %v8860_v46, %v2349_v55  ;;  %v3001_v18 = vpop.xlane.xlu2 %3000  ;;  %8863 = vrcp.f32 %v16074_v7  ;;  %v2778_v42 = vsub.f32 2.0, %v2762_v10  ;;  %v16075_v55 = vld [vmem:[#allocation54_spill] sm:$0xff]  ;;  %v2049_v38 = vmul.f32 %v11638_v34, %v11446_v19 }
 0x549   : > { %16068 = vst [vmem:[#allocation100_spill] sm:$0xff] %v11681_v26  ;;  %v2079_v3 = vmul.f32 %v11518_v13, %v16071_v40  ;;  %v2355_v36 = vpop.xlane.xlu1 %2354  ;;  %v8862_v63 = vpop.eup %8861  ;;  %v11703_v13 = vmul.f32 %v11235_v29, %v11600_v20  ;;  %v2093_v57 = vmul.f32 %v16075_v55, %v2077_v53  ;;  %v2795_v30 = vmul.f32 %v8854_v48, %v2779_v27  ;;  %v16080_v53 = vld [vmem:[#allocation58_spill] sm:$0xff] }
 0x54a   : > { %16069 = vst [vmem:[#allocation64_spill] sm:$0xff] %v11683_v0  ;;  %v11699_v45 = vpop.xlane.xlu0 %2716  ;;  %v2417_v21 = vsub.f32 2.0, %v2401_v47  ;;  %v2432_v59 = vmul.f32 %v8858_v6, %v2416_v11  ;;  %v3020_v40 = vsub.f32 %v16076_v32, %v11647_v2  ;;  %8865 = vrcp.f32 %v2355_v36  ;;  %v16085_v32 = vld [vmem:[#allocation69_spill] sm:$0xff] }
 0x54b   : > { %16073 = vst [vmem:[#allocation102_spill] sm:$0xff] %v11696_v43  ;;  %v11711_v10 = vmul.f32 %v11221_v31, %v2092_v4  ;;  %v11714_v50 = vmul.f32 %v11229_v25, %v2092_v4  ;;  %v11717_v20 = vmul.f32 %v11232_v14, %v2092_v4  ;;  %v11720_v55 = vmul.f32 %v16080_v53, %v2079_v3  ;;  %v16087_v3 = vld [vmem:[#allocation67_spill] sm:$0xff] }
 0x54c   : > { %v11723_v19 = vmul.f32 %v11235_v29, %v2092_v4  ;;  %v11727_v48 = vmul.f32 %v11221_v31, %v11696_v43  ;;  %v2794_v2 = vmul.f32 %v8856_v16, %v2778_v42  ;;  %v2764_v6 = vmul.f32 %v8862_v63, %v2714_v49  ;;  %v16089_v4 = vld [vmem:[#allocation68_spill] sm:$0xff] }
 0x54d   : > { %16077 = vst [vmem:[#allocation103_spill] sm:$0xff] %v11711_v10  ;;  %v11730_v27 = vmul.f32 %v11221_v31, %v2093_v57  ;;  %v2065_v11 = vsub.f32 2.0, %v2049_v38  ;;  %v2433_v47 = vmul.f32 %v8860_v46, %v2417_v21  ;;  %v3021_v26 = vsub.f32 %v16085_v32, %v3001_v18 }
 0x54e   : > { %16078 = vst [vmem:[#allocation104_spill] sm:$0xff] %v11714_v50  ;;  %v11733_v28 = vpop.eup %8863  ;;  %v11736_v53 = vmul.f32 %v16087_v3, %v2795_v30  ;;  %8867 = vrcp.f32 %v11699_v45  ;;  %v11743_v49 = vmul.f32 %v11229_v25, %v2093_v57  ;;  %v11746_v16 = vmul.f32 %v11232_v14, %v2093_v57 }
 0x54f   : > { %16079 = vst [vmem:[#allocation105_spill] sm:$0xff] %v11717_v20  ;;  %v3048_v20 = vmul.f32 1.442695, %v3020_v40  ;;  %v11749_v46 = vmul.f32 %v11235_v29, %v2093_v57  ;;  %v11753_v18 = vmul.f32 %v11221_v31, %v11720_v55  ;;  %v11757_v30 = vmul.f32 %v11229_v25, %v11720_v55 }
 0x550   : > { %16081 = vst [vmem:[#allocation51_spill] sm:$0xff] %v11720_v55  ;;  %v2352_v42 = vpop.xlane.xlu2 %2351  ;;  %v8866_v21 = vpop.eup %8865  ;;  %v2780_v32 = vsub.f32 2.0, %v2764_v6  ;;  %v11763_v57 = vmul.f32 %v11638_v34, %v2065_v11  ;;  %v3050_v43 = vmul.f32 1.442695, %v3021_v26  ;;  %v11774_v25 = vmul.f32 %v11444_v22, %v11736_v53  ;;  %v16102_v11 = vld [vmem:[#allocation76_spill] sm:$0xff] }
 0x551   : > { %16082 = vst [vmem:[#allocation53_spill] sm:$0xff] %v11723_v19  ;;  %v11739_v19 = vmul.f32 %v16089_v4, %v2432_v59  ;;  %v3007_v38 = vpop.xlane.xlu1 %3006  ;;  %v16096_v59 = vld [vmem:[#allocation66_spill] sm:$0xff]  ;;  %8869 = vrcp.f32 %v2352_v42  ;;  %v11767_v4 = vmul.f32 %v11733_v28, %v16074_v7  ;;  %v2403_v7 = vmul.f32 %v8866_v21, %v2355_v36  ;;  %v16113_v55 = vld [vmem:[#allocation40_spill] sm:$0xff] }
 0x552   : > { %16083 = vst [vmem:[#allocation56_spill] sm:$0xff] %v11727_v48  ;;  %v11760_v40 = vmul.f32 %v16096_v59, %v2794_v2  ;;  %v2720_v3 = vpop.xlane.xlu0 %2719  ;;  %v16100_v48 = vld [vmem:[#allocation70_spill] sm:$0xff]  ;;  %8871 = vpow2.f32 %v3048_v20  ;;  %v3023_v59 = vsub.f32 %v16102_v11, %v3007_v38  ;;  %v11785_v26 = vmul.f32 %v11450_v8, %v11736_v53 }
 0x553   : > { %16084 = vst [vmem:[#allocation54_spill] sm:$0xff] %v11730_v27  ;;  %v11770_v31 = vmul.f32 %v16100_v48, %v2433_v47  ;;  %v3334_v2 = vmul.f32 %v11466_v60, %v11739_v19  ;;  %v3458_v6 = vmul.f32 %v11469_v61, %v11739_v19  ;;  %v3582_v34 = vmul.f32 %v11472_v15, %v11739_v19 }
 0x554   : > { %16086 = vst [vmem:[#allocation65_spill] sm:$0xff] %v11733_v28  ;;  %8873 = vrcp.f32 %v2720_v3  ;;  %v8868_v48 = vpop.eup %8867  ;;  %v11789_v47 = vmul.f32 %v11458_v54, %v11736_v53  ;;  %v2796_v20 = vmul.f32 %v8862_v63, %v2780_v32  ;;  %v11797_v36 = vmul.f32 %v11458_v54, %v11760_v40  ;;  %v16105_v63 = vld [vmem:[#allocation113_spill] sm:$0xff] }
 0x555   : > { %16088 = vst [vmem:[#allocation58_spill] sm:$0xff] %v11736_v53  ;;  %v3335_v38 = vmul.f32 %v11466_v60, %v11770_v31  ;;  %8875 = vpow2.f32 %v3050_v43  ;;  %v16104_v53 = vld [vmem:[#allocation112_spill] sm:$0xff]  ;;  %v2419_v28 = vsub.f32 2.0, %v2403_v7  ;;  %v11805_v32 = vadd.f32 %v3582_v34, %v16105_v63 }
 0x556   : > { %16090 = vst [vmem:[#allocation69_spill] sm:$0xff] %v11739_v19  ;;  %v3493_v19 = vmul.f32 %v11450_v8, %v11760_v40  ;;  %v3474_v10 = vadd.f32 %v3458_v6, %v16104_v53  ;;  %v3459_v29 = vmul.f32 %v11469_v61, %v11770_v31  ;;  %v16109_v53 = vld [vmem:[#allocation71_spill] sm:$0xff] }
 0x557   : > { %16091 = vst [vmem:[#allocation67_spill] sm:$0xff] %v11743_v49  ;;  %v8870_v11 = vpop.eup %8869  ;;  %v2435_v6 = vmul.f32 %v8866_v21, %v2419_v28  ;;  %v16114_v49 = vld [vmem:[#allocation72_spill] sm:$0xff] }
 0x558   : > { %16092 = vst [vmem:[#allocation68_spill] sm:$0xff] %v11746_v16  ;;  %v16107_v16 = vld [vmem:[#allocation44_spill] sm:$0xff]  ;;  %v3004_v43 = vpop.xlane.xlu2 %3003 }
 0x559   : > { %16093 = vst [vmem:[#allocation126_spill] sm:$0xff] %v11749_v46  ;;  %v3054_v46 = vmul.f32 1.442695, %v3023_v59  ;;  %4513 = vrot.lane.b32.xlu1 %v16107_v16, %s16106_s18  ;;  %v11811_v14 = vpop.xlane.xlu1 %2357  ;;  %v16111_v59 = vld [vmem:[#allocation106_spill] sm:$0xff]  ;;  %4870 = vrot.lane.b32.xlu2 %v16113_v55, %s16112_s25  ;;  %v3022_v27 = vsub.f32 %v16114_v49, %v3004_v43 }
 0x55a   : > { %16094 = vst [vmem:[#allocation127_spill] sm:$0xff] %v11753_v18  ;;  %v16103_v18 = vld [vmem:[#allocation110_spill] sm:$0xff]  ;;  %v11821_v63 = vadd.f32 %v3335_v38, %v16111_v59  ;;  %8877 = vrcp.f32 %v11811_v14  ;;  %v11834_v38 = vadd.f32 %v3493_v19, %v3474_v10 }
 0x55b   : > { %16095 = vst [vmem:[#allocation128_spill] sm:$0xff] %v11757_v30  ;;  %v3369_v30 = vmul.f32 %v11444_v22, %v11760_v40  ;;  %v3350_v50 = vadd.f32 %v3334_v2, %v16103_v18  ;;  %v11813_v18 = vpop.eup %8871  ;;  %v11818_v2 = vmul.f32 %v16109_v53, %v2796_v20  ;;  %v16122_v10 = vld [vmem:[#allocation114_spill] sm:$0xff] }
 0x55c   : > { %16097 = vst [vmem:[#allocation66_spill] sm:$0xff] %v11760_v40  ;;  %v2402_v40 = vmul.f32 %v8870_v11, %v2352_v42  ;;  %v2361_v42 = vpop.xlane.xlu0 %2360  ;;  %v8874_v7 = vpop.eup %8873 }
 0x55d   : > { %16098 = vst [vmem:[#allocation129_spill] sm:$0xff] %v11763_v57  ;;  %v2765_v57 = vmul.f32 %v8868_v48, %v11699_v45  ;;  %v3583_v45 = vmul.f32 %v11472_v15, %v11770_v31  ;;  %v2766_v28 = vmul.f32 %v8874_v7, %v2720_v3  ;;  %8879 = vrcp.f32 %v2361_v42  ;;  %v11829_v21 = vpop.eup %8875  ;;  %v16119_v3 = vld [vmem:[#allocation74_spill] sm:$0xff] }
 0x55e   : > { %16099 = vst [vmem:[#allocation130_spill] sm:$0xff] %v11767_v4  ;;  %v2418_v16 = vsub.f32 2.0, %v2402_v40  ;;  %8881 = vpow2.f32 %v3054_v46  ;;  %v11832_v40 = vadd.f32 %v3369_v30, %v3350_v50  ;;  %v3052_v50 = vmul.f32 1.442695, %v3022_v27  ;;  %v16123_v30 = vld [vmem:[#allocation116_spill] sm:$0xff]  ;;  %v16125_v4 = vld [vmem:[#allocation55_spill] sm:$0xff] }
 0x55f   : > { %16101 = vst [vmem:[#allocation70_spill] sm:$0xff] %v11770_v31  ;;  %v2781_v34 = vsub.f32 2.0, %v2765_v57  ;;  %v16115_v31 = vld [vmem:[#allocation73_spill] sm:$0xff]  ;;  %v2782_v46 = vsub.f32 2.0, %v2766_v28  ;;  %v3371_v5 = vmul.f32 %v11444_v22, %v11818_v2 }
 0x560   : > { %16108 = vst [vmem:[#allocation76_spill] sm:$0xff] %v11813_v18  ;;  %v2451_v20 = vmul.f32 %v16115_v31, %v2435_v6  ;;  %v2434_v57 = vmul.f32 %v8870_v11, %v2418_v16  ;;  %v16120_v6 = vld [vmem:[#allocation75_spill] sm:$0xff]  ;;  %8883 = vpow2.f32 %v3052_v50 }
 0x561   : > { %16110 = vst [vmem:[#allocation110_spill] sm:$0xff] %v11818_v2  ;;  %v2797_v53 = vmul.f32 %v8868_v48, %v2781_v34  ;;  %v16124_v34 = vld [vmem:[#allocation117_spill] sm:$0xff] }
 0x562   : > { %16116 = vst [vmem:[#allocation112_spill] sm:$0xff] %v11829_v21  ;;  %v3213_v55 = vmul.f32 %v11461_v41, %v2451_v20  ;;  %v3337_v49 = vmul.f32 %v11466_v60, %v2451_v20  ;;  %v3461_v43 = vmul.f32 %v11469_v61, %v2451_v20  ;;  %v3585_v31 = vmul.f32 %v11472_v15, %v2451_v20  ;;  %v8878_v20 = vpop.eup %8877 }
 0x563   : > { %16117 = vst [vmem:[#allocation113_spill] sm:$0xff] %v11832_v40  ;;  %v2813_v48 = vmul.f32 %v16119_v3, %v2797_v53  ;;  %v11843_v16 = vmul.f32 %v16120_v6, %v2434_v57  ;;  %v8880_v3 = vpop.eup %8879 }
 0x564   : > { %16118 = vst [vmem:[#allocation71_spill] sm:$0xff] %v11834_v38  ;;  %v3229_v19 = vadd.f32 %v3213_v55, %v16122_v10  ;;  %v3353_v11 = vadd.f32 %v3337_v49, %v16123_v30  ;;  %v3477_v59 = vadd.f32 %v3461_v43, %v16124_v34  ;;  %v3601_v17 = vadd.f32 %v3585_v31, %v16125_v4  ;;  %v3058_v55 = vpop.xlane.xlu2 %3057  ;;  %v3061_v49 = vpop.xlane.xlu1 %3060  ;;  %v16126_v43 = vld [vmem:[#allocation107_spill] sm:$0xff] }
 0x565   : > { %16121 = vst [vmem:[#allocation106_spill] sm:$0xff] %v11843_v16  ;;  %v3248_v53 = vmul.f32 %v11441_v39, %v2813_v48  ;;  %v3372_v57 = vmul.f32 %v11444_v22, %v2813_v48  ;;  %v3496_v28 = vmul.f32 %v11450_v8, %v2813_v48  ;;  %v3620_v27 = vmul.f32 %v11458_v54, %v2813_v48  ;;  %v11867_v30 = vpop.xlane.xlu0 %3066  ;;  %v11869_v48 = vpop.eup %8881 }
 0x566   : > { %v3475_v6 = vadd.f32 %v3459_v29, %v16126_v43  ;;  %v3336_v4 = vmul.f32 %v11466_v60, %v11843_v16  ;;  %v3460_v31 = vmul.f32 %v11469_v61, %v11843_v16  ;;  %v3584_v10 = vmul.f32 %v11472_v15, %v11843_v16  ;;  %16127 = vst [vmem:[#allocation40_spill] sm:$0xff] %v11869_v48  ;;  %v16132_v43 = vld [vmem:[#allocation108_spill] sm:$0xff] }
 0x567   : > { %v11871_v34 = vadd.f32 %v3248_v53, %v3229_v19  ;;  %v11873_v0 = vadd.f32 %v3372_v57, %v3353_v11  ;;  %v11875_v38 = vadd.f32 %v3496_v28, %v3477_v59  ;;  %v11877_v29 = vadd.f32 %v3620_v27, %v3601_v17 }
 0x568   : > { %v3599_v40 = vadd.f32 %v3583_v45, %v16132_v43  ;;  %v3495_v16 = vmul.f32 %v11450_v8, %v11818_v2  ;;  %v2798_v19 = vmul.f32 %v8874_v7, %v2782_v46  ;;  %v2404_v11 = vmul.f32 %v8878_v20, %v11811_v14 }
 0x569   : > { %16128 = vst [vmem:[#allocation72_spill] sm:$0xff] %v11871_v34  ;;  %v2405_v53 = vmul.f32 %v8880_v3, %v2361_v42  ;;  %8885 = vrcp.f32 %v3058_v55  ;;  %v3352_v17 = vadd.f32 %v3336_v4, %v11554_v23  ;;  %v3101_v45 = vsel %vm1873_vm2, %v11869_v48, 0.0 }
 0x56a   : > { %16129 = vst [vmem:[#allocation73_spill] sm:$0xff] %v11873_v0  ;;  %8887 = vrcp.f32 %v3061_v49  ;;  %v11892_v59 = vadd.f32 %v11797_v36, %v11805_v32  ;;  %v3476_v50 = vadd.f32 %v3460_v31, %v11565_v24  ;;  %v3600_v7 = vadd.f32 %v3584_v10, %v11582_v37  ;;  %3102 = vadd.xlane.f32.xlu0 %v3101_v45  ;;  %v16136_v36 = vld [vmem:[#allocation77_spill] sm:$0xff]  ;;  %v11916_v31 = vpop.eup %8883  ;;  %v16144_v45 = vld [vmem:[#allocation78_spill] sm:$0xff] }
 0x56b   : > { %16130 = vst [vmem:[#allocation74_spill] sm:$0xff] %v11875_v38  ;;  %v2420_v46 = vsub.f32 2.0, %v2404_v11  ;;  %v2421_v14 = vsub.f32 2.0, %v2405_v53  ;;  %v3619_v42 = vmul.f32 %v11458_v54, %v11818_v2  ;;  %v11899_v57 = vstv %s11845_s3  ;;  %s12892_s3 = sld [smem:[#allocation14 + %s11175_s4]] }
 0x56c   : > { %16131 = vst [vmem:[#allocation75_spill] sm:$0xff] %v11877_v29  ;;  %v11903_v23 = vadd.f32 %v11774_v25, %v11821_v63  ;;  %v11906_v28 = vadd.f32 %v11785_v26, %v3475_v6  ;;  %v2814_v32 = vmul.f32 %v16136_v36, %v2798_v19  ;;  %v11910_v24 = vstv %s11851_s20  ;;  %v2723_v27 = vpop.xlane.xlu2 %2722  ;;  %v3064_v4 = vpop.xlane.xlu1 %3063  ;;  %s12899_s20 = sld [smem:[#allocation14 + %s11186_s10]] }
 0x56d   : > { %16133 = vst [vmem:[#allocation114_spill] sm:$0xff] %v11899_v57  ;;  %v11913_v37 = vstv %s11857_s30  ;;  %8889 = vrcp.f32 %v11867_v30  ;;  %v2436_v10 = vmul.f32 %v8878_v20, %v2420_v46  ;;  %v2437_v43 = vmul.f32 %v8880_v3, %v2421_v14  ;;  %v3070_v63 = vpop.xlane.xlu0 %3069 }
 0x56e   : > { %16134 = vst [vmem:[#allocation116_spill] sm:$0xff] %v11903_v23  ;;  %8891 = vrcp.f32 %v2723_v27  ;;  %v11919_v25 = vadd.f32 %v11789_v47, %v3599_v40  ;;  %v11921_v6 = vadd.f32 %v3371_v5, %v3352_v17  ;;  %v11923_v19 = vadd.f32 %v3495_v16, %v3476_v50  ;;  %v16146_v47 = vld [vmem:[#allocation79_spill] sm:$0xff] }
 0x56f   : > { %16135 = vst [vmem:[#allocation117_spill] sm:$0xff] %v11906_v28  ;;  %v8886_v26 = vpop.eup %8885  ;;  %8893 = vrcp.f32 %v3064_v4  ;;  %v11925_v11 = vadd.f32 %v3619_v42, %v3600_v7  ;;  %v2452_v36 = vmul.f32 %v16144_v45, %v2436_v10  ;;  %v11929_v34 = vstv %s11884_s21  ;;  %s9536_s21 = smov 8  }
 0x570   : > { %16137 = vst [vmem:[#allocation55_spill] sm:$0xff] %v11910_v24  ;;  %v8888_v53 = vpop.eup %8887  ;;  %8895 = vrcp.f32 %v3070_v63  ;;  %v11933_v20 = vsel %vm1873_vm2, %v11813_v18, 0.0  ;;  %v2453_v40 = vmul.f32 %v16146_v47, %v2437_v43  ;;  %v3120_v3 = vmul.f32 %v8886_v26, %v3058_v55 }
 0x571   : > { %16138 = vst [vmem:[#allocation107_spill] sm:$0xff] %v11913_v37  ;;  %v3121_v46 = vmul.f32 %v8888_v53, %v3061_v49  ;;  %v11938_v5 = vsel %vm1873_vm2, %v11829_v21, 0.0  ;;  %v3214_v16 = vmul.f32 %v11461_v41, %v2452_v36  ;;  %v3338_v17 = vmul.f32 %v11466_v60, %v2452_v36 }
 0x572   : > { %16139 = vst [vmem:[#allocation108_spill] sm:$0xff] %v11916_v31  ;;  %v3462_v50 = vmul.f32 %v11469_v61, %v2452_v36  ;;  %v3586_v7 = vmul.f32 %v11472_v15, %v2452_v36  ;;  %v3249_v42 = vmul.f32 %v11441_v39, %v2814_v32  ;;  %v3373_v10 = vmul.f32 %v11444_v22, %v2814_v32 }
 0x573   : > { %16140 = vst [vmem:[#allocation77_spill] sm:$0xff] %v11919_v25  ;;  %v8890_v14 = vpop.eup %8889  ;;  %v3497_v55 = vmul.f32 %v11450_v8, %v2814_v32  ;;  %v11949_v49 = vsel %vm1873_vm2, %v11916_v31, 0.0  ;;  %v3230_v45 = vadd.f32 %v3214_v16, %v11585_v35  ;;  %v3354_v47 = vadd.f32 %v3338_v17, %v11588_v51 }
 0x574   : > { %16141 = vst [vmem:[#allocation131_spill] sm:$0xff] %v11921_v6  ;;  %v8892_v43 = vpop.eup %8891  ;;  %v3478_v21 = vadd.f32 %v3462_v50, %v11591_v52  ;;  %v3602_v36 = vadd.f32 %v3586_v7, %v11597_v44  ;;  %v3621_v29 = vmul.f32 %v11458_v54, %v2814_v32  ;;  %v3215_v38 = vmul.f32 %v11461_v41, %v2453_v40  ;;  %v11959_v31 = vpop.xlane.xlu2 %2366 }
 0x575   : > { %16142 = vst [vmem:[#allocation132_spill] sm:$0xff] %v11923_v19  ;;  %v8894_v18 = vpop.eup %8893  ;;  %v3339_v0 = vmul.f32 %v11466_v60, %v2453_v40  ;;  %v3463_v48 = vmul.f32 %v11469_v61, %v2453_v40  ;;  %v3137_v35 = vsub.f32 2.0, %v3121_v46  ;;  %v3123_v51 = vmul.f32 %v8890_v14, %v11867_v30  ;;  %v11967_v25 = vpop.xlane.xlu1 %2363 }
 0x576   : > { %16143 = vst [vmem:[#allocation133_spill] sm:$0xff] %v11925_v11  ;;  %v8896_v2 = vpop.eup %8895  ;;  %v3136_v11 = vsub.f32 2.0, %v3120_v3  ;;  %v2767_v16 = vmul.f32 %v8892_v43, %v2723_v27  ;;  %v11963_v52 = vmul.f32 %v11472_v15, %v2453_v40  ;;  %v3122_v44 = vmul.f32 %v8894_v18, %v3064_v4  ;;  %v16149_v40 = vld [vmem:[#allocation81_spill] sm:$0xff]  ;;  %v16150_v4 = vld [vmem:[#allocation80_spill] sm:$0xff] }
 0x577   : > { %16145 = vst [vmem:[#allocation78_spill] sm:$0xff] %v11929_v34  ;;  %v3124_v17 = vmul.f32 %v8896_v2, %v3070_v63  ;;  %v11965_v32 = vadd.f32 %v3249_v42, %v3230_v45  ;;  %v3153_v7 = vmul.f32 %v8888_v53, %v3137_v35  ;;  %v3139_v19 = vsub.f32 2.0, %v3123_v51 }
 0x578   : > { %v3152_v50 = vmul.f32 %v8886_v26, %v3136_v11  ;;  %v2783_v6 = vsub.f32 2.0, %v2767_v16  ;;  %v3231_v28 = vadd.f32 %v3215_v38, %v11671_v12  ;;  %v3355_v3 = vadd.f32 %v3339_v0, %v11675_v58 }
 0x579   : > { %16147 = vst [vmem:[#allocation79_spill] sm:$0xff] %v11965_v32  ;;  %v3479_v30 = vadd.f32 %v3463_v48, %v11692_v56  ;;  %v11972_v27 = vadd.f32 %v3373_v10, %v3354_v47  ;;  %v3169_v63 = vmul.f32 %v16150_v4, %v3153_v7  ;;  %v3138_v42 = vsub.f32 2.0, %v3122_v44  ;;  %v16156_v44 = vld [vmem:[#allocation45_spill] sm:$0xff] }
 0x57a   : > { %v3168_v46 = vmul.f32 %v16149_v40, %v3152_v50  ;;  %v3140_v45 = vsub.f32 2.0, %v3124_v17  ;;  %v3155_v26 = vmul.f32 %v8890_v14, %v3139_v19  ;;  %v2799_v11 = vmul.f32 %v8892_v43, %v2783_v6  ;;  %v16153_v19 = vld [vmem:[#allocation123_spill] sm:$0xff]  ;;  %v16157_v17 = vld [vmem:[#allocation124_spill] sm:$0xff]  ;;  %v16158_v40 = vld [vmem:[#allocation82_spill] sm:$0xff] }
 0x57b   : > { %16148 = vst [vmem:[#allocation134_spill] sm:$0xff] %v11972_v27  ;;  %v11976_v53 = vadd.f32 %v3497_v55, %v3478_v21  ;;  %v11978_v35 = vadd.f32 %v3621_v29, %v3602_v36  ;;  %v3277_v38 = vmul.f32 %v11899_v57, %v3169_v63  ;;  %v3401_v48 = vmul.f32 %v11910_v24, %v3169_v63  ;;  %v16154_v43 = vld [vmem:[#allocation119_spill] sm:$0xff]  ;;  %v16155_v36 = vld [vmem:[#allocation120_spill] sm:$0xff] }
 0x57c   : > { %v3276_v12 = vmul.f32 %v11899_v57, %v3168_v46  ;;  %v3400_v58 = vmul.f32 %v11910_v24, %v3168_v46  ;;  %v3524_v0 = vmul.f32 %v11913_v37, %v3168_v46  ;;  %v3648_v56 = vmul.f32 %v11929_v34, %v3168_v46  ;;  %v11988_v21 = vpop.xlane.xlu2 %2728  ;;  %v16159_v46 = vld [vmem:[#allocation83_spill] sm:$0xff] }
 0x57d   : > { %16151 = vst [vmem:[#allocation81_spill] sm:$0xff] %v11976_v53  ;;  %v3525_v10 = vmul.f32 %v11913_v37, %v3169_v63  ;;  %v3649_v6 = vmul.f32 %v11929_v34, %v3169_v63  ;;  %v3154_v55 = vmul.f32 %v8894_v18, %v3138_v42  ;;  %8897 = vrcp.f32 %v11959_v31  ;;  %v16160_v18 = vld [vmem:[#allocation49_spill] sm:$0xff] }
 0x57e   : > { %16152 = vst [vmem:[#allocation80_spill] sm:$0xff] %v11978_v35  ;;  %v3292_v29 = vadd.f32 %v3276_v12, %v11528_v62  ;;  %v3416_v14 = vadd.f32 %v3400_v58, %v16153_v19  ;;  %v3293_v47 = vadd.f32 %v3277_v38, %v16154_v43  ;;  %v3417_v51 = vadd.f32 %v3401_v48, %v16155_v36  ;;  %v16161_v42 = vld [vmem:[#allocation121_spill] sm:$0xff]  ;;  %v16162_v58 = vld [vmem:[#allocation122_spill] sm:$0xff]  ;;  %v16163_v43 = vld [vmem:[#allocation84_spill] sm:$0xff] }
 0x57f   : > { %v3156_v16 = vmul.f32 %v8896_v2, %v3140_v45  ;;  %8899 = vrcp.f32 %v11967_v25  ;;  %4511 = vrot.lane.b32.xlu0 %v16156_v44, %s16106_s18  ;;  %v3540_v50 = vadd.f32 %v3524_v0, %v16157_v17  ;;  %v3171_v62 = vmul.f32 %v16158_v40, %v3155_v26  ;;  %v12009_v0 = vpop.xlane.xlu1 %2725 }
 0x580   : > { %v3680_v7 = vadd.f32 %v3416_v14, %v3292_v29  ;;  %v2815_v4 = vmul.f32 %v16159_v46, %v2799_v11  ;;  %v3664_v63 = vadd.f32 %v3648_v56, %v16160_v18  ;;  %v3541_v12 = vadd.f32 %v3525_v10, %v16161_v42 }
 0x581   : > { %v3665_v38 = vadd.f32 %v3649_v6, %v16162_v58  ;;  %v3681_v48 = vadd.f32 %v3417_v51, %v3293_v47  ;;  %v3403_v45 = vmul.f32 %v11910_v24, %v3171_v62  ;;  %v3527_v19 = vmul.f32 %v11913_v37, %v3171_v62 }
 0x582   : > { %v3696_v2 = vadd.f32 %v3680_v7, %v3540_v50  ;;  %v12007_v36 = vmul.f32 %v16163_v43, %v3154_v55  ;;  %v3651_v11 = vmul.f32 %v11929_v34, %v3171_v62  ;;  %v3250_v56 = vmul.f32 %v11441_v39, %v2815_v4  ;;  %3093 = vadd.xlane.f32.xlu2 %v11933_v20 }
 0x583   : > { %v3697_v26 = vadd.f32 %v3681_v48, %v3541_v12  ;;  %v3374_v10 = vmul.f32 %v11444_v22, %v2815_v4  ;;  %v8898_v17 = vpop.eup %8897  ;;  %v12015_v7 = vadd.f32 %v3403_v45, %v11663_v1  ;;  %v12018_v40 = vadd.f32 %v3527_v19, %v11665_v33  ;;  %v16170_v33 = vld [vmem:[#allocation85_spill] sm:$0xff]  ;;  %3096 = vadd.xlane.f32.xlu1 %v11938_v5 }
 0x584   : > { %v3712_v6 = vadd.f32 %v3696_v2, %v3664_v63  ;;  %v3498_v55 = vmul.f32 %v11450_v8, %v2815_v4  ;;  %v12022_v42 = vadd.f32 %v3651_v11, %v11667_v9  ;;  %v12024_v58 = vadd.f32 %v3250_v56, %v3231_v28  ;;  %v12028_v43 = vpop.xlane.xlu2 %2369 }
 0x585   : > { %16164 = vst [vmem:[#allocation123_spill] sm:$0xff] %v12015_v7  ;;  %v8900_v46 = vpop.eup %8899  ;;  %v3713_v18 = vadd.f32 %v3697_v26, %v3665_v38  ;;  %v12026_v48 = vadd.f32 %v3374_v10, %v3355_v3  ;;  %v3603_v1 = vadd.f32 %v11963_v52, %v11703_v13  ;;  %v12035_v19 = vmul.f32 %v16170_v33, %v3156_v16  ;;  %v16172_v3 = vld [vmem:[#allocation42_spill] sm:$0xff] }
 0x586   : > { %16165 = vst [vmem:[#allocation119_spill] sm:$0xff] %v12018_v40  ;;  %v3728_v2 = vmul.f32 0.25, %v3712_v6  ;;  %v12032_v45 = vadd.f32 %v3498_v55, %v3479_v30  ;;  %v3622_v26 = vmul.f32 %v11458_v54, %v2815_v4  ;;  %v3402_v9 = vmul.f32 %v11910_v24, %v12007_v36  ;;  %v16174_v55 = vld [vmem:[#allocation96_spill] sm:$0xff] }
 0x587   : > { %16166 = vst [vmem:[#allocation120_spill] sm:$0xff] %v12022_v42  ;;  %v3729_v35 = vmul.f32 0.25, %v3713_v18  ;;  %v2407_v28 = vmul.f32 %v8898_v17, %v11959_v31  ;;  %4729 = vrot.lane.b32.xlu0 %v16172_v3, %s9532_s26  ;;  %8901 = vrcp.f32 %v12009_v0 }
 0x588   : > { %16167 = vst [vmem:[#allocation124_spill] sm:$0xff] %v12024_v58  ;;  %v12044_v13 = vsub.f32 %v3292_v29, %v3728_v2  ;;  %v12046_v52 = vsub.f32 %v3416_v14, %v3728_v2  ;;  %v12048_v30 = vsub.f32 %v3540_v50, %v3728_v2  ;;  %v12050_v16 = vsub.f32 %v3664_v63, %v3728_v2 }
 0x589   : > { %16168 = vst [vmem:[#allocation82_spill] sm:$0xff] %v12026_v48  ;;  %v12053_v4 = vsub.f32 %v3293_v47, %v3729_v35  ;;  %v12055_v11 = vsub.f32 %v3417_v51, %v3729_v35  ;;  %v12057_v31 = vsub.f32 %v3541_v12, %v3729_v35  ;;  %v12059_v56 = vsub.f32 %v3665_v38, %v3729_v35  ;;  %v2373_v38 = vpop.xlane.xlu1 %2372 }
 0x58a   : > { %16169 = vst [vmem:[#allocation83_spill] sm:$0xff] %v12032_v45  ;;  %v3808_v5 = vmul.f32 %v12044_v13, %v12044_v13  ;;  %v3824_v29 = vmul.f32 %v12046_v52, %v12046_v52  ;;  %v3279_v14 = vmul.f32 %v11899_v57, %v3171_v62  ;;  %v2406_v50 = vmul.f32 %v8900_v46, %v11967_v25  ;;  %v16198_v45 = vld [vmem:[#allocation65_spill] sm:$0xff] }
 0x58b   : > { %16171 = vst [vmem:[#allocation49_spill] sm:$0xff] %v12035_v19  ;;  %v3856_v20 = vmul.f32 %v12048_v30, %v12048_v30  ;;  %v3809_v47 = vmul.f32 %v12053_v4, %v12053_v4  ;;  %v3825_v35 = vmul.f32 %v12055_v11, %v12055_v11  ;;  %v3278_v51 = vmul.f32 %v11899_v57, %v12007_v36  ;;  %v16200_v57 = vld [vmem:[#allocation104_spill] sm:$0xff] }
 0x58c   : > { %v3840_v63 = vadd.f32 %v3824_v29, %v3808_v5  ;;  %v3888_v12 = vmul.f32 %v12050_v16, %v12050_v16  ;;  %v3857_v62 = vmul.f32 %v12057_v31, %v12057_v31  ;;  %v12079_v25 = vadd.f32 %v3622_v26, %v3603_v1  ;;  %v12088_v33 = vpop.xlane.xlu2 %2731  ;;  %3099 = vadd.xlane.f32.xlu1 %v11949_v49  ;;  %v16184_v49 = vld [vmem:[#allocation97_spill] sm:$0xff] }
 0x58d   : > { %v3841_v10 = vadd.f32 %v3825_v35, %v3809_v47  ;;  %v3889_v6 = vmul.f32 %v12059_v56, %v12059_v56  ;;  %v12084_v18 = vadd.f32 %v3402_v9, %v16174_v55  ;;  %v3404_v2 = vmul.f32 %v11910_v24, %v12035_v19  ;;  %v16176_v35 = vld [vmem:[#allocation113_spill] sm:$0xff] }
 0x58e   : > { %16173 = vst [vmem:[#allocation121_spill] sm:$0xff] %v12079_v25  ;;  %v3872_v5 = vadd.f32 %v3856_v20, %v3840_v63  ;;  %v3528_v29 = vmul.f32 %v11913_v37, %v12035_v19  ;;  %v3652_v1 = vmul.f32 %v11929_v34, %v12035_v19  ;;  %v2423_v26 = vsub.f32 2.0, %v2407_v28  ;;  %v16178_v20 = vld [vmem:[#allocation71_spill] sm:$0xff]  ;;  %v16194_v19 = vld [vmem:[#allocation126_spill] sm:$0xff] }
 0x58f   : > { %16175 = vst [vmem:[#allocation122_spill] sm:$0xff] %v12084_v18  ;;  %v3873_v47 = vadd.f32 %v3857_v62, %v3841_v10  ;;  %v12095_v42 = vadd.f32 %v3404_v2, %v16176_v35  ;;  %v2422_v53 = vsub.f32 2.0, %v2406_v50  ;;  %4943 = vrot.lane.b32.xlu0 %v16172_v3, %s16112_s25  ;;  %8903 = vrcp.f32 %v11988_v21  ;;  %v16181_v50 = vld [vmem:[#allocation64_spill] sm:$0xff] }
 0x590   : > { %v3904_v9 = vadd.f32 %v3888_v12, %v3872_v5  ;;  %v12102_v63 = vadd.f32 %v3528_v29, %v16178_v20  ;;  %v12105_v55 = vadd.f32 %v3652_v1, %v11892_v59  ;;  %v2439_v28 = vmul.f32 %v8898_v17, %v2423_v26  ;;  %v16186_v29 = vld [vmem:[#allocation86_spill] sm:$0xff] }
 0x591   : > { %16177 = vst [vmem:[#allocation84_spill] sm:$0xff] %v12095_v42  ;;  %v3905_v62 = vadd.f32 %v3889_v6, %v3873_v47  ;;  %v2438_v10 = vmul.f32 %v8900_v46, %v2422_v53  ;;  %v12109_v2 = vadd.f32 %v3278_v51, %v16181_v50  ;;  %v16183_v42 = vld [vmem:[#allocation87_spill] sm:$0xff]  ;;  %8905 = vrcp.f32 %v2373_v38  ;;  %v8902_v51 = vpop.eup %8901 }
 0x592   : > { %16179 = vst [vmem:[#allocation85_spill] sm:$0xff] %v12102_v63  ;;  %v3920_v35 = vmul.f32 0.25, %v3904_v9  ;;  %v2455_v3 = vmul.f32 %v16183_v42, %v2439_v28  ;;  %v12113_v12 = vadd.f32 %v3279_v14, %v16184_v49  ;;  %8907 = vrcp.f32 %v12028_v43  ;;  %v16188_v14 = vld [vmem:[#allocation130_spill] sm:$0xff]  ;;  %v2735_v49 = vpop.xlane.xlu1 %2734 }
 0x593   : > { %16180 = vst [vmem:[#allocation42_spill] sm:$0xff] %v12105_v55  ;;  %v3921_v5 = vmul.f32 0.25, %v3905_v62  ;;  %v2454_v20 = vmul.f32 %v16186_v29, %v2438_v10  ;;  %v12119_v59 = vadd.f32 %v12084_v18, %v12109_v2  ;;  %v2064_v6 = vsub.f32 2.0, %v16188_v14  ;;  %v16189_v28 = vld [vmem:[#allocation54_spill] sm:$0xff]  ;;  %v16190_v10 = vld [vmem:[#allocation67_spill] sm:$0xff]  ;;  %v16192_v14 = vld [vmem:[#allocation92_spill] sm:$0xff] }
 0x594   : > { %16182 = vst [vmem:[#allocation96_spill] sm:$0xff] %v12109_v2  ;;  %v12121_v53 = vadd.f32 1e-05, %v3920_v35  ;;  %v3217_v17 = vmul.f32 %v11461_v41, %v2455_v3  ;;  %v3341_v46 = vmul.f32 %v11466_v60, %v2455_v3  ;;  %v3465_v42 = vmul.f32 %v11469_v61, %v2455_v3  ;;  %v12131_v9 = vpop.xlane.xlu2 %3072  ;;  %v16197_v2 = vld [vmem:[#allocation61_spill] sm:$0xff] }
 0x595   : > { %16185 = vst [vmem:[#allocation113_spill] sm:$0xff] %v12113_v12  ;;  %v12127_v1 = vadd.f32 1e-05, %v3921_v5  ;;  %v3589_v26 = vmul.f32 %v11472_v15, %v2455_v3  ;;  %v3216_v47 = vmul.f32 %v11461_v41, %v2454_v20  ;;  %v3340_v35 = vmul.f32 %v11466_v60, %v2454_v20  ;;  %v8904_v29 = vpop.eup %8903  ;;  %v16191_v5 = vld [vmem:[#allocation51_spill] sm:$0xff]  ;;  %v16193_v3 = vld [vmem:[#allocation68_spill] sm:$0xff] }
 0x596   : > { %16187 = vst [vmem:[#allocation71_spill] sm:$0xff] %v12119_v59  ;;  %8909 = vrsqrt.f32 %v12121_v53  ;;  %v12135_v62 = vadd.f32 %v3217_v17, %v16189_v28  ;;  %v12138_v50 = vadd.f32 %v3341_v46, %v16190_v10  ;;  %v12143_v55 = vmul.f32 %v16192_v14, %v16191_v5  ;;  %v16195_v46 = vld [vmem:[#allocation93_spill] sm:$0xff] }
 0x597   : > { %8911 = vrsqrt.f32 %v12127_v1  ;;  %v12147_v63 = vadd.f32 %v3465_v42, %v16193_v3  ;;  %v12150_v18 = vadd.f32 %v3589_v26, %v16194_v19  ;;  %4939 = vrot.lane.b32.xlu0 %v16156_v44, %s16112_s25  ;;  %v8906_v17 = vpop.eup %8905  ;;  %v12156_v28 = vmul.f32 %v16195_v46, %v16191_v5  ;;  %v16196_v10 = vld [vmem:[#allocation129_spill] sm:$0xff]  ;;  %v16199_v5 = vld [vmem:[#allocation103_spill] sm:$0xff] }
 0x598   : > { %v12160_v27 = vmul.f32 %v16197_v2, %v16196_v10  ;;  %v3464_v32 = vmul.f32 %v11469_v61, %v2454_v20  ;;  %v3588_v42 = vmul.f32 %v11472_v15, %v2454_v20  ;;  %v8908_v3 = vpop.eup %8907  ;;  %v2768_v19 = vmul.f32 %v8902_v51, %v12009_v0  ;;  %v16201_v10 = vld [vmem:[#allocation105_spill] sm:$0xff] }
 0x599   : > { %v2769_v26 = vmul.f32 %v8904_v29, %v11988_v21  ;;  %v2409_v25 = vmul.f32 %v8906_v17, %v2373_v38  ;;  %8913 = vrcp.f32 %v2735_v49  ;;  %v12167_v48 = vmul.f32 %v16198_v45, %v2064_v6  ;;  %v16202_v0 = vld [vmem:[#allocation53_spill] sm:$0xff] }
 0x59a   : > { %v3232_v58 = vadd.f32 %v3216_v47, %v16199_v5  ;;  %v3356_v40 = vadd.f32 %v3340_v35, %v16200_v57  ;;  %v2408_v2 = vmul.f32 %v8908_v3, %v12028_v43  ;;  %v3480_v59 = vadd.f32 %v3464_v32, %v16201_v10 }
 0x59b   : > { %v2784_v23 = vsub.f32 2.0, %v2768_v19  ;;  %v2785_v20 = vsub.f32 2.0, %v2769_v26  ;;  %v2425_v24 = vsub.f32 2.0, %v2409_v25  ;;  %v3604_v34 = vadd.f32 %v3588_v42, %v16202_v0  ;;  %v16204_v26 = vld [vmem:[#allocation88_spill] sm:$0xff] }
 0x59c   : > { %v8910_v44 = vpop.eup %8909  ;;  %v2424_v21 = vsub.f32 2.0, %v2408_v2  ;;  %8915 = vrcp.f32 %v12088_v33  ;;  %v12177_v45 = vadd.f32 %v12015_v7, %v12113_v12  ;;  %vm3958_vm3 = vweird.f32 %v12121_v53  ;;  %v12181_v6 = vpop.xlane.xlu2 %3075  ;;  %v16205_v2 = vld [vmem:[#allocation89_spill] sm:$0xff] }
 0x59d   : > { %v8912_v38 = vpop.eup %8911  ;;  %v3953_v57 = vmul.f32 %v8910_v44, %v12121_v53  ;;  %vm3959_vm4 = vweird.f32 %v8910_v44  ;;  %v2800_v32 = vmul.f32 %v8902_v51, %v2784_v23  ;;  %v2801_v43 = vmul.f32 %v8904_v29, %v2785_v20  ;;  %v16206_v51 = vld [vmem:[#allocation94_spill] sm:$0xff]  ;;  %v16207_v20 = vld [vmem:[#allocation95_spill] sm:$0xff] }
 0x59e   : > { %16203 = vst [vmem:[#allocation64_spill] sm:$0xff] %v12177_v45  ;;  %v3963_v25 = vmul.f32 %v8912_v38, %v12127_v1  ;;  %vm3968_vm5 = vweird.f32 %v12127_v1  ;;  %vm3969_vm6 = vweird.f32 %v8912_v38  ;;  %v2441_v47 = vmul.f32 %v8906_v17, %v2425_v24  ;;  %v16208_v24 = vld [vmem:[#allocation41_spill] sm:$0xff]  ;;  %vm3960_vm7 = vmor %vm3958_vm3, %vm3959_vm4 }
 0x59f   : > { %v2440_v35 = vmul.f32 %v8908_v3, %v2424_v21  ;;  %v12185_v42 = vpop.eup %8913  ;;  %v3954_v19 = vmul.f32 %v8910_v44, %v3953_v57  ;;  %v2816_v5 = vmul.f32 %v16204_v26, %v2800_v32  ;;  %v2817_v10 = vmul.f32 %v16205_v2, %v2801_v43  ;;  %4868 = vrot.lane.b32.xlu2 %v16208_v24, %s16112_s25  ;;  %v12200_v32 = vpop.xlane.xlu0 %2737  ;;  %vm3970_vm8 = vmor %vm3968_vm5, %vm3969_vm6 }
 0x5a0   : > { %8917 = vrcp.f32 %v12131_v9  ;;  %v3964_v23 = vmul.f32 %v8912_v38, %v3963_v25  ;;  %v2457_v29 = vmul.f32 %v16206_v51, %v2441_v47  ;;  %v12193_v7 = vmul.f32 %v12185_v42, %v2735_v49  ;;  %16209 = vst [vmem:[#allocation87_spill] sm:$0xff] %v12200_v32  ;;  %v12207_v26 = vpop.xlane.xlu1 %3078 }
 0x5a1   : > { %v2456_v0 = vmul.f32 %v16207_v20, %v2440_v35  ;;  %v3955_v17 = vmul.f32 0.5, %v3954_v19  ;;  %v3251_v3 = vmul.f32 %v11441_v39, %v2816_v5  ;;  %v3375_v21 = vmul.f32 %v11444_v22, %v2816_v5 }
 0x5a2   : > { %v3499_v57 = vmul.f32 %v11450_v8, %v2816_v5  ;;  %v12202_v43 = vpop.eup %8915  ;;  %v3965_v25 = vmul.f32 0.5, %v3964_v23  ;;  %v3623_v47 = vmul.f32 %v11458_v54, %v2816_v5  ;;  %v3252_v49 = vmul.f32 %v11441_v39, %v2817_v10 }
 0x5a3   : > { %v3376_v35 = vmul.f32 %v11444_v22, %v2817_v10  ;;  %v3956_v19 = vsub.f32 1.5, %v3955_v17  ;;  %v12209_v2 = vadd.f32 %v3251_v3, %v3232_v58  ;;  %v12211_v51 = vadd.f32 %v3375_v21, %v3356_v40 }
 0x5a4   : > { %v12213_v20 = vadd.f32 %v3499_v57, %v3480_v59  ;;  %v3966_v24 = vsub.f32 1.5, %v3965_v25  ;;  %v12215_v12 = vadd.f32 %v3623_v47, %v3604_v34  ;;  %v12218_v23 = vadd.f32 %v3252_v49, %v12135_v62  ;;  %v12234_v3 = vpop.xlane.xlu2 %2375  ;;  %v16214_v57 = vld [vmem:[#allocation127_spill] sm:$0xff] }
 0x5a5   : > { %v12221_v5 = vadd.f32 %v3376_v35, %v12138_v50  ;;  %v3957_v32 = vmul.f32 %v8910_v44, %v3956_v19  ;;  %v3500_v17 = vmul.f32 %v11450_v8, %v2817_v10  ;;  %v3624_v58 = vmul.f32 %v11458_v54, %v2817_v10  ;;  %v16223_v19 = vld [vmem:[#allocation91_spill] sm:$0xff] }
 0x5a6   : > { %16210 = vst [vmem:[#allocation97_spill] sm:$0xff] %v12218_v23  ;;  %v12223_v45 = vpop.eup %8917  ;;  %v3219_v40 = vmul.f32 %v11461_v41, %v2457_v29  ;;  %v3967_v34 = vmul.f32 %v8912_v38, %v3966_v24  ;;  %v3343_v59 = vmul.f32 %v11466_v60, %v2457_v29  ;;  %v3467_v62 = vmul.f32 %v11469_v61, %v2457_v29 }
 0x5a7   : > { %16211 = vst [vmem:[#allocation86_spill] sm:$0xff] %v12221_v5  ;;  %v3591_v50 = vmul.f32 %v11472_v15, %v2457_v29  ;;  %v3961_v21 = vsel %vm3960_vm7, %v8910_v44, %v3957_v32  ;;  %v12240_v10 = vadd.f32 %v3500_v17, %v12147_v63  ;;  %v12243_v53 = vadd.f32 %v3624_v58, %v12150_v18  ;;  %v16217_v32 = vld [vmem:[#allocation43_spill] sm:$0xff]  ;;  %v16224_v17 = vld [vmem:[#allocation90_spill] sm:$0xff] }
 0x5a8   : > { %v12246_v25 = vadd.f32 %v3219_v40, %v16214_v57  ;;  %v12249_v47 = vmul.f32 %v3961_v21, %v12046_v52  ;;  %v12252_v29 = vmul.f32 %v3961_v21, %v12048_v30  ;;  %v12255_v44 = vmul.f32 %v3961_v21, %v12050_v16  ;;  %4731 = vrot.lane.b32.xlu2 %v16217_v32, %s9532_s26  ;;  %v16220_v52 = vld [vmem:[#allocation128_spill] sm:$0xff]  ;;  %v12269_v30 = vpop.xlane.xlu0 %3084  ;;  %v16221_v16 = vld [vmem:[#allocation39_spill] sm:$0xff] }
 0x5a9   : > { %16212 = vst [vmem:[#allocation130_spill] sm:$0xff] %v12240_v10  ;;  %v3971_v1 = vsel %vm3970_vm8, %v8912_v38, %v3967_v34  ;;  %v3359_v35 = vadd.f32 %v3343_v59, %v16220_v52  ;;  %4866 = vrot.lane.b32.xlu1 %v16221_v16, %s16112_s25  ;;  %v16222_v38 = vld [vmem:[#allocation102_spill] sm:$0xff]  ;;  %v12282_v58 = vmul.f32 %v16224_v17, %v12160_v27  ;;  %v16225_v34 = vld [vmem:[#allocation63_spill] sm:$0xff]  ;;  %8919 = vrcp.f32 %v12181_v6 }
 0x5aa   : > { %16213 = vst [vmem:[#allocation54_spill] sm:$0xff] %v12243_v53  ;;  %v12260_v63 = vmul.f32 %v3971_v1, %v12055_v11  ;;  %v12263_v18 = vmul.f32 %v3971_v1, %v12057_v31  ;;  %v12266_v49 = vmul.f32 %v3971_v1, %v12059_v56  ;;  %v3323_v24 = vmul.f32 %v16223_v19, %v16222_v38 }
 0x5ab   : > { %16215 = vst [vmem:[#allocation67_spill] sm:$0xff] %v12252_v29  ;;  %v3447_v11 = vmul.f32 %v16192_v14, %v16222_v38  ;;  %v3571_v31 = vmul.f32 %v16195_v46, %v16222_v38  ;;  %v3483_v56 = vadd.f32 %v3467_v62, %v12143_v55  ;;  %v12286_v40 = vmul.f32 %v16223_v19, %v12160_v27  ;;  %v12295_v62 = vpop.xlane.xlu1 %2378 }
 0x5ac   : > { %16216 = vst [vmem:[#allocation51_spill] sm:$0xff] %v12255_v44  ;;  %v2096_v59 = vmul.f32 %v16225_v34, %v12167_v48  ;;  %v3607_v57 = vadd.f32 %v3591_v50, %v12156_v28  ;;  %v3218_v52 = vmul.f32 %v11461_v41, %v2456_v0  ;;  %v3342_v16 = vmul.f32 %v11466_v60, %v2456_v0  ;;  %v16226_v34 = vld [vmem:[#allocation56_spill] sm:$0xff] }
 0x5ad   : > { %16218 = vst [vmem:[#allocation92_spill] sm:$0xff] %v12263_v18  ;;  %v3466_v38 = vmul.f32 %v11469_v61, %v2456_v0  ;;  %v3590_v55 = vmul.f32 %v11472_v15, %v2456_v0  ;;  %v12303_v48 = vmul.f32 %v16195_v46, %v12160_v27  ;;  %v2787_v28 = vsub.f32 2.0, %v12193_v7 }
 0x5ae   : > { %16219 = vst [vmem:[#allocation68_spill] sm:$0xff] %v12266_v49  ;;  %v12299_v49 = vmul.f32 %v16192_v14, %v12160_v27  ;;  %v2770_v50 = vmul.f32 %v12202_v43, %v12088_v33  ;;  %v3234_v18 = vadd.f32 %v3218_v52, %v16226_v34  ;;  %v3358_v0 = vadd.f32 %v3342_v16, %v3323_v24  ;;  %v16227_v24 = vld [vmem:[#allocation44_spill] sm:$0xff]  ;;  %v16229_v16 = vld [vmem:[#allocation58_spill] sm:$0xff] }
 0x5af   : > { %v3482_v44 = vadd.f32 %v3466_v38, %v3447_v11  ;;  %v3606_v29 = vadd.f32 %v3590_v55, %v3571_v31  ;;  %v12313_v53 = vmul.f32 %v16224_v17, %v2096_v59  ;;  %v12316_v10 = vmul.f32 %v16223_v19, %v2096_v59  ;;  %v12329_v11 = vpop.xlane.xlu2 %2740  ;;  %v16228_v17 = vld [vmem:[#allocation101_spill] sm:$0xff] }
 0x5b0   : > { %v2803_v27 = vmul.f32 %v12185_v42, %v2787_v28  ;;  %v2786_v5 = vsub.f32 2.0, %v2770_v50  ;;  %v12323_v7 = vmul.f32 %v16192_v14, %v2096_v59  ;;  %v3125_v33 = vmul.f32 %v12223_v45, %v12131_v9  ;;  %4727 = vrot.lane.b32.xlu2 %v16227_v24, %s9532_s26  ;;  %v4653_v9 = vpop.permute.xlu0 %4652  ;;  %v16233_v28 = vld [vmem:[#allocation99_spill] sm:$0xff] }
 0x5b1   : > { %v4112_v31 = vmul.f32 %v3961_v21, %v12044_v13  ;;  %v4113_v19 = vmul.f32 %v3971_v1, %v12053_v4  ;;  %v12334_v42 = vmul.f32 %v16195_v46, %v2096_v59  ;;  %4945 = vrot.lane.b32.xlu1 %v16217_v32, %s16112_s25  ;;  %v12343_v38 = vmul.f32 %v11441_v39, %v16229_v16  ;;  %v16231_v13 = vld [vmem:[#allocation69_spill] sm:$0xff]  ;;  %v16232_v59 = vld [vmem:[#allocation78_spill] sm:$0xff] }
 0x5b2   : > { %v2819_v52 = vmul.f32 %v16228_v17, %v2803_v27  ;;  %v2802_v14 = vmul.f32 %v12202_v43, %v2786_v5  ;;  %v3210_v4 = vmul.f32 %v11461_v41, %v16231_v13  ;;  %v3141_v46 = vsub.f32 2.0, %v3125_v33  ;;  %4683 = vmatpush.bf16.msrb.mxu2 %v4653_v9 }
 0x5b3   : > { %16230 = vst [vmem:[#allocation126_spill] sm:$0xff] %v12343_v38  ;;  %8921 = vrcp.f32 %v12295_v62  ;;  %v3526_v32 = vmul.f32 %v11913_v37, %v12007_v36  ;;  %v3650_v55 = vmul.f32 %v16232_v59, %v12007_v36  ;;  %v12374_v16 = vpop.xlane.xlu1 %3081  ;;  %v16273_v38 = vld [vmem:[#allocation132_spill] sm:$0xff] }
 0x5b4   : > { %v3254_v43 = vmul.f32 %v11441_v39, %v2819_v52  ;;  %v3378_v5 = vmul.f32 %v11444_v22, %v2819_v52  ;;  %v3502_v21 = vmul.f32 %v11450_v8, %v2819_v52  ;;  %v3626_v1 = vmul.f32 %v11458_v54, %v2819_v52 }
 0x5b5   : > { %v2818_v50 = vmul.f32 %v16233_v28, %v2802_v14  ;;  %v3157_v34 = vmul.f32 %v12223_v45, %v3141_v46  ;;  %v12384_v46 = vstv %s12309_s17  ;;  %8923 = vrcp.f32 %v12269_v30 }
 0x5b6   : > { %v12359_v27 = vadd.f32 %v3254_v43, %v12246_v25  ;;  %v12361_v33 = vadd.f32 %v3378_v5, %v3359_v35  ;;  %v12363_v17 = vadd.f32 %v3502_v21, %v3483_v56  ;;  %v12365_v52 = vadd.f32 %v3626_v1, %v3607_v57  ;;  %v8920_v25 = vpop.eup %8919  ;;  %v16238_v35 = vld [vmem:[#allocation66_spill] sm:$0xff]  ;;  %v16239_v57 = vld [vmem:[#allocation109_spill] sm:$0xff]  ;;  %16240 = vst [vmem:[#allocation103_spill] sm:$0xff] %v12384_v46 }
 0x5b7   : > { %v3253_v36 = vmul.f32 %v11441_v39, %v2818_v50  ;;  %v3377_v9 = vmul.f32 %v11444_v22, %v2818_v50  ;;  %v3501_v14 = vmul.f32 %v11450_v8, %v2818_v50  ;;  %v3625_v45 = vmul.f32 %v11458_v54, %v2818_v50 }
 0x5b8   : > { %16234 = vst [vmem:[#allocation93_spill] sm:$0xff] %v12359_v27  ;;  %v12378_v56 = vmul.f32 %v11441_v39, %v16238_v35  ;;  %v12381_v13 = vadd.f32 %v3210_v4, %v16239_v57  ;;  %v12387_v43 = vstv %s12320_s27  ;;  %4941 = vrot.lane.b32.xlu2 %v16227_v24, %s16112_s25  ;;  %v16246_v4 = vld [vmem:[#allocation70_spill] sm:$0xff]  ;;  %v3126_v24 = vmul.f32 %v8920_v25, %v12181_v6  ;;  %v16255_v6 = vld [vmem:[#allocation55_spill] sm:$0xff] }
 0x5b9   : > { %16235 = vst [vmem:[#allocation129_spill] sm:$0xff] %v12361_v33  ;;  %v8922_v5 = vpop.eup %8921  ;;  %v12389_v21 = vadd.f32 %v3253_v36, %v3234_v18  ;;  %v12391_v1 = vadd.f32 %v3377_v9, %v3358_v0  ;;  %v12393_v28 = vadd.f32 %v3501_v14, %v3482_v44  ;;  %v12395_v50 = vadd.f32 %v3625_v45, %v3606_v29  ;;  %v16248_v57 = vld [vmem:[#allocation106_spill] sm:$0xff]  ;;  %v16251_v44 = vld [vmem:[#allocation100_spill] sm:$0xff]  ;;  %v16252_v29 = vld [vmem:[#allocation45_spill] sm:$0xff] }
 0x5ba   : > { %16236 = vst [vmem:[#allocation61_spill] sm:$0xff] %v12363_v17  ;;  %v12404_v35 = vmul.f32 %v11461_v41, %v16246_v4  ;;  %v16250_v18 = vld [vmem:[#allocation98_spill] sm:$0xff]  ;;  %v12414_v36 = vadd.f32 %v3650_v55, %v16251_v44  ;;  %4725 = vrot.lane.b32.xlu1 %v16252_v29, %s9532_s26  ;;  %v16253_v9 = vld [vmem:[#allocation111_spill] sm:$0xff]  ;;  %v2411_v45 = vmul.f32 %v8922_v5, %v12295_v62  ;;  %v12424_v4 = vpop.xlane.xlu2 %3090  ;;  %8925 = vrcp.f32 %v12234_v3  ;;  %v16261_v33 = vld [vmem:[#allocation77_spill] sm:$0xff] }
 0x5bb   : > { %16237 = vst [vmem:[#allocation65_spill] sm:$0xff] %v12365_v52  ;;  %v12408_v52 = vmul.f32 %v11461_v41, %v16248_v57  ;;  %v12411_v0 = vadd.f32 %v3526_v32, %v16250_v18  ;;  %v12419_v14 = vmul.f32 %v16253_v9, %v3157_v34  ;;  %v4368_v32 = vmul.f32 %v12384_v46, %v12249_v47 }
 0x5bc   : > { %16241 = vst [vmem:[#allocation104_spill] sm:$0xff] %v12387_v43  ;;  %v4130_v55 = vmul.f32 %v12387_v43, %v4112_v31  ;;  %v4131_v57 = vmul.f32 %v12387_v43, %v4113_v19  ;;  %v4369_v34 = vmul.f32 %v12384_v46, %v12260_v63  ;;  %v3142_v47 = vsub.f32 2.0, %v3126_v24  ;;  %v16257_v19 = vld [vmem:[#allocation116_spill] sm:$0xff]  ;;  %v16259_v63 = vld [vmem:[#allocation117_spill] sm:$0xff]  ;;  %v16263_v46 = vld [vmem:[#allocation87_spill] sm:$0xff] }
 0x5bd   : > { %16242 = vst [vmem:[#allocation105_spill] sm:$0xff] %v12389_v21  ;;  %v3405_v18 = vmul.f32 %v16255_v6, %v12419_v14  ;;  %v3529_v62 = vmul.f32 %v11913_v37, %v12419_v14  ;;  %v3653_v44 = vmul.f32 %v16232_v59, %v12419_v14  ;;  %v2427_v29 = vsub.f32 2.0, %v2411_v45  ;;  %v8924_v21 = vpop.eup %8923 }
 0x5be   : > { %16243 = vst [vmem:[#allocation53_spill] sm:$0xff] %v12391_v1  ;;  %8927 = vrcp.f32 %v12374_v16  ;;  %v12441_v31 = vstv %s12368_s11 }
 0x5bf   : > { %16244 = vst [vmem:[#allocation88_spill] sm:$0xff] %v12393_v28  ;;  %v12444_v9 = vadd.f32 %v3405_v18, %v16257_v19  ;;  %v12447_v17 = vadd.f32 %v3529_v62, %v16259_v63  ;;  %v12450_v27 = vadd.f32 %v3653_v44, %v16261_v33  ;;  %8929 = vrcp.f32 %v12329_v11  ;;  %v16265_v62 = vld [vmem:[#allocation71_spill] sm:$0xff]  ;;  %v16267_v44 = vld [vmem:[#allocation64_spill] sm:$0xff] }
 0x5c0   : > { %16245 = vst [vmem:[#allocation89_spill] sm:$0xff] %v12395_v50  ;;  %v3088_v50 = vpop.xlane.xlu1 %3087  ;;  %v3158_v28 = vmul.f32 %v8920_v25, %v3142_v47  ;;  %v2443_v1 = vmul.f32 %v8922_v5, %v2427_v29  ;;  %v4148_v24 = vadd.f32 %v12441_v31, %v4130_v55  ;;  %v4149_v45 = vadd.f32 %v12441_v31, %v4131_v57  ;;  %v16266_v33 = vld [vmem:[#allocation119_spill] sm:$0xff]  ;;  %v8926_v43 = vpop.eup %8925  ;;  %v16270_v55 = vld [vmem:[#allocation48_spill] sm:$0xff] }
 0x5c1   : > { %16247 = vst [vmem:[#allocation94_spill] sm:$0xff] %v12404_v35  ;;  %8931 = vrcp.f32 %v16263_v46  ;;  %v12457_v18 = vstv %s12398_s14  ;;  %v12461_v19 = vadd.f32 %v16265_v62, %v12411_v0  ;;  %v12465_v63 = vadd.f32 %v16267_v44, %v16266_v33  ;;  %v16268_v25 = vld [vmem:[#allocation115_spill] sm:$0xff] }
 0x5c2   : > { %16249 = vst [vmem:[#allocation95_spill] sm:$0xff] %v12408_v52  ;;  %v12468_v5 = vmul.f32 %v16268_v25, %v3158_v28  ;;  %v2459_v47 = vmul.f32 %v16270_v55, %v2443_v1  ;;  %v3129_v57 = vmul.f32 %v8924_v21, %v12269_v30  ;;  %8933 = vrcp.f32 %v3088_v50  ;;  %v16271_v55 = vld [vmem:[#allocation131_spill] sm:$0xff]  ;;  %v16275_v52 = vld [vmem:[#allocation133_spill] sm:$0xff] }
 0x5c3   : > { %16254 = vst [vmem:[#allocation41_spill] sm:$0xff] %v12419_v14  ;;  %v2410_v29 = vmul.f32 %v8926_v43, %v12234_v3  ;;  %v4386_v62 = vadd.f32 %v12457_v18, %v4368_v32  ;;  %v4387_v30 = vadd.f32 %v12457_v18, %v4369_v34  ;;  %8935 = vrcp.f32 %v12424_v4 }
 0x5c4   : > { %16256 = vst [vmem:[#allocation127_spill] sm:$0xff] %v12441_v31  ;;  %v4164_v31 = vpack.c.bf16 %v4148_v24, %v4148_v24  ;;  %v3406_v44 = vmul.f32 %v16255_v6, %v12468_v5  ;;  %v3530_v28 = vmul.f32 %v11913_v37, %v12468_v5  ;;  %v3654_v1 = vmul.f32 %v16232_v59, %v12468_v5 }
 0x5c5   : > { %16258 = vst [vmem:[#allocation43_spill] sm:$0xff] %v12444_v9  ;;  %v8928_v9 = vpop.eup %8927  ;;  %v3221_v3 = vmul.f32 %v11461_v41, %v2459_v47  ;;  %v3345_v24 = vmul.f32 %v11466_v60, %v2459_v47  ;;  %v3469_v32 = vmul.f32 %v11469_v61, %v2459_v47  ;;  %v3145_v34 = vsub.f32 2.0, %v3129_v57 }
 0x5c6   : > { %16260 = vst [vmem:[#allocation128_spill] sm:$0xff] %v12447_v17  ;;  %v4871_v17 = vpop.permute.xlu2 %4870  ;;  %v8930_v25 = vpop.eup %8929  ;;  %v12486_v14 = vadd.f32 %v3406_v44, %v16271_v55  ;;  %v12489_v46 = vadd.f32 %v3530_v28, %v16273_v38  ;;  %v3128_v38 = vmul.f32 %v8928_v9, %v12374_v16  ;;  %v4188_v28 = vunpack.c.l.b16 %v4164_v31 }
 0x5c7   : > { %16262 = vst [vmem:[#allocation39_spill] sm:$0xff] %v12450_v27  ;;  %v4165_v27 = vpack.c.bf16 %v4149_v45, %v4149_v45  ;;  %4895 = vmatpush.bf16.msra.mxu0 %v4871_v17  ;;  %v3593_v45 = vmul.f32 %v11472_v15, %v2459_v47  ;;  %v12494_v17 = vpop.eup %8931  ;;  %v3361_v35 = vadd.f32 %v3345_v24, %v12286_v40  ;;  %8937 = vrcp.f32 %v12207_v26 }
 0x5c8   : > { %16264 = vst [vmem:[#allocation102_spill] sm:$0xff] %v12457_v18  ;;  %v3237_v18 = vadd.f32 %v3221_v3, %v12282_v58  ;;  %v3485_v23 = vadd.f32 %v3469_v32, %v12299_v49  ;;  %v8934_v44 = vpop.eup %8933  ;;  %v3161_v55 = vmul.f32 %v8924_v21, %v3145_v34  ;;  %v3144_v40 = vsub.f32 2.0, %v3128_v38  ;;  %v16282_v34 = vld [vmem:[#allocation82_spill] sm:$0xff]  ;;  %v16284_v38 = vld [vmem:[#allocation121_spill] sm:$0xff] }
 0x5c9   : > { %16269 = vst [vmem:[#allocation91_spill] sm:$0xff] %v12468_v5  ;;  %v12492_v5 = vadd.f32 %v3654_v1, %v16275_v52  ;;  %v12500_v47 = vadd.f32 %v3593_v45, %v12303_v48  ;;  %v2773_v52 = vmul.f32 %v8930_v25, %v12329_v11  ;;  %v4189_v57 = vunpack.c.l.b16 %v4165_v27  ;;  %v16280_v27 = vld [vmem:[#allocation118_spill] sm:$0xff] }
 0x5ca   : > { %16272 = vst [vmem:[#allocation90_spill] sm:$0xff] %v12486_v14  ;;  %v2426_v14 = vsub.f32 2.0, %v2410_v29  ;;  %v4402_v1 = vpack.c.bf16 %v4386_v62, %v4386_v62  ;;  %v3130_v45 = vmul.f32 %v8934_v44, %v3088_v50  ;;  %v3160_v62 = vmul.f32 %v8928_v9, %v3144_v40  ;;  %v16283_v50 = vld [vmem:[#allocation83_spill] sm:$0xff] }
 0x5cb   : > { %16274 = vst [vmem:[#allocation63_spill] sm:$0xff] %v12489_v46  ;;  %v16278_v46 = vld [vmem:[#allocation57_spill] sm:$0xff]  ;;  %v2789_v24 = vsub.f32 2.0, %v2773_v52  ;;  %v4196_v49 = vpack.c.b16 %v4189_v57, %v4188_v28  ;;  %v16286_v40 = vld [vmem:[#allocation59_spill] sm:$0xff] }
 0x5cc   : > { %16276 = vst [vmem:[#allocation56_spill] sm:$0xff] %v12492_v5  ;;  %v4403_v5 = vpack.c.bf16 %v4387_v30, %v4387_v30  ;;  %v3177_v58 = vmul.f32 %v16278_v46, %v3161_v55  ;;  %v2442_v3 = vmul.f32 %v8926_v43, %v2426_v14  ;;  %v4426_v32 = vunpack.c.l.b16 %v4402_v1  ;;  %v16281_v43 = vld [vmem:[#allocation124_spill] sm:$0xff] }
 0x5cd   : > { %16277 = vst [vmem:[#allocation44_spill] sm:$0xff] %v12494_v17  ;;  %v16279_v17 = vld [vmem:[#allocation114_spill] sm:$0xff]  ;;  %v2805_v30 = vmul.f32 %v8930_v25, %v2789_v24  ;;  %8071 = vmatmul.msk.bf16.vlgmr.msra.gmra.mxu2 %vm1873_vm2, %v4196_v49  ;;  %v3146_v49 = vsub.f32 2.0, %v3130_v45 }
 0x5ce   : > { %v4427_v48 = vunpack.c.l.b16 %v4403_v5  ;;  %v3285_v21 = vmul.f32 %v16279_v17, %v3177_v58  ;;  %v3409_v29 = vmul.f32 %v16255_v6, %v3177_v58  ;;  %v3533_v16 = vmul.f32 %v11913_v37, %v3177_v58 }
 0x5cf   : > { %v3657_v11 = vmul.f32 %v16232_v59, %v3177_v58  ;;  %v2458_v31 = vmul.f32 %v16280_v27, %v2442_v3  ;;  %v16285_v58 = vld [vmem:[#allocation60_spill] sm:$0xff]  ;;  %v2821_v24 = vmul.f32 %v16286_v40, %v2805_v30 }
 0x5d0   : > { %v4434_v46 = vpack.c.b16 %v4427_v48, %v4426_v32  ;;  %v3301_v14 = vadd.f32 %v3285_v21, %v16281_v43  ;;  %v3425_v5 = vadd.f32 %v3409_v29, %v16282_v34  ;;  %v3549_v55 = vadd.f32 %v3533_v16, %v16283_v50 }
 0x5d1   : > { %v3673_v52 = vadd.f32 %v3657_v11, %v16284_v38  ;;  %v3220_v28 = vmul.f32 %v11461_v41, %v2458_v31  ;;  %v3344_v57 = vmul.f32 %v11466_v60, %v2458_v31  ;;  %v3468_v1 = vmul.f32 %v11469_v61, %v2458_v31  ;;  %v16291_v11 = vld [vmem:[#allocation79_spill] sm:$0xff] }
 0x5d2   : > { %v3592_v9 = vmul.f32 %v11472_v15, %v2458_v31  ;;  %8079 = vmatmul.msk.bf16.vlgmr.msrb.gmra.mxu0 %vm1873_vm2, %v4434_v46  ;;  %v3689_v25 = vadd.f32 %v3425_v5, %v3301_v14  ;;  %v3176_v3 = vmul.f32 %v16285_v58, %v3160_v62  ;;  %v3504_v16 = vmul.f32 %v11450_v8, %v2821_v24  ;;  %v16293_v62 = vld [vmem:[#allocation81_spill] sm:$0xff]  ;;  %v16294_v46 = vld [vmem:[#allocation80_spill] sm:$0xff] }
 0x5d3   : > { %v12523_v32 = vadd.f32 %v3220_v28, %v12313_v53  ;;  %v12526_v48 = vadd.f32 %v3344_v57, %v12316_v10  ;;  %v12529_v60 = vadd.f32 %v3468_v1, %v12323_v7  ;;  %v3256_v53 = vmul.f32 %v11441_v39, %v2821_v24  ;;  %v16295_v58 = vld [vmem:[#allocation120_spill] sm:$0xff] }
 0x5d4   : > { %v12532_v61 = vadd.f32 %v3592_v9, %v12334_v42  ;;  %v3705_v15 = vadd.f32 %v3689_v25, %v3549_v55  ;;  %v3284_v41 = vmul.f32 %v16279_v17, %v3176_v3  ;;  %v3408_v21 = vmul.f32 %v16255_v6, %v3176_v3  ;;  %v16292_v42 = vld [vmem:[#allocation134_spill] sm:$0xff] }
 0x5d5   : > { %16287 = vst [vmem:[#allocation101_spill] sm:$0xff] %v12523_v32  ;;  %v3532_v29 = vmul.f32 %v11913_v37, %v3176_v3  ;;  %v3656_v45 = vmul.f32 %v16232_v59, %v3176_v3  ;;  %v3380_v10 = vmul.f32 %v11444_v22, %v2821_v24  ;;  %v12545_v34 = vadd.f32 %v3256_v53, %v3237_v18 }
 0x5d6   : > { %16288 = vst [vmem:[#allocation58_spill] sm:$0xff] %v12526_v48  ;;  %v3721_v7 = vadd.f32 %v3705_v15, %v3673_v52  ;;  %v3300_v27 = vadd.f32 %v3284_v41, %v16291_v11  ;;  %v3424_v31 = vadd.f32 %v3408_v21, %v16292_v42  ;;  %v12549_v38 = vadd.f32 %v3504_v16, %v3485_v23 }
 0x5d7   : > { %16289 = vst [vmem:[#allocation69_spill] sm:$0xff] %v12529_v60  ;;  %v3548_v30 = vadd.f32 %v3532_v29, %v16293_v62  ;;  %v3672_v43 = vadd.f32 %v3656_v45, %v16294_v46  ;;  %v12547_v50 = vadd.f32 %v3380_v10, %v3361_v35  ;;  %v3628_v1 = vmul.f32 %v11458_v54, %v2821_v24  ;;  %v16297_v45 = vld [vmem:[#allocation96_spill] sm:$0xff]  ;;  %v8936_v10 = vpop.eup %8935 }
 0x5d8   : > { %16290 = vst [vmem:[#allocation78_spill] sm:$0xff] %v12532_v61  ;;  %v3737_v28 = vmul.f32 0.25, %v3721_v7  ;;  %v3688_v57 = vadd.f32 %v3424_v31, %v3300_v27  ;;  %v3162_v9 = vmul.f32 %v8934_v44, %v3146_v49  ;;  %v3714_v25 = vadd.f32 %v12461_v19, %v12414_v36  ;;  %v16296_v19 = vld [vmem:[#allocation62_spill] sm:$0xff]  ;;  %v16319_v61 = vld [vmem:[#allocation95_spill] sm:$0xff] }
 0x5d9   : > { %v3715_v3 = vadd.f32 %v12465_v63, %v16295_v58  ;;  %v12559_v18 = vadd.f32 %v12378_v56, %v12381_v13  ;;  %v12570_v49 = vadd.f32 %v3628_v1, %v12500_v47 }
 0x5da   : > { %v12561_v35 = vsub.f32 %v3301_v14, %v3737_v28  ;;  %v12563_v23 = vsub.f32 %v3425_v5, %v3737_v28  ;;  %v12565_v40 = vsub.f32 %v3549_v55, %v3737_v28  ;;  %v12567_v24 = vsub.f32 %v3673_v52, %v3737_v28 }
 0x5db   : > { %v3704_v44 = vadd.f32 %v3688_v57, %v3548_v30  ;;  %v3178_v15 = vmul.f32 %v16296_v19, %v3162_v9  ;;  %v3730_v41 = vmul.f32 0.25, %v3714_v25  ;;  %v3731_v29 = vmul.f32 0.25, %v3715_v3  ;;  %v16299_v57 = vld [vmem:[#allocation113_spill] sm:$0xff] }
 0x5dc   : > { %v3817_v56 = vmul.f32 %v12561_v35, %v12561_v35  ;;  %v3833_v13 = vmul.f32 %v12563_v23, %v12563_v23  ;;  %v3865_v63 = vmul.f32 %v12565_v40, %v12565_v40  ;;  %v3897_v21 = vmul.f32 %v12567_v24, %v12567_v24 }
 0x5dd   : > { %v3720_v14 = vadd.f32 %v3704_v44, %v3672_v43  ;;  %v3286_v5 = vmul.f32 %v16279_v17, %v3178_v15  ;;  %v3410_v47 = vmul.f32 %v16255_v6, %v3178_v15  ;;  %v3534_v55 = vmul.f32 %v11913_v37, %v3178_v15  ;;  %v12606_v44 = vpop.eup %8937 }
 0x5de   : > { %v3849_v52 = vadd.f32 %v3833_v13, %v3817_v56  ;;  %v12586_v53 = vsub.f32 %v16297_v45, %v3730_v41  ;;  %v3658_v42 = vmul.f32 %v16232_v59, %v3178_v15  ;;  %v3131_v28 = vmul.f32 %v8936_v10, %v12424_v4 }
 0x5df   : > { %v3736_v16 = vmul.f32 0.25, %v3720_v14  ;;  %v12589_v7 = vadd.f32 %v3286_v5, %v12209_v2  ;;  %v3426_v11 = vadd.f32 %v3410_v47, %v12211_v51  ;;  %v3550_v46 = vadd.f32 %v3534_v55, %v12213_v20  ;;  %v16300_v20 = vld [vmem:[#allocation122_spill] sm:$0xff]  ;;  %v16301_v14 = vld [vmem:[#allocation123_spill] sm:$0xff] }
 0x5e0   : > { %v3881_v62 = vadd.f32 %v3865_v63, %v3849_v52  ;;  %v12596_v1 = vsub.f32 %v16299_v57, %v3731_v29  ;;  %v3147_v15 = vsub.f32 2.0, %v3131_v28  ;;  %v12610_v56 = vsub.f32 %v16300_v20, %v3730_v41 }
 0x5e1   : > { %16298 = vst [vmem:[#allocation99_spill] sm:$0xff] %v12589_v7  ;;  %v12598_v9 = vsub.f32 %v3300_v27, %v3736_v16  ;;  %v12600_v25 = vsub.f32 %v3424_v31, %v3736_v16  ;;  %v12602_v3 = vsub.f32 %v3548_v30, %v3736_v16  ;;  %v12604_v2 = vsub.f32 %v3672_v43, %v3736_v16 }
 0x5e2   : > { %v3913_v51 = vadd.f32 %v3897_v21, %v3881_v62  ;;  %v3690_v19 = vadd.f32 %v3426_v11, %v12589_v7  ;;  %v3674_v30 = vadd.f32 %v3658_v42, %v12215_v12  ;;  %v3163_v63 = vmul.f32 %v8936_v10, %v3147_v15  ;;  %v16304_v12 = vld [vmem:[#allocation50_spill] sm:$0xff]  ;;  %v16318_v7 = vld [vmem:[#allocation125_spill] sm:$0xff] }
 0x5e3   : > { %v3816_v4 = vmul.f32 %v12598_v9, %v12598_v9  ;;  %v3832_v27 = vmul.f32 %v12600_v25, %v12600_v25  ;;  %v3864_v31 = vmul.f32 %v12602_v3, %v12602_v3  ;;  %v12620_v5 = vsub.f32 %v16301_v14, %v3731_v29  ;;  %v16313_v14 = vld [vmem:[#allocation130_spill] sm:$0xff] }
 0x5e4   : > { %v3929_v43 = vmul.f32 0.25, %v3913_v51  ;;  %v3706_v13 = vadd.f32 %v3690_v19, %v3550_v46  ;;  %v12623_v55 = vsub.f32 %v12411_v0, %v3730_v41  ;;  %v12626_v52 = vsub.f32 %v16266_v33, %v3731_v29 }
 0x5e5   : > { %v3848_v47 = vadd.f32 %v3832_v27, %v3816_v4  ;;  %v12629_v21 = vsub.f32 %v12414_v36, %v3730_v41  ;;  %v3179_v42 = vmul.f32 %v16304_v12, %v3163_v63  ;;  %v12635_v10 = vsub.f32 %v16295_v58, %v3731_v29  ;;  %v16310_v27 = vld [vmem:[#allocation97_spill] sm:$0xff] }
 0x5e6   : > { %16302 = vst [vmem:[#allocation66_spill] sm:$0xff] %v12623_v55  ;;  %v12631_v45 = vadd.f32 1e-05, %v3929_v43  ;;  %v3722_v16 = vadd.f32 %v3706_v13, %v3674_v30  ;;  %v3896_v28 = vmul.f32 %v12604_v2, %v12604_v2  ;;  %v3810_v0 = vmul.f32 %v12586_v53, %v12586_v53  ;;  %v16312_v13 = vld [vmem:[#allocation86_spill] sm:$0xff] }
 0x5e7   : > { %16303 = vst [vmem:[#allocation109_spill] sm:$0xff] %v12629_v21  ;;  %v3880_v62 = vadd.f32 %v3864_v31, %v3848_v47  ;;  %v3811_v33 = vmul.f32 %v12596_v1, %v12596_v1  ;;  %v3287_v41 = vmul.f32 %v16279_v17, %v3179_v42  ;;  %v3826_v58 = vmul.f32 %v12610_v56, %v12610_v56 }
 0x5e8   : > { %16305 = vst [vmem:[#allocation70_spill] sm:$0xff] %v12635_v10  ;;  %8939 = vrsqrt.f32 %v12631_v45  ;;  %v12644_v36 = vmul.f32 0.25, %v3722_v16  ;;  %v3411_v57 = vmul.f32 %v16255_v6, %v3179_v42  ;;  %v3535_v51 = vmul.f32 %v11913_v37, %v3179_v42  ;;  %v16314_v16 = vld [vmem:[#allocation54_spill] sm:$0xff] }
 0x5e9   : > { %v3912_v29 = vadd.f32 %v3896_v28, %v3880_v62  ;;  %v3659_v19 = vmul.f32 %v16232_v59, %v3179_v42  ;;  %v12662_v31 = vadd.f32 %v3287_v41, %v16310_v27  ;;  %v16315_v42 = vld [vmem:[#allocation52_spill] sm:$0xff]  ;;  %v16316_v62 = vld [vmem:[#allocation94_spill] sm:$0xff]  ;;  %v3827_v41 = vmul.f32 %v12620_v5, %v12620_v5 }
 0x5ea   : > { %16306 = vst [vmem:[#allocation106_spill] sm:$0xff] %v12644_v36  ;;  %v12653_v15 = vsub.f32 %v3426_v11, %v12644_v36  ;;  %v12656_v20 = vsub.f32 %v3550_v46, %v12644_v36  ;;  %v12659_v4 = vsub.f32 %v3674_v30, %v12644_v36  ;;  %v3427_v63 = vadd.f32 %v3411_v57, %v16312_v13  ;;  %v16317_v28 = vld [vmem:[#allocation110_spill] sm:$0xff]  ;;  %v16321_v27 = vld [vmem:[#allocation44_spill] sm:$0xff] }
 0x5eb   : > { %16311 = vst [vmem:[#allocation111_spill] sm:$0xff] %v12662_v31  ;;  %v3928_v43 = vmul.f32 0.25, %v3912_v29  ;;  %v3551_v47 = vadd.f32 %v3535_v51, %v16313_v14  ;;  %v3675_v12 = vadd.f32 %v3659_v19, %v16314_v16  ;;  %v3227_v11 = vadd.f32 %v16316_v62, %v16315_v42  ;;  %v16320_v29 = vld [vmem:[#allocation87_spill] sm:$0xff] }
 0x5ec   : > { %16307 = vst [vmem:[#allocation98_spill] sm:$0xff] %v12653_v15  ;;  %v3247_v46 = vmul.f32 %v11441_v39, %v16317_v28  ;;  %v3228_v30 = vadd.f32 %v16319_v61, %v16318_v7  ;;  %v2772_v57 = vmul.f32 %v16321_v27, %v16320_v29  ;;  %v3691_v51 = vadd.f32 %v3427_v63, %v12662_v31  ;;  %v16322_v28 = vld [vmem:[#allocation126_spill] sm:$0xff] }
 0x5ed   : > { %16308 = vst [vmem:[#allocation100_spill] sm:$0xff] %v12656_v20  ;;  %v12677_v13 = vadd.f32 1e-05, %v3928_v43  ;;  %v3842_v19 = vadd.f32 %v3826_v58, %v3810_v0  ;;  %v3127_v16 = vmul.f32 %v12606_v44, %v12207_v26  ;;  %v3843_v42 = vadd.f32 %v3827_v41, %v3811_v33 }
 0x5ee   : > { %16309 = vst [vmem:[#allocation45_spill] sm:$0xff] %v12659_v4  ;;  %v8940_v14 = vpop.eup %8939  ;;  %v3858_v61 = vmul.f32 %v12623_v55, %v12623_v55  ;;  %v3859_v7 = vmul.f32 %v12626_v52, %v12626_v52  ;;  %v3890_v43 = vmul.f32 %v12629_v21, %v12629_v21  ;;  %v3891_v0 = vmul.f32 %v12635_v10, %v12635_v10  ;;  %v16323_v21 = vld [vmem:[#allocation49_spill] sm:$0xff] }
 0x5ef   : > { %v4043_v62 = vmul.f32 %v8940_v14, %v12631_v45  ;;  %8941 = vrsqrt.f32 %v12677_v13  ;;  %v3707_v26 = vadd.f32 %v3691_v51, %v3551_v47  ;;  %v3262_v41 = vadd.f32 %v16322_v28, %v3227_v11 }
 0x5f0   : > { %v3874_v33 = vadd.f32 %v3858_v61, %v3842_v19  ;;  %v3875_v58 = vadd.f32 %v3859_v7, %v3843_v42  ;;  %v2788_v29 = vsub.f32 2.0, %v2772_v57  ;;  %v12699_v36 = vadd.f32 %v3247_v46, %v3228_v30  ;;  %v16325_v57 = vld [vmem:[#allocation41_spill] sm:$0xff] }
 0x5f1   : > { %v4044_v31 = vmul.f32 %v8940_v14, %v4043_v62  ;;  %v3723_v60 = vadd.f32 %v3707_v26, %v3675_v12  ;;  %v3280_v55 = vmul.f32 %v16279_v17, %v16323_v21  ;;  %v3143_v4 = vsub.f32 2.0, %v3127_v16 }
 0x5f2   : > { %v3906_v48 = vadd.f32 %v3890_v43, %v3874_v33  ;;  %v3907_v32 = vadd.f32 %v3891_v0, %v3875_v58  ;;  %v2804_v42 = vmul.f32 %v16321_v27, %v2788_v29  ;;  %v3281_v46 = vmul.f32 %v16279_v17, %v16325_v57  ;;  %v16333_v33 = vld [vmem:[#allocation67_spill] sm:$0xff]  ;;  %v16336_v29 = vld [vmem:[#allocation84_spill] sm:$0xff] }
 0x5f3   : > { %v4045_v10 = vmul.f32 0.5, %v4044_v31  ;;  %v12703_v20 = vmul.f32 0.25, %v3723_v60  ;;  %vm4049_vm9 = vweird.f32 %v8940_v14  ;;  %vm4048_vm10 = vweird.f32 %v12631_v45  ;;  %v16334_v58 = vld [vmem:[#allocation51_spill] sm:$0xff]  ;;  %v16338_v57 = vld [vmem:[#allocation92_spill] sm:$0xff] }
 0x5f4   : > { %v3922_v51 = vmul.f32 0.25, %v3906_v48  ;;  %v3923_v19 = vmul.f32 0.25, %v3907_v32  ;;  %v3159_v45 = vmul.f32 %v12606_v44, %v3143_v4  ;;  %vm4050_vm11 = vmor %vm4048_vm10, %vm4049_vm9  ;;  %v12729_v7 = vstv %s12697_s28 }
 0x5f5   : > { %16324 = vst [vmem:[#allocation55_spill] sm:$0xff] %v12703_v20  ;;  %v8942_v11 = vpop.eup %8941  ;;  %v4046_v30 = vsub.f32 1.5, %v4045_v10  ;;  %v12711_v31 = vsub.f32 %v3427_v63, %v12703_v20  ;;  %v12714_v60 = vsub.f32 %v3551_v47, %v12703_v20  ;;  %v12717_v48 = vsub.f32 %v3675_v12, %v12703_v20  ;;  %v16330_v47 = vld [vmem:[#allocation46_spill] sm:$0xff] }
 0x5f6   : > { %v4033_v21 = vmul.f32 %v8942_v11, %v12677_v13  ;;  %v12719_v27 = vadd.f32 1e-05, %v3922_v51  ;;  %v12721_v16 = vadd.f32 1e-05, %v3923_v19  ;;  %v12724_v10 = vstv %s12693_s9  ;;  %16329 = vst [vmem:[#allocation71_spill] sm:$0xff] %v12729_v7  ;;  %v16337_v19 = vld [vmem:[#allocation43_spill] sm:$0xff] }
 0x5f7   : > { %16326 = vst [vmem:[#allocation116_spill] sm:$0xff] %v12711_v31  ;;  %v4047_v32 = vmul.f32 %v8940_v14, %v4046_v30  ;;  %v3296_v63 = vadd.f32 %v3280_v55, %v12559_v18  ;;  %v2820_v62 = vmul.f32 %v16330_v47, %v2804_v42  ;;  %v4514_v18 = vpop.permute.xlu1 %4513  ;;  %v3103_v55 = vpop.xlane.xlu0 %3102  ;;  %vm4039_vm12 = vweird.f32 %v8942_v11  ;;  %v16340_v47 = vld [vmem:[#allocation85_spill] sm:$0xff] }
 0x5f8   : > { %16327 = vst [vmem:[#allocation117_spill] sm:$0xff] %v12714_v60  ;;  %v4034_v61 = vmul.f32 %v8942_v11, %v4033_v21  ;;  %8943 = vrsqrt.f32 %v12719_v27  ;;  %4541 = vmatpush.bf16.msrb.mxu1 %v4514_v18  ;;  %vm4038_vm13 = vweird.f32 %v12677_v13  ;;  %v16341_v18 = vld [vmem:[#allocation128_spill] sm:$0xff]  ;;  %vm3978_vm15 = vweird.f32 %v12719_v27 }
 0x5f9   : > { %16328 = vst [vmem:[#allocation77_spill] sm:$0xff] %v12717_v48  ;;  %v4051_v43 = vsel %vm4050_vm11, %v8940_v14, %v4047_v32  ;;  %8945 = vrsqrt.f32 %v12721_v16  ;;  %v3297_v14 = vadd.f32 %v3281_v46, %v3262_v41  ;;  %v3684_v51 = vadd.f32 %v16336_v29, %v3296_v63  ;;  %v16339_v46 = vld [vmem:[#allocation68_spill] sm:$0xff]  ;;  %vm4040_vm14 = vmor %vm4038_vm13, %vm4039_vm12 }
 0x5fa   : > { %v12734_v12 = vmul.f32 %v4051_v43, %v12561_v35  ;;  %v12737_v0 = vmul.f32 %v4051_v43, %v12563_v23  ;;  %v12740_v26 = vmul.f32 %v4051_v43, %v12565_v40  ;;  %v12743_v44 = vmul.f32 %v4051_v43, %v12567_v24  ;;  %v16335_v40 = vld [vmem:[#allocation47_spill] sm:$0xff] }
 0x5fb   : > { %v4035_v4 = vmul.f32 0.5, %v4034_v61  ;;  %v12748_v35 = vmul.f32 %v12724_v10, %v16333_v33  ;;  %v12752_v23 = vmul.f32 %v12729_v7, %v16334_v58  ;;  %v12755_v28 = vmul.f32 %v16335_v40, %v3159_v45 }
 0x5fc   : > { %16331 = vst [vmem:[#allocation119_spill] sm:$0xff] %v12740_v26  ;;  %8947 = vrcp.f32 %v3103_v55  ;;  %v3685_v42 = vadd.f32 %v16337_v19, %v3297_v14  ;;  %v12761_v41 = vmul.f32 %v12724_v10, %v16338_v57  ;;  %v12765_v30 = vmul.f32 %v12729_v7, %v16339_v46 }
 0x5fd   : > { %16332 = vst [vmem:[#allocation64_spill] sm:$0xff] %v12743_v44  ;;  %v4036_v24 = vsub.f32 1.5, %v4035_v4  ;;  %v12768_v21 = vmul.f32 %v11441_v39, %v2820_v62  ;;  %v12771_v32 = vmul.f32 %v11444_v22, %v2820_v62  ;;  %v3700_v43 = vadd.f32 %v3684_v51, %v16340_v47  ;;  %v16343_v51 = vld [vmem:[#allocation42_spill] sm:$0xff] }
 0x5fe   : > { %v8944_v45 = vpop.eup %8943  ;;  %v3701_v4 = vadd.f32 %v3685_v42, %v16341_v18  ;;  %v12777_v33 = vmul.f32 %v11450_v8, %v2820_v62  ;;  %v12780_v58 = vmul.f32 %v11458_v54, %v2820_v62  ;;  %v12784_v39 = vmul.f32 %v16279_v17, %v12755_v28  ;;  %v16344_v42 = vld [vmem:[#allocation39_spill] sm:$0xff] }
 0x5ff   : > { %v4037_v61 = vmul.f32 %v8942_v11, %v4036_v24  ;;  %v3973_v22 = vmul.f32 %v8944_v45, %v12719_v27  ;;  %v8946_v40 = vpop.eup %8945  ;;  %v12790_v13 = vmul.f32 %v16255_v6, %v12755_v28  ;;  %v3716_v8 = vadd.f32 %v3700_v43, %v16343_v51 }
 0x600   : > { %16342 = vst [vmem:[#allocation115_spill] sm:$0xff] %v12780_v58  ;;  %v3717_v57 = vadd.f32 %v3701_v4, %v16344_v42  ;;  %v3983_v43 = vmul.f32 %v8946_v40, %v12721_v16  ;;  %vm3979_vm0 = vweird.f32 %v8944_v45  ;;  %vm3988_vm3 = vweird.f32 %v12721_v16 }
 0x601   : > { %v4041_v24 = vsel %vm4040_vm14, %v8942_v11, %v4037_v61  ;;  %v12808_v11 = vmul.f32 %v11913_v37, %v12755_v28  ;;  %v3974_v61 = vmul.f32 %v8944_v45, %v3973_v22  ;;  %v3732_v4 = vmul.f32 0.25, %v3716_v8  ;;  %vm3980_vm5 = vmor %vm3978_vm15, %vm3979_vm0 }
 0x602   : > { %v12795_v54 = vmul.f32 %v4041_v24, %v12598_v9  ;;  %v12798_v62 = vmul.f32 %v4041_v24, %v12600_v25  ;;  %v12801_v46 = vmul.f32 %v4041_v24, %v12602_v3  ;;  %v12804_v44 = vmul.f32 %v4041_v24, %v12604_v2  ;;  %v8948_v26 = vpop.eup %8947 }
 0x603   : > { %vm3989_vm4 = vweird.f32 %v8946_v40  ;;  %v3975_v9 = vmul.f32 0.5, %v3974_v61  ;;  %v3984_v25 = vmul.f32 %v8946_v40, %v3983_v43  ;;  %v3135_v3 = vmul.f32 %v8948_v26, %v3103_v55 }
 0x604   : > { %16345 = vst [vmem:[#allocation48_spill] sm:$0xff] %v12801_v46  ;;  %v3733_v2 = vmul.f32 0.25, %v3717_v57  ;;  %v12813_v24 = vsub.f32 %v3296_v63, %v3732_v4  ;;  %v12819_v22 = vsub.f32 %v16340_v47, %v3732_v4  ;;  %v12822_v8 = vsub.f32 %v16343_v51, %v3732_v4  ;;  %vm3990_vm6 = vmor %vm3988_vm3, %vm3989_vm4 }
 0x605   : > { %16346 = vst [vmem:[#allocation131_spill] sm:$0xff] %v12804_v44  ;;  %v12816_v44 = vsub.f32 %v16336_v29, %v3732_v4  ;;  %v3976_v46 = vsub.f32 1.5, %v3975_v9  ;;  %v3985_v7 = vmul.f32 0.5, %v3984_v25  ;;  %v3151_v20 = vsub.f32 2.0, %v3135_v3 }
 0x606   : > { %16347 = vst [vmem:[#allocation132_spill] sm:$0xff] %v12822_v8  ;;  %v12824_v58 = vsub.f32 %v3297_v14, %v3733_v2  ;;  %v12827_v61 = vsub.f32 %v16337_v19, %v3733_v2  ;;  %v12830_v63 = vsub.f32 %v16341_v18, %v3733_v2  ;;  %v12833_v55 = vsub.f32 %v16344_v42, %v3733_v2  ;;  %v16349_v42 = vld [vmem:[#allocation40_spill] sm:$0xff] }
 0x607   : > { %v3812_v29 = vmul.f32 %v12813_v24, %v12813_v24  ;;  %v3977_v47 = vmul.f32 %v8944_v45, %v3976_v46  ;;  %v3986_v51 = vsub.f32 1.5, %v3985_v7  ;;  %v3167_v57 = vmul.f32 %v8948_v26, %v3151_v20 }
 0x608   : > { %16348 = vst [vmem:[#allocation133_spill] sm:$0xff] %v12830_v63  ;;  %v3813_v43 = vmul.f32 %v12824_v58, %v12824_v58  ;;  %v3828_v14 = vmul.f32 %v12816_v44, %v12816_v44  ;;  %v3829_v19 = vmul.f32 %v12827_v61, %v12827_v61  ;;  %v3860_v18 = vmul.f32 %v12819_v22, %v12819_v22 }
 0x609   : > { %v3861_v7 = vmul.f32 %v12830_v63, %v12830_v63  ;;  %v12850_v20 = vsel %vm3980_vm5, %v8944_v45, %v3977_v47  ;;  %v3987_v26 = vmul.f32 %v8946_v40, %v3986_v51  ;;  %v3183_v46 = vmul.f32 %v16349_v42, %v3167_v57  ;;  %v16350_v57 = vld [vmem:[#allocation104_spill] sm:$0xff]  ;;  %v16354_v63 = vld [vmem:[#allocation102_spill] sm:$0xff] }
 0x60a   : > { %v3892_v27 = vmul.f32 %v12822_v8, %v12822_v8  ;;  %v4114_v4 = vmul.f32 %v12850_v20, %v12586_v53  ;;  %v4352_v9 = vmul.f32 %v12850_v20, %v12610_v56  ;;  %v3844_v25 = vadd.f32 %v3828_v14, %v3812_v29  ;;  %v16351_v8 = vld [vmem:[#allocation103_spill] sm:$0xff] }
 0x60b   : > { %v3845_v3 = vadd.f32 %v3829_v19, %v3813_v43  ;;  %v12862_v45 = vsel %vm3990_vm6, %v8946_v40, %v3987_v26  ;;  %v3291_v2 = vmul.f32 %v16279_v17, %v3183_v46  ;;  %v3415_v47 = vmul.f32 %v16255_v6, %v3183_v46  ;;  %v16353_v26 = vld [vmem:[#allocation127_spill] sm:$0xff] }
 0x60c   : > { %v3539_v51 = vmul.f32 %v11913_v37, %v3183_v46  ;;  %v4115_v16 = vmul.f32 %v12862_v45, %v12596_v1  ;;  %v4132_v42 = vmul.f32 %v16350_v57, %v4114_v4  ;;  %v4353_v53 = vmul.f32 %v12862_v45, %v12620_v5 }
 0x60d   : > { %v4370_v56 = vmul.f32 %v16351_v8, %v4352_v9  ;;  %v12874_v29 = vadd.f32 %v3291_v2, %v12545_v34  ;;  %v3431_v40 = vadd.f32 %v3415_v47, %v12547_v50  ;;  %v3663_v14 = vmul.f32 %v16232_v59, %v3183_v46 }
 0x60e   : > { %v3555_v43 = vadd.f32 %v3539_v51, %v12549_v38  ;;  %v4133_v19 = vmul.f32 %v16350_v57, %v4115_v16  ;;  %v4150_v1 = vadd.f32 %v16353_v26, %v4132_v42  ;;  %v4371_v4 = vmul.f32 %v16351_v8, %v4353_v53 }
 0x60f   : > { %16352 = vst [vmem:[#allocation57_spill] sm:$0xff] %v12874_v29  ;;  %v4388_v37 = vadd.f32 %v16354_v63, %v4370_v56  ;;  %v3679_v5 = vadd.f32 %v3663_v14, %v12570_v49  ;;  %v3695_v34 = vadd.f32 %v3431_v40, %v12874_v29  ;;  %v3876_v9 = vadd.f32 %v3860_v18, %v3844_v25 }
 0x610   : > { %v3877_v2 = vadd.f32 %v3861_v7, %v3845_v3  ;;  %v4151_v50 = vadd.f32 %v16353_v26, %v4133_v19  ;;  %v4166_v38 = vpack.c.bf16 %v4150_v1, %v4150_v1  ;;  %v4389_v46 = vadd.f32 %v16354_v63, %v4371_v4  ;;  %v16355_v7 = vld [vmem:[#allocation73_spill] sm:$0xff] }
 0x611   : > { %v4404_v47 = vpack.c.bf16 %v4388_v37, %v4388_v37  ;;  %v3655_v51 = vmul.f32 %v16232_v59, %v12755_v28  ;;  %v3711_v16 = vadd.f32 %v3695_v34, %v3555_v43  ;;  %v3893_v42 = vmul.f32 %v12833_v55, %v12833_v55  ;;  %v16356_v28 = vld [vmem:[#allocation74_spill] sm:$0xff] }
 0x612   : > { %v3908_v49 = vadd.f32 %v3892_v27, %v3876_v9  ;;  %v4167_v53 = vpack.c.bf16 %v4151_v50, %v4151_v50  ;;  %v4190_v56 = vunpack.c.l.b16 %v4166_v38  ;;  %v4405_v14 = vpack.c.bf16 %v4389_v46, %v4389_v46  ;;  %v16357_v27 = vld [vmem:[#allocation91_spill] sm:$0xff] }
 0x613   : > { %v4428_v18 = vunpack.c.l.b16 %v4404_v47  ;;  %v12896_v25 = vadd.f32 %v12790_v13, %v16355_v7  ;;  %v3727_v3 = vadd.f32 %v3711_v16, %v3679_v5  ;;  %v3909_v37 = vadd.f32 %v3893_v42, %v3877_v2  ;;  %v16358_v50 = vld [vmem:[#allocation75_spill] sm:$0xff]  ;;  %v16363_v7 = vld [vmem:[#allocation100_spill] sm:$0xff] }
 0x614   : > { %v3924_v19 = vmul.f32 0.25, %v3908_v49  ;;  %v12903_v1 = vadd.f32 %v12808_v11, %v16356_v28  ;;  %v3282_v4 = vmul.f32 %v16279_v17, %v16357_v27  ;;  %v4191_v34 = vunpack.c.l.b16 %v4167_v53 }
 0x615   : > { %v4429_v9 = vunpack.c.l.b16 %v4405_v14  ;;  %v12908_v38 = vadd.f32 %v3655_v51, %v16358_v50  ;;  %v12910_v46 = vmul.f32 0.25, %v3727_v3  ;;  %v3925_v13 = vmul.f32 0.25, %v3909_v37 }
 0x616   : > { %v12912_v47 = vadd.f32 1e-05, %v3924_v19  ;;  %v12916_v2 = vmul.f32 %v12653_v15, %v12653_v15  ;;  %v4197_v16 = vpack.c.b16 %v4191_v34, %v4190_v56  ;;  %v4567_v42 = vmul.f32 %v12862_v45, %v12626_v52  ;;  %v16366_v19 = vld [vmem:[#allocation90_spill] sm:$0xff] }
 0x617   : > { %16359 = vst [vmem:[#allocation114_spill] sm:$0xff] %v12910_v46  ;;  %v4435_v11 = vpack.c.b16 %v4429_v9, %v4428_v18  ;;  %v12921_v49 = vsub.f32 %v3431_v40, %v12910_v46  ;;  %v12924_v51 = vsub.f32 %v3555_v43, %v12910_v46  ;;  %v12927_v53 = vsub.f32 %v3679_v5, %v12910_v46  ;;  %v16364_v40 = vld [vmem:[#allocation72_spill] sm:$0xff]  ;;  %v16365_v5 = vld [vmem:[#allocation45_spill] sm:$0xff] }
 0x618   : > { %v12929_v14 = vadd.f32 1e-05, %v3925_v13  ;;  %v12933_v3 = vmul.f32 %v16363_v7, %v16363_v7  ;;  %8072 = vmatmul.msk.bf16.gmra.mxu2 %vm1873_vm2, %v4197_v16  ;;  %8949 = vrsqrt.f32 %v12912_v47  ;;  %v3298_v52 = vadd.f32 %v3282_v4, %v12699_v36  ;;  %v16367_v16 = vld [vmem:[#allocation63_spill] sm:$0xff]  ;;  %v16368_v46 = vld [vmem:[#allocation56_spill] sm:$0xff] }
 0x619   : > { %16360 = vst [vmem:[#allocation118_spill] sm:$0xff] %v12921_v49  ;;  %8080 = vmatmul.msk.bf16.gmra.mxu0 %vm1873_vm2, %v4435_v11  ;;  %v3299_v43 = vadd.f32 %v12784_v39, %v16364_v40  ;;  %v12943_v56 = vmul.f32 %v16365_v5, %v16365_v5  ;;  %v12947_v18 = vmul.f32 %v12711_v31, %v12711_v31  ;;  %v12961_v27 = vstv %s12892_s3 }
 0x61a   : > { %16361 = vst [vmem:[#allocation124_spill] sm:$0xff] %v12924_v51  ;;  %v12951_v37 = vmul.f32 %v12714_v60, %v12714_v60  ;;  %8951 = vrsqrt.f32 %v12929_v14  ;;  %v12956_v36 = vmul.f32 %v12717_v48, %v12717_v48  ;;  %v3686_v39 = vadd.f32 %v16366_v19, %v3298_v52 }
 0x61b   : > { %16362 = vst [vmem:[#allocation82_spill] sm:$0xff] %v12927_v53  ;;  %v3687_v28 = vadd.f32 %v12896_v25, %v3299_v43  ;;  %v12965_v4 = vmul.f32 %v16350_v57, %v12734_v12  ;;  %v4600_v34 = vadd.f32 %v12961_v27, %v12748_v35  ;;  %v4601_v9 = vadd.f32 %v12961_v27, %v12761_v41 }
 0x61c   : > { %v12972_v50 = vstv %s12899_s20  ;;  %v12976_v13 = vmul.f32 %v16351_v8, %v12737_v0  ;;  %v3702_v11 = vadd.f32 %v3686_v39, %v16367_v16  ;;  %v4585_v53 = vmul.f32 %v12724_v10, %v4567_v42  ;;  %v16369_v39 = vld [vmem:[#allocation66_spill] sm:$0xff] }
 0x61d   : > { %v3703_v40 = vadd.f32 %v3687_v28, %v12903_v1  ;;  %v12983_v12 = vmul.f32 %v16350_v57, %v12795_v54  ;;  %v12987_v35 = vmul.f32 %v16351_v8, %v12798_v62  ;;  %v4616_v41 = vpack.c.bf16 %v4600_v34, %v4600_v34 }
 0x61e   : > { %v4617_v51 = vpack.c.bf16 %v4601_v9, %v4601_v9  ;;  %v8950_v29 = vpop.eup %8949  ;;  %v3718_v0 = vadd.f32 %v3702_v11, %v16368_v46  ;;  %v4566_v28 = vmul.f32 %v12850_v20, %v16369_v39  ;;  %v4814_v42 = vadd.f32 %v12972_v50, %v12752_v23 }
 0x61f   : > { %v3719_v49 = vadd.f32 %v3703_v40, %v12908_v38  ;;  %v3993_v54 = vmul.f32 %v8950_v29, %v12912_v47  ;;  %vm3998_vm7 = vweird.f32 %v12912_v47  ;;  %v12997_v62 = vunpack.c.l.b16 %v4616_v41 }
 0x620   : > { %v8952_v48 = vpop.eup %8951  ;;  %v12999_v34 = vunpack.c.l.b16 %v4617_v51  ;;  %v13003_v9 = vadd.f32 %v12972_v50, %v12765_v30  ;;  %vm4008_vm8 = vweird.f32 %v12929_v14  ;;  %v3734_v40 = vmul.f32 0.25, %v3718_v0 }
 0x621   : > { %v4003_v11 = vmul.f32 %v8952_v48, %v12929_v14  ;;  %v3735_v39 = vmul.f32 0.25, %v3719_v49  ;;  %v13008_v23 = vadd.f32 %v12961_v27, %v4585_v53  ;;  %v3994_v5 = vmul.f32 %v8950_v29, %v3993_v54 }
 0x622   : > { %vm3999_vm9 = vweird.f32 %v8950_v29  ;;  %v4584_v51 = vmul.f32 %v12724_v10, %v4566_v28  ;;  %v13013_v7 = vsub.f32 %v3298_v52, %v3734_v40  ;;  %v13018_v31 = vsub.f32 %v16366_v19, %v3734_v40 }
 0x623   : > { %v4004_v60 = vmul.f32 %v8952_v48, %v4003_v11  ;;  %v13015_v30 = vsub.f32 %v3299_v43, %v3735_v39  ;;  %v3995_v0 = vmul.f32 0.5, %v3994_v5  ;;  %v13021_v49 = vsub.f32 %v12896_v25, %v3735_v39  ;;  %vm4000_vm11 = vmor %vm3998_vm7, %vm3999_vm9 }
 0x624   : > { %v13024_v53 = vsub.f32 %v16367_v16, %v3734_v40  ;;  %v13027_v54 = vsub.f32 %v12903_v1, %v3735_v39  ;;  %v13030_v28 = vsub.f32 %v16368_v46, %v3734_v40  ;;  %v13033_v52 = vsub.f32 %v12908_v38, %v3735_v39 }
 0x625   : > { %v4005_v41 = vmul.f32 0.5, %v4004_v60  ;;  %v3814_v43 = vmul.f32 %v13013_v7, %v13013_v7  ;;  %v3996_v5 = vsub.f32 1.5, %v3995_v0  ;;  %v3815_v25 = vmul.f32 %v13015_v30, %v13015_v30 }
 0x626   : > { %16370 = vst [vmem:[#allocation83_spill] sm:$0xff] %v13024_v53  ;;  %v3830_v19 = vmul.f32 %v13018_v31, %v13018_v31  ;;  %v3831_v1 = vmul.f32 %v13021_v49, %v13021_v49  ;;  %vm4009_vm10 = vweird.f32 %v8952_v48  ;;  %v3862_v46 = vmul.f32 %v13024_v53, %v13024_v53  ;;  %v16377_v53 = vld [vmem:[#allocation106_spill] sm:$0xff] }
 0x627   : > { %v4006_v60 = vsub.f32 1.5, %v4005_v41  ;;  %v4830_v38 = vpack.c.bf16 %v4814_v42, %v4814_v42  ;;  %v3997_v16 = vmul.f32 %v8950_v29, %v3996_v5  ;;  %v3863_v39 = vmul.f32 %v13027_v54, %v13027_v54  ;;  %vm4010_vm12 = vmor %vm4008_vm8, %vm4009_vm10 }
 0x628   : > { %v3846_v11 = vadd.f32 %v3830_v19, %v3814_v43  ;;  %v3847_v40 = vadd.f32 %v3831_v1, %v3815_v25  ;;  %v3894_v15 = vmul.f32 %v13030_v28, %v13030_v28  ;;  %v4602_v41 = vadd.f32 %v12961_v27, %v4584_v51 }
 0x629   : > { %v4007_v0 = vmul.f32 %v8952_v48, %v4006_v60  ;;  %v13055_v42 = vsel %vm4000_vm11, %v8950_v29, %v3997_v16  ;;  %v3895_v47 = vmul.f32 %v13033_v52, %v13033_v52  ;;  %v4831_v29 = vpack.c.bf16 %v13003_v9, %v13003_v9 }
 0x62a   : > { %v3878_v43 = vadd.f32 %v3862_v46, %v3846_v11  ;;  %v3879_v5 = vadd.f32 %v3863_v39, %v3847_v40  ;;  %v4116_v19 = vmul.f32 %v13055_v42, %v12813_v24  ;;  %v4354_v51 = vmul.f32 %v13055_v42, %v12816_v44 }
 0x62b   : > { %v13061_v25 = vsel %vm4010_vm12, %v8952_v48, %v4007_v0  ;;  %v4618_v11 = vpack.c.bf16 %v4602_v41, %v4602_v41  ;;  %v13075_v24 = vunpack.c.l.b16 %v4830_v38 }
 0x62c   : > { %v4117_v14 = vmul.f32 %v13061_v25, %v12824_v58  ;;  %v4355_v1 = vmul.f32 %v13061_v25, %v12827_v61  ;;  %v3910_v60 = vadd.f32 %v3894_v15, %v3878_v43  ;;  %v3911_v46 = vadd.f32 %v3895_v47, %v3879_v5  ;;  %v16371_v61 = vld [vmem:[#allocation101_spill] sm:$0xff]  ;;  %v16372_v43 = vld [vmem:[#allocation58_spill] sm:$0xff] }
 0x62d   : > { %v4134_v48 = vmul.f32 %v16350_v57, %v4116_v19  ;;  %v4372_v16 = vmul.f32 %v16351_v8, %v4354_v51  ;;  %v13083_v15 = vadd.f32 %v12768_v21, %v16371_v61  ;;  %v13087_v5 = vadd.f32 %v12771_v32, %v16372_v43 }
 0x62e   : > { %v4135_v44 = vmul.f32 %v16350_v57, %v4117_v14  ;;  %v4373_v40 = vmul.f32 %v16351_v8, %v4355_v1  ;;  %v3926_v9 = vmul.f32 0.25, %v3910_v60  ;;  %v3927_v39 = vmul.f32 0.25, %v3911_v46  ;;  %v4512_v60 = vpop.permute.xlu0 %4511 }
 0x62f   : > { %v4152_v58 = vadd.f32 %v16353_v26, %v4134_v48  ;;  %v4390_v0 = vadd.f32 %v16354_v63, %v4372_v16  ;;  %v4156_v1 = vadd.f32 %v16353_v26, %v12983_v12  ;;  %v4157_v21 = vadd.f32 %v16353_v26, %v12965_v4  ;;  %4542 = vmatpush.bf16.msrb.mxu1 %v4512_v60  ;;  %v3094_v48 = vpop.xlane.xlu2 %3093  ;;  %v3097_v4 = vpop.xlane.xlu1 %3096 }
 0x630   : > { %v4153_v38 = vadd.f32 %v16353_v26, %v4135_v44  ;;  %v4391_v41 = vadd.f32 %v16354_v63, %v4373_v40  ;;  %v13091_v47 = vadd.f32 1e-05, %v3926_v9  ;;  %v13093_v19 = vadd.f32 1e-05, %v3927_v39 }
 0x631   : > { %v4168_v51 = vpack.c.bf16 %v4152_v58, %v4152_v58  ;;  %v4406_v14 = vpack.c.bf16 %v4390_v0, %v4390_v0  ;;  %v13100_v16 = vunpack.c.l.b16 %v4618_v11  ;;  %v13103_v9 = vunpack.c.l.b16 %v4831_v29  ;;  %v16374_v11 = vld [vmem:[#allocation69_spill] sm:$0xff] }
 0x632   : > { %v4169_v46 = vpack.c.bf16 %v4153_v38, %v4153_v38  ;;  %v4407_v32 = vpack.c.bf16 %v4391_v41, %v4391_v41  ;;  %8953 = vrsqrt.f32 %v13091_v47  ;;  %v4172_v58 = vpack.c.bf16 %v4156_v1, %v4156_v1  ;;  %v16375_v1 = vld [vmem:[#allocation78_spill] sm:$0xff] }
 0x633   : > { %16373 = vst [vmem:[#allocation121_spill] sm:$0xff] %v13100_v16  ;;  %v4192_v44 = vunpack.c.l.b16 %v4168_v51  ;;  %v4430_v40 = vunpack.c.l.b16 %v4406_v14  ;;  %8955 = vrsqrt.f32 %v13093_v19  ;;  %v4173_v0 = vpack.c.bf16 %v4157_v21, %v4157_v21  ;;  %v16376_v21 = vld [vmem:[#allocation115_spill] sm:$0xff] }
 0x634   : > { %v4193_v39 = vunpack.c.l.b16 %v4169_v46  ;;  %v4431_v12 = vunpack.c.l.b16 %v4407_v32  ;;  %v4394_v61 = vadd.f32 %v16354_v63, %v12987_v35  ;;  %v4395_v43 = vadd.f32 %v16354_v63, %v12976_v13 }
 0x635   : > { %8957 = vrcp.f32 %v3094_v48  ;;  %v13111_v38 = vadd.f32 %v12777_v33, %v16374_v11  ;;  %v4273_v29 = vunpack.c.l.b16 %v4172_v58  ;;  %v4274_v14 = vunpack.c.l.b16 %v4173_v0  ;;  %v16378_v33 = vld [vmem:[#allocation99_spill] sm:$0xff] }
 0x636   : > { %v4198_v41 = vpack.c.b16 %v4193_v39, %v4192_v44  ;;  %v4436_v51 = vpack.c.b16 %v4431_v12, %v4430_v40  ;;  %v4410_v60 = vpack.c.bf16 %v4394_v61, %v4394_v61  ;;  %v4411_v46 = vpack.c.bf16 %v4395_v43, %v4395_v43  ;;  %v16379_v44 = vld [vmem:[#allocation55_spill] sm:$0xff] }
 0x637   : > { %8959 = vrcp.f32 %v3097_v4  ;;  %v13115_v32 = vadd.f32 %v16376_v21, %v16375_v1  ;;  %v4281_v13 = vpack.c.b16 %v4274_v14, %v4273_v29  ;;  %v13121_v11 = vsub.f32 %v16378_v33, %v16377_v53  ;;  %v16380_v40 = vld [vmem:[#allocation111_spill] sm:$0xff] }
 0x638   : > { %v8954_v35 = vpop.eup %8953  ;;  %8073 = vmatmul.msk.bf16.gmra.mxu2 %vm1873_vm2, %v4198_v41  ;;  %8081 = vmatmul.msk.bf16.gmra.mxu0 %vm1873_vm2, %v4436_v51  ;;  %v13125_v39 = vsub.f32 %v16380_v40, %v16379_v44  ;;  %v4499_v0 = vunpack.c.l.b16 %v4410_v60  ;;  %v4500_v61 = vunpack.c.l.b16 %v4411_v46  ;;  %v16381_v43 = vpack.c.bf16 %v13008_v23, %v13008_v23  ;;  %v16384_v23 = vld [vmem:[#allocation70_spill] sm:$0xff] }
 0x639   : > { %v8956_v12 = vpop.eup %8955  ;;  %v4013_v58 = vmul.f32 %v8954_v35, %v13091_v47  ;;  %vm4018_vm13 = vweird.f32 %v13091_v47  ;;  %8075 = vmatmul.msk.bf16.vlgmr.msra.gmra.mxu3 %vm1873_vm2, %v4281_v13  ;;  %v3818_v53 = vmul.f32 %v13121_v11, %v13121_v11  ;;  %v4781_v16 = vmul.f32 %v12862_v45, %v16384_v23 }
 0x63a   : > { %v13131_v41 = vunpack.c.l.b16 %v16381_v43  ;;  %v4023_v51 = vmul.f32 %v8956_v12, %v13093_v19  ;;  %v3819_v29 = vmul.f32 %v13125_v39, %v13125_v39  ;;  %v4507_v46 = vpack.c.b16 %v4500_v61, %v4499_v0  ;;  %v16383_v0 = vld [vmem:[#allocation109_spill] sm:$0xff] }
 0x63b   : > { %v8958_v14 = vpop.eup %8957  ;;  %v4014_v60 = vmul.f32 %v8954_v35, %v4013_v58  ;;  %v3850_v44 = vadd.f32 %v12916_v2, %v3818_v53  ;;  %v4568_v58 = vmul.f32 %v13055_v42, %v12819_v22  ;;  %v4780_v61 = vmul.f32 %v12850_v20, %v16383_v0 }
 0x63c   : > { %16382 = vst [vmem:[#allocation60_spill] sm:$0xff] %v13131_v41  ;;  %v4024_v21 = vmul.f32 %v8956_v12, %v4023_v51  ;;  %v3132_v33 = vmul.f32 %v8958_v14, %v3094_v48  ;;  %v3851_v13 = vadd.f32 %v12947_v18, %v3819_v29  ;;  %8083 = vmatmul.msk.bf16.vlgmr.msrb.gmra.mxu1 %vm1873_vm2, %v4507_v46  ;;  %vm4019_vm14 = vweird.f32 %v8954_v35 }
 0x63d   : > { %v8960_v40 = vpop.eup %8959  ;;  %v4015_v43 = vmul.f32 0.5, %v4014_v60  ;;  %v3882_v2 = vadd.f32 %v12933_v3, %v3850_v44  ;;  %vm4029_vm15 = vweird.f32 %v8956_v12  ;;  %vm4028_vm0 = vweird.f32 %v13093_v19  ;;  %vm4020_vm3 = vmor %vm4018_vm13, %vm4019_vm14 }
 0x63e   : > { %v4025_v1 = vmul.f32 0.5, %v4024_v21  ;;  %v3148_v51 = vsub.f32 2.0, %v3132_v33  ;;  %v3133_v48 = vmul.f32 %v8960_v40, %v3097_v4  ;;  %v3883_v18 = vadd.f32 %v12951_v37, %v3851_v13  ;;  %v16385_v4 = vld [vmem:[#allocation76_spill] sm:$0xff]  ;;  %v16386_v37 = vld [vmem:[#allocation71_spill] sm:$0xff]  ;;  %vm4030_vm4 = vmor %vm4028_vm0, %vm4029_vm15 }
 0x63f   : > { %v4016_v53 = vsub.f32 1.5, %v4015_v43  ;;  %v3914_v22 = vadd.f32 %v12943_v56, %v3882_v2  ;;  %v13159_v45 = vmul.f32 %v12724_v10, %v4568_v58 }
 0x640   : > { %v4026_v29 = vsub.f32 1.5, %v4025_v1  ;;  %v3164_v60 = vmul.f32 %v8958_v14, %v3148_v51  ;;  %v3149_v46 = vsub.f32 2.0, %v3133_v48  ;;  %v3915_v20 = vadd.f32 %v12956_v36, %v3883_v18  ;;  %v16389_v51 = vld [vmem:[#allocation53_spill] sm:$0xff] }
 0x641   : > { %v4017_v41 = vmul.f32 %v8954_v35, %v4016_v53  ;;  %v4798_v1 = vmul.f32 %v16386_v37, %v4780_v61  ;;  %v13166_v14 = vmul.f32 %v16386_v37, %v4781_v16  ;;  %v3930_v36 = vmul.f32 0.25, %v3914_v22 }
 0x642   : > { %v4027_v3 = vmul.f32 %v8956_v12, %v4026_v29  ;;  %v3180_v23 = vmul.f32 %v16385_v4, %v3164_v60  ;;  %v3165_v19 = vmul.f32 %v8960_v40, %v3149_v46  ;;  %v3931_v21 = vmul.f32 0.25, %v3915_v20  ;;  %v16387_v40 = vld [vmem:[#allocation107_spill] sm:$0xff]  ;;  %v16391_v29 = vld [vmem:[#allocation89_spill] sm:$0xff]  ;;  %v16392_v46 = vld [vmem:[#allocation112_spill] sm:$0xff] }
 0x643   : > { %v13168_v56 = vsel %vm4020_vm3, %v8954_v35, %v4017_v41 }
 0x644   : > { %v13171_v33 = vsel %vm4030_vm4, %v8956_v12, %v4027_v3  ;;  %v4118_v47 = vmul.f32 %v13168_v56, %v13013_v7  ;;  %v4356_v44 = vmul.f32 %v13168_v56, %v13018_v31  ;;  %v3288_v13 = vmul.f32 %v16279_v17, %v3180_v23  ;;  %v16388_v7 = vld [vmem:[#allocation105_spill] sm:$0xff] }
 0x645   : > { %v4119_v16 = vmul.f32 %v13171_v33, %v13015_v30  ;;  %v4357_v35 = vmul.f32 %v13171_v33, %v13021_v49  ;;  %v3412_v41 = vmul.f32 %v16255_v6, %v3180_v23  ;;  %v3536_v43 = vmul.f32 %v16387_v40, %v3180_v23  ;;  %v16390_v49 = vld [vmem:[#allocation88_spill] sm:$0xff] }
 0x646   : > { %v4136_v12 = vmul.f32 %v16350_v57, %v4118_v47  ;;  %v4374_v58 = vmul.f32 %v16351_v8, %v4356_v44  ;;  %v13187_v0 = vadd.f32 %v3288_v13, %v16388_v7  ;;  %v3660_v31 = vmul.f32 %v16232_v59, %v3180_v23  ;;  %v16393_v7 = vld [vmem:[#allocation93_spill] sm:$0xff] }
 0x647   : > { %v4137_v61 = vmul.f32 %v16350_v57, %v4119_v16  ;;  %v4375_v30 = vmul.f32 %v16351_v8, %v4357_v35  ;;  %v3428_v48 = vadd.f32 %v3412_v41, %v16389_v51  ;;  %v3552_v2 = vadd.f32 %v3536_v43, %v16390_v49 }
 0x648   : > { %v4154_v53 = vadd.f32 %v16353_v26, %v4136_v12  ;;  %v4392_v18 = vadd.f32 %v16354_v63, %v4374_v58  ;;  %v3676_v60 = vadd.f32 %v3660_v31, %v16391_v29  ;;  %v3181_v22 = vmul.f32 %v16392_v46, %v3165_v19 }
 0x649   : > { %v4155_v20 = vadd.f32 %v16353_v26, %v4137_v61  ;;  %v4393_v3 = vadd.f32 %v16354_v63, %v4375_v30  ;;  %v3692_v4 = vadd.f32 %v3428_v48, %v13187_v0  ;;  %v13201_v23 = vadd.f32 1e-05, %v3930_v36  ;;  %v16394_v61 = vld [vmem:[#allocation129_spill] sm:$0xff] }
 0x64a   : > { %v4170_v47 = vpack.c.bf16 %v4154_v53, %v4154_v53  ;;  %v4408_v44 = vpack.c.bf16 %v4392_v18, %v4392_v18  ;;  %v3289_v13 = vmul.f32 %v16279_v17, %v3181_v22  ;;  %v3413_v16 = vmul.f32 %v16255_v6, %v3181_v22  ;;  %v16395_v53 = vld [vmem:[#allocation61_spill] sm:$0xff] }
 0x64b   : > { %v4171_v35 = vpack.c.bf16 %v4155_v20, %v4155_v20  ;;  %v4409_v41 = vpack.c.bf16 %v4393_v3, %v4393_v3  ;;  %v3708_v43 = vadd.f32 %v3692_v4, %v3552_v2  ;;  %v3537_v12 = vmul.f32 %v16387_v40, %v3181_v22  ;;  %v4869_v3 = vpop.permute.xlu2 %4868 }
 0x64c   : > { %v4194_v19 = vunpack.c.l.b16 %v4170_v47  ;;  %v4432_v58 = vunpack.c.l.b16 %v4408_v44  ;;  %v13207_v31 = vadd.f32 %v3289_v13, %v16393_v7  ;;  %v3429_v30 = vadd.f32 %v3413_v16, %v16394_v61  ;;  %4896 = vmatpush.bf16.msra.mxu0 %v4869_v3  ;;  %v3100_v13 = vpop.xlane.xlu1 %3099 }
 0x64d   : > { %v4195_v36 = vunpack.c.l.b16 %v4171_v35  ;;  %v4433_v51 = vunpack.c.l.b16 %v4409_v41  ;;  %v3724_v49 = vadd.f32 %v3708_v43, %v3676_v60  ;;  %v3553_v18 = vadd.f32 %v3537_v12, %v16395_v53  ;;  %v16396_v35 = vld [vmem:[#allocation65_spill] sm:$0xff] }
 0x64e   : > { %v3661_v29 = vmul.f32 %v16232_v59, %v3181_v22  ;;  %v3693_v46 = vadd.f32 %v3429_v30, %v13207_v31  ;;  %v13213_v20 = vadd.f32 1e-05, %v3931_v21  ;;  %8961 = vrsqrt.f32 %v13201_v23 }
 0x64f   : > { %v4199_v4 = vpack.c.b16 %v4195_v36, %v4194_v19  ;;  %v4437_v47 = vpack.c.b16 %v4433_v51, %v4432_v58  ;;  %v13216_v44 = vmul.f32 0.25, %v3724_v49  ;;  %v4816_v16 = vadd.f32 %v12972_v50, %v4798_v1  ;;  %v16397_v58 = vld [vmem:[#allocation133_spill] sm:$0xff] }
 0x650   : > { %v3677_v41 = vadd.f32 %v3661_v29, %v16396_v35  ;;  %v3709_v43 = vadd.f32 %v3693_v46, %v3553_v18  ;;  %8963 = vrsqrt.f32 %v13213_v20  ;;  %v4604_v21 = vadd.f32 %v12961_v27, %v13159_v45  ;;  %v16398_v29 = vld [vmem:[#allocation132_spill] sm:$0xff] }
 0x651   : > { %8074 = vmatmul.msk.bf16.gmra.mxu2 %vm1873_vm2, %v4199_v4  ;;  %8082 = vmatmul.msk.bf16.gmra.mxu0 %vm1873_vm2, %v4437_v47  ;;  %v13226_v22 = vsub.f32 %v3428_v48, %v13216_v44  ;;  %v13229_v12 = vsub.f32 %v3552_v2, %v13216_v44  ;;  %v13232_v1 = vsub.f32 %v3676_v60, %v13216_v44  ;;  %8965 = vrcp.f32 %v3100_v13 }
 0x652   : > { %v3725_v19 = vadd.f32 %v3709_v43, %v3677_v41  ;;  %v4569_v7 = vmul.f32 %v13061_v25, %v16397_v58  ;;  %v4817_v45 = vadd.f32 %v12972_v50, %v13166_v14  ;;  %v4832_v61 = vpack.c.bf16 %v4816_v16, %v4816_v16 }
 0x653   : > { %v4620_v53 = vpack.c.bf16 %v4604_v21, %v4604_v21  ;;  %v4782_v46 = vmul.f32 %v13055_v42, %v16398_v29  ;;  %v4732_v16 = vpop.permute.xlu2 %4731  ;;  %vm4058_vm6 = vweird.f32 %v13201_v23  ;;  %vm4068_vm9 = vweird.f32 %v13213_v20 }
 0x654   : > { %v8962_v36 = vpop.eup %8961  ;;  %v13238_v51 = vmul.f32 0.25, %v3725_v19  ;;  %v4587_v48 = vmul.f32 %v12724_v10, %v4569_v7  ;;  %v4833_v49 = vpack.c.bf16 %v4817_v45, %v4817_v45  ;;  %v13242_v60 = vunpack.c.l.b16 %v4832_v61  ;;  %4753 = vmatpush.bf16.msrb.mxu3 %v4732_v16  ;;  %v4867_v58 = vpop.permute.xlu1 %4866 }
 0x655   : > { %v4053_v2 = vmul.f32 %v8962_v36, %v13201_v23  ;;  %4897 = vmatpush.bf16.msra.mxu0 %v4867_v58  ;;  %vm4059_vm5 = vweird.f32 %v8962_v36 }
 0x656   : > { %v8964_v3 = vpop.eup %8963  ;;  %v13247_v4 = vsub.f32 %v3429_v30, %v13238_v51  ;;  %v13250_v14 = vsub.f32 %v3553_v18, %v13238_v51  ;;  %v13253_v47 = vsub.f32 %v3677_v41, %v13238_v51  ;;  %v4605_v35 = vadd.f32 %v12961_v27, %v4587_v48  ;;  %v4730_v30 = vpop.permute.xlu0 %4729  ;;  %vm4060_vm8 = vmor %vm4058_vm6, %vm4059_vm5 }
 0x657   : > { %v8966_v43 = vpop.eup %8965  ;;  %v4054_v21 = vmul.f32 %v8962_v36, %v4053_v2  ;;  %v4063_v19 = vmul.f32 %v8964_v3, %v13213_v20  ;;  %v13257_v42 = vunpack.c.l.b16 %v4833_v49  ;;  %v4800_v48 = vmul.f32 %v16386_v37, %v4782_v46 }
 0x658   : > { %16399 = vst [vmem:[#allocation59_spill] sm:$0xff] %v13253_v47  ;;  %v3134_v7 = vmul.f32 %v8966_v43, %v3100_v13  ;;  %v4621_v61 = vpack.c.bf16 %v4605_v35, %v4605_v35  ;;  %v13261_v47 = vunpack.c.l.b16 %v4620_v53  ;;  %4754 = vmatpush.bf16.msrb.mxu3 %v4730_v30  ;;  %v16400_v13 = vld [vmem:[#allocation119_spill] sm:$0xff]  ;;  %vm4069_vm7 = vweird.f32 %v8964_v3 }
 0x659   : > { %v4055_v45 = vmul.f32 0.5, %v4054_v21  ;;  %v4064_v18 = vmul.f32 %v8964_v3, %v4063_v19  ;;  %v4863_v41 = vpack.c.b16 %v13257_v42, %v13242_v60  ;;  %v13268_v58 = vmul.f32 %v12724_v10, %v16400_v13  ;;  %vm4070_vm10 = vmor %vm4068_vm9, %vm4069_vm7 }
 0x65a   : > { %v3150_v29 = vsub.f32 2.0, %v3134_v7  ;;  %v13264_v49 = vunpack.c.l.b16 %v4621_v61  ;;  %v4818_v21 = vadd.f32 %v12972_v50, %v4800_v48  ;;  %v16401_v7 = vld [vmem:[#allocation64_spill] sm:$0xff]  ;;  %v4571_v48 = vmul.f32 %v13171_v33, %v13027_v54 }
 0x65b   : > { %v4056_v2 = vsub.f32 1.5, %v4055_v45  ;;  %v4065_v16 = vmul.f32 0.5, %v4064_v18  ;;  %v13276_v30 = vmul.f32 %v16386_v37, %v16401_v7  ;;  %v16402_v45 = vld [vmem:[#allocation108_spill] sm:$0xff]  ;;  %v4728_v61 = vpop.permute.xlu2 %4727  ;;  %vm5216_vm9 = vcmask 785408  }
 0x65c   : > { %v3166_v35 = vmul.f32 %v8966_v43, %v3150_v29  ;;  %v4650_v46 = vpack.c.b16 %v13264_v49, %v13261_v47  ;;  %v4834_v23 = vpack.c.bf16 %v4818_v21, %v4818_v21  ;;  %4755 = vmatpush.bf16.msrb.mxu3 %v4728_v61  ;;  %v16403_v21 = vpack.c.b16 %v12999_v34, %v12997_v62 }
 0x65d   : > { %v4057_v19 = vmul.f32 %v8962_v36, %v4056_v2  ;;  %v4066_v53 = vsub.f32 1.5, %v4065_v16  ;;  %v4783_v2 = vmul.f32 %v13061_v25, %v12833_v55  ;;  %v16404_v55 = vld [vmem:[#allocation98_spill] sm:$0xff] }
 0x65e   : > { %v3182_v18 = vmul.f32 %v16402_v45, %v3166_v35 }
 0x65f   : > { %v13280_v43 = vsel %vm4060_vm8, %v8962_v36, %v4057_v19  ;;  %v4067_v29 = vmul.f32 %v8964_v3, %v4066_v53 }
 0x660   : > { %v4122_v16 = vmul.f32 %v13280_v43, %v13121_v11  ;;  %v3290_v20 = vmul.f32 %v16279_v17, %v3182_v18  ;;  %v3414_v13 = vmul.f32 %v16255_v6, %v3182_v18  ;;  %v3538_v35 = vmul.f32 %v16387_v40, %v3182_v18  ;;  %v4946_v6 = vpop.permute.xlu1 %4945 }
 0x661   : > { %v13291_v36 = vsel %vm4070_vm10, %v8964_v3, %v4067_v29  ;;  %8087 = vmatmul.msk.bf16.vlgmr.msrb.gmra.mxu2 %vm1873_vm2, %v16403_v21  ;;  %v3662_v54 = vmul.f32 %v16232_v59, %v3182_v18  ;;  %v4360_v25 = vmul.f32 %v13280_v43, %v16404_v55  ;;  %v16405_v11 = vpack.c.b16 %v13103_v9, %v13075_v24  ;;  %v4944_v3 = vpop.permute.xlu0 %4943  ;;  %v16406_v9 = vld [vmem:[#allocation116_spill] sm:$0xff]  ;;  %v16407_v18 = vld [vmem:[#allocation83_spill] sm:$0xff] }
 0x662   : > { %v13304_v17 = vunpack.c.l.b16 %v4834_v23  ;;  %v4123_v40 = vmul.f32 %v13291_v36, %v13125_v39  ;;  %v4140_v62 = vmul.f32 %v16350_v57, %v4122_v16  ;;  %v13310_v34 = vadd.f32 %v3290_v20, %v13083_v15  ;;  %4967 = vmatpush.bf16.msra.mxu1 %v4946_v6 }
 0x663   : > { %8095 = vmatmul.msk.bf16.vlgmr.msra.gmra.mxu0 %vm1873_vm2, %v16405_v11  ;;  %v3430_v59 = vadd.f32 %v3414_v13, %v13087_v5  ;;  %v3554_v19 = vadd.f32 %v3538_v35, %v13111_v38  ;;  %v3678_v24 = vadd.f32 %v3662_v54, %v13115_v32  ;;  %v4361_v53 = vmul.f32 %v13291_v36, %v16406_v9  ;;  %v4471_v54 = vpop.f32.mrf.mxu0  ;;  %v4942_v9 = vpop.permute.xlu2 %4941 }
 0x664   : > { %v4378_v7 = vmul.f32 %v16351_v8, %v4360_v25  ;;  %v4141_v39 = vmul.f32 %v16350_v57, %v4123_v40  ;;  %v4158_v45 = vadd.f32 %v16353_v26, %v4140_v62  ;;  %v4570_v5 = vmul.f32 %v13168_v56, %v16407_v18 }
 0x665   : > { %v3694_v15 = vadd.f32 %v3430_v59, %v13310_v34  ;;  %v4379_v61 = vmul.f32 %v16351_v8, %v4361_v53  ;;  %v4589_v32 = vmul.f32 %v12724_v10, %v4571_v48  ;;  %v4801_v23 = vmul.f32 %v16386_v37, %v4783_v2 }
 0x666   : > { %v4396_v38 = vadd.f32 %v16354_v63, %v4378_v7  ;;  %v4159_v29 = vadd.f32 %v16353_v26, %v4141_v39  ;;  %v4174_v16 = vpack.c.bf16 %v4158_v45, %v4158_v45  ;;  %4968 = vmatpush.bf16.msra.mxu1 %v4944_v3  ;;  %v4588_v13 = vmul.f32 %v12724_v10, %v4570_v5 }
 0x667   : > { %v3710_v20 = vadd.f32 %v3694_v15, %v3554_v19  ;;  %v4397_v35 = vadd.f32 %v16354_v63, %v4379_v61  ;;  %v4607_v55 = vadd.f32 %v12961_v27, %v4589_v32  ;;  %v4819_v25 = vadd.f32 %v12972_v50, %v4801_v23 }
 0x668   : > { %v4412_v21 = vpack.c.bf16 %v4396_v38, %v4396_v38  ;;  %v4175_v11 = vpack.c.bf16 %v4159_v29, %v4159_v29  ;;  %v4275_v6 = vunpack.c.l.b16 %v4174_v16  ;;  %v4606_v2 = vadd.f32 %v12961_v27, %v4588_v13  ;;  %v4726_v53 = vpop.permute.xlu1 %4725 }
 0x669   : > { %v3726_v48 = vadd.f32 %v3710_v20, %v3678_v24  ;;  %v4413_v40 = vpack.c.bf16 %v4397_v35, %v4397_v35  ;;  %v4623_v3 = vpack.c.bf16 %v4607_v55, %v4607_v55  ;;  %v4835_v7 = vpack.c.bf16 %v4819_v25, %v4819_v25  ;;  %4756 = vmatpush.bf16.msrb.mxu3 %v4726_v53  ;;  %v4940_v35 = vpop.permute.xlu0 %4939  ;;  %v16409_v55 = vld [vmem:[#allocation131_spill] sm:$0xff] }
 0x66a   : > { %v4501_v62 = vunpack.c.l.b16 %v4412_v21  ;;  %v4276_v39 = vunpack.c.l.b16 %v4175_v11  ;;  %4969 = vmatpush.bf16.msra.mxu1 %v4942_v9  ;;  %v4622_v15 = vpack.c.bf16 %v4606_v2, %v4606_v2  ;;  %v4784_v18 = vmul.f32 %v13168_v56, %v13030_v28  ;;  %v16410_v11 = vld [vmem:[#allocation60_spill] sm:$0xff] }
 0x66b   : > { %v13333_v45 = vmul.f32 0.25, %v3726_v48  ;;  %v4502_v5 = vunpack.c.l.b16 %v4413_v40  ;;  %v13337_v61 = vunpack.c.l.b16 %v4623_v3  ;;  %v4859_v38 = vunpack.c.l.b16 %v4835_v7  ;;  %v4473_v2 = vpop.f32.mrf.mxu0 }
 0x66c   : > { %v4785_v32 = vmul.f32 %v13171_v33, %v13033_v52  ;;  %v4282_v23 = vpack.c.b16 %v4276_v39, %v4275_v6  ;;  %v13350_v28 = vunpack.c.l.b16 %v4622_v15  ;;  %v4802_v21 = vmul.f32 %v16386_v37, %v4784_v18  ;;  %v16411_v6 = vld [vmem:[#allocation121_spill] sm:$0xff] }
 0x66d   : > { %v13342_v29 = vsub.f32 %v3430_v59, %v13333_v45  ;;  %v13345_v16 = vsub.f32 %v3554_v19, %v13333_v45  ;;  %v13348_v20 = vsub.f32 %v3678_v24, %v13333_v45  ;;  %v4508_v13 = vpack.c.b16 %v4502_v5, %v4501_v62  ;;  %v16408_v19 = vld [vmem:[#allocation48_spill] sm:$0xff] }
 0x66e   : > { %v4864_v56 = vpack.c.b16 %v4859_v38, %v13304_v17  ;;  %8076 = vmatmul.msk.bf16.gmra.mxu3 %vm1873_vm2, %v4282_v23  ;;  %4970 = vmatpush.bf16.msra.mxu1 %v4940_v35  ;;  %v4651_v52 = vpack.c.b16 %v13337_v61, %v13350_v28  ;;  %v4803_v33 = vmul.f32 %v16386_v37, %v4785_v32 }
 0x66f   : > { %8084 = vmatmul.msk.bf16.gmra.mxu1 %vm1873_vm2, %v4508_v13  ;;  %v4820_v59 = vadd.f32 %v12972_v50, %v4802_v21  ;;  %v4590_v24 = vmul.f32 %v12724_v10, %v16408_v19  ;;  %v4804_v17 = vmul.f32 %v16386_v37, %v16409_v55  ;;  %v4609_v25 = vadd.f32 %v12961_v27, %v13268_v58 }
 0x670   : > { %v16412_v48 = vpack.c.b16 %v16410_v11, %v16411_v6  ;;  %v4821_v40 = vadd.f32 %v12972_v50, %v4803_v33  ;;  %v4823_v9 = vadd.f32 %v12972_v50, %v13276_v30  ;;  %v8527_v53 = vpack.i.bf16 %v4473_v2, %v4471_v54  ;;  %v16414_v11 = vld [vmem:[#allocation117_spill] sm:$0xff] }
 0x671   : > { %v4836_v62 = vpack.c.bf16 %v4820_v59, %v4820_v59  ;;  %v4625_v7 = vpack.c.bf16 %v4609_v25, %v4609_v25  ;;  %v4608_v60 = vadd.f32 %v12961_v27, %v4590_v24  ;;  %v4822_v42 = vadd.f32 %v12972_v50, %v4804_v17 }
 0x672   : > { %8088 = vmatmul.msk.bf16.gmra.mxu2 %vm1873_vm2, %v16412_v48  ;;  %v4837_v3 = vpack.c.bf16 %v4821_v40, %v4821_v40  ;;  %8528 = vrot.lane.b32.xlu1 %v8527_v53, %s16112_s25  ;;  %v3836_v35 = vmul.f32 %v13226_v22, %v13226_v22  ;;  %v3837_v21 = vmul.f32 %v13247_v4, %v13247_v4  ;;  %v16415_v48 = vld [vmem:[#allocation45_spill] sm:$0xff]  ;;  %v16416_v40 = vld [vmem:[#allocation59_spill] sm:$0xff] }
 0x673   : > { %8096 = vmatmul.msk.bf16.gmra.mxu0 %vm1873_vm2, %v4863_v41  ;;  %v13377_v58 = vunpack.c.l.b16 %v4836_v62  ;;  %v4839_v41 = vpack.c.bf16 %v4823_v9, %v4823_v9  ;;  %v4624_v18 = vpack.c.bf16 %v4608_v60, %v4608_v60  ;;  %v4838_v5 = vpack.c.bf16 %v4822_v42, %v4822_v42 }
 0x674   : > { %v13380_v39 = vunpack.c.l.b16 %v4837_v3  ;;  %v13388_v54 = vunpack.c.l.b16 %v4625_v7  ;;  %v13404_v33 = vsub.f32 %v13187_v0, %v13216_v44  ;;  %v13408_v59 = vsub.f32 %v13207_v31, %v13238_v51  ;;  %v16413_v31 = vld [vmem:[#allocation100_spill] sm:$0xff]  ;;  %v16417_v3 = vld [vmem:[#allocation77_spill] sm:$0xff] }
 0x675   : > { %v13386_v30 = vunpack.c.l.b16 %v4624_v18  ;;  %v13390_v38 = vunpack.c.l.b16 %v4838_v5  ;;  %v13392_v32 = vunpack.c.l.b16 %v4839_v41  ;;  %v3868_v55 = vmul.f32 %v13229_v12, %v13229_v12  ;;  %v16418_v5 = vld [vmem:[#allocation118_spill] sm:$0xff] }
 0x676   : > { %v4865_v15 = vpack.c.b16 %v13380_v39, %v13377_v58  ;;  %v3820_v19 = vmul.f32 %v13404_v33, %v13404_v33  ;;  %v3821_v24 = vmul.f32 %v13408_v59, %v13408_v59  ;;  %v3900_v17 = vmul.f32 %v13232_v1, %v13232_v1  ;;  %v13487_v39 = vpop.f32.mrf.mxu2 }
 0x677   : > { %v4721_v23 = vpack.c.b16 %v13388_v54, %v13386_v30  ;;  %v4935_v13 = vpack.c.b16 %v13392_v32, %v13390_v38  ;;  %v3869_v0 = vmul.f32 %v13250_v14, %v13250_v14  ;;  %v4574_v51 = vmul.f32 %v13280_v43, %v16413_v31 }
 0x678   : > { %v3852_v44 = vadd.f32 %v3836_v35, %v3820_v19  ;;  %v3853_v25 = vadd.f32 %v3837_v21, %v3821_v24  ;;  %v4575_v6 = vmul.f32 %v13291_v36, %v16414_v11  ;;  %v4788_v2 = vmul.f32 %v13280_v43, %v16415_v48  ;;  %v16419_v24 = vld [vmem:[#allocation114_spill] sm:$0xff] }
 0x679   : > { %v3901_v62 = vmul.f32 %v16416_v40, %v16416_v40  ;;  %v4789_v47 = vmul.f32 %v13291_v36, %v16417_v3  ;;  %v4592_v49 = vmul.f32 %v12724_v10, %v4574_v51  ;;  %v3839_v35 = vmul.f32 %v16418_v5, %v16418_v5 }
 0x67a   : > { %v3884_v9 = vadd.f32 %v3868_v55, %v3852_v44  ;;  %v3885_v53 = vadd.f32 %v3869_v0, %v3853_v25  ;;  %v16420_v55 = vld [vmem:[#allocation57_spill] sm:$0xff]  ;;  %v3838_v31 = vmul.f32 %v13342_v29, %v13342_v29  ;;  %v13453_v48 = vsub.f32 %v13310_v34, %v13333_v45 }
 0x67b   : > { %v4807_v42 = vmul.f32 %v16386_v37, %v4789_v47  ;;  %v4610_v43 = vadd.f32 %v12961_v27, %v4592_v49  ;;  %v13447_v0 = vsub.f32 %v16420_v55, %v16419_v24 }
 0x67c   : > { %v3916_v7 = vadd.f32 %v3900_v17, %v3884_v9  ;;  %v3917_v60 = vadd.f32 %v3901_v62, %v3885_v53  ;;  %v16421_v53 = vld [vmem:[#allocation124_spill] sm:$0xff]  ;;  %v3822_v49 = vmul.f32 %v13453_v48, %v13453_v48 }
 0x67d   : > { %v4825_v19 = vadd.f32 %v12972_v50, %v4807_v42  ;;  %v4626_v17 = vpack.c.bf16 %v4610_v43, %v4610_v43  ;;  %v3871_v3 = vmul.f32 %v16421_v53, %v16421_v53 }
 0x67e   : > { %v3932_v36 = vmul.f32 0.25, %v3916_v7  ;;  %v3933_v21 = vmul.f32 0.25, %v3917_v60  ;;  %v3870_v60 = vmul.f32 %v13345_v16, %v13345_v16  ;;  %v3854_v42 = vadd.f32 %v3838_v31, %v3822_v49 }
 0x67f   : > { %v13457_v62 = vunpack.c.l.b16 %v4626_v17 }
 0x680   : > { %v3948_v51 = vadd.f32 1e-05, %v3932_v36  ;;  %v3949_v11 = vadd.f32 1e-05, %v3933_v21 }
 0x682   : > { %8089 = vmatmul.msk.bf16.gmra.mxu2 %vm1873_vm2, %v4650_v46  ;;  %v4593_v46 = vmul.f32 %v12724_v10, %v4575_v6  ;;  %v4841_v6 = vpack.c.bf16 %v4825_v19, %v4825_v19  ;;  %8967 = vrsqrt.f32 %v3948_v51  ;;  %vm4078_vm13 = vweird.f32 %v3948_v51 }
 0x683   : > { %8097 = vmatmul.msk.bf16.gmra.mxu0 %vm1873_vm2, %v4864_v56  ;;  %v4806_v56 = vmul.f32 %v16386_v37, %v4788_v2  ;;  %v3823_v2 = vmul.f32 %v13447_v0, %v13447_v0  ;;  %8969 = vrsqrt.f32 %v3949_v11  ;;  %vm4088_vm15 = vweird.f32 %v3949_v11 }
 0x684   : > { %v4611_v41 = vadd.f32 %v12961_v27, %v4593_v46  ;;  %v13469_v45 = vunpack.c.l.b16 %v4841_v6 }
 0x685   : > { %v4824_v18 = vadd.f32 %v12972_v50, %v4806_v56  ;;  %v3855_v46 = vadd.f32 %v3839_v35, %v3823_v2  ;;  %v16422_v56 = vld [vmem:[#allocation82_spill] sm:$0xff]  ;;  %v3886_v35 = vadd.f32 %v3870_v60, %v3854_v42 }
 0x686   : > { %v4627_v44 = vpack.c.bf16 %v4611_v41, %v4611_v41  ;;  %v3903_v7 = vmul.f32 %v16422_v56, %v16422_v56 }
 0x687   : > { %v4840_v25 = vpack.c.bf16 %v4824_v18, %v4824_v18  ;;  %v3887_v43 = vadd.f32 %v3871_v3, %v3855_v46  ;;  %v3902_v18 = vmul.f32 %v13348_v20, %v13348_v20 }
 0x688   : > { %v13459_v9 = vunpack.c.l.b16 %v4627_v44  ;;  %v8968_v21 = vpop.eup %8967 }
 0x689   : > { %v13463_v47 = vunpack.c.l.b16 %v4840_v25  ;;  %v3919_v36 = vadd.f32 %v3903_v7, %v3887_v43  ;;  %v8970_v19 = vpop.eup %8969  ;;  %v4073_v24 = vmul.f32 %v8968_v21, %v3948_v51  ;;  %v3918_v55 = vadd.f32 %v3902_v18, %v3886_v35 }
 0x68a   : > { %v4722_v34 = vpack.c.b16 %v13459_v9, %v13457_v62  ;;  %v4083_v44 = vmul.f32 %v8970_v19, %v3949_v11  ;;  %vm4079_vm11 = vweird.f32 %v8968_v21  ;;  %vm4089_vm12 = vweird.f32 %v8970_v19 }
 0x68b   : > { %v4936_v41 = vpack.c.b16 %v13469_v45, %v13463_v47  ;;  %v3935_v17 = vmul.f32 0.25, %v3919_v36  ;;  %v4074_v25 = vmul.f32 %v8968_v21, %v4073_v24  ;;  %v3934_v31 = vmul.f32 0.25, %v3918_v55  ;;  %vm4080_vm14 = vmor %vm4078_vm13, %vm4079_vm11 }
 0x68c   : > { %v4084_v2 = vmul.f32 %v8970_v19, %v4083_v44  ;;  %vm4090_vm0 = vmor %vm4088_vm15, %vm4089_vm12 }
 0x68d   : > { %v3951_v6 = vadd.f32 1e-05, %v3935_v17  ;;  %v4075_v3 = vmul.f32 0.5, %v4074_v25  ;;  %v3950_v49 = vadd.f32 1e-05, %v3934_v31 }
 0x68e   : > { %v4085_v61 = vmul.f32 0.5, %v4084_v2 }
 0x68f   : > { %8971 = vrsqrt.f32 %v3951_v6  ;;  %v4076_v28 = vsub.f32 1.5, %v4075_v3  ;;  %vm4108_vm5 = vweird.f32 %v3951_v6  ;;  %vm4098_vm6 = vweird.f32 %v3950_v49 }
 0x690   : > { %8973 = vrsqrt.f32 %v3950_v49 }
 0x691   : > { %v4077_v58 = vmul.f32 %v8968_v21, %v4076_v28 }
 0x692   : > { %8090 = vmatmul.msk.bf16.gmra.mxu2 %vm1873_vm2, %v4651_v52  ;;  %v4086_v52 = vsub.f32 1.5, %v4085_v61 }
 0x693   : > { %8098 = vmatmul.msk.bf16.gmra.mxu0 %vm1873_vm2, %v4865_v15  ;;  %v13489_v60 = vsel %vm4080_vm14, %v8968_v21, %v4077_v58 }
 0x694   : > { %v4087_v15 = vmul.f32 %v8970_v19, %v4086_v52  ;;  %v4124_v43 = vmul.f32 %v13489_v60, %v13404_v33  ;;  %v4362_v18 = vmul.f32 %v13489_v60, %v13226_v22 }
 0x695   : > { %v8972_v7 = vpop.eup %8971 }
 0x696   : > { %v4476_v46 = vpop.f32.mrf.mxu0  ;;  %v13491_v42 = vsel %vm4090_vm0, %v8970_v19, %v4087_v15  ;;  %v4103_v35 = vmul.f32 %v8972_v7, %v3951_v6  ;;  %v8974_v36 = vpop.eup %8973  ;;  %v4142_v21 = vmul.f32 %v16350_v57, %v4124_v43  ;;  %v4380_v24 = vmul.f32 %v16351_v8, %v4362_v18 }
 0x697   : > { %v4125_v51 = vmul.f32 %v13491_v42, %v13408_v59  ;;  %v4363_v11 = vmul.f32 %v13491_v42, %v13247_v4  ;;  %v4093_v55 = vmul.f32 %v8974_v36, %v3950_v49  ;;  %vm4109_vm3 = vweird.f32 %v8972_v7 }
 0x698   : > { %v4104_v22 = vmul.f32 %v8972_v7, %v4103_v35  ;;  %v4160_v25 = vadd.f32 %v16353_v26, %v4142_v21  ;;  %v4398_v31 = vadd.f32 %v16354_v63, %v4380_v24  ;;  %vm4099_vm4 = vweird.f32 %v8974_v36  ;;  %vm4110_vm7 = vmor %vm4108_vm5, %vm4109_vm3 }
 0x699   : > { %v4143_v17 = vmul.f32 %v16350_v57, %v4125_v51  ;;  %v4381_v33 = vmul.f32 %v16351_v8, %v4363_v11  ;;  %v4094_v59 = vmul.f32 %v8974_v36, %v4093_v55  ;;  %vm4100_vm8 = vmor %vm4098_vm6, %vm4099_vm4 }
 0x69a   : > { %v4105_v3 = vmul.f32 0.5, %v4104_v22  ;;  %v4176_v61 = vpack.c.bf16 %v4160_v25, %v4160_v25  ;;  %v4414_v28 = vpack.c.bf16 %v4398_v31, %v4398_v31 }
 0x69b   : > { %v4161_v2 = vadd.f32 %v16353_v26, %v4143_v17  ;;  %v4399_v4 = vadd.f32 %v16354_v63, %v4381_v33  ;;  %v4095_v52 = vmul.f32 0.5, %v4094_v59 }
 0x69c   : > { %v4106_v43 = vsub.f32 1.5, %v4105_v3  ;;  %v4277_v18 = vunpack.c.l.b16 %v4176_v61  ;;  %v4503_v11 = vunpack.c.l.b16 %v4414_v28 }
 0x69d   : > { %v4177_v58 = vpack.c.bf16 %v4161_v2, %v4161_v2  ;;  %v4415_v15 = vpack.c.bf16 %v4399_v4, %v4399_v4  ;;  %v4096_v35 = vsub.f32 1.5, %v4095_v52 }
 0x69e   : > { %v4478_v19 = vpop.f32.mrf.mxu0  ;;  %v4107_v24 = vmul.f32 %v8972_v7, %v4106_v43 }
 0x69f   : > { %v8542_v44 = vpack.i.bf16 %v4478_v19, %v4476_v46  ;;  %v13510_v46 = vpop.f32.mrf.mxu2  ;;  %v4278_v51 = vunpack.c.l.b16 %v4177_v58  ;;  %v4504_v21 = vunpack.c.l.b16 %v4415_v15  ;;  %v4097_v19 = vmul.f32 %v8974_v36, %v4096_v35 }
 0x6a0   : > { %v4111_v33 = vsel %vm4110_vm7, %v8972_v7, %v4107_v24 }
 0x6a1   : > { %8543 = vrot.lane.b32.xlu1 %v8542_v44, %s16112_s25  ;;  %v4283_v55 = vpack.c.b16 %v4278_v51, %v4277_v18  ;;  %v4509_v17 = vpack.c.b16 %v4504_v21, %v4503_v11  ;;  %v13512_v44 = vsel %vm4100_vm8, %v8974_v36, %v4097_v19  ;;  %v4127_v22 = vmul.f32 %v4111_v33, %v13447_v0 }
 0x6a2   : > { %v4365_v25 = vmul.f32 %v4111_v33, %v16418_v5  ;;  %v4126_v6 = vmul.f32 %v13512_v44, %v13453_v48  ;;  %v4364_v49 = vmul.f32 %v13512_v44, %v13342_v29  ;;  %v4576_v11 = vmul.f32 %v13489_v60, %v13229_v12 }
 0x6a3   : > { %8077 = vmatmul.msk.bf16.gmra.mxu3 %vm1873_vm2, %v4283_v55  ;;  %8085 = vmatmul.msk.bf16.gmra.mxu1 %vm1873_vm2, %v4509_v17  ;;  %v4145_v31 = vmul.f32 %v16350_v57, %v4127_v22  ;;  %v4790_v21 = vmul.f32 %v13489_v60, %v13232_v1  ;;  %v4579_v24 = vmul.f32 %v4111_v33, %v16421_v53 }
 0x6a4   : > { %v4383_v7 = vmul.f32 %v16351_v8, %v4365_v25  ;;  %v4144_v36 = vmul.f32 %v16350_v57, %v4126_v6  ;;  %v4382_v0 = vmul.f32 %v16351_v8, %v4364_v49  ;;  %v4793_v19 = vmul.f32 %v4111_v33, %v16422_v56 }
 0x6a5   : > { %v4163_v5 = vadd.f32 %v16353_v26, %v4145_v31  ;;  %v4577_v55 = vmul.f32 %v13491_v42, %v13250_v14  ;;  %v4594_v17 = vmul.f32 %v12724_v10, %v4576_v11  ;;  %v4791_v22 = vmul.f32 %v13491_v42, %v16416_v40 }
 0x6a6   : > { %v4401_v59 = vadd.f32 %v16354_v63, %v4383_v7  ;;  %v4162_v2 = vadd.f32 %v16353_v26, %v4144_v36  ;;  %v4400_v4 = vadd.f32 %v16354_v63, %v4382_v0  ;;  %v4808_v25 = vmul.f32 %v16386_v37, %v4790_v21 }
 0x6a7   : > { %v13530_v48 = vpop.f32.mrf.mxu2  ;;  %v4179_v3 = vpack.c.bf16 %v4163_v5, %v4163_v5  ;;  %v4595_v6 = vmul.f32 %v12724_v10, %v4577_v55  ;;  %v4612_v12 = vadd.f32 %v12961_v27, %v4594_v17  ;;  %v4809_v1 = vmul.f32 %v16386_v37, %v4791_v22 }
 0x6a8   : > { %v4417_v29 = vpack.c.bf16 %v4401_v59, %v4401_v59  ;;  %v4178_v61 = vpack.c.bf16 %v4162_v2, %v4162_v2  ;;  %v4416_v28 = vpack.c.bf16 %v4400_v4, %v4400_v4  ;;  %v4826_v53 = vadd.f32 %v12972_v50, %v4808_v25 }
 0x6a9   : > { %v4280_v58 = vunpack.c.l.b16 %v4179_v3  ;;  %v4597_v56 = vmul.f32 %v12724_v10, %v4579_v24  ;;  %v4811_v60 = vmul.f32 %v16386_v37, %v4793_v19  ;;  %v4613_v14 = vadd.f32 %v12961_v27, %v4595_v6 }
 0x6aa   : > { %v4279_v52 = vunpack.c.l.b16 %v4178_v61  ;;  %v4505_v15 = vunpack.c.l.b16 %v4416_v28  ;;  %v4506_v57 = vunpack.c.l.b16 %v4417_v29  ;;  %v4628_v33 = vpack.c.bf16 %v4612_v12, %v4612_v12 }
 0x6ab   : > { %v4827_v49 = vadd.f32 %v12972_v50, %v4809_v1  ;;  %v4842_v40 = vpack.c.bf16 %v4826_v53, %v4826_v53  ;;  %v4629_v31 = vpack.c.bf16 %v4613_v14, %v4613_v14  ;;  %v4615_v5 = vadd.f32 %v12961_v27, %v4597_v56 }
 0x6ac   : > { %v4284_v43 = vpack.c.b16 %v4280_v58, %v4279_v52  ;;  %v4510_v8 = vpack.c.b16 %v4506_v57, %v4505_v15  ;;  %v4717_v36 = vunpack.c.l.b16 %v4628_v33  ;;  %v4829_v59 = vadd.f32 %v12972_v50, %v4811_v60 }
 0x6ad   : > { %v4843_v7 = vpack.c.bf16 %v4827_v49, %v4827_v49  ;;  %v4931_v0 = vunpack.c.l.b16 %v4842_v40  ;;  %v4718_v2 = vunpack.c.l.b16 %v4629_v31  ;;  %v4578_v30 = vmul.f32 %v13512_v44, %v13345_v16 }
 0x6ae   : > { %v4792_v54 = vmul.f32 %v13512_v44, %v13348_v20  ;;  %v4631_v61 = vpack.c.bf16 %v4615_v5, %v4615_v5  ;;  %v4845_v52 = vpack.c.bf16 %v4829_v59, %v4829_v59 }
 0x6af   : > { %v13532_v35 = vpop.f32.mrf.mxu2  ;;  %v4932_v4 = vunpack.c.l.b16 %v4843_v7  ;;  %v4723_v32 = vpack.c.b16 %v4718_v2, %v4717_v36 }
 0x6b0   : > { %v4810_v3 = vmul.f32 %v16386_v37, %v4792_v54  ;;  %v4720_v20 = vunpack.c.l.b16 %v4631_v61 }
 0x6b2   : > { %v4828_v28 = vadd.f32 %v12972_v50, %v4810_v3 }
 0x6b3   : > { %8078 = vmatmul.msk.bf16.gmra.mxu3 %vm1873_vm2, %v4284_v43  ;;  %8086 = vmatmul.msk.bf16.gmra.mxu1 %vm1873_vm2, %v4510_v8  ;;  %v4934_v8 = vunpack.c.l.b16 %v4845_v52 }
 0x6b4   : > { %v4844_v15 = vpack.c.bf16 %v4828_v28, %v4828_v28 }
 0x6b5   : > { %v4481_v18 = vpop.f32.mrf.mxu0 }
 0x6b6   : > { %v4933_v44 = vunpack.c.l.b16 %v4844_v15 }
 0x6b9   : > { %v4544_v57 = vpop.f32.mrf.mxu1 }
 0x6bb   : > { %v13536_v51 = vpop.f32.mrf.mxu2 }
 0x6bc   : > { %v13602_v53 = vpop.f32.mrf.mxu3 }
 0x6bd   : > { %v4483_v63 = vpop.f32.mrf.mxu0 }
 0x6be   : > { %v8557_v26 = vpack.i.bf16 %v4483_v63, %v4481_v18 }
 0x6c0   : > { %8558 = vrot.lane.b32.xlu1 %v8557_v26, %s16112_s25 }
 0x6c1   : > { %v4546_v50 = vpop.f32.mrf.mxu1 }
 0x6c2   : > { %v8587_v11 = vpack.i.bf16 %v4546_v50, %v4544_v57  ;;  %v8332_v57 = vld [vmem:[%s9836_s12 + $0x30] sm:$0xff] }
 0x6c3   : > { %8091 = vmatmul.msk.bf16.vlgmr.msrb.gmra.mxu3 %vm1873_vm2, %v4721_v23  ;;  %8099 = vmatmul.msk.bf16.vlgmr.msra.gmra.mxu1 %vm1873_vm2, %v4935_v13  ;;  %v13567_v42 = vpop.f32.mrf.mxu2  ;;  %v4937_v23 = vpack.c.b16 %v4932_v4, %v4931_v0  ;;  %v4596_v13 = vmul.f32 %v12724_v10, %v4578_v30  ;;  %v4938_v10 = vpack.c.b16 %v4934_v8, %v4933_v44 }
 0x6c4   : > { %v13606_v49 = vpop.f32.mrf.mxu3 }
 0x6c5   : > { %v4614_v29 = vadd.f32 %v12961_v27, %v4596_v13 }
 0x6c7   : > { %v4630_v58 = vpack.c.bf16 %v4614_v29, %v4614_v29 }
 0x6c9   : > { %v4719_v43 = vunpack.c.l.b16 %v4630_v58  ;;  %v8333_v58 = vld [vmem:[%s9836_s12 + $0x38] sm:$0xff] }
 0x6ca   : > { %5309 = vmatpush.bf16.msra.mxu2 %v8333_v58 }
 0x6cb   : > { %v4724_v63 = vpack.c.b16 %v4720_v20, %v4719_v43  ;;  %v8331_v20 = vld [vmem:[%s9836_s12 + $0x28] sm:$0xff] }
 0x6ce   : > { %v4486_v38 = vpop.f32.mrf.mxu0  ;;  %5310 = vmatpush.bf16.msra.mxu2 %v8332_v57 }
 0x6d2   : > { %5311 = vmatpush.bf16.msra.mxu2 %v8331_v20 }
 0x6d3   : > { %8092 = vmatmul.msk.bf16.gmra.mxu3 %vm1873_vm2, %v4722_v34  ;;  %8100 = vmatmul.msk.bf16.gmra.mxu1 %vm1873_vm2, %v4936_v41 }
 0x6d4   : > { %v13579_v16 = vpop.f32.mrf.mxu2 }
 0x6d6   : > { %v4488_v18 = vpop.f32.mrf.mxu0 }
 0x6d7   : > { %v8572_v26 = vpack.i.bf16 %v4488_v18, %v4486_v38 }
 0x6d9   : > { %8573 = vrot.lane.b32.xlu1 %v8572_v26, %s16112_s25 }
 0x6dc   : > { %v13590_v27 = vpop.f32.mrf.mxu2 }
 0x6e0   : > { %v4899_v37 = vpop.f32.mrf.mxu0 }
 0x6e1   : > { %8588 = vrot.lane.b32.xlu1 %v8587_v11, %s16112_s25 }
 0x6e3   : > { %8093 = vmatmul.msk.bf16.gmra.mxu3 %vm1873_vm2, %v4723_v32  ;;  %8101 = vmatmul.msk.bf16.gmra.mxu1 %vm1873_vm2, %v4937_v23 }
 0x6e4   : > { %v4685_v21 = vpop.f32.mrf.mxu2  ;;  %v8529_v50 = vpop.permute.xlu1 %8528 }
 0x6e8   : > { %v4901_v24 = vpop.f32.mrf.mxu0 }
 0x6e9   : > { %v8537_v19 = vpack.i.bf16 %v4901_v24, %v4899_v37 }
 0x6eb   : > { %8538 = vrot.lane.b32.xlu0 %v8537_v19, %s16106_s18 }
 0x6ec   : > { %v4549_v62 = vpop.f32.mrf.mxu1  ;;  %v4687_v9 = vpop.f32.mrf.mxu2 }
 0x6ed   : > { %v8532_v47 = vpack.i.bf16 %v4687_v9, %v4685_v21  ;;  %v8328_v21 = vld [vmem:[%s9836_s12 + $0x10] sm:$0xff]  ;;  %v8530_v9 = vunpack.i.l.bf16 %v8529_v50 }
 0x6ef   : > { %8533 = vrot.lane.b32.xlu2 %v8532_v47, %s9532_s26 }
 0x6f0   : > { %v4904_v34 = vpop.f32.mrf.mxu0 }
 0x6f1   : > { %v13608_v36 = vpop.f32.mrf.mxu3 }
 0x6f3   : > { %8094 = vmatmul.msk.bf16.gmra.mxu3 %vm1873_vm2, %v4724_v63  ;;  %8102 = vmatmul.msk.bf16.gmra.mxu1 %vm1873_vm2, %v4938_v10  ;;  %v8330_v63 = vld [vmem:[%s9836_s12 + $0x20] sm:$0xff]  ;;  %v8329_v10 = vld [vmem:[%s9836_s12 + $0x18] sm:$0xff] }
 0x6f4   : > { %v4551_v45 = vpop.f32.mrf.mxu1  ;;  %5312 = vmatpush.bf16.msra.mxu2 %v8330_v63 }
 0x6f5   : > { %v4690_v41 = vpop.f32.mrf.mxu2  ;;  %v8602_v55 = vpack.i.bf16 %v4551_v45, %v4549_v62  ;;  %v8531_v62 = vunpack.i.h.bf16 %v8529_v50  ;;  %v8327_v45 = vld [vmem:[%s9836_s12 + $0x8] sm:$0xff] }
 0x6f7   : > { %8603 = vrot.lane.b32.xlu1 %v8602_v55, %s16112_s25 }
 0x6f8   : > { %v4906_v17 = vpop.f32.mrf.mxu0  ;;  %5313 = vmatpush.bf16.msra.mxu2 %v8329_v10 }
 0x6f9   : > { %v8552_v22 = vpack.i.bf16 %v4906_v17, %v4904_v34  ;;  %v13612_v2 = vpop.f32.mrf.mxu3  ;;  %v5184_v17 = vsel %vm1726_vm1, %v13487_v39, %v8530_v9 }
 0x6fb   : > { %8553 = vrot.lane.b32.xlu0 %v8552_v22, %s16106_s18  ;;  %v5185_v22 = vsel %vm1726_vm1, %v13510_v46, %v8531_v62 }
 0x6fc   : > { %5314 = vmatpush.bf16.msra.mxu2 %v8328_v21 }
 0x6fd   : > { %v4692_v25 = vpop.f32.mrf.mxu2 }
 0x6fe   : > { %v8547_v6 = vpack.i.bf16 %v4692_v25, %v4690_v41 }
 0x700   : > { %v4909_v12 = vpop.f32.mrf.mxu0  ;;  %8548 = vrot.lane.b32.xlu2 %v8547_v6, %s9532_s26  ;;  %5315 = vmatpush.bf16.msra.mxu2 %v8327_v45 }
 0x705   : > { %v4695_v1 = vpop.f32.mrf.mxu2 }
 0x708   : > { %v4911_v56 = vpop.f32.mrf.mxu0 }
 0x709   : > { %v8567_v60 = vpack.i.bf16 %v4911_v56, %v4909_v12 }
 0x70b   : > { %8568 = vrot.lane.b32.xlu0 %v8567_v60, %s16106_s18 }
 0x70d   : > { %v4697_v14 = vpop.f32.mrf.mxu2 }
 0x70e   : > { %v8562_v33 = vpack.i.bf16 %v4697_v14, %v4695_v1 }
 0x710   : > { %8563 = vrot.lane.b32.xlu2 %v8562_v33, %s9532_s26  ;;  %v4914_v40 = vpop.f32.mrf.mxu0  ;;  %v8326_v33 = vld [vmem:[%s9836_s12] sm:$0xff]  ;;  %s16423_s12 = scalar_lea.vmem [#allocation17], %s9806_s5 }
 0x711   : > { %5316 = vmatpush.bf16.msra.mxu2 %v8326_v33 }
 0x715   : > { %v4700_v31 = vpop.f32.mrf.mxu2 }
 0x718   : > { %v4916_v7 = vpop.f32.mrf.mxu0 }
 0x719   : > { %v8582_v0 = vpack.i.bf16 %v4916_v7, %v4914_v40 }
 0x71b   : > { %8583 = vrot.lane.b32.xlu0 %v8582_v0, %s16106_s18 }
 0x71d   : > { %v4702_v5 = vpop.f32.mrf.mxu2 }
 0x71e   : > { %v8577_v59 = vpack.i.bf16 %v4702_v5, %v4700_v31  ;;  %v8544_v31 = vpop.permute.xlu1 %8543 }
 0x720   : > { %8578 = vrot.lane.b32.xlu2 %v8577_v59, %s9532_s26  ;;  %v4554_v4 = vpop.f32.mrf.mxu1  ;;  %v8546_v59 = vunpack.i.h.bf16 %v8544_v31 }
 0x726   : > { %v13614_v30 = vpop.f32.mrf.mxu3 }
 0x728   : > { %v4556_v54 = vpop.f32.mrf.mxu1 }
 0x729   : > { %v8617_v38 = vpack.i.bf16 %v4556_v54, %v4554_v4  ;;  %v8545_v4 = vunpack.i.l.bf16 %v8544_v31 }
 0x72b   : > { %8618 = vrot.lane.b32.xlu1 %v8617_v38, %s16112_s25 }
 0x72e   : > { %v13617_v32 = vpop.f32.mrf.mxu3 }
 0x730   : > { %v4559_v23 = vpop.f32.mrf.mxu1 }
 0x732   : > { %v8559_v63 = vpop.permute.xlu1 %8558 }
 0x733   : > { %v8561_v50 = vunpack.i.h.bf16 %v8559_v63 }
 0x735   : > { %v5189_v9 = vsel %vm1726_vm1, %v13567_v42, %v8561_v50 }
 0x736   : > { %v13619_v13 = vpop.f32.mrf.mxu3 }
 0x738   : > { %v4561_v3 = vpop.f32.mrf.mxu1 }
 0x739   : > { %v8632_v29 = vpack.i.bf16 %v4561_v3, %v4559_v23 }
 0x73b   : > { %8633 = vrot.lane.b32.xlu1 %v8632_v29, %s16112_s25  ;;  %v5186_v29 = vsel %vm1726_vm1, %v13530_v48, %v8545_v4  ;;  %s16531_s25 = sld [smem:[#allocation146_spill]] }
 0x73e   : > { %v13622_v61 = vpop.f32.mrf.mxu3 }
 0x740   : > { %v4972_v28 = vpop.f32.mrf.mxu1 }
 0x741   : > { %s7639_s30 = sshll.u32 %s16531_s25, 4  ;;  %s7640_s30 = int_to_ptr.hbm [resolvable:$true] %s7639_s30 }
 0x746   : > { %v4758_v52 = vpop.f32.mrf.mxu3 }
 0x748   : > { %v4974_v15 = vpop.f32.mrf.mxu1 }
 0x749   : > { %v8597_v43 = vpack.i.bf16 %v4974_v15, %v4972_v28  ;;  %v8534_v37 = vpop.permute.xlu2 %8533  ;;  %v5187_v28 = vsel %vm1726_vm1, %v13532_v35, %v8546_v59 }
 0x74a   : > { %v8536_v47 = vunpack.i.h.bf16 %v8534_v37  ;;  %v8535_v34 = vunpack.i.l.bf16 %v8534_v37  ;;  %v8560_v37 = vunpack.i.l.bf16 %v8559_v63 }
 0x74b   : > { %8598 = vrot.lane.b32.xlu0 %v8597_v43, %s16106_s18 }
 0x74c   : > { %v5201_v6 = vsel %vm1873_vm2, %v5185_v22, %v8536_v47  ;;  %v5200_v12 = vsel %vm1873_vm2, %v5184_v17, %v8535_v34  ;;  %v5188_v62 = vsel %vm1726_vm1, %v13536_v51, %v8560_v37 }
 0x74e   : > { %v4760_v44 = vpop.f32.mrf.mxu3 }
 0x74f   : > { %v8592_v8 = vpack.i.bf16 %v4760_v44, %v4758_v52 }
 0x750   : > { %v4977_v18 = vpop.f32.mrf.mxu1 }
 0x751   : > { %8593 = vrot.lane.b32.xlu2 %v8592_v8, %s9532_s26 }
 0x756   : > { %v4763_v26 = vpop.f32.mrf.mxu3 }
 0x758   : > { %v4979_v11 = vpop.f32.mrf.mxu1 }
 0x759   : > { %v8612_v24 = vpack.i.bf16 %v4979_v11, %v4977_v18 }
 0x75a   : > { %v8549_v46 = vpop.permute.xlu2 %8548 }
 0x75b   : > { %8613 = vrot.lane.b32.xlu0 %v8612_v24, %s16106_s18  ;;  %v8551_v54 = vunpack.i.h.bf16 %v8549_v46  ;;  %v8550_v38 = vunpack.i.l.bf16 %v8549_v46 }
 0x75d   : > { %v8539_v19 = vpop.permute.xlu0 %8538  ;;  %v5203_v58 = vsel %vm1873_vm2, %v5187_v28, %v8551_v54  ;;  %v5202_v15 = vsel %vm1873_vm2, %v5186_v29, %v8550_v38 }
 0x75e   : > { %v8541_v41 = vunpack.i.h.bf16 %v8539_v19  ;;  %v8540_v55 = vunpack.i.l.bf16 %v8539_v19  ;;  %v4765_v25 = vpop.f32.mrf.mxu3 }
 0x75f   : > { %v8607_v1 = vpack.i.bf16 %v4765_v25, %v4763_v26  ;;  %v8574_v25 = vpop.permute.xlu1 %8573 }
 0x760   : > { %v4982_v56 = vpop.f32.mrf.mxu1  ;;  %v5218_v60 = vsel %vm5216_vm9, %v5201_v6, %v8541_v41  ;;  %v5217_v14 = vsel %vm5216_vm9, %v5200_v12, %v8540_v55  ;;  %v8576_v12 = vunpack.i.h.bf16 %v8574_v25 }
 0x761   : > { %8608 = vrot.lane.b32.xlu2 %v8607_v1, %s9532_s26  ;;  %v5233_v40 = vpack.c.bf16 %v5218_v60, %v5217_v14  ;;  %v8575_v1 = vunpack.i.l.bf16 %v8574_v25 }
 0x763   : > { %5317 = vmatmul.bf16.vlgmr.msra.gmra.mxu2 %v5233_v40  ;;  %v5190_v33 = vsel %vm1726_vm1, %v13579_v16, %v8575_v1  ;;  %v5191_v40 = vsel %vm1726_vm1, %v13590_v27, %v8576_v12 }
 0x766   : > { %v4768_v39 = vpop.f32.mrf.mxu3 }
 0x768   : > { %v4984_v7 = vpop.f32.mrf.mxu1 }
 0x769   : > { %v8627_v0 = vpack.i.bf16 %v4984_v7, %v4982_v56 }
 0x76a   : > { %v8564_v48 = vpop.permute.xlu2 %8563 }
 0x76b   : > { %8628 = vrot.lane.b32.xlu0 %v8627_v0, %s16106_s18  ;;  %v8566_v11 = vunpack.i.h.bf16 %v8564_v48  ;;  %v8565_v21 = vunpack.i.l.bf16 %v8564_v48 }
 0x76d   : > { %v8554_v5 = vpop.permute.xlu0 %8553  ;;  %v5205_v34 = vsel %vm1873_vm2, %v5189_v9, %v8566_v11  ;;  %v5204_v45 = vsel %vm1873_vm2, %v5188_v62, %v8565_v21 }
 0x76e   : > { %v8556_v23 = vunpack.i.h.bf16 %v8554_v5  ;;  %v8555_v3 = vunpack.i.l.bf16 %v8554_v5  ;;  %v4770_v52 = vpop.f32.mrf.mxu3  ;;  %v8589_v5 = vpop.permute.xlu1 %8588 }
 0x76f   : > { %v8622_v57 = vpack.i.bf16 %v4770_v52, %v4768_v39  ;;  %v8591_v4 = vunpack.i.h.bf16 %v8589_v5  ;;  %v8590_v54 = vunpack.i.l.bf16 %v8589_v5 }
 0x770   : > { %v4987_v43 = vpop.f32.mrf.mxu1  ;;  %v5219_v20 = vsel %vm5216_vm9, %v5202_v15, %v8555_v3  ;;  %v5220_v44 = vsel %vm5216_vm9, %v5203_v58, %v8556_v23 }
 0x771   : > { %8623 = vrot.lane.b32.xlu2 %v8622_v57, %s9532_s26  ;;  %v5234_v8 = vpack.c.bf16 %v5220_v44, %v5219_v20  ;;  %v5193_v27 = vsel %vm1726_vm1, %v13606_v49, %v8591_v4  ;;  %v5192_v3 = vsel %vm1726_vm1, %v13602_v53, %v8590_v54 }
 0x773   : > { %5322 = vmatmul.bf16.gmra.mxu2 %v5234_v8 }
 0x776   : > { %v4773_v18 = vpop.f32.mrf.mxu3  ;;  %v8604_v20 = vpop.permute.xlu1 %8603 }
 0x777   : > { %v8606_v8 = vunpack.i.h.bf16 %v8604_v20 }
 0x778   : > { %v4989_v10 = vpop.f32.mrf.mxu1 }
 0x779   : > { %v8642_v35 = vpack.i.bf16 %v4989_v10, %v4987_v43  ;;  %v5195_v53 = vsel %vm1726_vm1, %v13612_v2, %v8606_v8 }
 0x77a   : > { %v8579_v6 = vpop.permute.xlu2 %8578 }
 0x77b   : > { %8643 = vrot.lane.b32.xlu0 %v8642_v35, %s16106_s18  ;;  %v8581_v42 = vunpack.i.h.bf16 %v8579_v6  ;;  %v8580_v56 = vunpack.i.l.bf16 %v8579_v6 }
 0x77d   : > { %v8569_v26 = vpop.permute.xlu0 %8568  ;;  %v5207_v39 = vsel %vm1873_vm2, %v5191_v40, %v8581_v42  ;;  %v5206_v31 = vsel %vm1873_vm2, %v5190_v33, %v8580_v56  ;;  %v13698_v42 = vld [vmem:[%s16423_s12] ss:$0 sm:$0xff] }
 0x77e   : > { %v8571_v24 = vunpack.i.h.bf16 %v8569_v26  ;;  %v8570_v19 = vunpack.i.l.bf16 %v8569_v26  ;;  %v4775_v47 = vpop.f32.mrf.mxu3 }
 0x77f   : > { %v8637_v41 = vpack.i.bf16 %v4775_v47, %v4773_v18  ;;  %v8605_v18 = vunpack.i.l.bf16 %v8604_v20 }
 0x780   : > { %v5221_v55 = vsel %vm5216_vm9, %v5204_v45, %v8570_v19  ;;  %v5222_v17 = vsel %vm5216_vm9, %v5205_v34, %v8571_v24 }
 0x781   : > { %8638 = vrot.lane.b32.xlu2 %v8637_v41, %s9532_s26  ;;  %v5235_v22 = vpack.c.bf16 %v5222_v17, %v5221_v55  ;;  %v5194_v10 = vsel %vm1726_vm1, %v13608_v36, %v8605_v18  ;;  %v9075_v18 = vld [vmem:[#allocation23 + $0x20] sm:$0xff] }
 0x783   : > { %5327 = vmatmul.bf16.gmra.mxu2 %v5235_v22 }
 0x78d   : > { %v8584_v51 = vpop.permute.xlu0 %8583 }
 0x78e   : > { %v8586_v60 = vunpack.i.h.bf16 %v8584_v51  ;;  %v8585_v14 = vunpack.i.l.bf16 %v8584_v51 }
 0x790   : > { %v5223_v46 = vsel %vm5216_vm9, %v5206_v31, %v8585_v14  ;;  %v5224_v7 = vsel %vm5216_vm9, %v5207_v39, %v8586_v60  ;;  %v9071_v31 = vld [vmem:[#allocation23] sm:$0xff] }
 0x791   : > { %v5236_v0 = vpack.c.bf16 %v5224_v7, %v5223_v46 }
 0x793   : > { %5332 = vmatmul.bf16.gmra.mxu2 %v5236_v0 }
 0x79d   : > { %v8619_v19 = vpop.permute.xlu1 %8618 }
 0x79e   : > { %v8621_v9 = vunpack.i.h.bf16 %v8619_v19  ;;  %v8620_v2 = vunpack.i.l.bf16 %v8619_v19 }
 0x7a0   : > { %v5197_v45 = vsel %vm1726_vm1, %v13617_v32, %v8621_v9  ;;  %v5196_v41 = vsel %vm1726_vm1, %v13614_v30, %v8620_v2 }
 0x7ab   : > { %v8594_v59 = vpop.permute.xlu2 %8593 }
 0x7ac   : > { %v8596_v38 = vunpack.i.h.bf16 %v8594_v59  ;;  %v8595_v23 = vunpack.i.l.bf16 %v8594_v59 }
 0x7ad   : > { %v8634_v1 = vpop.permute.xlu1 %8633 }
 0x7ae   : > { %v5209_v52 = vsel %vm1873_vm2, %v5193_v27, %v8596_v38  ;;  %v5208_v58 = vsel %vm1873_vm2, %v5192_v3, %v8595_v23  ;;  %v8636_v56 = vunpack.i.h.bf16 %v8634_v1  ;;  %v8635_v60 = vunpack.i.l.bf16 %v8634_v1  ;;  %v9072_v3 = vld [vmem:[#allocation23 + $0x8] sm:$0xff]  ;;  %v9079_v1 = vld [vmem:[#allocation23 + $0x40] sm:$0xff] }
 0x7b0   : > { %v5199_v7 = vsel %vm1726_vm1, %v13622_v61, %v8636_v56  ;;  %v5198_v0 = vsel %vm1726_vm1, %v13619_v13, %v8635_v60 }
 0x7bb   : > { %v8609_v44 = vpop.permute.xlu2 %8608 }
 0x7bc   : > { %v8611_v49 = vunpack.i.h.bf16 %v8609_v44  ;;  %v8610_v63 = vunpack.i.l.bf16 %v8609_v44 }
 0x7bd   : > { %v8599_v16 = vpop.permute.xlu0 %8598 }
 0x7be   : > { %v8601_v29 = vunpack.i.h.bf16 %v8599_v16  ;;  %v8600_v28 = vunpack.i.l.bf16 %v8599_v16  ;;  %v5211_v50 = vsel %vm1873_vm2, %v5195_v53, %v8611_v49  ;;  %v5210_v37 = vsel %vm1873_vm2, %v5194_v10, %v8610_v63  ;;  %v9076_v53 = vld [vmem:[#allocation23 + $0x28] sm:$0xff] }
 0x7c0   : > { %v5225_v15 = vsel %vm5216_vm9, %v5208_v58, %v8600_v28  ;;  %v5226_v57 = vsel %vm5216_vm9, %v5209_v52, %v8601_v29  ;;  %v9073_v52 = vld [vmem:[#allocation23 + $0x10] sm:$0xff] }
 0x7c1   : > { %v5237_v43 = vpack.c.bf16 %v5226_v57, %v5225_v15 }
 0x7c3   : > { %5337 = vmatmul.bf16.gmra.mxu2 %v5237_v43  ;;  %v9074_v43 = vld [vmem:[#allocation23 + $0x18] sm:$0xff] }
 0x7cb   : > { %v8624_v62 = vpop.permute.xlu2 %8623 }
 0x7cc   : > { %v8626_v47 = vunpack.i.h.bf16 %v8624_v62  ;;  %v8625_v34 = vunpack.i.l.bf16 %v8624_v62 }
 0x7cd   : > { %v8614_v48 = vpop.permute.xlu0 %8613 }
 0x7ce   : > { %v8616_v35 = vunpack.i.h.bf16 %v8614_v48  ;;  %v8615_v26 = vunpack.i.l.bf16 %v8614_v48  ;;  %v5213_v22 = vsel %vm1873_vm2, %v5197_v45, %v8626_v47  ;;  %v5212_v25 = vsel %vm1873_vm2, %v5196_v41, %v8625_v34 }
 0x7d0   : > { %v5227_v11 = vsel %vm5216_vm9, %v5210_v37, %v8615_v26  ;;  %v5228_v21 = vsel %vm5216_vm9, %v5211_v50, %v8616_v35  ;;  %v9077_v50 = vld [vmem:[#allocation23 + $0x30] sm:$0xff] }
 0x7d1   : > { %v5238_v24 = vpack.c.bf16 %v5228_v21, %v5227_v11 }
 0x7d3   : > { %5342 = vmatmul.bf16.gmra.mxu2 %v5238_v24  ;;  %v16426_v24 = vld [vmem:[#allocation38_spill] sm:$0xff] }
 0x7db   : > { %v8639_v32 = vpop.permute.xlu2 %8638 }
 0x7dc   : > { %v8641_v14 = vunpack.i.h.bf16 %v8639_v32  ;;  %v8640_v33 = vunpack.i.l.bf16 %v8639_v32 }
 0x7dd   : > { %v8629_v36 = vpop.permute.xlu0 %8628 }
 0x7de   : > { %v8631_v55 = vunpack.i.h.bf16 %v8629_v36  ;;  %v8630_v17 = vunpack.i.l.bf16 %v8629_v36  ;;  %v5215_v4 = vsel %vm1873_vm2, %v5199_v7, %v8641_v14  ;;  %v5214_v54 = vsel %vm1873_vm2, %v5198_v0, %v8640_v33 }
 0x7e0   : > { %v5229_v6 = vsel %vm5216_vm9, %v5212_v25, %v8630_v17  ;;  %v5230_v51 = vsel %vm5216_vm9, %v5213_v22, %v8631_v55  ;;  %v9078_v55 = vld [vmem:[#allocation23 + $0x38] sm:$0xff] }
 0x7e1   : > { %v5239_v12 = vpack.c.bf16 %v5230_v51, %v5229_v6 }
 0x7e3   : > { %5347 = vmatmul.bf16.gmra.mxu2 %v5239_v12 }
 0x7e6   : > { %v5318_v30 = vpop.f32.mrf.mxu2 }
 0x7e7   : > { %v5319_v40 = vadd.f32 %v13698_v42, %v5318_v30 }
 0x7e9   : > { %v13701_v46 = vadd.f32 %v9071_v31, %v5319_v40 }
 0x7eb   : > { %5376 = vadd.xlane.f32.xlu1 %v13701_v46 }
 0x7ed   : > { %v8644_v39 = vpop.permute.xlu0 %8643 }
 0x7ee   : > { %v8646_v5 = vunpack.i.h.bf16 %v8644_v39  ;;  %v8645_v59 = vunpack.i.l.bf16 %v8644_v39  ;;  %v5320_v27 = vpop.f32.mrf.mxu2  ;;  %v9080_v39 = vld [vmem:[#allocation23 + $0x48] sm:$0xff] }
 0x7ef   : > { %v5321_v61 = vadd.f32 %v13698_v42, %v5320_v27 }
 0x7f0   : > { %v5231_v38 = vsel %vm5216_vm9, %v5214_v54, %v8645_v59  ;;  %v5232_v23 = vsel %vm5216_vm9, %v5215_v4, %v8646_v5 }
 0x7f1   : > { %v5240_v16 = vpack.c.bf16 %v5232_v23, %v5231_v38  ;;  %v13713_v29 = vadd.f32 %v9072_v3, %v5321_v61  ;;  %v9081_v38 = vld [vmem:[#allocation23 + $0x50] sm:$0xff] }
 0x7f3   : > { %5352 = vmatmul.bf16.gmra.mxu2 %v5240_v16  ;;  %5378 = vadd.xlane.f32.xlu2 %v13713_v29 }
 0x7f6   : > { %v5323_v13 = vpop.f32.mrf.mxu2 }
 0x7f7   : > { %v5324_v28 = vadd.f32 %v13698_v42, %v5323_v13 }
 0x7f9   : > { %v13717_v58 = vadd.f32 %v9073_v52, %v5324_v28  ;;  %v9082_v52 = vld [vmem:[#allocation23 + $0x58] sm:$0xff] }
 0x7fb   : > { %5380 = vadd.xlane.f32.xlu0 %v13717_v58 }
 0x7fe   : > { %v5325_v15 = vpop.f32.mrf.mxu2 }
 0x7ff   : > { %v5326_v57 = vadd.f32 %v13698_v42, %v5325_v15 }
 0x801   : > { %v13721_v20 = vadd.f32 %v9074_v43, %v5326_v57 }
 0x803   : > { %5382 = vadd.xlane.f32.xlu1 %v13721_v20 }
 0x806   : > { %v5328_v44 = vpop.f32.mrf.mxu2 }
 0x807   : > { %v5329_v8 = vadd.f32 %v13698_v42, %v5328_v44 }
 0x809   : > { %v13725_v49 = vadd.f32 %v9075_v18, %v5329_v8 }
 0x80b   : > { %5384 = vadd.xlane.f32.xlu2 %v13725_v49 }
 0x80e   : > { %v5330_v63 = vpop.f32.mrf.mxu2 }
 0x80f   : > { %v5331_v48 = vadd.f32 %v13698_v42, %v5330_v63 }
 0x811   : > { %v13729_v10 = vadd.f32 %v9076_v53, %v5331_v48  ;;  %v9083_v48 = vld [vmem:[#allocation23 + $0x60] sm:$0xff] }
 0x813   : > { %16424 = vst [vmem:[#allocation79_spill] sm:$0xff] %v13729_v10  ;;  %5386 = vadd.xlane.f32.xlu0 %v13729_v10 }
 0x816   : > { %v5333_v35 = vpop.f32.mrf.mxu2 }
 0x817   : > { %v5334_v26 = vadd.f32 %v13698_v42, %v5333_v35 }
 0x819   : > { %v13733_v37 = vadd.f32 %v9077_v50, %v5334_v26  ;;  %v9084_v50 = vld [vmem:[#allocation23 + $0x68] sm:$0xff] }
 0x81b   : > { %16425 = vst [vmem:[#allocation134_spill] sm:$0xff] %v13733_v37  ;;  %5388 = vadd.xlane.f32.xlu0 %v13733_v37 }
 0x81e   : > { %v5335_v11 = vpop.f32.mrf.mxu2 }
 0x81f   : > { %v5336_v34 = vadd.f32 %v13698_v42, %v5335_v11 }
 0x821   : > { %v13747_v17 = vadd.f32 %v9078_v55, %v5336_v34  ;;  %v8349_v34 = vld [vmem:[%s9851_s24 + $0x74] sm:$0xf0]  ;;  %v8195_v55 = vld [vmem:[%s9851_s24 + $0x78] sm:$0xf0] }
 0x823   : > { %16427 = vst [vmem:[#allocation81_spill] sm:$0xff] %v13747_v17 }
 0x846   : > { %v5338_v62 = vpop.f32.mrf.mxu2 }
 0x847   : > { %v5339_v6 = vadd.f32 %v13698_v42, %v5338_v62  ;;  %v9085_v62 = vld [vmem:[#allocation23 + $0x70] sm:$0xff] }
 0x849   : > { %v13757_v32 = vadd.f32 %v9079_v1, %v5339_v6  ;;  %v8185_v1 = vld [vmem:[%s9851_s24 + $0x60] sm:$0xf] }
 0x84b   : > { %16428 = vst [vmem:[#allocation80_spill] sm:$0xff] %v13757_v32 }
 0x84e   : > { %v5340_v41 = vpop.f32.mrf.mxu2 }
 0x84f   : > { %v5341_v14 = vadd.f32 %v13698_v42, %v5340_v41 }
 0x851   : > { %v13767_v31 = vadd.f32 %v9080_v39, %v5341_v14  ;;  %v8187_v14 = vld [vmem:[%s9851_s24 + $0x68] sm:$0xf0] }
 0x853   : > { %16429 = vst [vmem:[#allocation120_spill] sm:$0xff] %v13767_v31 }
 0x856   : > { %v5343_v60 = vpop.f32.mrf.mxu2 }
 0x857   : > { %v5344_v59 = vadd.f32 %v13698_v42, %v5343_v60 }
 0x859   : > { %v13777_v23 = vadd.f32 %v9081_v38, %v5344_v59  ;;  %v8169_v38 = vld [vmem:[%s9851_s24 + $0x40] sm:$0xf] }
 0x85b   : > { %16430 = vst [vmem:[#allocation62_spill] sm:$0xff] %v13777_v23 }
 0x85e   : > { %v5377_v21 = vpop.xlane.xlu1 %5376  ;;  %v5345_v0 = vpop.f32.mrf.mxu2 }
 0x85f   : > { %v5408_v19 = vmul.f32 %v5377_v21, %v16426_v24  ;;  %v5346_v61 = vadd.f32 %v13698_v42, %v5345_v0  ;;  %v8344_v0 = vld [vmem:[%s9851_s24 + $0x54] sm:$0xf] }
 0x861   : > { %v13738_v9 = vsub.f32 %v13701_v46, %v5408_v19  ;;  %v13787_v15 = vadd.f32 %v9082_v52, %v5346_v61 }
 0x863   : > { %v5440_v2 = vmul.f32 %v13738_v9, %v13738_v9  ;;  %16431 = vst [vmem:[#allocation96_spill] sm:$0xff] %v13787_v15 }
 0x865   : > { %5456 = vadd.xlane.f32.xlu1 %v5440_v2 }
 0x866   : > { %v5379_v47 = vpop.xlane.xlu2 %5378  ;;  %v5348_v13 = vpop.f32.mrf.mxu2 }
 0x867   : > { %v5409_v36 = vmul.f32 %v5379_v47, %v16426_v24  ;;  %v5349_v44 = vadd.f32 %v13698_v42, %v5348_v13  ;;  %v8193_v47 = vld [vmem:[%s9851_s24 + $0x70] sm:$0xf]  ;;  %v8171_v13 = vld [vmem:[%s9851_s24 + $0x48] sm:$0xf0] }
 0x868   : > { %v8194_v41 = vor.u32 %v8349_v34, %v8193_v47 }
 0x869   : > { %v13745_v45 = vsub.f32 %v13713_v29, %v5409_v36  ;;  %v13797_v53 = vadd.f32 %v9083_v48, %v5349_v44  ;;  %v8348_v36 = vld [vmem:[%s9851_s24 + $0x74] sm:$0xf] }
 0x86a   : > { %5844 = vmatpush.bf16.msra.mxu3 %v8194_v41  ;;  %v8153_v41 = vld [vmem:[%s9851_s24 + $0x20] sm:$0xf] }
 0x86b   : > { %v5441_v22 = vmul.f32 %v13745_v45, %v13745_v45  ;;  %16432 = vst [vmem:[#allocation113_spill] sm:$0xff] %v13797_v53 }
 0x86d   : > { %5458 = vadd.xlane.f32.xlu2 %v5441_v22  ;;  %5390 = vadd.xlane.f32.xlu1 %v13747_v17  ;;  %v8198_v22 = vor.u32 %v8348_v36, %v8195_v55  ;;  %v8339_v55 = vld [vmem:[%s9851_s24 + $0x24] sm:$0xf0] }
 0x86e   : > { %v5381_v25 = vpop.xlane.xlu0 %5380  ;;  %v5350_v63 = vpop.f32.mrf.mxu2 }
 0x86f   : > { %v5410_v51 = vmul.f32 %v5381_v25, %v16426_v24  ;;  %v5351_v26 = vadd.f32 %v13698_v42, %v5350_v63  ;;  %5893 = vmatpush.bf16.msrb.mxu0 %v8198_v22 }
 0x871   : > { %v13755_v12 = vsub.f32 %v13717_v58, %v5410_v51  ;;  %v13803_v11 = vadd.f32 %v9084_v50, %v5351_v26  ;;  %v8341_v26 = vld [vmem:[%s9851_s24 + $0x34] sm:$0xf0] }
 0x873   : > { %v5442_v56 = vmul.f32 %v13755_v12, %v13755_v12  ;;  %16433 = vst [vmem:[#allocation122_spill] sm:$0xff] %v13803_v11 }
 0x875   : > { %5460 = vadd.xlane.f32.xlu2 %v5442_v56  ;;  %5392 = vadd.xlane.f32.xlu1 %v13757_v32  ;;  %v8347_v56 = vld [vmem:[%s9851_s24 + $0x64] sm:$0xf0] }
 0x876   : > { %v5383_v30 = vpop.xlane.xlu1 %5382  ;;  %v5353_v21 = vpop.f32.mrf.mxu2  ;;  %v8186_v60 = vor.u32 %v8347_v56, %v8185_v1  ;;  %v8338_v1 = vld [vmem:[%s9851_s24 + $0x24] sm:$0xf]  ;;  %v8155_v56 = vld [vmem:[%s9851_s24 + $0x28] sm:$0xf0] }
 0x877   : > { %v5411_v33 = vmul.f32 %v5383_v30, %v16426_v24  ;;  %v5354_v19 = vadd.f32 %v13698_v42, %v5353_v21  ;;  %v8346_v30 = vld [vmem:[%s9851_s24 + $0x64] sm:$0xf]  ;;  %v8340_v21 = vld [vmem:[%s9851_s24 + $0x34] sm:$0xf] }
 0x878   : > { %v8190_v39 = vor.u32 %v8346_v30, %v8187_v14  ;;  %5845 = vmatpush.bf16.msra.mxu3 %v8186_v60 }
 0x879   : > { %v13765_v40 = vsub.f32 %v13721_v20, %v5411_v33  ;;  %v13807_v2 = vadd.f32 %v9085_v62, %v5354_v19  ;;  %v8177_v33 = vld [vmem:[%s9851_s24 + $0x50] sm:$0xf]  ;;  %v8163_v19 = vld [vmem:[%s9851_s24 + $0x38] sm:$0xf0] }
 0x87a   : > { %5894 = vmatpush.bf16.msrb.mxu0 %v8190_v39  ;;  %v8166_v36 = vor.u32 %v8340_v21, %v8163_v19 }
 0x87b   : > { %v5443_v7 = vmul.f32 %v13765_v40, %v13765_v40  ;;  %16434 = vst [vmem:[#allocation123_spill] sm:$0xff] %v13807_v2 }
 0x87d   : > { %5394 = vadd.xlane.f32.xlu2 %v13767_v31  ;;  %5462 = vadd.xlane.f32.xlu0 %v5443_v7  ;;  %v8345_v7 = vld [vmem:[%s9851_s24 + $0x54] sm:$0xf0] }
 0x87e   : > { %v5385_v5 = vpop.xlane.xlu2 %5384  ;;  %v8178_v59 = vor.u32 %v8345_v7, %v8177_v33  ;;  %v8154_v33 = vor.u32 %v8339_v55, %v8153_v41  ;;  %v8139_v41 = vld [vmem:[%s9851_s24 + $0x8] sm:$0xf0] }
 0x87f   : > { %v5412_v4 = vmul.f32 %v5385_v5, %v16426_v24  ;;  %v8179_v5 = vld [vmem:[%s9851_s24 + $0x58] sm:$0xf0] }
 0x880   : > { %5846 = vmatpush.bf16.msra.mxu3 %v8178_v59  ;;  %v8145_v59 = vld [vmem:[%s9851_s24 + $0x10] sm:$0xf] }
 0x881   : > { %v13775_v54 = vsub.f32 %v13725_v49, %v5412_v4  ;;  %v8182_v4 = vor.u32 %v8344_v0, %v8179_v5  ;;  %v8158_v5 = vor.u32 %v8338_v1, %v8155_v56 }
 0x883   : > { %v5444_v16 = vmul.f32 %v13775_v54, %v13775_v54  ;;  %5895 = vmatpush.bf16.msrb.mxu0 %v8182_v4  ;;  %v8337_v4 = vld [vmem:[%s9851_s24 + $0x14] sm:$0xf0] }
 0x885   : > { %5396 = vadd.xlane.f32.xlu2 %v13777_v23  ;;  %5464 = vadd.xlane.f32.xlu0 %v5444_v16  ;;  %v8343_v16 = vld [vmem:[%s9851_s24 + $0x44] sm:$0xf0] }
 0x886   : > { %v5387_v27 = vpop.xlane.xlu0 %5386 }
 0x887   : > { %v5413_v3 = vmul.f32 %v5387_v27, %v16426_v24 }
 0x889   : > { %v13785_v28 = vsub.f32 %v13729_v10, %v5413_v3  ;;  %v8342_v3 = vld [vmem:[%s9851_s24 + $0x44] sm:$0xf] }
 0x88a   : > { %v8174_v48 = vor.u32 %v8342_v3, %v8171_v13  ;;  %v5355_v13 = vpop.f32.mrf.mxu2  ;;  %v8358_v10 = vld [vmem:[%s9857_s1 + $0x40] sm:$0xff] }
 0x88b   : > { %v5445_v57 = vmul.f32 %v13785_v28, %v13785_v28 }
 0x88c   : > { %5896 = vmatpush.bf16.msrb.mxu0 %v8174_v48 }
 0x88d   : > { %5466 = vadd.xlane.f32.xlu1 %v5445_v57  ;;  %5398 = vadd.xlane.f32.xlu0 %v13787_v15 }
 0x88e   : > { %v5389_v43 = vpop.xlane.xlu0 %5388 }
 0x88f   : > { %v5414_v8 = vmul.f32 %v5389_v43, %v16426_v24  ;;  %v8170_v43 = vor.u32 %v8343_v16, %v8169_v38 }
 0x890   : > { %5897 = vmatpush.bf16.msrb.mxu0 %v8166_v36  ;;  %v8334_v36 = vld [vmem:[%s9851_s24 + $0x4] sm:$0xf] }
 0x891   : > { %v13795_v18 = vsub.f32 %v13733_v37, %v5414_v8  ;;  %5847 = vmatpush.bf16.msra.mxu3 %v8170_v43 }
 0x893   : > { %v5446_v35 = vmul.f32 %v13795_v18, %v13795_v18 }
 0x894   : > { %5898 = vmatpush.bf16.msrb.mxu0 %v8158_v5 }
 0x895   : > { %5468 = vadd.xlane.f32.xlu1 %v5446_v35  ;;  %5400 = vadd.xlane.f32.xlu0 %v13797_v53  ;;  %v8161_v35 = vld [vmem:[%s9851_s24 + $0x30] sm:$0xf] }
 0x896   : > { %v8162_v34 = vor.u32 %v8341_v26, %v8161_v35  ;;  %v8137_v35 = vld [vmem:[%s9851_s24] sm:$0xf]  ;;  %v8335_v26 = vld [vmem:[%s9851_s24 + $0x4] sm:$0xf0] }
 0x898   : > { %5848 = vmatpush.bf16.msra.mxu3 %v8162_v34 }
 0x89c   : > { %5849 = vmatpush.bf16.msra.mxu3 %v8154_v33 }
 0x89d   : > { %5402 = vadd.xlane.f32.xlu1 %v13803_v11 }
 0x8a5   : > { %5404 = vadd.xlane.f32.xlu1 %v13807_v2 }
 0x8d8   : > { %v5457_v25 = vpop.xlane.xlu1 %5456 }
 0x8d9   : > { %v5488_v6 = vmul.f32 %v5457_v25, %v16426_v24 }
 0x8db   : > { %v13815_v51 = vadd.f32 1e-05, %v5488_v6 }
 0x8dd   : > { %8975 = vrsqrt.f32 %v13815_v51  ;;  %vm5526_vm2 = vweird.f32 %v13815_v51 }
 0x8e0   : > { %v5459_v27 = vpop.xlane.xlu2 %5458  ;;  %v5391_v61 = vpop.xlane.xlu1 %5390 }
 0x8e1   : > { %v5489_v52 = vmul.f32 %v5459_v27, %v16426_v24  ;;  %v5415_v57 = vmul.f32 %v5391_v61, %v16426_v24  ;;  %v8336_v27 = vld [vmem:[%s9851_s24 + $0x14] sm:$0xf]  ;;  %v8147_v61 = vld [vmem:[%s9851_s24 + $0x18] sm:$0xf0]  ;;  %s16438_s24 = scalar_lea.vmem [#allocation19], %s9806_s5 }
 0x8e2   : > { %v8150_v48 = vor.u32 %v8336_v27, %v8147_v61 }
 0x8e3   : > { %v13832_v44 = vpop.eup %8975  ;;  %v13834_v8 = vadd.f32 1e-05, %v5489_v52  ;;  %v13837_v63 = vsub.f32 %v13747_v17, %v5415_v57  ;;  %v8146_v57 = vor.u32 %v8337_v4, %v8145_v59  ;;  %v13901_v4 = vld [vmem:[%s16438_s24] ss:$0 sm:$0xff]  ;;  %v8352_v17 = vld [vmem:[%s9857_s1 + $0x10] sm:$0xff] }
 0x8e4   : > { %v5521_v50 = vmul.f32 %v13832_v44, %v13815_v51  ;;  %vm5527_vm1 = vweird.f32 %v13832_v44  ;;  %5899 = vmatpush.bf16.msrb.mxu0 %v8150_v48 }
 0x8e5   : > { %8977 = vrsqrt.f32 %v13834_v8  ;;  %v5447_v62 = vmul.f32 %v13837_v63, %v13837_v63  ;;  %vm13871_vm10 = vmor %vm5526_vm2, %vm5527_vm1  ;;  %5850 = vmatpush.bf16.msra.mxu3 %v8146_v57  ;;  %vm5536_vm12 = vweird.f32 %v13834_v8 }
 0x8e6   : > { %v5522_v47 = vmul.f32 %v13832_v44, %v5521_v50 }
 0x8e7   : > { %5470 = vadd.xlane.f32.xlu2 %v5447_v62  ;;  %v5356_v62 = vadd.f32 %v13698_v42, %v5355_v13 }
 0x8e8   : > { %v5523_v22 = vmul.f32 0.5, %v5522_v47  ;;  %v5461_v25 = vpop.xlane.xlu2 %5460  ;;  %v5393_v6 = vpop.xlane.xlu1 %5392 }
 0x8e9   : > { %v5490_v60 = vmul.f32 %v5461_v25, %v16426_v24  ;;  %v5416_v30 = vmul.f32 %v5393_v6, %v16426_v24  ;;  %v13886_v6 = vld [vmem:[%s9867_s29] ss:$0 sm:$0xff] }
 0x8ea   : > { %v5524_v14 = vsub.f32 1.5, %v5523_v22  ;;  %v8138_v22 = vor.u32 %v8335_v26, %v8137_v35 }
 0x8eb   : > { %v8978_v39 = vpop.eup %8977  ;;  %v13855_v7 = vadd.f32 1e-05, %v5490_v60  ;;  %v13858_v0 = vsub.f32 %v13757_v32, %v5416_v30  ;;  %v8142_v30 = vor.u32 %v8334_v36, %v8139_v41  ;;  %v8354_v32 = vld [vmem:[%s9857_s1 + $0x20] sm:$0xff] }
 0x8ec   : > { %v5525_v38 = vmul.f32 %v13832_v44, %v5524_v14  ;;  %v5531_v16 = vmul.f32 %v8978_v39, %v13834_v8  ;;  %vm5537_vm11 = vweird.f32 %v8978_v39  ;;  %v9086_v14 = vld [vmem:[#allocation23 + $0x78] sm:$0xff]  ;;  %5851 = vmatpush.bf16.msra.mxu3 %v8138_v22 }
 0x8ed   : > { %8979 = vrsqrt.f32 %v13855_v7  ;;  %v5448_v3 = vmul.f32 %v13858_v0, %v13858_v0  ;;  %v13894_v33 = vadd.f32 %v9086_v14, %v5356_v62  ;;  %vm5538_vm13 = vmor %vm5536_vm12, %vm5537_vm11  ;;  %5900 = vmatpush.bf16.msrb.mxu0 %v8142_v30  ;;  %vm5546_vm15 = vweird.f32 %v13855_v7 }
 0x8ee   : > { %v5532_v52 = vmul.f32 %v8978_v39, %v5531_v16  ;;  %v5529_v50 = vsel %vm13871_vm10, %v13832_v44, %v5525_v38 }
 0x8ef   : > { %5472 = vadd.xlane.f32.xlu2 %v5448_v3  ;;  %v5680_v44 = vmul.f32 %v5529_v50, %v13738_v9  ;;  %16437 = vst [vmem:[#allocation50_spill] sm:$0xff] %v13894_v33 }
 0x8f0   : > { %v5533_v51 = vmul.f32 0.5, %v5532_v52  ;;  %v5395_v21 = vpop.xlane.xlu2 %5394  ;;  %v5463_v19 = vpop.xlane.xlu0 %5462 }
 0x8f1   : > { %v5417_v47 = vmul.f32 %v5395_v21, %v16426_v24  ;;  %v5491_v34 = vmul.f32 %v5463_v19, %v16426_v24  ;;  %v5699_v8 = vmul.f32 %v13886_v6, %v5680_v44 }
 0x8f2   : > { %v5534_v55 = vsub.f32 1.5, %v5533_v51 }
 0x8f3   : > { %v8980_v25 = vpop.eup %8979  ;;  %v13890_v1 = vsub.f32 %v13767_v31, %v5417_v47  ;;  %v5507_v42 = vadd.f32 1e-05, %v5491_v34  ;;  %v5718_v43 = vadd.f32 %v13901_v4, %v5699_v8 }
 0x8f4   : > { %v5535_v56 = vmul.f32 %v8978_v39, %v5534_v55  ;;  %v5541_v60 = vmul.f32 %v8980_v25, %v13855_v7  ;;  %vm5547_vm14 = vweird.f32 %v8980_v25 }
 0x8f5   : > { %8981 = vrsqrt.f32 %v5507_v42  ;;  %v5449_v9 = vmul.f32 %v13890_v1, %v13890_v1  ;;  %vm5548_vm0 = vmor %vm5546_vm15, %vm5547_vm14  ;;  %vm5556_vm4 = vweird.f32 %v5507_v42 }
 0x8f6   : > { %v5539_v5 = vsel %vm5538_vm13, %v8978_v39, %v5535_v56  ;;  %v5542_v59 = vmul.f32 %v8980_v25, %v5541_v60 }
 0x8f7   : > { %v5681_v38 = vmul.f32 %v5539_v5, %v13745_v45  ;;  %5474 = vadd.xlane.f32.xlu0 %v5449_v9  ;;  %5406 = vadd.xlane.f32.xlu2 %v13894_v33 }
 0x8f8   : > { %v5543_v16 = vmul.f32 0.5, %v5542_v59  ;;  %v5397_v27 = vpop.xlane.xlu2 %5396  ;;  %v5465_v61 = vpop.xlane.xlu0 %5464 }
 0x8f9   : > { %v5700_v3 = vmul.f32 %v13886_v6, %v5681_v38  ;;  %v5418_v39 = vmul.f32 %v5397_v27, %v16426_v24  ;;  %v5492_v13 = vmul.f32 %v5465_v61, %v16426_v24 }
 0x8fa   : > { %v5544_v52 = vsub.f32 1.5, %v5543_v16 }
 0x8fb   : > { %v8982_v57 = vpop.eup %8981  ;;  %v5719_v48 = vadd.f32 %v13901_v4, %v5700_v3  ;;  %v13912_v45 = vsub.f32 %v13777_v23, %v5418_v39  ;;  %v5508_v35 = vadd.f32 1e-05, %v5492_v13 }
 0x8fc   : > { %v5545_v26 = vmul.f32 %v8980_v25, %v5544_v52  ;;  %v5551_v50 = vmul.f32 %v8982_v57, %v5507_v42  ;;  %vm5557_vm3 = vweird.f32 %v8982_v57 }
 0x8fd   : > { %8983 = vrsqrt.f32 %v5508_v35  ;;  %v5450_v51 = vmul.f32 %v13912_v45, %v13912_v45  ;;  %v5734_v21 = vpack.c.bf16 %v5719_v48, %v5718_v43  ;;  %vm5558_vm5 = vmor %vm5556_vm4, %vm5557_vm3  ;;  %vm5566_vm7 = vweird.f32 %v5508_v35 }
 0x8fe   : > { %v5552_v19 = vmul.f32 %v8982_v57, %v5551_v50  ;;  %v5549_v62 = vsel %vm5548_vm0, %v8980_v25, %v5545_v26 }
 0x8ff   : > { %5476 = vadd.xlane.f32.xlu0 %v5450_v51  ;;  %5852 = vmatmul.bf16.vlgmr.msra.gmra.mxu3 %v5734_v21  ;;  %v5682_v56 = vmul.f32 %v5549_v62, %v13755_v12 }
 0x900   : > { %v5553_v47 = vmul.f32 0.5, %v5552_v19  ;;  %5901 = vmatmul.bf16.vlgmr.msrb.gmra.mxu0 %v5734_v21  ;;  %v5399_v34 = vpop.xlane.xlu0 %5398  ;;  %v5467_v36 = vpop.xlane.xlu1 %5466 }
 0x901   : > { %v5419_v41 = vmul.f32 %v5399_v34, %v16426_v24  ;;  %v5493_v55 = vmul.f32 %v5467_v36, %v16426_v24  ;;  %v5701_v8 = vmul.f32 %v13886_v6, %v5682_v56 }
 0x902   : > { %v5554_v22 = vsub.f32 1.5, %v5553_v47 }
 0x903   : > { %v8984_v44 = vpop.eup %8983  ;;  %v13921_v7 = vsub.f32 %v13787_v15, %v5419_v41  ;;  %v5509_v60 = vadd.f32 1e-05, %v5493_v55  ;;  %v5720_v13 = vadd.f32 %v13901_v4, %v5701_v8  ;;  %v8357_v15 = vld [vmem:[%s9857_s1 + $0x38] sm:$0xff] }
 0x904   : > { %v5555_v30 = vmul.f32 %v8982_v57, %v5554_v22  ;;  %v5561_v25 = vmul.f32 %v8984_v44, %v5508_v35  ;;  %vm5567_vm6 = vweird.f32 %v8984_v44  ;;  %7498 = vmatpush.bf16.msrb.mxu1 %v8357_v15 }
 0x905   : > { %8985 = vrsqrt.f32 %v5509_v60  ;;  %v5451_v14 = vmul.f32 %v13921_v7, %v13921_v7  ;;  %vm5568_vm8 = vmor %vm5566_vm7, %vm5567_vm6  ;;  %vm5576_vm1 = vweird.f32 %v5509_v60 }
 0x906   : > { %v5559_v9 = vsel %vm5558_vm5, %v8982_v57, %v5555_v30  ;;  %v5562_v5 = vmul.f32 %v8984_v44, %v5561_v25 }
 0x907   : > { %v5683_v59 = vmul.f32 %v5559_v9, %v13765_v40  ;;  %5478 = vadd.xlane.f32.xlu1 %v5451_v14 }
 0x908   : > { %v5563_v12 = vmul.f32 0.5, %v5562_v5  ;;  %v5401_v38 = vpop.xlane.xlu0 %5400  ;;  %v5469_v16 = vpop.xlane.xlu1 %5468 }
 0x909   : > { %v5420_v27 = vmul.f32 %v5401_v38, %v16426_v24  ;;  %v5702_v42 = vmul.f32 %v13886_v6, %v5683_v59 }
 0x90a   : > { %v5564_v61 = vsub.f32 1.5, %v5563_v12 }
 0x90b   : > { %v8986_v3 = vpop.eup %8985  ;;  %v13930_v39 = vsub.f32 %v13797_v53, %v5420_v27  ;;  %v5721_v52 = vadd.f32 %v13901_v4, %v5702_v42 }
 0x90c   : > { %v5565_v40 = vmul.f32 %v8984_v44, %v5564_v61  ;;  %v5571_v57 = vmul.f32 %v8986_v3, %v5509_v60  ;;  %vm5577_vm9 = vweird.f32 %v8986_v3 }
 0x90d   : > { %v5735_v43 = vpack.c.bf16 %v5721_v52, %v5720_v13  ;;  %v5452_v48 = vmul.f32 %v13930_v39, %v13930_v39  ;;  %vm5578_vm2 = vmor %vm5576_vm1, %vm5577_vm9 }
 0x90e   : > { %v5572_v26 = vmul.f32 %v8986_v3, %v5571_v57  ;;  %v5569_v50 = vsel %vm5568_vm8, %v8984_v44, %v5565_v40 }
 0x90f   : > { %5857 = vmatmul.bf16.gmra.mxu3 %v5735_v43  ;;  %5480 = vadd.xlane.f32.xlu2 %v5452_v48  ;;  %v5684_v47 = vmul.f32 %v5569_v50, %v13775_v54 }
 0x910   : > { %v5573_v51 = vmul.f32 0.5, %v5572_v26  ;;  %5906 = vmatmul.bf16.gmra.mxu0 %v5735_v43  ;;  %v5403_v21 = vpop.xlane.xlu1 %5402 }
 0x911   : > { %v5421_v19 = vmul.f32 %v5403_v21, %v16426_v24  ;;  %v5703_v22 = vmul.f32 %v13886_v6, %v5684_v47 }
 0x912   : > { %v5574_v62 = vsub.f32 1.5, %v5573_v51 }
 0x913   : > { %v13939_v34 = vsub.f32 %v13803_v11, %v5421_v19  ;;  %v5722_v60 = vadd.f32 %v13901_v4, %v5703_v22 }
 0x914   : > { %v5575_v36 = vmul.f32 %v8986_v3, %v5574_v62 }
 0x915   : > { %v5453_v35 = vmul.f32 %v13939_v34, %v13939_v34 }
 0x916   : > { %v5579_v41 = vsel %vm5578_vm2, %v8986_v3, %v5575_v36 }
 0x917   : > { %v5685_v55 = vmul.f32 %v5579_v41, %v13785_v28  ;;  %5482 = vadd.xlane.f32.xlu0 %v5453_v35  ;;  %v5494_v28 = vmul.f32 %v5469_v16, %v16426_v24 }
 0x918   : > { %v5405_v44 = vpop.xlane.xlu1 %5404 }
 0x919   : > { %v5422_v56 = vmul.f32 %v5405_v44, %v16426_v24  ;;  %v5704_v54 = vmul.f32 %v13886_v6, %v5685_v55  ;;  %v5510_v5 = vadd.f32 1e-05, %v5494_v28 }
 0x91b   : > { %v13948_v30 = vsub.f32 %v13807_v2, %v5422_v56  ;;  %v5723_v25 = vadd.f32 %v13901_v4, %v5704_v54  ;;  %8987 = vrsqrt.f32 %v5510_v5  ;;  %vm5586_vm11 = vweird.f32 %v5510_v5  ;;  %v5758_v56 = vld [vmem:[%s9873_s8] sm:$0x3]  ;;  %s16509_s8 = sld [smem:[#allocation145_spill]] }
 0x91c   : > { %v13969_v54 = vperm.slane %v5758_v56, 1 }
 0x91d   : > { %v5736_v14 = vpack.c.bf16 %v5723_v25, %v5722_v60  ;;  %v5454_v9 = vmul.f32 %v13948_v30, %v13948_v30 }
 0x91f   : > { %5862 = vmatmul.bf16.gmra.mxu3 %v5736_v14  ;;  %5484 = vadd.xlane.f32.xlu1 %v5454_v9 }
 0x920   : > { %5911 = vmatmul.bf16.gmra.mxu0 %v5736_v14 }
 0x921   : > { %v8988_v59 = vpop.eup %8987  ;;  %s16510_s26 = scalar_lea.vmem %s16509_s8, %s9861_s16  ;;  %s9534_s16 = smov [#allocation23]  }
 0x922   : > { %v5581_v8 = vmul.f32 %v8988_v59, %v5510_v5  ;;  %vm5587_vm10 = vweird.f32 %v8988_v59  ;;  %s7637_s4 = sshll.u32 %s9534_s16, 4  ;;  %s7638_s4 = int_to_ptr.vmem [resolvable:$true] %s7637_s4 }
 0x923   : > { %vm5588_vm12 = vmor %vm5586_vm11, %vm5587_vm10 }
 0x924   : > { %v5582_v12 = vmul.f32 %v8988_v59, %v5581_v8 }
 0x926   : > { %v5583_v61 = vmul.f32 0.5, %v5582_v12 }
 0x928   : > { %v5584_v3 = vsub.f32 1.5, %v5583_v61 }
 0x92a   : > { %v5585_v40 = vmul.f32 %v8988_v59, %v5584_v3 }
 0x92c   : > { %v5589_v16 = vsel %vm5588_vm12, %v8988_v59, %v5585_v40 }
 0x92d   : > { %v5686_v21 = vmul.f32 %v5589_v16, %v13795_v18 }
 0x92f   : > { %v5705_v41 = vmul.f32 %v13886_v6, %v5686_v21 }
 0x931   : > { %v5724_v22 = vadd.f32 %v13901_v4, %v5705_v41 }
 0x95a   : > { %v5471_v38 = vpop.xlane.xlu2 %5470 }
 0x95b   : > { %v5495_v27 = vmul.f32 %v5471_v38, %v16426_v24 }
 0x95d   : > { %v5511_v42 = vadd.f32 1e-05, %v5495_v27  ;;  %v13984_v27 = vperm.slane %v5758_v56, 0 }
 0x95f   : > { %8989 = vrsqrt.f32 %v5511_v42  ;;  %vm5596_vm14 = vweird.f32 %v5511_v42 }
 0x962   : > { %v5473_v13 = vpop.xlane.xlu2 %5472 }
 0x963   : > { %v5496_v8 = vmul.f32 %v5473_v13, %v16426_v24 }
 0x965   : > { %v8990_v52 = vpop.eup %8989  ;;  %v5512_v3 = vadd.f32 1e-05, %v5496_v8 }
 0x966   : > { %v5591_v57 = vmul.f32 %v8990_v52, %v5511_v42  ;;  %vm5597_vm13 = vweird.f32 %v8990_v52 }
 0x967   : > { %vm5598_vm15 = vmor %vm5596_vm14, %vm5597_vm13  ;;  %8991 = vrsqrt.f32 %v5512_v3  ;;  %vm5606_vm3 = vweird.f32 %v5512_v3 }
 0x968   : > { %v5592_v43 = vmul.f32 %v8990_v52, %v5591_v57 }
 0x96a   : > { %v5593_v48 = vmul.f32 0.5, %v5592_v43  ;;  %v5407_v26 = vpop.xlane.xlu2 %5406  ;;  %v5475_v12 = vpop.xlane.xlu0 %5474 }
 0x96b   : > { %v5423_v50 = vmul.f32 %v5407_v26, %v16426_v24  ;;  %v5497_v61 = vmul.f32 %v5475_v12, %v16426_v24 }
 0x96c   : > { %v5594_v51 = vsub.f32 1.5, %v5593_v48 }
 0x96d   : > { %v13959_v19 = vsub.f32 %v13894_v33, %v5423_v50  ;;  %v13994_v43 = vadd.f32 1e-05, %v5497_v61  ;;  %v14002_v50 = vpop.eup %8991 }
 0x96e   : > { %v5595_v62 = vmul.f32 %v8990_v52, %v5594_v51  ;;  %vm5607_vm0 = vweird.f32 %v14002_v50 }
 0x96f   : > { %v5455_v47 = vmul.f32 %v13959_v19, %v13959_v19  ;;  %8993 = vrsqrt.f32 %v13994_v43  ;;  %vm14048_vm4 = vmor %vm5606_vm3, %vm5607_vm0  ;;  %vm5616_vm6 = vweird.f32 %v13994_v43 }
 0x970   : > { %v5599_v36 = vsel %vm5598_vm15, %v8990_v52, %v5595_v62 }
 0x971   : > { %v5687_v35 = vmul.f32 %v5599_v36, %v13837_v63  ;;  %5486 = vadd.xlane.f32.xlu2 %v5455_v47  ;;  %v5601_v36 = vmul.f32 %v14002_v50, %v5512_v3 }
 0x973   : > { %v5706_v55 = vmul.f32 %v13886_v6, %v5687_v35  ;;  %v5477_v35 = vpop.xlane.xlu0 %5476 }
 0x974   : > { %v5498_v56 = vmul.f32 %v5477_v35, %v16426_v24 }
 0x975   : > { %v5725_v18 = vadd.f32 %v13901_v4, %v5706_v55  ;;  %v14006_v47 = vpop.eup %8993 }
 0x976   : > { %vm5617_vm5 = vweird.f32 %v14006_v47 }
 0x977   : > { %v5737_v44 = vpack.c.bf16 %v5725_v18, %v5724_v22  ;;  %v5611_v18 = vmul.f32 %v14006_v47, %v13994_v43  ;;  %vm5618_vm7 = vmor %vm5616_vm6, %vm5617_vm5 }
 0x979   : > { %5867 = vmatmul.bf16.gmra.mxu3 %v5737_v44  ;;  %5916 = vmatmul.bf16.gmra.mxu0 %v5737_v44  ;;  %v5602_v44 = vmul.f32 %v14002_v50, %v5601_v36  ;;  %v5612_v8 = vmul.f32 %v14006_v47, %v5611_v18 }
 0x97d   : > { %v5902_v60 = vpop.f32.mrf.mxu0 }
 0x97e   : > { %v13972_v25 = vadd.f32 %v5902_v60, %v13969_v54  ;;  %v5479_v60 = vpop.xlane.xlu1 %5478 }
 0x97f   : > { %v5499_v12 = vmul.f32 %v5479_v60, %v16426_v24 }
 0x980   : > { %v13975_v63 = vmul.f32 0.70710677, %v13972_v25 }
 0x982   : > { %v6046_v14 = vmul.f32 %v13975_v63, %v13975_v63  ;;  %v5853_v42 = vpop.f32.mrf.mxu3 }
 0x983   : > { %v13988_v52 = vadd.f32 %v5853_v42, %v13984_v27  ;;  %v14018_v42 = vadd.f32 1e-05, %v5498_v56 }
 0x984   : > { %v13979_v9 = vmin.f32 %v6046_v14, 16.0 }
 0x985   : > { %v13992_v57 = vmul.f32 0.70710677, %v13988_v52  ;;  %8995 = vrsqrt.f32 %v14018_v42  ;;  %vm5626_vm11 = vweird.f32 %v14018_v42 }
 0x986   : > { %v6059_v28 = vmul.f32 3.8918573e-05, %v13979_v9  ;;  %v6048_v22 = vmul.f32 2.1237322e-06, %v13979_v9 }
 0x987   : > { %v6006_v13 = vmul.f32 %v13992_v57, %v13992_v57 }
 0x988   : > { %v6060_v5 = vadd.f32 0.001143296, %v6059_v28 }
 0x989   : > { %v13998_v48 = vmin.f32 %v6006_v13, 16.0 }
 0x98a   : > { %v6061_v59 = vmul.f32 %v6060_v5, %v13979_v9  ;;  %v6049_v5 = vadd.f32 0.00028619796, %v6048_v22 }
 0x98b   : > { %v6019_v26 = vmul.f32 3.8918573e-05, %v13998_v48  ;;  %v6008_v35 = vmul.f32 2.1237322e-06, %v13998_v48 }
 0x98c   : > { %v6062_v38 = vadd.f32 0.014752088, %v6061_v59  ;;  %v5904_v59 = vpop.f32.mrf.mxu0 }
 0x98d   : > { %v6020_v21 = vadd.f32 0.001143296, %v6019_v26  ;;  %v14021_v61 = vadd.f32 %v5904_v59, %v13969_v54  ;;  %v6009_v56 = vadd.f32 0.00028619796, %v6008_v35 }
 0x98e   : > { %v6063_v40 = vmul.f32 %v6062_v38, %v13979_v9  ;;  %v5603_v38 = vmul.f32 0.5, %v5602_v44 }
 0x98f   : > { %v6021_v62 = vmul.f32 %v6020_v21, %v13998_v48  ;;  %v14027_v26 = vmul.f32 0.70710677, %v14021_v61  ;;  %v14029_v21 = vadd.f32 1e-05, %v5499_v12 }
 0x990   : > { %v6064_v16 = vadd.f32 0.112945676, %v6063_v40 }
 0x991   : > { %v6022_v55 = vadd.f32 0.014752088, %v6021_v62  ;;  %v5604_v62 = vsub.f32 1.5, %v5603_v38  ;;  %v6126_v36 = vmul.f32 %v14027_v26, %v14027_v26  ;;  %vm5636_vm14 = vweird.f32 %v14029_v21 }
 0x992   : > { %v6065_v51 = vmul.f32 %v6064_v16, %v13979_v9  ;;  %v6050_v16 = vmul.f32 %v6049_v5, %v13979_v9 }
 0x993   : > { %v6023_v28 = vmul.f32 %v6022_v55, %v13998_v48  ;;  %v14037_v22 = vmin.f32 %v6126_v36, 16.0  ;;  %v5605_v44 = vmul.f32 %v14002_v50, %v5604_v62 }
 0x994   : > { %v6066_v41 = vadd.f32 0.4994258, %v6065_v51  ;;  %v5613_v51 = vmul.f32 0.5, %v5612_v8  ;;  %v6051_v55 = vadd.f32 0.0036580483, %v6050_v16 }
 0x995   : > { %v6024_v13 = vadd.f32 0.112945676, %v6023_v28  ;;  %v14043_v28 = vpop.eup %8995 }
 0x996   : > { %v6067_v14 = vmul.f32 %v6066_v41, %v13979_v9  ;;  %v5614_v18 = vsub.f32 1.5, %v5613_v51  ;;  %v6052_v5 = vmul.f32 %v6051_v55, %v13979_v9  ;;  %v5621_v16 = vmul.f32 %v14043_v28, %v14018_v42 }
 0x997   : > { %v6025_v41 = vmul.f32 %v6024_v13, %v13998_v48  ;;  %v5609_v13 = vsel %vm14048_vm4, %v14002_v50, %v5605_v44  ;;  %v6010_v51 = vmul.f32 %v6009_v56, %v13998_v48  ;;  %vm5627_vm1 = vweird.f32 %v14043_v28 }
 0x998   : > { %v14023_v40 = vadd.f32 1.0, %v6067_v14  ;;  %v6139_v14 = vmul.f32 3.8918573e-05, %v14037_v22  ;;  %v5615_v12 = vmul.f32 %v14006_v47, %v5614_v18  ;;  %v6053_v35 = vadd.f32 0.05243302, %v6052_v5  ;;  %vm14134_vm13 = vmor %vm5626_vm11, %vm5627_vm1 }
 0x999   : > { %v6026_v60 = vadd.f32 0.4994258, %v6025_v41  ;;  %v5688_v43 = vmul.f32 %v5609_v13, %v13858_v0  ;;  %v5622_v44 = vmul.f32 %v14043_v28, %v5621_v16  ;;  %v6011_v56 = vadd.f32 0.0036580483, %v6010_v51  ;;  %v5481_v13 = vpop.xlane.xlu2 %5480 }
 0x99a   : > { %8997 = vrcp.f32 %v14023_v40  ;;  %v6140_v38 = vadd.f32 0.001143296, %v6139_v14  ;;  %v5619_v50 = vsel %vm5618_vm7, %v14006_v47, %v5615_v12  ;;  %v6054_v8 = vmul.f32 %v6053_v35, %v13979_v9 }
 0x99b   : > { %8999 = vrsqrt.f32 %v14029_v21  ;;  %v6027_v62 = vmul.f32 %v6026_v60, %v13998_v48  ;;  %v5689_v5 = vmul.f32 %v5619_v50, %v13890_v1  ;;  %v6128_v47 = vmul.f32 2.1237322e-06, %v14037_v22 }
 0x99c   : > { %v6141_v36 = vmul.f32 %v6140_v38, %v14037_v22  ;;  %v5623_v33 = vmul.f32 0.5, %v5622_v44  ;;  %v6012_v16 = vmul.f32 %v6011_v56, %v13998_v48  ;;  %v5500_v50 = vmul.f32 %v5481_v13, %v16426_v24 }
 0x99d   : > { %v14072_v14 = vadd.f32 1.0, %v6027_v62  ;;  %v6055_v62 = vadd.f32 0.18741608, %v6054_v8  ;;  %v5708_v35 = vmul.f32 %v13886_v6, %v5689_v5  ;;  %vm6074_vm9 = vweird.f32 %v14023_v40 }
 0x99e   : > { %v6142_v55 = vadd.f32 0.014752088, %v6141_v36  ;;  %v5707_v36 = vmul.f32 %v13886_v6, %v5688_v43  ;;  %v5624_v2 = vsub.f32 1.5, %v5623_v33 }
 0x99f   : > { %9001 = vrcp.f32 %v14072_v14  ;;  %v5727_v56 = vadd.f32 %v13901_v4, %v5708_v35  ;;  %v6056_v5 = vmul.f32 %v6055_v62, %v13979_v9  ;;  %v6078_v9 = vand.u32 2147483647, %v14023_v40 }
 0x9a0   : > { %v14046_v59 = vpop.eup %8997  ;;  %v6143_v60 = vmul.f32 %v6142_v55, %v14037_v22  ;;  %v6129_v55 = vadd.f32 0.00028619796, %v6128_v47  ;;  %v5726_v44 = vadd.f32 %v13901_v4, %v5707_v36  ;;  %vm6034_vm0 = vweird.f32 %v14072_v14 }
 0x9a1   : > { %v14058_v3 = vpop.eup %8999  ;;  %v6070_v41 = vmul.f32 %v14046_v59, %v14023_v40  ;;  %vm6075_vm8 = vweird.f32 %v14046_v59  ;;  %vm6079_vm12 = vcmp.eq.f32.partialorder %v6078_v9, 8.507059e+37 }
 0x9a2   : > { %v5631_v18 = vmul.f32 %v14058_v3, %v14029_v21  ;;  %v6144_v12 = vadd.f32 0.112945676, %v6143_v60  ;;  %v5738_v13 = vpack.c.bf16 %v5727_v56, %v5726_v44  ;;  %v6130_v36 = vmul.f32 %v6129_v55, %v14037_v22  ;;  %vm14116_vm2 = vmor %vm6074_vm9, %vm6075_vm8 }
 0x9a3   : > { %v6071_v38 = vsub.f32 1.0, %v6070_v41  ;;  %v5855_v41 = vpop.f32.mrf.mxu3  ;;  %vm5637_vm10 = vweird.f32 %v14058_v3 }
 0x9a4   : > { %v5632_v0 = vmul.f32 %v14058_v3, %v5631_v18  ;;  %v6145_v51 = vmul.f32 %v6144_v12, %v14037_v22  ;;  %v14087_v60 = vadd.f32 %v5855_v41, %v13984_v27  ;;  %v6013_v12 = vadd.f32 0.05243302, %v6012_v16  ;;  %5872 = vmatmul.bf16.gmra.mxu3 %v5738_v13  ;;  %5921 = vmatmul.bf16.gmra.mxu0 %v5738_v13  ;;  %vm14144_vm15 = vmor %vm5636_vm14, %vm5637_vm10 }
 0x9a5   : > { %v6072_v1 = vmul.f32 %v14046_v59, %v6071_v38  ;;  %v6080_v41 = vand.u32 2147483648, %v14023_v40  ;;  %v6057_v40 = vadd.f32 1.1283791, %v6056_v5 }
 0x9a6   : > { %v6146_v18 = vadd.f32 0.4994258, %v6145_v51  ;;  %v5633_v43 = vmul.f32 0.5, %v5632_v0  ;;  %v14093_v38 = vmul.f32 0.70710677, %v14087_v60  ;;  %v14098_v51 = vpop.eup %9001  ;;  %v6014_v62 = vmul.f32 %v6013_v12, %v13998_v48 }
 0x9a7   : > { %v6073_v47 = vadd.f32 %v14046_v59, %v6072_v1  ;;  %v14100_v0 = vadd.f32 1e-05, %v5500_v50  ;;  %v5625_v1 = vmul.f32 %v14043_v28, %v5624_v2  ;;  %v6030_v55 = vmul.f32 %v14098_v51, %v14072_v14 }
 0x9a8   : > { %v6147_v8 = vmul.f32 %v6146_v18, %v14037_v22  ;;  %v6086_v16 = vmul.f32 %v14093_v38, %v14093_v38  ;;  %v5634_v35 = vsub.f32 1.5, %v5633_v43  ;;  %v6131_v2 = vadd.f32 0.0036580483, %v6130_v36  ;;  %v5907_v36 = vpop.f32.mrf.mxu0 }
 0x9a9   : > { %v6077_v43 = vsel %vm14116_vm2, %v14046_v59, %v6073_v47  ;;  %v6081_v56 = vor.u32 1.1754944e-38, %v6080_v41  ;;  %v6031_v47 = vsub.f32 1.0, %v6030_v55  ;;  %v5629_v42 = vsel %vm14134_vm13, %v14043_v28, %v5625_v1 }
 0x9aa   : > { %v14103_v33 = vadd.f32 1.0, %v6147_v8  ;;  %v14122_v18 = vmin.f32 %v6086_v16, 16.0  ;;  %v5635_v44 = vmul.f32 %v14058_v3, %v5634_v35  ;;  %v6015_v8 = vadd.f32 0.18741608, %v6014_v62 }
 0x9ab   : > { %v6082_v59 = vsel %vm6079_vm12, %v6081_v56, %v6077_v43  ;;  %v6058_v41 = vmul.f32 %v6057_v40, %v13975_v63  ;;  %v6132_v9 = vmul.f32 %v6131_v2, %v14037_v22  ;;  %v14151_v21 = vadd.f32 %v5907_v36, %v13969_v54 }
 0x9ac   : > { %9003 = vrcp.f32 %v14103_v33  ;;  %v6099_v12 = vmul.f32 3.8918573e-05, %v14122_v18  ;;  %v5639_v62 = vsel %vm14144_vm15, %v14058_v3, %v5635_v44  ;;  %v6088_v50 = vmul.f32 2.1237322e-06, %v14122_v18 }
 0x9ad   : > { %9005 = vrsqrt.f32 %v14100_v0  ;;  %v14161_v1 = vmul.f32 0.5, %v13972_v25  ;;  %v6083_v43 = vmul.f32 %v6082_v59, %v6058_v41  ;;  %v6016_v63 = vmul.f32 %v6015_v8, %v13998_v48 }
 0x9ae   : > { %v6100_v13 = vadd.f32 0.001143296, %v6099_v12  ;;  %v14165_v40 = vmul.f32 0.70710677, %v14151_v21  ;;  %v14168_v2 = vmul.f32 %v5629_v42, %v13912_v45  ;;  %v6032_v3 = vmul.f32 %v14098_v51, %v6031_v47 }
 0x9af   : > { %v14174_v12 = vmul.f32 %v5639_v62, %v13921_v7  ;;  %v14177_v25 = vmul.f32 0.5, %v13988_v52  ;;  %v6133_v5 = vadd.f32 0.05243302, %v6132_v9  ;;  %v14184_v8 = vmul.f32 0.5, %v14021_v61  ;;  %v5483_v9 = vpop.xlane.xlu0 %5482 }
 0x9b0   : > { %v6101_v55 = vmul.f32 %v6100_v13, %v14122_v18  ;;  %v6206_v48 = vmul.f32 %v14165_v40, %v14165_v40  ;;  %v6089_v59 = vadd.f32 0.00028619796, %v6088_v50  ;;  %v5858_v13 = vpop.f32.mrf.mxu3  ;;  %v8200_v36 = vclamps-f32 %v6083_v43, 1.0 }
 0x9b1   : > { %v6017_v7 = vadd.f32 1.1283791, %v6016_v63  ;;  %v6033_v42 = vadd.f32 %v14098_v51, %v6032_v3  ;;  %vm6035_vm3 = vweird.f32 %v14098_v51  ;;  %v6040_v61 = vand.u32 2147483648, %v14072_v14 }
 0x9b2   : > { %v14139_v16 = vpop.eup %9003  ;;  %v6102_v56 = vadd.f32 0.014752088, %v6101_v55  ;;  %v14188_v52 = vmin.f32 %v6206_v48, 16.0  ;;  %v6134_v62 = vmul.f32 %v6133_v5, %v14037_v22  ;;  %v14196_v55 = vadd.f32 %v5858_v13, %v13984_v27  ;;  %vm14207_vm4 = vmor %vm6034_vm0, %vm6035_vm3 }
 0x9b3   : > { %v14158_v28 = vpop.eup %9005  ;;  %v6150_v44 = vmul.f32 %v14139_v16, %v14103_v33  ;;  %v6038_v43 = vand.u32 2147483647, %v14072_v14  ;;  %v6090_v3 = vmul.f32 %v6089_v59, %v14122_v18  ;;  %v6018_v48 = vmul.f32 %v6017_v7, %v13992_v57 }
 0x9b4   : > { %v5641_v45 = vmul.f32 %v14158_v28, %v14100_v0  ;;  %v6103_v47 = vmul.f32 %v6102_v56, %v14122_v18  ;;  %v6219_v50 = vmul.f32 3.8918573e-05, %v14188_v52  ;;  %v6041_v57 = vor.u32 1.1754944e-38, %v6040_v61 }
 0x9b5   : > { %v6151_v35 = vsub.f32 1.0, %v6150_v44  ;;  %v14202_v44 = vadd.f32 1.0, %v8200_v36  ;;  %v6135_v7 = vadd.f32 0.18741608, %v6134_v62  ;;  %v14219_v11 = vmul.f32 0.70710677, %v14196_v55 }
 0x9b6   : > { %v6104_v41 = vadd.f32 0.112945676, %v6103_v47  ;;  %v5642_v63 = vmul.f32 %v14158_v28, %v5641_v45  ;;  %v5501_v47 = vmul.f32 %v5483_v9, %v16426_v24  ;;  %v6220_v13 = vadd.f32 0.001143296, %v6219_v50 }
 0x9b7   : > { %v6037_v45 = vsel %vm14207_vm4, %v14098_v51, %v6033_v42  ;;  %v6152_v59 = vmul.f32 %v14139_v16, %v6151_v35  ;;  %vm6039_vm5 = vcmp.eq.f32.partialorder %v6038_v43, 8.507059e+37  ;;  %v6091_v50 = vadd.f32 0.0036580483, %v6090_v3  ;;  %v5909_v43 = vpop.f32.mrf.mxu0 }
 0x9b8   : > { %v6105_v56 = vmul.f32 %v6104_v41, %v14122_v18  ;;  %v6208_v41 = vmul.f32 2.1237322e-06, %v14188_v52  ;;  %v6221_v14 = vmul.f32 %v6220_v13, %v14188_v52  ;;  %v5643_v9 = vmul.f32 0.5, %v5642_v63 }
 0x9b9   : > { %v6042_v5 = vsel %vm6039_vm5, %v6041_v57, %v6037_v45  ;;  %v14222_v51 = vadd.f32 1e-05, %v5501_v47  ;;  %v6166_v35 = vmul.f32 %v14219_v11, %v14219_v11  ;;  %v6153_v61 = vadd.f32 %v14139_v16, %v6152_v59 }
 0x9ba   : > { %v6106_v36 = vadd.f32 0.4994258, %v6105_v56  ;;  %v6222_v42 = vadd.f32 0.014752088, %v6221_v14  ;;  %v8365_v56 = vld [vmem:[%s9857_s1 + $0x78] sm:$0xff]  ;;  %vm6155_vm6 = vweird.f32 %v14139_v16  ;;  %vm5646_vm7 = vweird.f32 %v14100_v0 }
 0x9bb   : > { %v6209_v13 = vadd.f32 0.00028619796, %v6208_v41  ;;  %v6136_v63 = vmul.f32 %v6135_v7, %v14037_v22  ;;  %v6160_v3 = vand.u32 2147483648, %v14103_v33  ;;  %v14235_v45 = vmin.f32 %v6166_v35, 16.0  ;;  %7547 = vmatpush.bf16.msrb.mxu2 %v8365_v56 }
 0x9bc   : > { %v6107_v53 = vmul.f32 %v6106_v36, %v14122_v18  ;;  %v6223_v47 = vmul.f32 %v6222_v42, %v14188_v52  ;;  %vm6154_vm8 = vweird.f32 %v14103_v33  ;;  %v6158_v59 = vand.u32 2147483647, %v14103_v33  ;;  %v8364_v33 = vld [vmem:[%s9857_s1 + $0x70] sm:$0xff] }
 0x9bd   : > { %v5644_v36 = vsub.f32 1.5, %v5643_v9  ;;  %vm5647_vm9 = vweird.f32 %v14158_v28  ;;  %vm14244_vm1 = vmor %vm6154_vm8, %vm6155_vm6  ;;  %v14250_v41 = vadd.f32 %v5909_v43, %v13969_v54  ;;  %v6210_v7 = vmul.f32 %v6209_v13, %v14188_v52 }
 0x9be   : > { %v14229_v62 = vadd.f32 1.0, %v6107_v53  ;;  %v6092_v53 = vmul.f32 %v6091_v50, %v14122_v18  ;;  %v6157_v57 = vsel %vm14244_vm1, %v14139_v16, %v6153_v61  ;;  %v6224_v14 = vadd.f32 0.112945676, %v6223_v47  ;;  %vm14281_vm10 = vmor %vm5646_vm7, %vm5647_vm9 }
 0x9bf   : > { %v6179_v9 = vmul.f32 3.8918573e-05, %v14235_v45  ;;  %v6043_v50 = vmul.f32 %v6042_v5, %v6018_v48  ;;  %v6137_v42 = vadd.f32 1.1283791, %v6136_v63  ;;  %v6161_v35 = vor.u32 1.1754944e-38, %v6160_v3  ;;  %7548 = vmatpush.bf16.msrb.mxu2 %v8364_v33 }
 0x9c0   : > { %9007 = vrcp.f32 %v14229_v62  ;;  %v6168_v56 = vmul.f32 2.1237322e-06, %v14235_v45  ;;  %vm6159_vm2 = vcmp.eq.f32.partialorder %v6158_v59, 8.507059e+37  ;;  %v6093_v43 = vadd.f32 0.05243302, %v6092_v53 }
 0x9c1   : > { %9009 = vrsqrt.f32 %v14222_v51  ;;  %v6225_v23 = vmul.f32 %v6224_v14, %v14188_v52  ;;  %v6180_v31 = vadd.f32 0.001143296, %v6179_v9  ;;  %v5645_v22 = vmul.f32 %v14158_v28, %v5644_v36 }
 0x9c2   : > { %v6162_v16 = vsel %vm6159_vm2, %v6161_v35, %v6157_v57  ;;  %v5709_v61 = vmul.f32 %v13886_v6, %v14168_v2  ;;  %v5710_v48 = vmul.f32 %v13886_v6, %v14174_v12  ;;  %v6211_v13 = vadd.f32 0.0036580483, %v6210_v7 }
 0x9c3   : > { %v6226_v63 = vadd.f32 0.4994258, %v6225_v23  ;;  %v6181_v3 = vmul.f32 %v6180_v31, %v14235_v45  ;;  %v14270_v47 = vmul.f32 0.70710677, %v14250_v41  ;;  %v8199_v53 = vclamps-f32 %v6043_v50, 1.0 }
 0x9c4   : > { %v6138_v36 = vmul.f32 %v6137_v42, %v14027_v26  ;;  %v6169_v33 = vadd.f32 0.00028619796, %v6168_v56  ;;  %v6094_v31 = vmul.f32 %v6093_v43, %v14122_v18  ;;  %v5649_v12 = vsel %vm14281_vm10, %v14158_v28, %v5645_v22  ;;  %v5485_v42 = vpop.xlane.xlu1 %5484 }
 0x9c5   : > { %v6227_v15 = vmul.f32 %v6226_v63, %v14188_v52  ;;  %v6182_v6 = vadd.f32 0.014752088, %v6181_v3  ;;  %v6286_v26 = vmul.f32 %v14270_v47, %v14270_v47  ;;  %v5728_v7 = vadd.f32 %v13901_v4, %v5709_v61 }
 0x9c6   : > { %v14266_v5 = vpop.eup %9007  ;;  %v6163_v57 = vmul.f32 %v6162_v16, %v6138_v36  ;;  %v5729_v0 = vadd.f32 %v13901_v4, %v5710_v48  ;;  %v6212_v9 = vmul.f32 %v6211_v13, %v14188_v52  ;;  %v6170_v28 = vmul.f32 %v6169_v33, %v14235_v45  ;;  %v5860_v13 = vpop.f32.mrf.mxu3 }
 0x9c7   : > { %v14272_v59 = vpop.eup %9009  ;;  %v6110_v2 = vmul.f32 %v14266_v5, %v14229_v62  ;;  %v6183_v50 = vmul.f32 %v6182_v6, %v14235_v45  ;;  %v14298_v35 = vmin.f32 %v6286_v26, 16.0  ;;  %v14300_v43 = vadd.f32 1.0, %v6227_v15 }
 0x9c8   : > { %v5651_v14 = vmul.f32 %v14272_v59, %v14222_v51  ;;  %v5739_v22 = vpack.c.bf16 %v5729_v0, %v5728_v7  ;;  %v14305_v16 = vmul.f32 %v14202_v44, %v14161_v1  ;;  %v7286_v4 = vadd.f32 1.0, %v8199_v53 }
 0x9c9   : > { %v6111_v56 = vsub.f32 1.0, %v6110_v2  ;;  %v14308_v61 = vmul.f32 %v5649_v12, %v13930_v39  ;;  %v6095_v48 = vadd.f32 0.18741608, %v6094_v31  ;;  %v8202_v63 = vclamps-f32 %v6163_v57, 1.0 }
 0x9ca   : > { %v14311_v3 = vmul.f32 0.5, %v14087_v60  ;;  %v6184_v36 = vadd.f32 0.112945676, %v6183_v50  ;;  %v5502_v2 = vmul.f32 %v5485_v42, %v16426_v24  ;;  %5877 = vmatmul.bf16.gmra.mxu3 %v5739_v22  ;;  %5926 = vmatmul.bf16.gmra.mxu0 %v5739_v22  ;;  %v5652_v33 = vmul.f32 %v14272_v59, %v5651_v14 }
 0x9cb   : > { %v6213_v23 = vadd.f32 0.05243302, %v6212_v9  ;;  %v6288_v1 = vmul.f32 2.1237322e-06, %v14298_v35  ;;  %v6299_v44 = vmul.f32 3.8918573e-05, %v14298_v35  ;;  %v6112_v39 = vmul.f32 %v14266_v5, %v6111_v56  ;;  %v5912_v56 = vpop.f32.mrf.mxu0 }
 0x9cc   : > { %9011 = vrcp.f32 %v14300_v43  ;;  %v6171_v53 = vadd.f32 0.0036580483, %v6170_v28  ;;  %v6185_v60 = vmul.f32 %v6184_v36, %v14235_v45  ;;  %v14321_v31 = vmul.f32 %v7286_v4, %v14177_v25 }
 0x9cd   : > { %v6096_v15 = vmul.f32 %v6095_v48, %v14122_v18  ;;  %v6289_v6 = vadd.f32 0.00028619796, %v6288_v1  ;;  %v6300_v26 = vadd.f32 0.001143296, %v6299_v44  ;;  %v14325_v12 = vmul.f32 0.5, %v14151_v21 }
 0x9ce   : > { %v6186_v57 = vadd.f32 0.4994258, %v6185_v60  ;;  %v14327_v7 = vadd.f32 1e-05, %v5502_v2  ;;  %v14330_v0 = vadd.f32 %v5860_v13, %v13984_v27  ;;  %v7289_v14 = vadd.f32 1.0, %v8202_v63 }
 0x9cf   : > { %v5653_v9 = vmul.f32 0.5, %v5652_v33  ;;  %v6290_v50 = vmul.f32 %v6289_v6, %v14298_v35  ;;  %v6301_v25 = vmul.f32 %v6300_v26, %v14298_v35  ;;  %v6113_v42 = vadd.f32 %v14266_v5, %v6112_v39 }
 0x9d0   : > { %vm6115_vm11 = vweird.f32 %v14266_v5  ;;  %vm5657_vm12 = vweird.f32 %v14272_v59  ;;  %v6214_v18 = vmul.f32 %v6213_v23, %v14188_v52  ;;  %v6172_v21 = vmul.f32 %v6171_v53, %v14235_v45  ;;  %v8363_v53 = vld [vmem:[%s9857_s1 + $0x68] sm:$0xff] }
 0x9d1   : > { %v6097_v28 = vadd.f32 1.1283791, %v6096_v15  ;;  %v6120_v22 = vand.u32 2147483648, %v14229_v62  ;;  %v6187_v4 = vmul.f32 %v6186_v57, %v14235_v45  ;;  %v6302_v48 = vadd.f32 0.014752088, %v6301_v25  ;;  %v8356_v57 = vld [vmem:[%s9857_s1 + $0x30] sm:$0xff]  ;;  %7549 = vmatpush.bf16.msrb.mxu2 %v8363_v53 }
 0x9d2   : > { %v14341_v13 = vpop.eup %9011  ;;  %vm6114_vm13 = vweird.f32 %v14229_v62  ;;  %v6118_v63 = vand.u32 2147483647, %v14229_v62  ;;  %vm5656_vm14 = vweird.f32 %v14222_v51  ;;  %v6291_v36 = vadd.f32 0.0036580483, %v6290_v50  ;;  %v5863_v62 = vpop.f32.mrf.mxu3  ;;  %7499 = vmatpush.bf16.msrb.mxu1 %v8356_v57 }
 0x9d3   : > { %v14347_v2 = vmul.f32 0.70710677, %v14330_v0  ;;  %vm14351_vm15 = vmor %vm6114_vm13, %vm6115_vm11  ;;  %v5654_v23 = vsub.f32 1.5, %v5653_v9  ;;  %v14355_v1 = vadd.f32 1.0, %v6187_v4  ;;  %v6303_v44 = vmul.f32 %v6302_v48, %v14298_v35 }
 0x9d4   : > { %v14359_v39 = vadd.f32 %v5912_v56, %v13969_v54  ;;  %v6117_v60 = vsel %vm14351_vm15, %v14266_v5, %v6113_v42  ;;  %v6215_v15 = vadd.f32 0.18741608, %v6214_v18  ;;  %v6173_v6 = vadd.f32 0.05243302, %v6172_v21  ;;  %vm14401_vm3 = vmor %vm5656_vm14, %vm5657_vm12 }
 0x9d5   : > { %v6246_v26 = vmul.f32 %v14347_v2, %v14347_v2  ;;  %v14369_v9 = vmul.f32 %v7289_v14, %v14184_v8  ;;  %v6121_v50 = vor.u32 1.1754944e-38, %v6120_v22  ;;  %v6230_v25 = vmul.f32 %v14341_v13, %v14300_v43 }
 0x9d6   : > { %9013 = vrcp.f32 %v14355_v1  ;;  %vm6119_vm0 = vcmp.eq.f32.partialorder %v6118_v63, 8.507059e+37  ;;  %v6292_v56 = vmul.f32 %v6291_v36, %v14298_v35  ;;  %v6304_v5 = vadd.f32 0.112945676, %v6303_v44 }
 0x9d7   : > { %v14376_v42 = vadd.f32 %v5863_v62, %v13984_v27  ;;  %v6098_v18 = vmul.f32 %v6097_v28, %v14093_v38  ;;  %v6122_v21 = vsel %vm6119_vm0, %v6121_v50, %v6117_v60  ;;  %v14379_v8 = vmin.f32 %v6246_v26, 16.0  ;;  %v8355_v60 = vld [vmem:[%s9857_s1 + $0x28] sm:$0xff] }
 0x9d8   : > { %v14382_v14 = vmul.f32 0.70710677, %v14359_v39  ;;  %v5655_v22 = vmul.f32 %v14272_v59, %v5654_v23  ;;  %v6216_v4 = vmul.f32 %v6215_v15, %v14188_v52  ;;  %v6174_v48 = vmul.f32 %v6173_v6, %v14235_v45  ;;  %7500 = vmatpush.bf16.msrb.mxu1 %v8355_v60 }
 0x9d9   : > { %v6305_v63 = vmul.f32 %v6304_v5, %v14298_v35  ;;  %v6231_v36 = vsub.f32 1.0, %v6230_v25  ;;  %v6248_v33 = vmul.f32 2.1237322e-06, %v14379_v8  ;;  %v6259_v44 = vmul.f32 3.8918573e-05, %v14379_v8 }
 0x9da   : > { %v6366_v38 = vmul.f32 %v14382_v14, %v14382_v14  ;;  %v6123_v28 = vmul.f32 %v6122_v21, %v6098_v18  ;;  %v6293_v62 = vadd.f32 0.05243302, %v6292_v56  ;;  %v14393_v23 = vmul.f32 0.70710677, %v14376_v42 }
 0x9db   : > { %v6306_v53 = vadd.f32 0.4994258, %v6305_v63  ;;  %9015 = vrsqrt.f32 %v14327_v7  ;;  %v6249_v15 = vadd.f32 0.00028619796, %v6248_v33  ;;  %v6260_v6 = vadd.f32 0.001143296, %v6259_v44 }
 0x9dc   : > { %v14395_v52 = vpop.eup %9013  ;;  %v14406_v26 = vmin.f32 %v6366_v38, 16.0  ;;  %v5659_v50 = vsel %vm14401_vm3, %v14272_v59, %v5655_v22  ;;  %v6217_v25 = vadd.f32 1.1283791, %v6216_v4  ;;  %v6238_v51 = vand.u32 2147483647, %v14300_v43  ;;  %v8362_v63 = vld [vmem:[%s9857_s1 + $0x60] sm:$0xff]  ;;  %7501 = vmatpush.bf16.msrb.mxu1 %v8354_v32 }
 0x9dd   : > { %v6232_v56 = vmul.f32 %v14341_v13, %v6231_v36  ;;  %v6307_v5 = vmul.f32 %v6306_v53, %v14298_v35  ;;  %v6250_v18 = vmul.f32 %v6249_v15, %v14379_v8  ;;  %v6261_v21 = vmul.f32 %v6260_v6, %v14379_v8  ;;  %7550 = vmatpush.bf16.msrb.mxu2 %v8362_v63 }
 0x9de   : > { %v8201_v33 = vclamps-f32 %v6123_v28, 1.0  ;;  %v6175_v44 = vadd.f32 0.18741608, %v6174_v48  ;;  %v6190_v38 = vmul.f32 %v14395_v52, %v14355_v1  ;;  %v6294_v59 = vmul.f32 %v6293_v62, %v14298_v35 }
 0x9df   : > { %v14422_v22 = vadd.f32 1.0, %v6307_v5  ;;  %v6262_v4 = vadd.f32 0.014752088, %v6261_v21  ;;  %v6379_v36 = vmul.f32 3.8918573e-05, %v14406_v26  ;;  %v6326_v53 = vmul.f32 %v14393_v23, %v14393_v23 }
 0x9e0   : > { %v14429_v15 = vmul.f32 %v5659_v50, %v13939_v34  ;;  %v14432_v48 = vmul.f32 %v6217_v25, %v14165_v40  ;;  %v6240_v28 = vand.u32 2147483648, %v14300_v43  ;;  %v6251_v62 = vadd.f32 0.0036580483, %v6250_v18  ;;  %v8361_v34 = vld [vmem:[%s9857_s1 + $0x58] sm:$0xff] }
 0x9e1   : > { %v14435_v6 = vpop.eup %9015  ;;  %v6233_v5 = vadd.f32 %v14341_v13, %v6232_v56  ;;  %vm6234_vm4 = vweird.f32 %v14300_v43  ;;  %vm6235_vm5 = vweird.f32 %v14341_v13  ;;  %9017 = vrcp.f32 %v14422_v22  ;;  %7551 = vmatpush.bf16.msrb.mxu2 %v8361_v34 }
 0x9e2   : > { %v7288_v50 = vadd.f32 1.0, %v8201_v33  ;;  %v6176_v40 = vmul.f32 %v6175_v44, %v14235_v45  ;;  %v6295_v25 = vadd.f32 0.18741608, %v6294_v59  ;;  %v6263_v21 = vmul.f32 %v6262_v4, %v14379_v8  ;;  %vm14453_vm7 = vmor %vm6234_vm4, %vm6235_vm5  ;;  %v8353_v33 = vld [vmem:[%s9857_s1 + $0x18] sm:$0xff] }
 0x9e3   : > { %vm14444_vm6 = vcmp.eq.f32.partialorder %v6238_v51, 8.507059e+37  ;;  %v6191_v56 = vsub.f32 1.0, %v6190_v38  ;;  %v6380_v63 = vadd.f32 0.001143296, %v6379_v36  ;;  %v14448_v57 = vmin.f32 %v6326_v53, 16.0  ;;  %v8360_v53 = vld [vmem:[%s9857_s1 + $0x50] sm:$0xff]  ;;  %7502 = vmatpush.bf16.msrb.mxu1 %v8353_v33 }
 0x9e4   : > { %v6241_v45 = vor.u32 1.1754944e-38, %v6240_v28  ;;  %v6200_v44 = vand.u32 2147483648, %v14355_v1  ;;  %v6252_v51 = vmul.f32 %v6251_v62, %v14379_v8  ;;  %v6264_v59 = vadd.f32 0.112945676, %v6263_v21 }
 0x9e5   : > { %v6237_v38 = vsel %vm14453_vm7, %v14341_v13, %v6233_v5  ;;  %v6198_v4 = vand.u32 2147483647, %v14355_v1  ;;  %v6381_v36 = vmul.f32 %v6380_v63, %v14406_v26  ;;  %v6339_v43 = vmul.f32 3.8918573e-05, %v14448_v57  ;;  %7552 = vmatpush.bf16.msrb.mxu2 %v8360_v53 }
 0x9e6   : > { %v14467_v60 = vmul.f32 %v7288_v50, %v14311_v3  ;;  %v14469_v28 = vadd.f32 1.1283791, %v6176_v40  ;;  %v6296_v62 = vmul.f32 %v6295_v25, %v14298_v35  ;;  %v6265_v34 = vmul.f32 %v6264_v59, %v14379_v8 }
 0x9e7   : > { %v9018_v21 = vpop.eup %9017  ;;  %v6192_v13 = vmul.f32 %v14395_v52, %v6191_v56  ;;  %vm6194_vm8 = vweird.f32 %v14355_v1  ;;  %v6382_v5 = vadd.f32 0.014752088, %v6381_v36  ;;  %v6340_v63 = vadd.f32 0.001143296, %v6339_v43  ;;  %v8359_v36 = vld [vmem:[%s9857_s1 + $0x48] sm:$0xff]  ;;  %7503 = vmatpush.bf16.msrb.mxu1 %v8352_v17 }
 0x9e8   : > { %v6242_v32 = vsel %vm14444_vm6, %v6241_v45, %v6237_v38  ;;  %v6201_v3 = vor.u32 1.1754944e-38, %v6200_v44  ;;  %v6310_v50 = vmul.f32 %v9018_v21, %v14422_v22  ;;  %v6253_v40 = vadd.f32 0.05243302, %v6252_v51 }
 0x9e9   : > { %vm6195_vm9 = vweird.f32 %v14395_v52  ;;  %vm14480_vm1 = vcmp.eq.f32.partialorder %v6198_v4, 8.507059e+37  ;;  %v6266_v25 = vadd.f32 0.4994258, %v6265_v34  ;;  %v6368_v56 = vmul.f32 2.1237322e-06, %v14406_v26  ;;  %v5914_v34 = vpop.f32.mrf.mxu0  ;;  %7553 = vmatpush.bf16.msrb.mxu2 %v8359_v36  ;;  %v8351_v36 = vld [vmem:[%s9857_s1 + $0x8] sm:$0xff] }
 0x9ea   : > { %v6383_v59 = vmul.f32 %v6382_v5, %v14406_v26  ;;  %v6297_v18 = vadd.f32 1.1283791, %v6296_v62  ;;  %v6311_v45 = vsub.f32 1.0, %v6310_v50  ;;  %v6318_v44 = vand.u32 2147483647, %v14422_v22  ;;  %vm14503_vm10 = vmor %vm6194_vm8, %vm6195_vm9 }
 0x9eb   : > { %v6341_v51 = vmul.f32 %v6340_v63, %v14448_v57  ;;  %v6193_v38 = vadd.f32 %v14395_v52, %v6192_v13  ;;  %v6320_v4 = vand.u32 2147483648, %v14422_v22  ;;  %v6267_v43 = vmul.f32 %v6266_v25, %v14379_v8  ;;  %7504 = vmatpush.bf16.msrb.mxu1 %v8351_v36 }
 0x9ec   : > { %v6384_v53 = vadd.f32 0.112945676, %v6383_v59  ;;  %v6312_v5 = vmul.f32 %v9018_v21, %v6311_v45  ;;  %vm6315_vm2 = vweird.f32 %v9018_v21  ;;  %v6254_v62 = vmul.f32 %v6253_v40, %v14379_v8 }
 0x9ed   : > { %v6342_v50 = vadd.f32 0.014752088, %v6341_v51  ;;  %v6243_v37 = vmul.f32 %v6242_v32, %v14432_v48  ;;  %v14495_v63 = vadd.f32 1.0, %v6267_v43  ;;  %v6369_v33 = vadd.f32 0.00028619796, %v6368_v56  ;;  %7554 = vmatpush.bf16.msrb.mxu2 %v8358_v10 }
 0x9ee   : > { %v6385_v13 = vmul.f32 %v6384_v53, %v14406_v26  ;;  %v6313_v59 = vadd.f32 %v9018_v21, %v6312_v5  ;;  %vm6314_vm11 = vweird.f32 %v14422_v22  ;;  %v14510_v32 = vadd.f32 %v5914_v34, %v13969_v54  ;;  %v8350_v34 = vld [vmem:[%s9857_s1] sm:$0xff] }
 0x9ef   : > { %v6343_v48 = vmul.f32 %v6342_v50, %v14448_v57  ;;  %v6197_v40 = vsel %vm14503_vm10, %v14395_v52, %v6193_v38  ;;  %v6298_v56 = vmul.f32 %v6297_v18, %v14270_v47  ;;  %vm6316_vm12 = vmor %vm6314_vm11, %vm6315_vm2  ;;  %v6321_v1 = vor.u32 1.1754944e-38, %v6320_v4  ;;  %v14532_v4 = vld [vmem:[%s9867_s29] ss:$0 sm:$0xff]  ;;  %v5865_v50 = vpop.f32.mrf.mxu3  ;;  %s16466_s29 = smov %s16438_s24  ;;  %7505 = vmatpush.bf16.msrb.mxu1 %v8350_v34 }
 0x9f0   : > { %9019 = vrcp.f32 %v14495_v63  ;;  %v6317_v22 = vsel %vm6316_vm12, %v9018_v21, %v6313_v59  ;;  %vm6319_vm13 = vcmp.eq.f32.partialorder %v6318_v44, 8.507059e+37  ;;  %v6255_v45 = vadd.f32 0.18741608, %v6254_v62 }
 0x9f1   : > { %v6386_v51 = vadd.f32 0.4994258, %v6385_v13  ;;  %v8204_v17 = vclamps-f32 %v6243_v37, 1.0  ;;  %v6322_v43 = vsel %vm6319_vm13, %v6321_v1, %v6317_v22  ;;  %v6370_v53 = vmul.f32 %v6369_v33, %v14406_v26 }
 0x9f2   : > { %v6344_v52 = vadd.f32 0.112945676, %v6343_v48  ;;  %v6202_v47 = vsel %vm14480_vm1, %v6201_v3, %v6197_v40  ;;  %v6323_v18 = vmul.f32 %v6322_v43, %v6298_v56  ;;  %v6328_v10 = vmul.f32 2.1237322e-06, %v14448_v57 }
 0x9f3   : > { %v6387_v38 = vmul.f32 %v6386_v51, %v14406_v26  ;;  %v16465_v21 = vpack.c.bf16 %v14369_v9, %v14305_v16  ;;  %v14529_v44 = vmul.f32 0.70710677, %v14510_v32  ;;  %v5711_v3 = vmul.f32 %v14532_v4, %v14308_v61 }
 0x9f4   : > { %v6345_v37 = vmul.f32 %v6344_v52, %v14448_v57  ;;  %v5712_v35 = vmul.f32 %v14532_v4, %v14429_v15  ;;  %v6178_v5 = vmul.f32 %v14469_v28, %v14219_v11  ;;  %v5949_v16 = vmul.f32 0.5, %v14250_v41  ;;  %v14549_v15 = vld [vmem:[%s16466_s29] ss:$0 sm:$0xff] }
 0x9f5   : > { %7555 = vmatmul.bf16.vlgmr.msrb.gmra.mxu2 %v16465_v21  ;;  %v8206_v9 = vclamps-f32 %v6323_v18, 1.0  ;;  %v6256_v62 = vmul.f32 %v6255_v45, %v14379_v8  ;;  %v7350_v13 = vpack.c.bf16 %v14467_v60, %v14321_v31  ;;  %v7291_v25 = vadd.f32 1.0, %v8204_v17 }
 0x9f6   : > { %v9020_v33 = vpop.eup %9019  ;;  %v6446_v61 = vmul.f32 %v14529_v44, %v14529_v44  ;;  %v5731_v59 = vadd.f32 %v14549_v15, %v5712_v35  ;;  %v6203_v11 = vmul.f32 %v6202_v47, %v6178_v5  ;;  %v6371_v28 = vadd.f32 0.0036580483, %v6370_v53 }
 0x9f7   : > { %v6270_v41 = vmul.f32 %v9020_v33, %v14495_v63  ;;  %v14553_v48 = vadd.f32 1.0, %v6387_v38  ;;  %v6329_v8 = vadd.f32 0.00028619796, %v6328_v10  ;;  %v6346_v40 = vadd.f32 0.4994258, %v6345_v37  ;;  %7506 = vmatmul.bf16.vlgmr.msrb.gmra.mxu1 %v7350_v13 }
 0x9f8   : > { %v5730_v31 = vadd.f32 %v14549_v15, %v5711_v3  ;;  %v14557_v60 = vadd.f32 %v5865_v50, %v13984_v27  ;;  %v7293_v56 = vadd.f32 1.0, %v8206_v9  ;;  %v6257_v1 = vadd.f32 1.1283791, %v6256_v62 }
 0x9f9   : > { %v6271_v36 = vsub.f32 1.0, %v6270_v41  ;;  %v14559_v22 = vmin.f32 %v6446_v61, 16.0  ;;  %vm6275_vm14 = vweird.f32 %v9020_v33  ;;  %v6278_v45 = vand.u32 2147483647, %v14495_v63 }
 0x9fa   : > { %v6280_v51 = vand.u32 2147483648, %v14495_v63  ;;  %v5740_v17 = vpack.c.bf16 %v5731_v59, %v5730_v31  ;;  %9021 = vrcp.f32 %v14553_v48  ;;  %v7323_v47 = vmul.f32 %v7291_v25, %v14325_v12 }
 0x9fb   : > { %v6272_v43 = vmul.f32 %v9020_v33, %v6271_v36  ;;  %v6448_v53 = vmul.f32 2.1237322e-06, %v14559_v22  ;;  %v6459_v52 = vmul.f32 3.8918573e-05, %v14559_v22  ;;  %v6372_v18 = vmul.f32 %v6371_v28, %v14406_v26 }
 0x9fc   : > { %v6347_v38 = vmul.f32 %v6346_v40, %v14448_v57  ;;  %5882 = vmatmul.bf16.gmra.mxu3 %v5740_v17  ;;  %5931 = vmatmul.bf16.gmra.mxu0 %v5740_v17  ;;  %v14570_v10 = vmul.f32 0.70710677, %v14557_v60  ;;  %v8203_v21 = vclamps-f32 %v6203_v11, 1.0  ;;  %v7325_v37 = vmul.f32 %v7293_v56, %v5949_v16 }
 0x9fd   : > { %v6273_v3 = vadd.f32 %v9020_v33, %v6272_v43  ;;  %vm6274_vm15 = vweird.f32 %v14495_v63  ;;  %v6258_v35 = vmul.f32 %v6257_v1, %v14347_v2  ;;  %v6281_v34 = vor.u32 1.1754944e-38, %v6280_v51 }
 0x9fe   : > { %vm6276_vm0 = vmor %vm6274_vm15, %vm6275_vm14  ;;  %v6330_v12 = vmul.f32 %v6329_v8, %v14448_v57  ;;  %v6449_v5 = vadd.f32 0.00028619796, %v6448_v53  ;;  %vm6279_vm3 = vcmp.eq.f32.partialorder %v6278_v45, 8.507059e+37  ;;  %v6460_v62 = vadd.f32 0.001143296, %v6459_v52 }
 0x9ff   : > { %v6277_v9 = vsel %vm6276_vm0, %v9020_v33, %v6273_v3  ;;  %v6406_v50 = vmul.f32 %v14570_v10, %v14570_v10  ;;  %v6373_v25 = vadd.f32 0.05243302, %v6372_v18  ;;  %v14578_v16 = vadd.f32 1.0, %v6347_v38 }
 0xa00   : > { %v6282_v13 = vsel %vm6279_vm3, %v6281_v34, %v6277_v9  ;;  %v6450_v63 = vmul.f32 %v6449_v5, %v14559_v22  ;;  %v14581_v61 = vpop.eup %9021  ;;  %v6461_v59 = vmul.f32 %v6460_v62, %v14559_v22  ;;  %v7353_v41 = vpack.c.bf16 %v7325_v37, %v7323_v47 }
 0xa01   : > { %v6283_v2 = vmul.f32 %v6282_v13, %v6258_v35  ;;  %v14584_v11 = vmin.f32 %v6406_v50, 16.0  ;;  %v5946_v33 = vmul.f32 0.5, %v14196_v55  ;;  %v7290_v28 = vadd.f32 1.0, %v8203_v21 }
 0xa02   : > { %v6331_v8 = vadd.f32 0.0036580483, %v6330_v12  ;;  %v5948_v40 = vmul.f32 0.5, %v14330_v0  ;;  %v6462_v56 = vadd.f32 0.014752088, %v6461_v59  ;;  %v6374_v36 = vmul.f32 %v6373_v25, %v14406_v26 }
 0xa03   : > { %v8205_v31 = vclamps-f32 %v6283_v2, 1.0  ;;  %v6408_v1 = vmul.f32 2.1237322e-06, %v14584_v11  ;;  %v6390_v45 = vmul.f32 %v14581_v61, %v14553_v48  ;;  %9023 = vrcp.f32 %v14578_v16 }
 0xa04   : > { %v6451_v51 = vadd.f32 0.0036580483, %v6450_v63  ;;  %v6463_v55 = vmul.f32 %v6462_v56, %v14559_v22  ;;  %v6419_v53 = vmul.f32 3.8918573e-05, %v14584_v11  ;;  %v7322_v0 = vmul.f32 %v7290_v28, %v5946_v33 }
 0xa05   : > { %7560 = vmatmul.bf16.gmra.mxu2 %v7353_v41  ;;  %v7292_v17 = vadd.f32 1.0, %v8205_v31  ;;  %v6409_v43 = vadd.f32 0.00028619796, %v6408_v1  ;;  %v5661_v52 = vmul.f32 %v14435_v6, %v14327_v7  ;;  %v6332_v18 = vmul.f32 %v6331_v8, %v14448_v57 }
 0xa06   : > { %v6464_v38 = vadd.f32 0.112945676, %v6463_v55  ;;  %v6391_v37 = vsub.f32 1.0, %v6390_v45  ;;  %v6452_v3 = vmul.f32 %v6451_v51, %v14559_v22  ;;  %v6420_v35 = vadd.f32 0.001143296, %v6419_v53 }
 0xa07   : > { %v7324_v47 = vmul.f32 %v7292_v17, %v5948_v40  ;;  %v6410_v21 = vmul.f32 %v6409_v43, %v14584_v11  ;;  %v6375_v34 = vadd.f32 0.18741608, %v6374_v36  ;;  %v5662_v50 = vmul.f32 %v14435_v6, %v5661_v52 }
 0xa08   : > { %v6465_v12 = vmul.f32 %v6464_v38, %v14559_v22  ;;  %v6421_v62 = vmul.f32 %v6420_v35, %v14584_v11  ;;  %v6333_v13 = vadd.f32 0.05243302, %v6332_v18  ;;  %v6392_v2 = vmul.f32 %v14581_v61, %v6391_v37 }
 0xa09   : > { %v7352_v5 = vpack.c.bf16 %v7324_v47, %v7322_v0  ;;  %v14601_v9 = vpop.eup %9023  ;;  %v6411_v63 = vadd.f32 0.0036580483, %v6410_v21  ;;  %v6453_v59 = vadd.f32 0.05243302, %v6452_v3  ;;  %v6376_v33 = vmul.f32 %v6375_v34, %v14406_v26 }
 0xa0a   : > { %v6466_v25 = vadd.f32 0.4994258, %v6465_v12  ;;  %v6422_v41 = vadd.f32 0.014752088, %v6421_v62  ;;  %v6350_v28 = vmul.f32 %v14601_v9, %v14578_v16  ;;  %v5663_v31 = vmul.f32 0.5, %v5662_v50  ;;  %v5487_v12 = vpop.xlane.xlu2 %5486 }
 0xa0b   : > { %7511 = vmatmul.bf16.gmra.mxu1 %v7352_v5  ;;  %v6334_v56 = vmul.f32 %v6333_v13, %v14448_v57  ;;  %v6412_v36 = vmul.f32 %v6411_v63, %v14584_v11  ;;  %v6393_v45 = vadd.f32 %v14581_v61, %v6392_v2  ;;  %vm6395_vm4 = vweird.f32 %v14581_v61  ;;  %v5917_v5 = vpop.f32.mrf.mxu0 }
 0xa0c   : > { %v6467_v8 = vmul.f32 %v6466_v25, %v14559_v22  ;;  %v6423_v40 = vmul.f32 %v6422_v41, %v14584_v11  ;;  %v6454_v26 = vmul.f32 %v6453_v59, %v14559_v22  ;;  %v6377_v17 = vadd.f32 1.1283791, %v6376_v33 }
 0xa0d   : > { %v6400_v55 = vand.u32 2147483648, %v14553_v48  ;;  %v6351_v43 = vsub.f32 1.0, %v6350_v28  ;;  %vm6394_vm5 = vweird.f32 %v14553_v48  ;;  %v6398_v53 = vand.u32 2147483647, %v14553_v48 }
 0xa0e   : > { %v14612_v1 = vadd.f32 1.0, %v6467_v8  ;;  %v6424_v51 = vadd.f32 0.112945676, %v6423_v40  ;;  %vm14623_vm6 = vmor %vm6394_vm5, %vm6395_vm4  ;;  %v6335_v47 = vadd.f32 0.18741608, %v6334_v56  ;;  %v5664_v3 = vsub.f32 1.5, %v5663_v31 }
 0xa0f   : > { %v6413_v18 = vadd.f32 0.05243302, %v6412_v36  ;;  %v6397_v38 = vsel %vm14623_vm6, %v14581_v61, %v6393_v45  ;;  %v6455_v21 = vadd.f32 0.18741608, %v6454_v26  ;;  %v6378_v35 = vmul.f32 %v6377_v17, %v14382_v14 }
 0xa10   : > { %9025 = vrcp.f32 %v14612_v1  ;;  %v6425_v0 = vmul.f32 %v6424_v51, %v14584_v11  ;;  %v6401_v34 = vor.u32 1.1754944e-38, %v6400_v55  ;;  %v6352_v48 = vmul.f32 %v14601_v9, %v6351_v43 }
 0xa11   : > { %vm6399_vm7 = vcmp.eq.f32.partialorder %v6398_v53, 8.507059e+37  ;;  %v5503_v50 = vmul.f32 %v5487_v12, %v16426_v24  ;;  %v14635_v13 = vadd.f32 %v5917_v5, %v13969_v54  ;;  %v6336_v63 = vmul.f32 %v6335_v47, %v14448_v57 }
 0xa12   : > { %v6426_v37 = vadd.f32 0.4994258, %v6425_v0  ;;  %v6402_v61 = vsel %vm6399_vm7, %v6401_v34, %v6397_v38  ;;  %vm6354_vm8 = vweird.f32 %v14578_v16  ;;  %v6414_v14 = vmul.f32 %v6413_v18, %v14584_v11 }
 0xa13   : > { %v6358_v2 = vand.u32 2147483647, %v14578_v16  ;;  %v6456_v59 = vmul.f32 %v6455_v21, %v14559_v22  ;;  %v6353_v24 = vadd.f32 %v14601_v9, %v6352_v48  ;;  %vm6355_vm9 = vweird.f32 %v14601_v9 }
 0xa14   : > { %v6427_v62 = vmul.f32 %v6426_v37, %v14584_v11  ;;  %v14647_v28 = vadd.f32 1e-05, %v5503_v50  ;;  %v14650_v57 = vmul.f32 0.70710677, %v14635_v13  ;;  %v6403_v8 = vmul.f32 %v6402_v61, %v6378_v35  ;;  %vm14660_vm1 = vmor %vm6354_vm8, %vm6355_vm9 }
 0xa15   : > { %v6360_v40 = vand.u32 2147483648, %v14578_v16  ;;  %v6480_v22 = vand.u32 2147483648, %v14612_v1  ;;  %v6415_v56 = vadd.f32 0.18741608, %v6414_v14  ;;  %v6457_v26 = vadd.f32 1.1283791, %v6456_v59 }
 0xa16   : > { %v9026_v25 = vpop.eup %9025  ;;  %v14643_v33 = vadd.f32 1.0, %v6427_v62  ;;  %v6526_v36 = vmul.f32 %v14650_v57, %v14650_v57  ;;  %v6478_v17 = vand.u32 2147483647, %v14612_v1  ;;  %v14666_v55 = vmul.f32 %v14435_v6, %v5664_v3 }
 0xa17   : > { %v6470_v41 = vmul.f32 %v9026_v25, %v14612_v1  ;;  %vm6475_vm2 = vweird.f32 %v9026_v25  ;;  %v6337_v43 = vadd.f32 1.1283791, %v6336_v63  ;;  %v6357_v53 = vsel %vm14660_vm1, %v14601_v9, %v6353_v24 }
 0xa18   : > { %9027 = vrcp.f32 %v14643_v33  ;;  %v14671_v0 = vmin.f32 %v6526_v36, 16.0  ;;  %v8208_v16 = vclamps-f32 %v6403_v8, 1.0  ;;  %v6361_v52 = vor.u32 1.1754944e-38, %v6360_v40 }
 0xa19   : > { %v6471_v31 = vsub.f32 1.0, %v6470_v41  ;;  %9029 = vrsqrt.f32 %v14647_v28  ;;  %vm6474_vm10 = vweird.f32 %v14612_v1  ;;  %vm6359_vm11 = vcmp.eq.f32.partialorder %v6358_v2, 8.507059e+37 }
 0xa1a   : > { %vm6476_vm12 = vmor %vm6474_vm10, %vm6475_vm2  ;;  %v6481_v18 = vor.u32 1.1754944e-38, %v6480_v22  ;;  %v6416_v38 = vmul.f32 %v6415_v56, %v14584_v11  ;;  %v6539_v21 = vmul.f32 3.8918573e-05, %v14671_v0  ;;  %vm5667_vm13 = vweird.f32 %v14435_v6 }
 0xa1b   : > { %v6472_v51 = vmul.f32 %v9026_v25, %v6471_v31  ;;  %v6362_v3 = vsel %vm6359_vm11, %v6361_v52, %v6357_v53  ;;  %v6458_v9 = vmul.f32 %v6457_v26, %v14529_v44  ;;  %vm6479_vm14 = vcmp.eq.f32.partialorder %v6478_v17, 8.507059e+37 }
 0xa1c   : > { %v5951_v48 = vmul.f32 0.5, %v14359_v39  ;;  %v6338_v1 = vmul.f32 %v6337_v43, %v14393_v23  ;;  %vm5666_vm15 = vweird.f32 %v14327_v7  ;;  %v7295_v11 = vadd.f32 1.0, %v8208_v16 }
 0xa1d   : > { %v6473_v47 = vadd.f32 %v9026_v25, %v6472_v51  ;;  %v6540_v61 = vadd.f32 0.001143296, %v6539_v21  ;;  %v6417_v63 = vadd.f32 1.1283791, %v6416_v38  ;;  %v6440_v39 = vand.u32 2147483648, %v14643_v33  ;;  %vm5668_vm7 = vmor %vm5666_vm15, %vm5667_vm13 }
 0xa1e   : > { %v9028_v37 = vpop.eup %9027  ;;  %v6363_v44 = vmul.f32 %v6362_v3, %v6338_v1  ;;  %v6438_v24 = vand.u32 2147483647, %v14643_v33  ;;  %v6528_v8 = vmul.f32 2.1237322e-06, %v14671_v0  ;;  %v7327_v40 = vmul.f32 %v7295_v11, %v5951_v48 }
 0xa1f   : > { %v6477_v35 = vsel %vm6476_vm12, %v9026_v25, %v6473_v47  ;;  %v14678_v34 = vpop.eup %9029  ;;  %v6430_v5 = vmul.f32 %v9028_v37, %v14643_v33  ;;  %v5953_v25 = vmul.f32 0.5, %v14510_v32  ;;  %v6541_v59 = vmul.f32 %v6540_v61, %v14671_v0 }
 0xa20   : > { %v6482_v12 = vsel %vm6479_vm14, %v6481_v18, %v6477_v35  ;;  %v5671_v50 = vmul.f32 %v14678_v34, %v14647_v28  ;;  %vm6435_vm0 = vweird.f32 %v9028_v37  ;;  %v8207_v32 = vclamps-f32 %v6363_v44, 1.0 }
 0xa21   : > { %v6483_v62 = vmul.f32 %v6482_v12, %v6458_v9  ;;  %v6431_v14 = vsub.f32 1.0, %v6430_v5  ;;  %v6542_v56 = vadd.f32 0.014752088, %v6541_v59  ;;  %v6418_v36 = vmul.f32 %v6417_v63, %v14570_v10 }
 0xa22   : > { %v5672_v23 = vmul.f32 %v14678_v34, %v5671_v50  ;;  %vm6434_vm3 = vweird.f32 %v14643_v33  ;;  %v6441_v51 = vor.u32 1.1754944e-38, %v6440_v39  ;;  %vm6439_vm5 = vcmp.eq.f32.partialorder %v6438_v24, 8.507059e+37  ;;  %v5868_v33 = vpop.f32.mrf.mxu3 }
 0xa23   : > { %v8210_v2 = vclamps-f32 %v6483_v62, 1.0  ;;  %v6432_v41 = vmul.f32 %v9028_v37, %v6431_v14  ;;  %vm6436_vm4 = vmor %vm6434_vm3, %vm6435_vm0  ;;  %v6543_v43 = vmul.f32 %v6542_v56, %v14671_v0  ;;  %vm5677_vm6 = vweird.f32 %v14678_v34 }
 0xa24   : > { %v5673_v22 = vmul.f32 0.5, %v5672_v23  ;;  %v6529_v16 = vadd.f32 0.00028619796, %v6528_v8  ;;  %v5669_v21 = vsel %vm5668_vm7, %v14435_v6, %v14666_v55  ;;  %vm5676_vm8 = vweird.f32 %v14647_v28 }
 0xa25   : > { %v7297_v31 = vadd.f32 1.0, %v8210_v2  ;;  %v6433_v45 = vadd.f32 %v9028_v37, %v6432_v41  ;;  %v6544_v38 = vadd.f32 0.112945676, %v6543_v43  ;;  %v14706_v3 = vadd.f32 %v5868_v33, %v13984_v27  ;;  %vm5678_vm9 = vmor %vm5676_vm8, %vm5677_vm6  ;;  %v5919_v2 = vpop.f32.mrf.mxu0 }
 0xa26   : > { %v5674_v17 = vsub.f32 1.5, %v5673_v22  ;;  %v7294_v9 = vadd.f32 1.0, %v8207_v32  ;;  %v6530_v48 = vmul.f32 %v6529_v16, %v14671_v0  ;;  %v5694_v28 = vmul.f32 %v5669_v21, %v13948_v30 }
 0xa27   : > { %v7329_v26 = vmul.f32 %v7297_v31, %v5953_v25  ;;  %v6437_v53 = vsel %vm6436_vm4, %v9028_v37, %v6433_v45  ;;  %v6545_v37 = vmul.f32 %v6544_v38, %v14671_v0  ;;  %v14713_v6 = vmul.f32 0.70710677, %v14706_v3 }
 0xa28   : > { %v6442_v52 = vsel %vm6439_vm5, %v6441_v51, %v6437_v53  ;;  %v5675_v18 = vmul.f32 %v14678_v34, %v5674_v17  ;;  %v5950_v55 = vmul.f32 0.5, %v14376_v42  ;;  %v5952_v12 = vmul.f32 0.5, %v14557_v60 }
 0xa29   : > { %v7355_v47 = vpack.c.bf16 %v7329_v26, %v7327_v40  ;;  %v6443_v10 = vmul.f32 %v6442_v52, %v6418_v36  ;;  %v6546_v1 = vadd.f32 0.4994258, %v6545_v37  ;;  %v6486_v62 = vmul.f32 %v14713_v6, %v14713_v6 }
 0xa2a   : > { %v5679_v7 = vsel %vm5678_vm9, %v14678_v34, %v5675_v18  ;;  %v7326_v50 = vmul.f32 %v7294_v9, %v5950_v55  ;;  %v6531_v44 = vadd.f32 0.0036580483, %v6530_v48  ;;  %v5713_v42 = vmul.f32 %v14532_v4, %v5694_v28  ;;  %v5870_v26 = vpop.f32.mrf.mxu3 }
 0xa2b   : > { %7565 = vmatmul.bf16.gmra.mxu2 %v7355_v47  ;;  %v8209_v35 = vclamps-f32 %v6443_v10, 1.0  ;;  %v6547_v11 = vmul.f32 %v6546_v1, %v14671_v0  ;;  %v5695_v61 = vmul.f32 %v5679_v7, %v13959_v19  ;;  %v14724_v63 = vmin.f32 %v6486_v62, 16.0 }
 0xa2c   : > { %v6532_v19 = vmul.f32 %v6531_v44, %v14671_v0  ;;  %v14733_v23 = vadd.f32 %v5919_v2, %v13969_v54  ;;  %v5732_v24 = vadd.f32 %v14549_v15, %v5713_v42 }
 0xa2d   : > { %v7296_v5 = vadd.f32 1.0, %v8209_v35  ;;  %v14722_v25 = vadd.f32 1.0, %v6547_v11  ;;  %v6488_v60 = vmul.f32 2.1237322e-06, %v14724_v63  ;;  %v6499_v14 = vmul.f32 3.8918573e-05, %v14724_v63  ;;  %v5922_v53 = vpop.f32.mrf.mxu0 }
 0xa2e   : > { %v5714_v39 = vmul.f32 %v14532_v4, %v5695_v61  ;;  %v14738_v40 = vmul.f32 0.70710677, %v14733_v23  ;;  %v6533_v4 = vadd.f32 0.05243302, %v6532_v19  ;;  %v14761_v37 = vadd.f32 %v5922_v53, %v13969_v54 }
 0xa2f   : > { %v7328_v34 = vmul.f32 %v7296_v5, %v5952_v12  ;;  %9031 = vrcp.f32 %v14722_v25  ;;  %v6489_v59 = vadd.f32 0.00028619796, %v6488_v60  ;;  %v6500_v41 = vadd.f32 0.001143296, %v6499_v14 }
 0xa30   : > { %v5733_v8 = vadd.f32 %v14549_v15, %v5714_v39  ;;  %v6606_v32 = vmul.f32 %v14738_v40, %v14738_v40  ;;  %v14749_v15 = vadd.f32 %v5870_v26, %v13984_v27  ;;  %v6534_v16 = vmul.f32 %v6533_v4, %v14671_v0 }
 0xa31   : > { %v7354_v30 = vpack.c.bf16 %v7328_v34, %v7326_v50  ;;  %v6501_v31 = vmul.f32 %v6500_v41, %v14724_v63  ;;  %v6490_v36 = vmul.f32 %v6489_v59, %v14724_v63  ;;  %v14772_v62 = vmul.f32 0.70710677, %v14761_v37 }
 0xa32   : > { %v5741_v22 = vpack.c.bf16 %v5733_v8, %v5732_v24  ;;  %v14746_v51 = vmin.f32 %v6606_v32, 16.0  ;;  %v14758_v10 = vmul.f32 0.70710677, %v14749_v15  ;;  %v6535_v48 = vadd.f32 0.18741608, %v6534_v16  ;;  %v5873_v59 = vpop.f32.mrf.mxu3 }
 0xa33   : > { %7516 = vmatmul.bf16.gmra.mxu1 %v7354_v30  ;;  %v6502_v45 = vadd.f32 0.014752088, %v6501_v31  ;;  %v6491_v18 = vadd.f32 0.0036580483, %v6490_v36  ;;  %v6686_v19 = vmul.f32 %v14772_v62, %v14772_v62  ;;  %vm6554_vm2 = vweird.f32 %v14722_v25 }
 0xa34   : > { %5887 = vmatmul.bf16.gmra.mxu3 %v5741_v22  ;;  %5936 = vmatmul.bf16.gmra.mxu0 %v5741_v22  ;;  %v6608_v52 = vmul.f32 2.1237322e-06, %v14746_v51  ;;  %v6619_v47 = vmul.f32 3.8918573e-05, %v14746_v51  ;;  %v6566_v7 = vmul.f32 %v14758_v10, %v14758_v10  ;;  %v6536_v61 = vmul.f32 %v6535_v48, %v14671_v0 }
 0xa35   : > { %v14741_v56 = vpop.eup %9031  ;;  %v6503_v43 = vmul.f32 %v6502_v45, %v14724_v63  ;;  %v6492_v28 = vmul.f32 %v6491_v18, %v14724_v63  ;;  %v6560_v8 = vand.u32 2147483648, %v14722_v25  ;;  %v6558_v22 = vand.u32 2147483647, %v14722_v25 }
 0xa36   : > { %v6550_v17 = vmul.f32 %v14741_v56, %v14722_v25  ;;  %v6609_v33 = vadd.f32 0.00028619796, %v6608_v52  ;;  %v6620_v21 = vadd.f32 0.001143296, %v6619_v47  ;;  %v14768_v12 = vmin.f32 %v6566_v7, 16.0 }
 0xa37   : > { %v6504_v38 = vadd.f32 0.112945676, %v6503_v43  ;;  %v6493_v42 = vadd.f32 0.05243302, %v6492_v28  ;;  %vm6555_vm1 = vweird.f32 %v14741_v56  ;;  %v6537_v24 = vadd.f32 1.1283791, %v6536_v61 }
 0xa38   : > { %v6551_v9 = vsub.f32 1.0, %v6550_v17  ;;  %v6621_v1 = vmul.f32 %v6620_v21, %v14746_v51  ;;  %v6610_v5 = vmul.f32 %v6609_v33, %v14746_v51  ;;  %v6579_v30 = vmul.f32 3.8918573e-05, %v14768_v12  ;;  %vm14796_vm10 = vmor %vm6554_vm2, %vm6555_vm1 }
 0xa39   : > { %v6505_v35 = vmul.f32 %v6504_v38, %v14724_v63  ;;  %v6568_v0 = vmul.f32 2.1237322e-06, %v14768_v12  ;;  %v6494_v4 = vmul.f32 %v6493_v42, %v14724_v63  ;;  %v14794_v36 = vadd.f32 %v5873_v59, %v13984_v27 }
 0xa3a   : > { %v6622_v11 = vadd.f32 0.014752088, %v6621_v1  ;;  %v6552_v50 = vmul.f32 %v14741_v56, %v6551_v9  ;;  %v6611_v14 = vadd.f32 0.0036580483, %v6610_v5  ;;  %v6580_v39 = vadd.f32 0.001143296, %v6579_v30 }
 0xa3b   : > { %v6506_v55 = vadd.f32 0.4994258, %v6505_v35  ;;  %v14801_v43 = vmin.f32 %v6686_v19, 16.0  ;;  %v6569_v53 = vadd.f32 0.00028619796, %v6568_v0  ;;  %v6538_v52 = vmul.f32 %v6537_v24, %v14650_v57 }
 0xa3c   : > { %v6623_v44 = vmul.f32 %v6622_v11, %v14746_v51  ;;  %v6553_v41 = vadd.f32 %v14741_v56, %v6552_v50  ;;  %v6581_v32 = vmul.f32 %v6580_v39, %v14768_v12  ;;  %v6612_v26 = vmul.f32 %v6611_v14, %v14746_v51 }
 0xa3d   : > { %v6507_v34 = vmul.f32 %v6506_v55, %v14724_v63  ;;  %v6561_v47 = vor.u32 1.1754944e-38, %v6560_v8  ;;  %vm6559_vm11 = vcmp.eq.f32.partialorder %v6558_v22, 8.507059e+37  ;;  %v6495_v33 = vadd.f32 0.18741608, %v6494_v4 }
 0xa3e   : > { %v6624_v2 = vadd.f32 0.112945676, %v6623_v44  ;;  %v6557_v25 = vsel %vm14796_vm10, %v14741_v56, %v6553_v41  ;;  %v6582_v16 = vadd.f32 0.014752088, %v6581_v32  ;;  %v14812_v9 = vmul.f32 0.70710677, %v14794_v36 }
 0xa3f   : > { %v14779_v60 = vadd.f32 1.0, %v6507_v34  ;;  %v6562_v35 = vsel %vm6559_vm11, %v6561_v47, %v6557_v25  ;;  %v6613_v7 = vadd.f32 0.05243302, %v6612_v26  ;;  %v6688_v56 = vmul.f32 2.1237322e-06, %v14801_v43 }
 0xa40   : > { %v6625_v31 = vmul.f32 %v6624_v2, %v14746_v51  ;;  %v6583_v21 = vmul.f32 %v6582_v16, %v14768_v12  ;;  %v6699_v48 = vmul.f32 3.8918573e-05, %v14801_v43  ;;  %v6570_v57 = vmul.f32 %v6569_v53, %v14768_v12 }
 0xa41   : > { %9033 = vrcp.f32 %v14779_v60  ;;  %v6646_v55 = vmul.f32 %v14812_v9, %v14812_v9  ;;  %v6563_v11 = vmul.f32 %v6562_v35, %v6538_v52  ;;  %v6496_v50 = vmul.f32 %v6495_v33, %v14724_v63 }
 0xa42   : > { %v6626_v17 = vadd.f32 0.4994258, %v6625_v31  ;;  %v6584_v28 = vadd.f32 0.112945676, %v6583_v21  ;;  %v6614_v61 = vmul.f32 %v6613_v7, %v14746_v51  ;;  %v6689_v44 = vadd.f32 0.00028619796, %v6688_v56 }
 0xa43   : > { %v6700_v30 = vadd.f32 0.001143296, %v6699_v48  ;;  %v14826_v42 = vmin.f32 %v6646_v55, 16.0  ;;  %v6571_v14 = vadd.f32 0.0036580483, %v6570_v57  ;;  %v8212_v59 = vclamps-f32 %v6563_v11, 1.0 }
 0xa44   : > { %v6627_v18 = vmul.f32 %v6626_v17, %v14746_v51  ;;  %v6585_v34 = vmul.f32 %v6584_v28, %v14768_v12  ;;  %v6497_v41 = vadd.f32 1.1283791, %v6496_v50  ;;  %v5955_v24 = vmul.f32 0.5, %v14635_v13  ;;  %v5924_v17 = vpop.f32.mrf.mxu0 }
 0xa45   : > { %v6701_v19 = vmul.f32 %v6700_v30, %v14801_v43  ;;  %v6659_v63 = vmul.f32 3.8918573e-05, %v14826_v42  ;;  %v6615_v8 = vadd.f32 0.18741608, %v6614_v61  ;;  %v6690_v31 = vmul.f32 %v6689_v44, %v14801_v43  ;;  %v5875_v61 = vpop.f32.mrf.mxu3 }
 0xa46   : > { %v14816_v1 = vadd.f32 1.0, %v6627_v18  ;;  %v6586_v2 = vadd.f32 0.4994258, %v6585_v34  ;;  %v14835_v4 = vmul.f32 0.5, %v14706_v3  ;;  %v14838_v32 = vmul.f32 0.5, %v14733_v23 }
 0xa47   : > { %v14808_v38 = vpop.eup %9033  ;;  %v6702_v22 = vadd.f32 0.014752088, %v6701_v19  ;;  %v14841_v45 = vmul.f32 0.5, %v14749_v15  ;;  %v6572_v26 = vmul.f32 %v6571_v14, %v14768_v12  ;;  %v14848_v13 = vmul.f32 0.5, %v14761_v37 }
 0xa48   : > { %v6510_v5 = vmul.f32 %v14808_v38, %v14779_v60  ;;  %9035 = vrcp.f32 %v14816_v1  ;;  %v6587_v0 = vmul.f32 %v6586_v2, %v14768_v12  ;;  %v7299_v52 = vadd.f32 1.0, %v8212_v59 }
 0xa49   : > { %v6703_v16 = vmul.f32 %v6702_v22, %v14801_v43  ;;  %v6498_v23 = vmul.f32 %v6497_v41, %v14713_v6  ;;  %v6518_v15 = vand.u32 2147483647, %v14779_v60  ;;  %v6660_v47 = vadd.f32 0.001143296, %v6659_v63 }
 0xa4a   : > { %v6511_v39 = vsub.f32 1.0, %v6510_v5  ;;  %v14845_v53 = vadd.f32 1.0, %v6587_v0  ;;  %v6520_v18 = vand.u32 2147483648, %v14779_v60  ;;  %v6616_v33 = vmul.f32 %v6615_v8, %v14746_v51 }
 0xa4b   : > { %v6691_v21 = vadd.f32 0.0036580483, %v6690_v31  ;;  %v14858_v35 = vadd.f32 %v5924_v17, %v13969_v54  ;;  %vm6515_vm12 = vweird.f32 %v14808_v38  ;;  %v6573_v37 = vadd.f32 0.05243302, %v6572_v26 }
 0xa4c   : > { %v6512_v25 = vmul.f32 %v14808_v38, %v6511_v39  ;;  %v6704_v7 = vadd.f32 0.112945676, %v6703_v16  ;;  %v6648_v56 = vmul.f32 2.1237322e-06, %v14826_v42  ;;  %9037 = vrcp.f32 %v14845_v53 }
 0xa4d   : > { %v6661_v57 = vmul.f32 %v6660_v47, %v14826_v42  ;;  %v14867_v51 = vmul.f32 %v7299_v52, %v5955_v24  ;;  %vm6514_vm13 = vweird.f32 %v14779_v60  ;;  %vm14870_vm14 = vcmp.eq.f32.partialorder %v6518_v15, 8.507059e+37 }
 0xa4e   : > { %v14851_v3 = vpop.eup %9035  ;;  %v6513_v48 = vadd.f32 %v14808_v38, %v6512_v25  ;;  %v6705_v55 = vmul.f32 %v6704_v7, %v14801_v43  ;;  %v6617_v5 = vadd.f32 1.1283791, %v6616_v33  ;;  %v6692_v11 = vmul.f32 %v6691_v21, %v14801_v43  ;;  %vm14881_vm15 = vmor %vm6514_vm13, %vm6515_vm12 }
 0xa4f   : > { %v6630_v6 = vmul.f32 %v14851_v3, %v14816_v1  ;;  %v6662_v50 = vadd.f32 0.014752088, %v6661_v57  ;;  %v14877_v34 = vmul.f32 0.70710677, %v14858_v35  ;;  %v6521_v60 = vor.u32 1.1754944e-38, %v6520_v18 }
 0xa50   : > { %v6574_v30 = vmul.f32 %v6573_v37, %v14768_v12  ;;  %v6706_v14 = vadd.f32 0.4994258, %v6705_v55  ;;  %v6649_v2 = vadd.f32 0.00028619796, %v6648_v56  ;;  %v6517_v39 = vsel %vm14881_vm15, %v14808_v38, %v6513_v48 }
 0xa51   : > { %v6631_v19 = vsub.f32 1.0, %v6630_v6  ;;  %v6663_v59 = vmul.f32 %v6662_v50, %v14826_v42  ;;  %v6766_v41 = vmul.f32 %v14877_v34, %v14877_v34  ;;  %v6638_v0 = vand.u32 2147483647, %v14816_v1 }
 0xa52   : > { %v6707_v63 = vmul.f32 %v6706_v14, %v14801_v43  ;;  %v14895_v24 = vmul.f32 0.5, %v14794_v36  ;;  %v14898_v8 = vadd.f32 %v5875_v61, %v13984_v27  ;;  %v14900_v31 = vpop.eup %9037  ;;  %v14903_v38 = vmul.f32 %v6617_v5, %v14738_v40 }
 0xa53   : > { %v6693_v22 = vadd.f32 0.05243302, %v6692_v11  ;;  %v6664_v26 = vadd.f32 0.112945676, %v6663_v59  ;;  %v14905_v17 = vmin.f32 %v6766_v41, 16.0  ;;  %v6522_v25 = vsel %vm14870_vm14, %v6521_v60, %v6517_v39 }
 0xa54   : > { %v6575_v16 = vadd.f32 0.18741608, %v6574_v30  ;;  %v14909_v52 = vadd.f32 1.0, %v6707_v63  ;;  %v6650_v36 = vmul.f32 %v6649_v2, %v14826_v42  ;;  %v6632_v15 = vmul.f32 %v14851_v3, %v6631_v19  ;;  %v5927_v19 = vpop.f32.mrf.mxu0 }
 0xa55   : > { %v6665_v47 = vmul.f32 %v6664_v26, %v14826_v42  ;;  %v6768_v18 = vmul.f32 2.1237322e-06, %v14905_v17  ;;  %v6779_v40 = vmul.f32 3.8918573e-05, %v14905_v17  ;;  %v6640_v33 = vand.u32 2147483648, %v14816_v1 }
 0xa56   : > { %v6590_v21 = vmul.f32 %v14900_v31, %v14845_v53  ;;  %9039 = vrcp.f32 %v14909_v52  ;;  %v14921_v37 = vmul.f32 0.70710677, %v14898_v8  ;;  %v6523_v7 = vmul.f32 %v6522_v25, %v6498_v23 }
 0xa57   : > { %vm14923_vm0 = vcmp.eq.f32.partialorder %v6638_v0, 8.507059e+37  ;;  %v6694_v48 = vmul.f32 %v6693_v22, %v14801_v43  ;;  %v6666_v6 = vadd.f32 0.4994258, %v6665_v47  ;;  %vm6634_vm3 = vweird.f32 %v14816_v1 }
 0xa58   : > { %v6651_v57 = vadd.f32 0.0036580483, %v6650_v36  ;;  %v6769_v28 = vadd.f32 0.00028619796, %v6768_v18  ;;  %v6780_v55 = vadd.f32 0.001143296, %v6779_v40  ;;  %v6633_v5 = vadd.f32 %v14851_v3, %v6632_v15 }
 0xa59   : > { %vm6635_vm4 = vweird.f32 %v14851_v3  ;;  %v6576_v11 = vmul.f32 %v6575_v16, %v14768_v12  ;;  %v6667_v23 = vmul.f32 %v6666_v6, %v14826_v42  ;;  %v6591_v50 = vsub.f32 1.0, %v6590_v21 }
 0xa5a   : > { %v6770_v61 = vmul.f32 %v6769_v28, %v14905_v17  ;;  %v6781_v44 = vmul.f32 %v6780_v55, %v14905_v17  ;;  %v6726_v60 = vmul.f32 %v14921_v37, %v14921_v37  ;;  %v8211_v30 = vclamps-f32 %v6523_v7, 1.0  ;;  %vm14944_vm5 = vmor %vm6634_vm3, %vm6635_vm4 }
 0xa5b   : > { %v6641_v14 = vor.u32 1.1754944e-38, %v6640_v33  ;;  %v6695_v2 = vadd.f32 0.18741608, %v6694_v48  ;;  %v14938_v39 = vmul.f32 0.5, %v14858_v35  ;;  %v6652_v41 = vmul.f32 %v6651_v57, %v14826_v42 }
 0xa5c   : > { %v14940_v59 = vpop.eup %9039  ;;  %v6771_v0 = vadd.f32 0.0036580483, %v6770_v61  ;;  %v6782_v63 = vadd.f32 0.014752088, %v6781_v44  ;;  %v14949_v22 = vmin.f32 %v6726_v60, 16.0  ;;  %v6637_v35 = vsel %vm14944_vm5, %v14851_v3, %v6633_v5 }
 0xa5d   : > { %v6577_v26 = vadd.f32 1.1283791, %v6576_v11  ;;  %vm6594_vm6 = vweird.f32 %v14845_v53  ;;  %v14955_v25 = vadd.f32 1.0, %v6667_v23  ;;  %v6592_v1 = vmul.f32 %v14900_v31, %v6591_v50 }
 0xa5e   : > { %v6598_v16 = vand.u32 2147483647, %v14845_v53  ;;  %v6710_v36 = vmul.f32 %v14940_v59, %v14909_v52  ;;  %v14962_v15 = vadd.f32 %v5927_v19, %v13969_v54  ;;  %v6600_v47 = vand.u32 2147483648, %v14845_v53 }
 0xa5f   : > { %v6696_v18 = vmul.f32 %v6695_v2, %v14801_v43  ;;  %v6783_v3 = vmul.f32 %v6782_v63, %v14905_v17  ;;  %v6739_v40 = vmul.f32 3.8918573e-05, %v14949_v22  ;;  %v7298_v33 = vadd.f32 1.0, %v8211_v30 }
 0xa60   : > { %v6642_v21 = vsel %vm14923_vm0, %v6641_v14, %v6637_v35  ;;  %v6653_v7 = vadd.f32 0.05243302, %v6652_v41  ;;  %v6772_v48 = vmul.f32 %v6771_v0, %v14905_v17  ;;  %9041 = vrcp.f32 %v14955_v25 }
 0xa61   : > { %v6784_v6 = vadd.f32 0.112945676, %v6783_v3  ;;  %v6728_v57 = vmul.f32 2.1237322e-06, %v14949_v22  ;;  %v6740_v28 = vadd.f32 0.001143296, %v6739_v40  ;;  %v6593_v55 = vadd.f32 %v14900_v31, %v6592_v1  ;;  %v5878_v3 = vpop.f32.mrf.mxu3 }
 0xa62   : > { %vm6595_vm7 = vweird.f32 %v14900_v31  ;;  %v6711_v43 = vsub.f32 1.0, %v6710_v36  ;;  %v14976_v5 = vmul.f32 0.70710677, %v14962_v15  ;;  %v6643_v56 = vmul.f32 %v6642_v21, %v14903_v38 }
 0xa63   : > { %vm14979_vm8 = vcmp.eq.f32.partialorder %v6598_v16, 8.507059e+37  ;;  %v6785_v23 = vmul.f32 %v6784_v6, %v14905_v17  ;;  %v6741_v50 = vmul.f32 %v6740_v28, %v14949_v22  ;;  %v6697_v61 = vadd.f32 1.1283791, %v6696_v18  ;;  %vm14991_vm9 = vmor %vm6594_vm6, %vm6595_vm7 }
 0xa64   : > { %v6654_v44 = vmul.f32 %v6653_v7, %v14826_v42  ;;  %v6773_v60 = vadd.f32 0.05243302, %v6772_v48  ;;  %v6846_v30 = vmul.f32 %v14976_v5, %v14976_v5  ;;  %v6578_v14 = vmul.f32 %v6577_v26, %v14758_v10 }
 0xa65   : > { %v6786_v2 = vadd.f32 0.4994258, %v6785_v23  ;;  %v6729_v19 = vadd.f32 0.00028619796, %v6728_v57  ;;  %v6742_v12 = vadd.f32 0.014752088, %v6741_v50  ;;  %v6597_v41 = vsel %vm14991_vm9, %v14900_v31, %v6593_v55 }
 0xa66   : > { %v6601_v0 = vor.u32 1.1754944e-38, %v6600_v47  ;;  %v6712_v63 = vmul.f32 %v14940_v59, %v6711_v43  ;;  %v14999_v35 = vmin.f32 %v6846_v30, 16.0  ;;  %v15001_v1 = vpop.eup %9041  ;;  %v15004_v10 = vmul.f32 %v7298_v33, %v14835_v4 }
 0xa67   : > { %v8214_v53 = vclamps-f32 %v6643_v56, 1.0  ;;  %v6787_v26 = vmul.f32 %v6786_v2, %v14905_v17  ;;  %v6743_v16 = vmul.f32 %v6742_v12, %v14949_v22  ;;  %v6698_v36 = vmul.f32 %v6697_v61, %v14772_v62 }
 0xa68   : > { %v6718_v18 = vand.u32 2147483647, %v14909_v52  ;;  %v6655_v31 = vadd.f32 0.18741608, %v6654_v44  ;;  %v6859_v47 = vmul.f32 3.8918573e-05, %v14999_v35  ;;  %v6602_v40 = vsel %vm14979_vm8, %v6601_v0, %v6597_v41 }
 0xa69   : > { %v6774_v21 = vmul.f32 %v6773_v60, %v14905_v17  ;;  %v6730_v4 = vmul.f32 %v6729_v19, %v14949_v22  ;;  %v6744_v33 = vadd.f32 0.112945676, %v6743_v16  ;;  %v6713_v7 = vadd.f32 %v14940_v59, %v6712_v63  ;;  %v5929_v63 = vpop.f32.mrf.mxu0 }
 0xa6a   : > { %vm6715_vm1 = vweird.f32 %v14940_v59  ;;  %v6670_v62 = vmul.f32 %v15001_v1, %v14955_v25  ;;  %v6848_v48 = vmul.f32 2.1237322e-06, %v14999_v35  ;;  %v6720_v6 = vand.u32 2147483648, %v14909_v52 }
 0xa6b   : > { %v15021_v57 = vadd.f32 1.0, %v6787_v26  ;;  %v15024_v28 = vmul.f32 0.5, %v14898_v8  ;;  %v6860_v55 = vadd.f32 0.001143296, %v6859_v47  ;;  %v6603_v43 = vmul.f32 %v6602_v40, %v6578_v14  ;;  %v5880_v40 = vpop.f32.mrf.mxu3 }
 0xa6c   : > { %vm6714_vm2 = vweird.f32 %v14909_v52  ;;  %v6656_v56 = vmul.f32 %v6655_v31, %v14826_v42  ;;  %v6745_v11 = vmul.f32 %v6744_v33, %v14949_v22  ;;  %v7301_v23 = vadd.f32 1.0, %v8214_v53 }
 0xa6d   : > { %vm15029_vm10 = vmor %vm6714_vm2, %vm6715_vm1  ;;  %vm15033_vm11 = vcmp.eq.f32.partialorder %v6718_v18, 8.507059e+37  ;;  %v6775_v44 = vadd.f32 0.18741608, %v6774_v21  ;;  %v6731_v8 = vadd.f32 0.0036580483, %v6730_v4  ;;  %v6671_v52 = vsub.f32 1.0, %v6670_v62 }
 0xa6e   : > { %v6717_v60 = vsel %vm15029_vm10, %v14940_v59, %v6713_v7  ;;  %v6746_v30 = vadd.f32 0.4994258, %v6745_v11  ;;  %v6849_v42 = vadd.f32 0.00028619796, %v6848_v48  ;;  %v6721_v14 = vor.u32 1.1754944e-38, %v6720_v6 }
 0xa6f   : > { %9043 = vrcp.f32 %v15021_v57  ;;  %v6861_v38 = vmul.f32 %v6860_v55, %v14999_v35  ;;  %v15043_v2 = vadd.f32 %v5878_v3, %v13984_v27  ;;  %v8213_v19 = vclamps-f32 %v6603_v43, 1.0 }
 0xa70   : > { %v6657_v12 = vadd.f32 1.1283791, %v6656_v56  ;;  %v6678_v41 = vand.u32 2147483647, %v14955_v25  ;;  %v6747_v0 = vmul.f32 %v6746_v30, %v14949_v22  ;;  %v6722_v59 = vsel %vm15033_vm11, %v6721_v14, %v6717_v60 }
 0xa71   : > { %v6680_v53 = vand.u32 2147483648, %v14955_v25  ;;  %v6862_v26 = vadd.f32 0.014752088, %v6861_v38  ;;  %v15051_v16 = vmul.f32 0.70710677, %v15043_v2  ;;  %v6672_v18 = vmul.f32 %v15001_v1, %v6671_v52 }
 0xa72   : > { %v6776_v31 = vmul.f32 %v6775_v44, %v14905_v17  ;;  %v6732_v47 = vmul.f32 %v6731_v8, %v14949_v22  ;;  %v6850_v3 = vmul.f32 %v6849_v42, %v14999_v35  ;;  %v15057_v21 = vadd.f32 1.0, %v6747_v0 }
 0xa73   : > { %v6863_v4 = vmul.f32 %v6862_v26, %v14999_v35  ;;  %v6806_v33 = vmul.f32 %v15051_v16, %v15051_v16  ;;  %v15063_v7 = vadd.f32 %v5929_v63, %v13969_v54  ;;  %v15066_v62 = vmul.f32 %v7301_v23, %v14838_v32 }
 0xa74   : > { %v7300_v48 = vadd.f32 1.0, %v8213_v19  ;;  %v6723_v17 = vmul.f32 %v6722_v59, %v6698_v36  ;;  %v6658_v6 = vmul.f32 %v6657_v12, %v14812_v9  ;;  %vm6675_vm12 = vweird.f32 %v15001_v1 }
 0xa75   : > { %v15069_v55 = vpop.eup %9043  ;;  %vm15072_vm13 = vcmp.eq.f32.partialorder %v6678_v41, 8.507059e+37  ;;  %v6681_v56 = vor.u32 1.1754944e-38, %v6680_v53  ;;  %9045 = vrcp.f32 %v15057_v21  ;;  %v15078_v11 = vadd.f32 %v5880_v40, %v13984_v27 }
 0xa76   : > { %v6673_v32 = vadd.f32 %v15001_v1, %v6672_v18  ;;  %v6733_v23 = vadd.f32 0.05243302, %v6732_v47  ;;  %v6864_v36 = vadd.f32 0.112945676, %v6863_v4  ;;  %v15081_v50 = vmin.f32 %v6806_v33, 16.0 }
 0xa77   : > { %vm6674_vm14 = vweird.f32 %v14955_v25  ;;  %v6777_v9 = vadd.f32 1.1283791, %v6776_v31  ;;  %v6851_v61 = vadd.f32 0.0036580483, %v6850_v3  ;;  %v15085_v44 = vmul.f32 0.70710677, %v15063_v7 }
 0xa78   : > { %v8216_v8 = vclamps-f32 %v6723_v17, 1.0  ;;  %v6790_v60 = vmul.f32 %v15069_v55, %v15021_v57  ;;  %v6865_v52 = vmul.f32 %v6864_v36, %v14999_v35  ;;  %v6808_v30 = vmul.f32 2.1237322e-06, %v15081_v50  ;;  %vm15096_vm15 = vmor %vm6674_vm14, %vm6675_vm12 }
 0xa79   : > { %v15092_v42 = vmul.f32 %v7300_v48, %v14841_v45  ;;  %v6819_v14 = vmul.f32 3.8918573e-05, %v15081_v50  ;;  %v6926_v38 = vmul.f32 %v15085_v44, %v15085_v44  ;;  %v15104_v19 = vmul.f32 0.70710677, %v15078_v11 }
 0xa7a   : > { %v6677_v12 = vsel %vm15096_vm15, %v15001_v1, %v6673_v32  ;;  %v6734_v45 = vmul.f32 %v6733_v23, %v14949_v22  ;;  %v15111_v41 = vmul.f32 0.5, %v14962_v15  ;;  %v6866_v0 = vadd.f32 0.4994258, %v6865_v52 }
 0xa7b   : > { %v15113_v63 = vpop.eup %9045  ;;  %v6852_v59 = vmul.f32 %v6851_v61, %v14999_v35  ;;  %v6809_v53 = vadd.f32 0.00028619796, %v6808_v30  ;;  %v6820_v26 = vadd.f32 0.001143296, %v6819_v14  ;;  %v15116_v18 = vmin.f32 %v6926_v38, 16.0 }
 0xa7c   : > { %v7303_v31 = vadd.f32 1.0, %v8216_v8  ;;  %v15119_v47 = vmul.f32 %v6777_v9, %v14877_v34  ;;  %v6791_v3 = vsub.f32 1.0, %v6790_v60  ;;  %v6886_v1 = vmul.f32 %v15104_v19, %v15104_v19 }
 0xa7d   : > { %v6750_v15 = vmul.f32 %v15113_v63, %v15057_v21  ;;  %v6867_v40 = vmul.f32 %v6866_v0, %v14999_v35  ;;  %v6821_v4 = vmul.f32 %v6820_v26, %v15081_v50  ;;  %v6928_v33 = vmul.f32 2.1237322e-06, %v15116_v18 }
 0xa7e   : > { %v6682_v48 = vsel %vm15072_vm13, %v6681_v56, %v6677_v12  ;;  %v6798_v17 = vand.u32 2147483647, %v15021_v57  ;;  %v6735_v34 = vadd.f32 0.18741608, %v6734_v45  ;;  %v6939_v32 = vmul.f32 3.8918573e-05, %v15116_v18 }
 0xa7f   : > { %v6853_v23 = vadd.f32 0.05243302, %v6852_v59  ;;  %v15132_v36 = vadd.f32 1.0, %v6867_v40  ;;  %v6810_v9 = vmul.f32 %v6809_v53, %v15081_v50  ;;  %v6822_v61 = vadd.f32 0.014752088, %v6821_v4 }
 0xa80   : > { %v6792_v8 = vmul.f32 %v15069_v55, %v6791_v3  ;;  %v6800_v60 = vand.u32 2147483648, %v15021_v57  ;;  %v6929_v52 = vadd.f32 0.00028619796, %v6928_v33  ;;  %v6940_v30 = vadd.f32 0.001143296, %v6939_v32 }
 0xa81   : > { %vm6794_vm0 = vweird.f32 %v15021_v57  ;;  %v6751_v43 = vsub.f32 1.0, %v6750_v15  ;;  %9047 = vrcp.f32 %v15132_v36  ;;  %v15139_v56 = vmin.f32 %v6886_v1, 16.0 }
 0xa82   : > { %v15142_v25 = vmul.f32 %v7303_v31, %v14848_v13  ;;  %v6683_v14 = vmul.f32 %v6682_v48, %v6658_v6  ;;  %v6736_v38 = vmul.f32 %v6735_v34, %v14949_v22  ;;  %v6823_v12 = vmul.f32 %v6822_v61, %v15081_v50 }
 0xa83   : > { %vm15146_vm3 = vcmp.eq.f32.partialorder %v6798_v17, 8.507059e+37  ;;  %v6854_v0 = vmul.f32 %v6853_v23, %v14999_v35  ;;  %v6811_v59 = vadd.f32 0.0036580483, %v6810_v9  ;;  %v6930_v53 = vmul.f32 %v6929_v52, %v15116_v18 }
 0xa84   : > { %v6941_v26 = vmul.f32 %v6940_v30, %v15116_v18  ;;  %v6793_v3 = vadd.f32 %v15069_v55, %v6792_v8  ;;  %vm6795_vm4 = vweird.f32 %v15069_v55  ;;  %v6801_v13 = vor.u32 1.1754944e-38, %v6800_v60  ;;  %v5932_v60 = vpop.f32.mrf.mxu0 }
 0xa85   : > { %v6824_v6 = vadd.f32 0.112945676, %v6823_v12  ;;  %v6752_v22 = vmul.f32 %v15113_v63, %v6751_v43  ;;  %v6931_v31 = vadd.f32 0.0036580483, %v6930_v53  ;;  %v6899_v15 = vmul.f32 3.8918573e-05, %v15139_v56  ;;  %vm15165_vm5 = vmor %vm6794_vm0, %vm6795_vm4 }
 0xa86   : > { %v6942_v1 = vadd.f32 0.014752088, %v6941_v26  ;;  %v8215_v40 = vclamps-f32 %v6683_v14, 1.0  ;;  %v6737_v4 = vadd.f32 1.1283791, %v6736_v38  ;;  %v15158_v33 = vmul.f32 0.5, %v15043_v2 }
 0xa87   : > { %v6825_v48 = vmul.f32 %v6824_v6, %v15081_v50  ;;  %v15161_v17 = vpop.eup %9047  ;;  %v6855_v32 = vadd.f32 0.18741608, %v6854_v0  ;;  %v6812_v23 = vmul.f32 %v6811_v59, %v15081_v50  ;;  %v6900_v61 = vadd.f32 0.001143296, %v6899_v15 }
 0xa88   : > { %v6943_v9 = vmul.f32 %v6942_v1, %v15116_v18  ;;  %v6797_v2 = vsel %vm15165_vm5, %v15069_v55, %v6793_v3  ;;  %vm6755_vm6 = vweird.f32 %v15113_v63  ;;  %v6870_v8 = vmul.f32 %v15161_v17, %v15132_v36 }
 0xa89   : > { %v6888_v57 = vmul.f32 2.1237322e-06, %v15139_v56  ;;  %v6753_v52 = vadd.f32 %v15113_v63, %v6752_v22  ;;  %v6826_v30 = vadd.f32 0.4994258, %v6825_v48  ;;  %v6932_v43 = vmul.f32 %v6931_v31, %v15116_v18 }
 0xa8a   : > { %v6944_v14 = vadd.f32 0.112945676, %v6943_v9  ;;  %vm6754_vm7 = vweird.f32 %v15057_v21  ;;  %v6760_v38 = vand.u32 2147483648, %v15057_v21  ;;  %v6871_v12 = vsub.f32 1.0, %v6870_v8 }
 0xa8b   : > { %v6901_v55 = vmul.f32 %v6900_v61, %v15139_v56  ;;  %v6758_v0 = vand.u32 2147483647, %v15057_v21  ;;  %v6813_v59 = vadd.f32 0.05243302, %v6812_v23  ;;  %v15186_v26 = vadd.f32 %v5932_v60, %v13969_v54  ;;  %vm15192_vm8 = vmor %vm6754_vm7, %vm6755_vm6 }
 0xa8c   : > { %v6945_v53 = vmul.f32 %v6944_v14, %v15116_v18  ;;  %v6802_v3 = vsel %vm15146_vm3, %v6801_v13, %v6797_v2  ;;  %v6856_v22 = vmul.f32 %v6855_v32, %v14999_v35  ;;  %v6889_v31 = vadd.f32 0.00028619796, %v6888_v57 }
 0xa8d   : > { %v6902_v1 = vadd.f32 0.014752088, %v6901_v55  ;;  %v6757_v21 = vsel %vm15192_vm8, %v15113_v63, %v6753_v52  ;;  %v6827_v15 = vmul.f32 %v6826_v30, %v15081_v50  ;;  %v6933_v48 = vadd.f32 0.05243302, %v6932_v43  ;;  %v5883_v55 = vpop.f32.mrf.mxu3 }
 0xa8e   : > { %v6946_v34 = vadd.f32 0.4994258, %v6945_v53  ;;  %v7302_v45 = vadd.f32 1.0, %v8215_v40  ;;  %v6761_v13 = vor.u32 1.1754944e-38, %v6760_v38  ;;  %v6872_v23 = vmul.f32 %v15161_v17, %v6871_v12 }
 0xa8f   : > { %v6903_v9 = vmul.f32 %v6902_v1, %v15139_v56  ;;  %v6738_v61 = vmul.f32 %v6737_v4, %v14921_v37  ;;  %vm6759_vm9 = vcmp.eq.f32.partialorder %v6758_v0, 8.507059e+37  ;;  %v6814_v35 = vmul.f32 %v6813_v59, %v15081_v50 }
 0xa90   : > { %v15206_v32 = vmul.f32 0.70710677, %v15186_v26  ;;  %v6803_v63 = vmul.f32 %v6802_v3, %v15119_v47  ;;  %v6762_v2 = vsel %vm6759_vm9, %v6761_v13, %v6757_v21  ;;  %v6947_v8 = vmul.f32 %v6946_v34, %v15116_v18 }
 0xa91   : > { %v6890_v40 = vmul.f32 %v6889_v31, %v15139_v56  ;;  %v6857_v57 = vadd.f32 1.1283791, %v6856_v22  ;;  %v15211_v60 = vadd.f32 1.0, %v6827_v15  ;;  %v6934_v52 = vmul.f32 %v6933_v48, %v15116_v18 }
 0xa92   : > { %v6904_v30 = vadd.f32 0.112945676, %v6903_v9  ;;  %v6873_v37 = vadd.f32 %v15161_v17, %v6872_v23  ;;  %vm6875_vm1 = vweird.f32 %v15161_v17  ;;  %v6880_v4 = vand.u32 2147483648, %v15132_v36  ;;  %v5934_v23 = vpop.f32.mrf.mxu0 }
 0xa93   : > { %v15217_v43 = vadd.f32 1.0, %v6947_v8  ;;  %v6763_v47 = vmul.f32 %v6762_v2, %v6738_v61  ;;  %v6815_v14 = vadd.f32 0.18741608, %v6814_v35  ;;  %v7006_v12 = vmul.f32 %v15206_v32, %v15206_v32 }
 0xa94   : > { %v6905_v38 = vmul.f32 %v6904_v30, %v15139_v56  ;;  %vm6874_vm2 = vweird.f32 %v15132_v36  ;;  %v6878_v0 = vand.u32 2147483647, %v15132_v36  ;;  %v6891_v59 = vadd.f32 0.0036580483, %v6890_v40 }
 0xa95   : > { %9049 = vrcp.f32 %v15217_v43  ;;  %v8218_v53 = vclamps-f32 %v6803_v63, 1.0  ;;  %vm15225_vm10 = vmor %vm6874_vm2, %vm6875_vm1  ;;  %v6935_v6 = vadd.f32 0.18741608, %v6934_v52  ;;  %v15230_v22 = vmin.f32 %v7006_v12, 16.0 }
 0xa96   : > { %9051 = vrcp.f32 %v15211_v60  ;;  %v15233_v31 = vmul.f32 %v7302_v45, %v14895_v24  ;;  %v6877_v36 = vsel %vm15225_vm10, %v15161_v17, %v6873_v37  ;;  %v6906_v1 = vadd.f32 0.4994258, %v6905_v38 }
 0xa97   : > { %v15239_v21 = vadd.f32 %v5883_v55, %v13984_v27  ;;  %v8217_v15 = vclamps-f32 %v6763_v47, 1.0  ;;  %v6881_v48 = vor.u32 1.1754944e-38, %v6880_v4  ;;  %v6816_v34 = vmul.f32 %v6815_v14, %v15081_v50  ;;  %v15267_v4 = vpop.f32.mrf.mxu2 }
 0xa98   : > { %v15243_v13 = vmul.f32 0.5, %v15063_v7  ;;  %vm6879_vm11 = vcmp.eq.f32.partialorder %v6878_v0, 8.507059e+37  ;;  %v6892_v24 = vmul.f32 %v6891_v59, %v15139_v56  ;;  %v6907_v45 = vmul.f32 %v6906_v1, %v15139_v56 }
 0xa99   : > { %v7019_v9 = vmul.f32 3.8918573e-05, %v15230_v22  ;;  %v7305_v17 = vadd.f32 1.0, %v8218_v53  ;;  %v6858_v61 = vmul.f32 %v6857_v57, %v14976_v5  ;;  %v6882_v35 = vsel %vm6879_vm11, %v6881_v48, %v6877_v36  ;;  %v15265_v57 = vpop.f32.mrf.mxu1 }
 0xa9a   : > { %v6936_v63 = vmul.f32 %v6935_v6, %v15116_v18  ;;  %v15252_v50 = vadd.f32 1.0, %v6907_v45  ;;  %v15255_v8 = vmul.f32 0.70710677, %v15239_v21  ;;  %v15258_v40 = vadd.f32 %v5934_v23, %v13969_v54 }
 0xa9b   : > { %v15250_v2 = vpop.eup %9049  ;;  %v7020_v7 = vadd.f32 0.001143296, %v7019_v9  ;;  %v7304_v30 = vadd.f32 1.0, %v8217_v15  ;;  %v6817_v37 = vadd.f32 1.1283791, %v6816_v34  ;;  %v6883_v47 = vmul.f32 %v6882_v35, %v6858_v61 }
 0xa9c   : > { %v15260_v52 = vpop.eup %9051  ;;  %v6950_v5 = vmul.f32 %v15250_v2, %v15217_v43  ;;  %v7008_v18 = vmul.f32 2.1237322e-06, %v15230_v22  ;;  %v15270_v14 = vmul.f32 0.5, %v15078_v11  ;;  %v6893_v38 = vadd.f32 0.05243302, %v6892_v24 }
 0xa9d   : > { %9053 = vrcp.f32 %v15252_v50  ;;  %v6840_v12 = vand.u32 2147483648, %v15211_v60  ;;  %v6937_v55 = vadd.f32 1.1283791, %v6936_v63  ;;  %v7021_v59 = vmul.f32 %v7020_v7, %v15230_v22 }
 0xa9e   : > { %v6951_v0 = vsub.f32 1.0, %v6950_v5  ;;  %v15276_v53 = vmul.f32 %v7305_v17, %v14938_v39  ;;  %v6830_v3 = vmul.f32 %v15260_v52, %v15211_v60  ;;  %v6966_v6 = vmul.f32 %v15255_v8, %v15255_v8 }
 0xa9f   : > { %v15283_v11 = vmul.f32 0.70710677, %v15258_v40  ;;  %v15286_v36 = vmul.f32 %v7304_v30, %v15024_v28  ;;  %v15289_v1 = vmul.f32 %v6817_v37, %v15051_v16  ;;  %v6838_v15 = vand.u32 2147483647, %v15211_v60 }
 0xaa0   : > { %v7009_v48 = vadd.f32 0.00028619796, %v7008_v18  ;;  %v8220_v39 = vclamps-f32 %v6883_v47, 1.0  ;;  %v6894_v34 = vmul.f32 %v6893_v38, %v15139_v56  ;;  %v7022_v23 = vadd.f32 0.014752088, %v7021_v59 }
 0xaa1   : > { %v15293_v24 = vmin.f32 %v6966_v6, 16.0  ;;  %v15295_v45 = vor.u32 1.1754944e-38, %v6840_v12  ;;  %v15298_v9 = vmul.f32 %v6937_v55, %v15085_v44  ;;  %v6952_v28 = vmul.f32 %v15250_v2, %v6951_v0 }
 0xaa2   : > { %v7357_v16 = vpack.c.bf16 %v15066_v62, %v14867_v51  ;;  %v6831_v61 = vsub.f32 1.0, %v6830_v3  ;;  %v7023_v35 = vmul.f32 %v7022_v23, %v15230_v22  ;;  %v7086_v7 = vmul.f32 %v15283_v11, %v15283_v11  ;;  %v15313_v51 = vpop.f32.mrf.mxu1  ;;  %v15315_v62 = vpop.f32.mrf.mxu2 }
 0xaa3   : > { %v15303_v17 = vpop.eup %9053  ;;  %v6979_v63 = vmul.f32 3.8918573e-05, %v15293_v24  ;;  %vm6954_vm12 = vweird.f32 %v15217_v43  ;;  %v6958_v44 = vand.u32 2147483647, %v15217_v43  ;;  %v6960_v30 = vand.u32 2147483648, %v15217_v43  ;;  %v5885_v43 = vpop.f32.mrf.mxu3 }
 0xaa4   : > { %v7010_v37 = vmul.f32 %v7009_v48, %v15230_v22  ;;  %7570 = vmatmul.bf16.gmra.mxu2 %v7357_v16  ;;  %v7307_v5 = vadd.f32 1.0, %v8220_v39  ;;  %vm6834_vm13 = vweird.f32 %v15211_v60  ;;  %v6895_v18 = vadd.f32 0.18741608, %v6894_v34  ;;  %v15391_v60 = vld [vmem:[%s16510_s26] ss:$0 sm:$0xff] }
 0xaa5   : > { %v6910_v47 = vmul.f32 %v15303_v17, %v15252_v50  ;;  %v7024_v38 = vadd.f32 0.112945676, %v7023_v35  ;;  %v6953_v12 = vadd.f32 %v15250_v2, %v6952_v28  ;;  %vm6955_vm14 = vweird.f32 %v15250_v2 }
 0xaa6   : > { %v6968_v55 = vmul.f32 2.1237322e-06, %v15293_v24  ;;  %v6980_v0 = vadd.f32 0.001143296, %v6979_v63  ;;  %v6832_v59 = vmul.f32 %v15260_v52, %v6831_v61  ;;  %vm6835_vm15 = vweird.f32 %v15260_v52  ;;  %vm15335_vm3 = vmor %vm6954_vm12, %vm6955_vm14 }
 0xaa7   : > { %v7025_v3 = vmul.f32 %v7024_v38, %v15230_v22  ;;  %v15326_v6 = vmin.f32 %v7086_v7, 16.0  ;;  %vm15328_vm0 = vcmp.eq.f32.partialorder %v6958_v44, 8.507059e+37  ;;  %v6961_v39 = vor.u32 1.1754944e-38, %v6960_v30  ;;  %vm15375_vm5 = vmor %vm6834_vm13, %vm6835_vm15 }
 0xaa8   : > { %v7011_v34 = vadd.f32 0.0036580483, %v7010_v37  ;;  %v6981_v23 = vmul.f32 %v6980_v0, %v15293_v24  ;;  %v6911_v16 = vsub.f32 1.0, %v6910_v47  ;;  %v7356_v63 = vpack.c.bf16 %v15092_v42, %v15004_v10 }
 0xaa9   : > { %v7026_v61 = vadd.f32 0.4994258, %v7025_v3  ;;  %v7088_v35 = vmul.f32 2.1237322e-06, %v15326_v6  ;;  %v6957_v7 = vsel %vm15335_vm3, %v15250_v2, %v6953_v12  ;;  %v6896_v44 = vmul.f32 %v6895_v18, %v15139_v56 }
 0xaaa   : > { %v6969_v30 = vadd.f32 0.00028619796, %v6968_v55  ;;  %v6982_v37 = vadd.f32 0.014752088, %v6981_v23  ;;  %v6833_v38 = vadd.f32 %v15260_v52, %v6832_v59  ;;  %vm15347_vm4 = vcmp.eq.f32.partialorder %v6838_v15, 8.507059e+37  ;;  %7521 = vmatmul.bf16.gmra.mxu1 %v7356_v63  ;;  %v15359_v15 = vpop.f32.mrf.mxu1  ;;  %v15361_v12 = vpop.f32.mrf.mxu2 }
 0xaab   : > { %v7027_v47 = vmul.f32 %v7026_v61, %v15230_v22  ;;  %v7089_v3 = vadd.f32 0.00028619796, %v7088_v35  ;;  %v7099_v10 = vmul.f32 3.8918573e-05, %v15326_v6  ;;  %v15354_v42 = vmul.f32 %v7307_v5, %v15111_v41 }
 0xaac   : > { %v6918_v56 = vand.u32 2147483647, %v15252_v50  ;;  %v7012_v2 = vmul.f32 %v7011_v34, %v15230_v22  ;;  %v6983_v18 = vmul.f32 %v6982_v37, %v15293_v24  ;;  %v6962_v55 = vsel %vm15328_vm0, %v6961_v39, %v6957_v7 }
 0xaad   : > { %v6912_v59 = vmul.f32 %v15303_v17, %v6911_v16  ;;  %v15366_v23 = vadd.f32 1.0, %v7027_v47  ;;  %v15369_v41 = vadd.f32 %v5885_v43, %v13984_v27  ;;  %v6970_v34 = vmul.f32 %v6969_v30, %v15293_v24 }
 0xaae   : > { %v6984_v28 = vadd.f32 0.112945676, %v6983_v18  ;;  %v7090_v48 = vmul.f32 %v7089_v3, %v15326_v6  ;;  %v7100_v39 = vadd.f32 0.001143296, %v7099_v10  ;;  %v6837_v16 = vsel %vm15375_vm5, %v15260_v52, %v6833_v38 }
 0xaaf   : > { %v6897_v61 = vadd.f32 1.1283791, %v6896_v44  ;;  %v6920_v35 = vand.u32 2147483648, %v15252_v50  ;;  %9055 = vrcp.f32 %v15366_v23  ;;  %vm6915_vm6 = vweird.f32 %v15303_v17 }
 0xab0   : > { %vm15394_vm7 = vcmp.eq.f32.partialorder %v6918_v56, 8.507059e+37  ;;  %v7013_v7 = vadd.f32 0.05243302, %v7012_v2  ;;  %v6985_v52 = vmul.f32 %v6984_v28, %v15293_v24  ;;  %v6963_v44 = vmul.f32 %v6962_v55, %v15298_v9 }
 0xab1   : > { %v6913_v30 = vadd.f32 %v15303_v17, %v6912_v59  ;;  %v7101_v37 = vmul.f32 %v7100_v39, %v15326_v6  ;;  %v15403_v43 = vmul.f32 0.70710677, %v15369_v41  ;;  %vm6914_vm8 = vweird.f32 %v15252_v50 }
 0xab2   : > { %v6971_v38 = vadd.f32 0.0036580483, %v6970_v34  ;;  %v6986_v47 = vadd.f32 0.4994258, %v6985_v52  ;;  %v7091_v3 = vadd.f32 0.0036580483, %v7090_v48  ;;  %v7508_v2 = vadd.f32 %v15391_v60, %v15265_v57  ;;  %vm15417_vm9 = vmor %vm6914_vm8, %vm6915_vm6  ;;  %v7514_v34 = vpop.f32.mrf.mxu1  ;;  %v15431_v0 = vpop.f32.mrf.mxu2 }
 0xab3   : > { %v7102_v10 = vadd.f32 0.014752088, %v7101_v37  ;;  %v7046_v56 = vmul.f32 %v15403_v43, %v15403_v43  ;;  %v7359_v9 = vpack.c.bf16 %v15276_v53, %v15142_v25  ;;  %v6842_v18 = vsel %vm15347_vm4, %v15295_v45, %v6837_v16 }
 0xab4   : > { %v6921_v55 = vor.u32 1.1754944e-38, %v6920_v35  ;;  %v7014_v59 = vmul.f32 %v7013_v7, %v15230_v22  ;;  %v6987_v5 = vmul.f32 %v6986_v47, %v15293_v24  ;;  %v8222_v28 = vclamps-f32 %v6963_v44, 1.0 }
 0xab5   : > { %v15423_v57 = vpop.eup %9055  ;;  %v6917_v25 = vsel %vm15417_vm9, %v15303_v17, %v6913_v30  ;;  %v7103_v53 = vmul.f32 %v7102_v10, %v15326_v6  ;;  %v15429_v45 = vmin.f32 %v7046_v56, 16.0  ;;  %7575 = vmatmul.bf16.gmra.mxu2 %v7359_v9  ;;  %v6972_v39 = vmul.f32 %v6971_v38, %v15293_v24 }
 0xab6   : > { %v7030_v48 = vmul.f32 %v15423_v57, %v15366_v23  ;;  %v15436_v16 = vadd.f32 1.0, %v6987_v5  ;;  %v7557_v35 = vadd.f32 %v15267_v4, %v7508_v2  ;;  %v7092_v7 = vmul.f32 %v7091_v3, %v15326_v6 }
 0xab7   : > { %v7104_v52 = vadd.f32 0.112945676, %v7103_v53  ;;  %v7048_v17 = vmul.f32 2.1237322e-06, %v15429_v45  ;;  %v7059_v44 = vmul.f32 3.8918573e-05, %v15429_v45  ;;  %v6922_v30 = vsel %vm15394_vm7, %v6921_v55, %v6917_v25 }
 0xab8   : > { %v7031_v37 = vsub.f32 1.0, %v7030_v48  ;;  %9057 = vrcp.f32 %v15436_v16  ;;  %v7510_v38 = vadd.f32 %v15391_v60, %v15313_v51  ;;  %v6843_v47 = vmul.f32 %v6842_v18, %v15289_v1 }
 0xab9   : > { %v7309_v10 = vadd.f32 1.0, %v8222_v28  ;;  %v6898_v4 = vmul.f32 %v6897_v61, %v15104_v19  ;;  %v7105_v3 = vmul.f32 %v7104_v52, %v15326_v6  ;;  %v7015_v56 = vadd.f32 0.18741608, %v7014_v59 }
 0xaba   : > { %v7049_v2 = vadd.f32 0.00028619796, %v7048_v17  ;;  %v7060_v9 = vadd.f32 0.001143296, %v7059_v44  ;;  %v7596_v50 = vadd.f32 %v7557_v35, %v13701_v46  ;;  %v6973_v55 = vadd.f32 0.05243302, %v6972_v39  ;;  %v7517_v61 = vpop.f32.mrf.mxu1 }
 0xabb   : > { %v6923_v63 = vmul.f32 %v6922_v30, %v6898_v4  ;;  %v7093_v5 = vadd.f32 0.05243302, %v7092_v7  ;;  %v7106_v25 = vadd.f32 0.4994258, %v7105_v3  ;;  %v7032_v53 = vmul.f32 %v15423_v57, %v7031_v37 }
 0xabc   : > { %v7050_v51 = vmul.f32 %v7049_v2, %v15429_v45  ;;  %v7061_v1 = vmul.f32 %v7060_v9, %v15429_v45  ;;  %7612 = vst [vmem:[#allocation23] sm:$0xff] %v7596_v50  ;;  %v7559_v19 = vadd.f32 %v15315_v62, %v7510_v38  ;;  %v7341_v18 = vmul.f32 %v7309_v10, %v15243_v13 }
 0xabd   : > { %v7107_v59 = vmul.f32 %v7106_v25, %v15326_v6  ;;  %v7358_v46 = vpack.c.bf16 %v15286_v36, %v15233_v31  ;;  %v7513_v28 = vadd.f32 %v15391_v60, %v15359_v15  ;;  %v8219_v39 = vclamps-f32 %v6843_v47, 1.0  ;;  %v7566_v31 = vpop.f32.mrf.mxu2 }
 0xabe   : > { %v15461_v48 = vpop.eup %9057  ;;  %v7016_v35 = vmul.f32 %v7015_v56, %v15230_v22  ;;  %v7062_v7 = vadd.f32 0.014752088, %v7061_v1  ;;  %v7597_v52 = vadd.f32 %v7559_v19, %v13713_v29  ;;  %v8221_v62 = vclamps-f32 %v6923_v63, 1.0 }
 0xabf   : > { %vm7035_vm1 = vweird.f32 %v15423_v57  ;;  %v6974_v13 = vmul.f32 %v6973_v55, %v15293_v24  ;;  %v7094_v17 = vmul.f32 %v7093_v5, %v15326_v6  ;;  %7526 = vmatmul.bf16.gmra.mxu1 %v7358_v46  ;;  %v7033_v36 = vadd.f32 %v15423_v57, %v7032_v53 }
 0xac0   : > { %v15469_v15 = vadd.f32 1.0, %v7107_v59  ;;  %v7051_v44 = vadd.f32 0.0036580483, %v7050_v51  ;;  %v7063_v30 = vmul.f32 %v7062_v7, %v15429_v45  ;;  %7613 = vst [vmem:[#allocation23 + $0x8] sm:$0xff] %v7597_v52  ;;  %v6990_v29 = vmul.f32 %v15461_v48, %v15436_v16  ;;  %v5937_v7 = vpop.f32.mrf.mxu0 }
 0xac1   : > { %v7562_v22 = vadd.f32 %v15361_v12, %v7513_v28  ;;  %v7361_v37 = vpack.c.bf16 %v7341_v18, %v15354_v42  ;;  %v7515_v38 = vadd.f32 %v15391_v60, %v7514_v34  ;;  %v7306_v47 = vadd.f32 1.0, %v8219_v39 }
 0xac2   : > { %v7017_v10 = vadd.f32 1.1283791, %v7016_v35  ;;  %v7040_v4 = vand.u32 2147483648, %v15366_v23  ;;  %9059 = vrcp.f32 %v15469_v15  ;;  %v7308_v3 = vadd.f32 1.0, %v8221_v62  ;;  %v7519_v63 = vpop.f32.mrf.mxu1 }
 0xac3   : > { %vm7034_vm2 = vweird.f32 %v15366_v23  ;;  %v7038_v56 = vand.u32 2147483647, %v15366_v23  ;;  %v7064_v2 = vadd.f32 0.112945676, %v7063_v30  ;;  %v6975_v42 = vadd.f32 0.18741608, %v6974_v13 }
 0xac4   : > { %vm15483_vm10 = vmor %vm7034_vm2, %vm7035_vm1  ;;  %v7052_v34 = vmul.f32 %v7051_v44, %v15429_v45  ;;  %v7598_v9 = vadd.f32 %v7562_v22, %v13717_v58  ;;  %v7564_v50 = vadd.f32 %v15431_v0, %v7515_v38  ;;  %v6991_v23 = vsub.f32 1.0, %v6990_v29  ;;  %v16517_v30 = vld [vmem:[#allocation79_spill] sm:$0xff] }
 0xac5   : > { %v7037_v55 = vsel %vm15483_vm10, %v15423_v57, %v7033_v36  ;;  %v7095_v5 = vadd.f32 0.18741608, %v7094_v17  ;;  %v7065_v25 = vmul.f32 %v7064_v2, %v15429_v45  ;;  %7580 = vmatmul.bf16.gmra.mxu2 %v7361_v37  ;;  %v7338_v53 = vmul.f32 %v7306_v47, %v15158_v33 }
 0xac6   : > { %v7041_v51 = vor.u32 1.1754944e-38, %v7040_v4  ;;  %7614 = vst [vmem:[#allocation23 + $0x10] sm:$0xff] %v7598_v9  ;;  %v7599_v1 = vadd.f32 %v7564_v50, %v13721_v20  ;;  %v7518_v58 = vadd.f32 %v15391_v60, %v7517_v61  ;;  %v7340_v0 = vmul.f32 %v7308_v3, %v15270_v14  ;;  %v7568_v14 = vpop.f32.mrf.mxu2 }
 0xac7   : > { %vm7039_vm11 = vcmp.eq.f32.partialorder %v7038_v56, 8.507059e+37  ;;  %v7066_v19 = vadd.f32 0.4994258, %v7065_v25  ;;  %v7520_v18 = vadd.f32 %v15391_v60, %v7519_v63  ;;  %v7018_v59 = vmul.f32 %v7017_v10, %v15206_v32 }
 0xac8   : > { %v9060_v57 = vpop.eup %9059  ;;  %v7042_v46 = vsel %vm7039_vm11, %v7041_v51, %v7037_v55  ;;  %v7053_v28 = vadd.f32 0.05243302, %v7052_v34  ;;  %7615 = vst [vmem:[#allocation23 + $0x18] sm:$0xff] %v7599_v1  ;;  %v7567_v39 = vadd.f32 %v7566_v31, %v7518_v58  ;;  %v6976_v33 = vmul.f32 %v6975_v42, %v15293_v24 }
 0xac9   : > { %v6992_v35 = vmul.f32 %v15461_v48, %v6991_v23  ;;  %v7096_v20 = vmul.f32 %v7095_v5, %v15326_v6  ;;  %v7110_v61 = vmul.f32 %v9060_v57, %v15469_v15  ;;  %v7067_v52 = vmul.f32 %v7066_v19, %v15429_v45 }
 0xaca   : > { %v7600_v62 = vadd.f32 %v7567_v39, %v13725_v49  ;;  %v7569_v13 = vadd.f32 %v7568_v14, %v7520_v18  ;;  %v15507_v32 = vadd.f32 %v5937_v7, %v13969_v54  ;;  %v7043_v17 = vmul.f32 %v7042_v46, %v7018_v59 }
 0xacb   : > { %v7111_v31 = vsub.f32 1.0, %v7110_v61  ;;  %v7120_v24 = vand.u32 2147483648, %v15469_v15  ;;  %v7360_v36 = vpack.c.bf16 %v7340_v0, %v7338_v53  ;;  %v7054_v44 = vmul.f32 %v7053_v28, %v15429_v45 }
 0xacc   : > { %v15511_v6 = vadd.f32 1.0, %v7067_v52  ;;  %7616 = vst [vmem:[#allocation23 + $0x20] sm:$0xff] %v7600_v62  ;;  %v7601_v29 = vadd.f32 %v7569_v13, %v16517_v30  ;;  %v15515_v22 = vmul.f32 0.70710677, %v15507_v32  ;;  %v7097_v49 = vadd.f32 1.1283791, %v7096_v20 }
 0xacd   : > { %v7112_v37 = vmul.f32 %v9060_v57, %v7111_v31  ;;  %vm7115_vm12 = vweird.f32 %v9060_v57  ;;  %v7118_v38 = vand.u32 2147483647, %v15469_v15  ;;  %v6993_v47 = vadd.f32 %v15461_v48, %v6992_v35 }
 0xace   : > { %vm6995_vm13 = vweird.f32 %v15461_v48  ;;  %v7000_v10 = vand.u32 2147483648, %v15436_v16  ;;  %9061 = vrcp.f32 %v15511_v6  ;;  %7617 = vst [vmem:[#allocation23 + $0x28] sm:$0xff] %v7601_v29  ;;  %v8224_v4 = vclamps-f32 %v7043_v17, 1.0 }
 0xacf   : > { %v7113_v3 = vadd.f32 %v9060_v57, %v7112_v37  ;;  %vm7114_vm14 = vweird.f32 %v15469_v15  ;;  %7531 = vmatmul.bf16.gmra.mxu1 %v7360_v36  ;;  %v7166_v56 = vmul.f32 %v15515_v22, %v15515_v22  ;;  %vm6994_vm15 = vweird.f32 %v15436_v16 }
 0xad0   : > { %v6998_v2 = vand.u32 2147483647, %v15436_v16  ;;  %vm7116_vm0 = vmor %vm7114_vm14, %vm7115_vm12  ;;  %v7121_v12 = vor.u32 1.1754944e-38, %v7120_v24  ;;  %v7055_v42 = vadd.f32 0.18741608, %v7054_v44  ;;  %v7098_v9 = vmul.f32 %v7097_v49, %v15283_v11  ;;  %v5888_v44 = vpop.f32.mrf.mxu3 }
 0xad1   : > { %vm15527_vm3 = vmor %vm6994_vm15, %vm6995_vm13  ;;  %v7117_v50 = vsel %vm7116_vm0, %v9060_v57, %v7113_v3  ;;  %vm7119_vm4 = vcmp.eq.f32.partialorder %v7118_v38, 8.507059e+37  ;;  %v15532_v15 = vmin.f32 %v7166_v56, 16.0  ;;  %v6977_v63 = vadd.f32 1.1283791, %v6976_v33 }
 0xad2   : > { %v6997_v55 = vsel %vm15527_vm3, %v15461_v48, %v6993_v47  ;;  %v7122_v23 = vsel %vm7119_vm4, %v7121_v12, %v7117_v50  ;;  %v7311_v16 = vadd.f32 1.0, %v8224_v4  ;;  %v7001_v5 = vor.u32 1.1754944e-38, %v7000_v10 }
 0xad3   : > { %v7123_v25 = vmul.f32 %v7122_v23, %v7098_v9  ;;  %v7179_v53 = vmul.f32 3.8918573e-05, %v15532_v15  ;;  %vm6999_vm5 = vcmp.eq.f32.partialorder %v6998_v2, 8.507059e+37  ;;  %v7056_v1 = vmul.f32 %v7055_v42, %v15429_v45  ;;  %v5939_v42 = vpop.f32.mrf.mxu0 }
 0xad4   : > { %v9062_v51 = vpop.eup %9061  ;;  %v5967_v11 = vmul.f32 0.5, %v15186_v26  ;;  %v7002_v58 = vsel %vm6999_vm5, %v7001_v5, %v6997_v55  ;;  %v6978_v18 = vmul.f32 %v6977_v63, %v15255_v8  ;;  %v5969_v59 = vmul.f32 0.5, %v15258_v40 }
 0xad5   : > { %v8226_v0 = vclamps-f32 %v7123_v25, 1.0  ;;  %v7070_v19 = vmul.f32 %v9062_v51, %v15511_v6  ;;  %v7180_v57 = vadd.f32 0.001143296, %v7179_v53  ;;  %v7057_v33 = vadd.f32 1.1283791, %v7056_v1 }
 0xad6   : > { %v7343_v48 = vmul.f32 %v7311_v16, %v5967_v11  ;;  %v7003_v39 = vmul.f32 %v7002_v58, %v6978_v18  ;;  %v7080_v35 = vand.u32 2147483648, %v15511_v6  ;;  %vm7075_vm6 = vweird.f32 %v9062_v51 }
 0xad7   : > { %v7313_v46 = vadd.f32 1.0, %v8226_v0  ;;  %v7071_v28 = vsub.f32 1.0, %v7070_v19  ;;  %v7181_v45 = vmul.f32 %v7180_v57, %v15532_v15  ;;  %v7078_v61 = vand.u32 2147483647, %v15511_v6 }
 0xad8   : > { %vm7074_vm7 = vweird.f32 %v15511_v6  ;;  %v7081_v40 = vor.u32 1.1754944e-38, %v7080_v35  ;;  %v8223_v62 = vclamps-f32 %v7003_v39, 1.0  ;;  %v7058_v13 = vmul.f32 %v7057_v33, %v15403_v43  ;;  %v5890_v25 = vpop.f32.mrf.mxu3 }
 0xad9   : > { %v7345_v20 = vmul.f32 %v7313_v46, %v5969_v59  ;;  %v7072_v26 = vmul.f32 %v9062_v51, %v7071_v28  ;;  %v7182_v14 = vadd.f32 0.014752088, %v7181_v45  ;;  %vm7076_vm8 = vmor %vm7074_vm7, %vm7075_vm6  ;;  %vm7079_vm9 = vcmp.eq.f32.partialorder %v7078_v61, 8.507059e+37 }
 0xada   : > { %v15551_v29 = vadd.f32 %v5888_v44, %v13984_v27  ;;  %v7310_v6 = vadd.f32 1.0, %v8223_v62  ;;  %v7168_v37 = vmul.f32 2.1237322e-06, %v15532_v15  ;;  %v5966_v43 = vmul.f32 0.5, %v15239_v21 }
 0xadb   : > { %v7073_v7 = vadd.f32 %v9062_v51, %v7072_v26  ;;  %v7363_v8 = vpack.c.bf16 %v7345_v20, %v7343_v48  ;;  %v7183_v52 = vmul.f32 %v7182_v14, %v15532_v15  ;;  %v5968_v10 = vmul.f32 0.5, %v15369_v41 }
 0xadc   : > { %v15555_v47 = vmul.f32 0.70710677, %v15551_v29  ;;  %v7342_v56 = vmul.f32 %v7310_v6, %v5966_v43  ;;  %v7169_v12 = vadd.f32 0.00028619796, %v7168_v37  ;;  %v15565_v50 = vadd.f32 %v5939_v42, %v13969_v54 }
 0xadd   : > { %v7077_v17 = vsel %vm7076_vm8, %v9062_v51, %v7073_v7  ;;  %7585 = vmatmul.bf16.gmra.mxu2 %v7363_v8  ;;  %v7184_v24 = vadd.f32 0.112945676, %v7183_v52  ;;  %v15578_v54 = vadd.f32 %v5890_v25, %v13984_v27 }
 0xade   : > { %v7082_v31 = vsel %vm7079_vm9, %v7081_v40, %v7077_v17  ;;  %v7126_v3 = vmul.f32 %v15555_v47, %v15555_v47  ;;  %v7170_v21 = vmul.f32 %v7169_v12, %v15532_v15  ;;  %v15573_v16 = vmul.f32 0.70710677, %v15565_v50 }
 0xadf   : > { %v7083_v36 = vmul.f32 %v7082_v31, %v7058_v13  ;;  %v7185_v30 = vmul.f32 %v7184_v24, %v15532_v15  ;;  %v15585_v0 = vmul.f32 0.70710677, %v15578_v54 }
 0xae0   : > { %v15562_v9 = vmin.f32 %v7126_v3, 16.0  ;;  %v7246_v53 = vmul.f32 %v15573_v16, %v15573_v16  ;;  %v7171_v51 = vadd.f32 0.0036580483, %v7170_v21 }
 0xae1   : > { %v8225_v49 = vclamps-f32 %v7083_v36, 1.0  ;;  %v7186_v38 = vadd.f32 0.4994258, %v7185_v30  ;;  %v7206_v27 = vmul.f32 %v15585_v0, %v15585_v0 }
 0xae2   : > { %v7139_v41 = vmul.f32 3.8918573e-05, %v15562_v9  ;;  %v7128_v23 = vmul.f32 2.1237322e-06, %v15562_v9  ;;  %v15582_v58 = vmin.f32 %v7246_v53, 16.0  ;;  %v7172_v48 = vmul.f32 %v7171_v51, %v15532_v15 }
 0xae3   : > { %v7312_v4 = vadd.f32 1.0, %v8225_v49  ;;  %v7187_v34 = vmul.f32 %v7186_v38, %v15532_v15  ;;  %v15594_v33 = vmin.f32 %v7206_v27, 16.0 }
 0xae4   : > { %v7140_v5 = vadd.f32 0.001143296, %v7139_v41  ;;  %v7129_v11 = vadd.f32 0.00028619796, %v7128_v23  ;;  %v7248_v18 = vmul.f32 2.1237322e-06, %v15582_v58 }
 0xae5   : > { %v7344_v2 = vmul.f32 %v7312_v4, %v5968_v10  ;;  %v15569_v55 = vadd.f32 1.0, %v7187_v34  ;;  %v7259_v57 = vmul.f32 3.8918573e-05, %v15582_v58  ;;  %v7208_v61 = vmul.f32 2.1237322e-06, %v15594_v33 }
 0xae6   : > { %v7141_v1 = vmul.f32 %v7140_v5, %v15562_v9  ;;  %v7130_v46 = vmul.f32 %v7129_v11, %v15562_v9  ;;  %v7249_v28 = vadd.f32 0.00028619796, %v7248_v18  ;;  %v7219_v14 = vmul.f32 3.8918573e-05, %v15594_v33 }
 0xae7   : > { %v7362_v63 = vpack.c.bf16 %v7344_v2, %v7342_v56  ;;  %9063 = vrcp.f32 %v15569_v55  ;;  %v7260_v39 = vadd.f32 0.001143296, %v7259_v57  ;;  %v7173_v7 = vadd.f32 0.05243302, %v7172_v48 }
 0xae8   : > { %v7142_v19 = vadd.f32 0.014752088, %v7141_v1  ;;  %v7250_v20 = vmul.f32 %v7249_v28, %v15582_v58  ;;  %v7131_v40 = vadd.f32 0.0036580483, %v7130_v46  ;;  %v7209_v62 = vadd.f32 0.00028619796, %v7208_v61 }
 0xae9   : > { %7536 = vmatmul.bf16.gmra.mxu1 %v7362_v63  ;;  %v7261_v26 = vmul.f32 %v7260_v39, %v15582_v58  ;;  %v7220_v24 = vadd.f32 0.001143296, %v7219_v14  ;;  %v7174_v49 = vmul.f32 %v7173_v7, %v15532_v15  ;;  %v7200_v27 = vand.u32 2147483648, %v15569_v55 }
 0xaea   : > { %v7143_v59 = vmul.f32 %v7142_v19, %v15562_v9  ;;  %v7251_v31 = vadd.f32 0.0036580483, %v7250_v20  ;;  %v7210_v44 = vmul.f32 %v7209_v62, %v15594_v33  ;;  %v7132_v37 = vmul.f32 %v7131_v40, %v15562_v9 }
 0xaeb   : > { %v7262_v52 = vadd.f32 0.014752088, %v7261_v26  ;;  %v7221_v6 = vmul.f32 %v7220_v24, %v15594_v33  ;;  %v7175_v12 = vadd.f32 0.18741608, %v7174_v49  ;;  %vm7194_vm2 = vweird.f32 %v15569_v55 }
 0xaec   : > { %v7144_v35 = vadd.f32 0.112945676, %v7143_v59  ;;  %v7252_v4 = vmul.f32 %v7251_v31, %v15582_v58  ;;  %v7211_v2 = vadd.f32 0.0036580483, %v7210_v44  ;;  %v7133_v42 = vadd.f32 0.05243302, %v7132_v37 }
 0xaed   : > { %v15596_v45 = vpop.eup %9063  ;;  %v7263_v36 = vmul.f32 %v7262_v52, %v15582_v58  ;;  %v7222_v3 = vadd.f32 0.014752088, %v7221_v6  ;;  %v7176_v53 = vmul.f32 %v7175_v12, %v15532_v15  ;;  %v7198_v15 = vand.u32 2147483647, %v15569_v55 }
 0xaee   : > { %v7145_v8 = vmul.f32 %v7144_v35, %v15562_v9  ;;  %v7190_v13 = vmul.f32 %v15596_v45, %v15569_v55  ;;  %v7253_v21 = vadd.f32 0.05243302, %v7252_v4  ;;  %v7212_v23 = vmul.f32 %v7211_v2, %v15594_v33 }
 0xaef   : > { %v7264_v38 = vadd.f32 0.112945676, %v7263_v36  ;;  %v7223_v34 = vmul.f32 %v7222_v3, %v15594_v33  ;;  %v7134_v51 = vmul.f32 %v7133_v42, %v15562_v9  ;;  %vm7195_vm1 = vweird.f32 %v15596_v45 }
 0xaf0   : > { %v7146_v17 = vadd.f32 0.4994258, %v7145_v8  ;;  %v7191_v43 = vsub.f32 1.0, %v7190_v13  ;;  %v7254_v18 = vmul.f32 %v7253_v21, %v15582_v58  ;;  %v7213_v59 = vadd.f32 0.05243302, %v7212_v23  ;;  %vm7196_vm10 = vmor %vm7194_vm2, %vm7195_vm1 }
 0xaf1   : > { %v7265_v56 = vmul.f32 %v7264_v38, %v15582_v58  ;;  %v7224_v5 = vadd.f32 0.112945676, %v7223_v34  ;;  %v7135_v28 = vadd.f32 0.18741608, %v7134_v51  ;;  %v7177_v20 = vadd.f32 1.1283791, %v7176_v53 }
 0xaf2   : > { %v7147_v30 = vmul.f32 %v7146_v17, %v15562_v9  ;;  %v7192_v63 = vmul.f32 %v15596_v45, %v7191_v43  ;;  %v7255_v61 = vadd.f32 0.18741608, %v7254_v18  ;;  %v7201_v14 = vor.u32 1.1754944e-38, %v7200_v27 }
 0xaf3   : > { %v7266_v41 = vadd.f32 0.4994258, %v7265_v56  ;;  %v7225_v1 = vmul.f32 %v7224_v5, %v15594_v33  ;;  %v7214_v8 = vmul.f32 %v7213_v59, %v15594_v33  ;;  %vm7199_vm11 = vcmp.eq.f32.partialorder %v7198_v15, 8.507059e+37 }
 0xaf4   : > { %v15611_v10 = vadd.f32 1.0, %v7147_v30  ;;  %v7193_v19 = vadd.f32 %v15596_v45, %v7192_v63  ;;  %v7136_v62 = vmul.f32 %v7135_v28, %v15562_v9  ;;  %v7178_v13 = vmul.f32 %v7177_v20, %v15515_v22 }
 0xaf5   : > { %v7267_v25 = vmul.f32 %v7266_v41, %v15582_v58  ;;  %v7226_v46 = vadd.f32 0.4994258, %v7225_v1  ;;  %v7256_v31 = vmul.f32 %v7255_v61, %v15582_v58  ;;  %v7215_v36 = vadd.f32 0.18741608, %v7214_v8 }
 0xaf6   : > { %9065 = vrcp.f32 %v15611_v10  ;;  %v7197_v26 = vsel %vm7196_vm10, %v15596_v45, %v7193_v19  ;;  %v7160_v45 = vand.u32 2147483648, %v15611_v10  ;;  %vm7154_vm13 = vweird.f32 %v15611_v10 }
 0xaf7   : > { %v7268_v57 = vadd.f32 1.0, %v7267_v25  ;;  %v7227_v35 = vmul.f32 %v7226_v46, %v15594_v33  ;;  %v7202_v52 = vsel %vm7199_vm11, %v7201_v14, %v7197_v26  ;;  %v7158_v30 = vand.u32 2147483647, %v15611_v10 }
 0xaf8   : > { %v7203_v44 = vmul.f32 %v7202_v52, %v7178_v13  ;;  %v7137_v6 = vadd.f32 1.1283791, %v7136_v62  ;;  %v7257_v37 = vadd.f32 1.1283791, %v7256_v31  ;;  %v7161_v4 = vor.u32 1.1754944e-38, %v7160_v45 }
 0xaf9   : > { %9067 = vrcp.f32 %v7268_v57  ;;  %v7228_v40 = vadd.f32 1.0, %v7227_v35  ;;  %v7278_v58 = vand.u32 2147483647, %v7268_v57  ;;  %v7280_v38 = vand.u32 2147483648, %v7268_v57 }
 0xafa   : > { %v7216_v56 = vmul.f32 %v7215_v36, %v15594_v33  ;;  %v8228_v2 = vclamps-f32 %v7203_v44, 1.0  ;;  %vm7159_vm0 = vcmp.eq.f32.partialorder %v7158_v30, 8.507059e+37  ;;  %v7138_v12 = vmul.f32 %v7137_v6, %v15555_v47 }
 0xafb   : > { %9069 = vrcp.f32 %v7228_v40  ;;  %vm7274_vm3 = vweird.f32 %v7268_v57  ;;  %v7258_v63 = vmul.f32 %v7257_v37, %v15573_v16  ;;  %vm7279_vm5 = vcmp.eq.f32.partialorder %v7278_v58, 8.507059e+37 }
 0xafc   : > { %v9066_v11 = vpop.eup %9065  ;;  %v7281_v21 = vor.u32 1.1754944e-38, %v7280_v38  ;;  %v7217_v5 = vadd.f32 1.1283791, %v7216_v56  ;;  %v7238_v25 = vand.u32 2147483647, %v7228_v40  ;;  %v7240_v53 = vand.u32 2147483648, %v7228_v40 }
 0xafd   : > { %v7150_v48 = vmul.f32 %v9066_v11, %v15611_v10  ;;  %vm7155_vm12 = vweird.f32 %v9066_v11  ;;  %vm7234_vm7 = vweird.f32 %v7228_v40  ;;  %v7315_v47 = vadd.f32 1.0, %v8228_v2 }
 0xafe   : > { %vm15639_vm14 = vmor %vm7154_vm13, %vm7155_vm12  ;;  %v7218_v27 = vmul.f32 %v7217_v5, %v15585_v0  ;;  %vm7239_vm9 = vcmp.eq.f32.partialorder %v7238_v25, 8.507059e+37  ;;  %v5971_v59 = vmul.f32 0.5, %v15507_v32  ;;  %v5973_v46 = vmul.f32 0.5, %v15565_v50  ;;  %v16527_v25 = vld [vmem:[#allocation96_spill] sm:$0xff] }
 0xaff   : > { %v7151_v39 = vsub.f32 1.0, %v7150_v48  ;;  %v9068_v55 = vpop.eup %9067  ;;  %v5972_v8 = vmul.f32 0.5, %v15578_v54  ;;  %v16523_v54 = vld [vmem:[#allocation81_spill] sm:$0xff] }
 0xb00   : > { %v7270_v24 = vmul.f32 %v9068_v55, %v7268_v57  ;;  %vm7275_vm15 = vweird.f32 %v9068_v55  ;;  %v7241_v57 = vor.u32 1.1754944e-38, %v7240_v53  ;;  %v7347_v35 = vmul.f32 %v7315_v47, %v5971_v59 }
 0xb01   : > { %v7152_v7 = vmul.f32 %v9066_v11, %v7151_v39  ;;  %v9070_v43 = vpop.eup %9069  ;;  %vm7276_vm4 = vmor %vm7274_vm3, %vm7275_vm15 }
 0xb02   : > { %v7271_v49 = vsub.f32 1.0, %v7270_v24  ;;  %v7230_v10 = vmul.f32 %v9070_v43, %v7228_v40  ;;  %vm7235_vm6 = vweird.f32 %v9070_v43 }
 0xb03   : > { %v7153_v17 = vadd.f32 %v9066_v11, %v7152_v7  ;;  %vm7236_vm8 = vmor %vm7234_vm7, %vm7235_vm6  ;;  %v5970_v7 = vmul.f32 0.5, %v15551_v29 }
 0xb04   : > { %v7272_v3 = vmul.f32 %v9068_v55, %v7271_v49  ;;  %v7231_v41 = vsub.f32 1.0, %v7230_v10 }
 0xb05   : > { %v7157_v22 = vsel %vm15639_vm14, %v9066_v11, %v7153_v17  ;;  %v16522_v17 = vld [vmem:[#allocation134_spill] sm:$0xff] }
 0xb06   : > { %v7162_v42 = vsel %vm7159_vm0, %v7161_v4, %v7157_v22  ;;  %v7273_v34 = vadd.f32 %v9068_v55, %v7272_v3  ;;  %v7232_v1 = vmul.f32 %v9070_v43, %v7231_v41  ;;  %v16524_v22 = vld [vmem:[#allocation80_spill] sm:$0xff] }
 0xb07   : > { %v7163_v51 = vmul.f32 %v7162_v42, %v7138_v12  ;;  %v16525_v3 = vld [vmem:[#allocation120_spill] sm:$0xff] }
 0xb08   : > { %v7277_v23 = vsel %vm7276_vm4, %v9068_v55, %v7273_v34  ;;  %v7233_v19 = vadd.f32 %v9070_v43, %v7232_v1  ;;  %v16526_v34 = vld [vmem:[#allocation62_spill] sm:$0xff] }
 0xb09   : > { %v7282_v33 = vsel %vm7279_vm5, %v7281_v21, %v7277_v23  ;;  %v8227_v16 = vclamps-f32 %v7163_v51, 1.0 }
 0xb0a   : > { %v7283_v11 = vmul.f32 %v7282_v33, %v7258_v63  ;;  %v7237_v48 = vsel %vm7236_vm8, %v9070_v43, %v7233_v19  ;;  %v16528_v19 = vld [vmem:[#allocation113_spill] sm:$0xff] }
 0xb0b   : > { %v7242_v28 = vsel %vm7239_vm9, %v7241_v57, %v7237_v48  ;;  %v7314_v26 = vadd.f32 1.0, %v8227_v16  ;;  %v16529_v48 = vld [vmem:[#allocation122_spill] sm:$0xff] }
 0xb0c   : > { %v8230_v18 = vclamps-f32 %v7283_v11, 1.0  ;;  %v7243_v39 = vmul.f32 %v7242_v28, %v7218_v27 }
 0xb0d   : > { %v7346_v0 = vmul.f32 %v7314_v26, %v5970_v7 }
 0xb0e   : > { %v7317_v15 = vadd.f32 1.0, %v8230_v18  ;;  %v8229_v61 = vclamps-f32 %v7243_v39, 1.0 }
 0xb10   : > { %v7349_v20 = vmul.f32 %v7317_v15, %v5973_v46  ;;  %v7316_v40 = vadd.f32 1.0, %v8229_v61 }
 0xb12   : > { %v7365_v14 = vpack.c.bf16 %v7349_v20, %v7347_v35  ;;  %v7348_v52 = vmul.f32 %v7316_v40, %v5972_v8  ;;  %v16530_v35 = vld [vmem:[#allocation123_spill] sm:$0xff]  ;;  %v16532_v8 = vld [vmem:[#allocation50_spill] sm:$0xff] }
 0xb14   : > { %7590 = vmatmul.bf16.gmra.mxu2 %v7365_v14  ;;  %v7364_v62 = vpack.c.bf16 %v7348_v52, %v7346_v0 }
 0xb16   : > { %7541 = vmatmul.bf16.gmra.mxu1 %v7364_v62 }
 0xb27   : > { %v7571_v32 = vpop.f32.mrf.mxu2  ;;  %v7522_v50 = vpop.f32.mrf.mxu1 }
 0xb28   : > { %v7523_v55 = vadd.f32 %v15391_v60, %v7522_v50 }
 0xb2a   : > { %v7572_v13 = vadd.f32 %v7571_v32, %v7523_v55 }
 0xb2c   : > { %v7602_v31 = vadd.f32 %v7572_v13, %v16522_v17 }
 0xb2e   : > { %7618 = vst [vmem:[#allocation23 + $0x30] sm:$0xff] %v7602_v31 }
 0xb2f   : > { %v7573_v45 = vpop.f32.mrf.mxu2  ;;  %v7524_v24 = vpop.f32.mrf.mxu1 }
 0xb30   : > { %v7525_v29 = vadd.f32 %v15391_v60, %v7524_v24 }
 0xb32   : > { %v7574_v36 = vadd.f32 %v7573_v45, %v7525_v29 }
 0xb34   : > { %v7603_v44 = vadd.f32 %v7574_v36, %v16523_v54 }
 0xb36   : > { %7619 = vst [vmem:[#allocation23 + $0x38] sm:$0xff] %v7603_v44 }
 0xb38   : > { %v7576_v30 = vpop.f32.mrf.mxu2 }
 0xb3c   : > { %v7527_v6 = vpop.f32.mrf.mxu1 }
 0xb3d   : > { %v7528_v9 = vadd.f32 %v15391_v60, %v7527_v6 }
 0xb3f   : > { %v7577_v49 = vadd.f32 %v7576_v30, %v7528_v9 }
 0xb40   : > { %v7578_v58 = vpop.f32.mrf.mxu2 }
 0xb41   : > { %v7604_v37 = vadd.f32 %v7577_v49, %v16524_v22 }
 0xb43   : > { %7620 = vst [vmem:[#allocation23 + $0x40] sm:$0xff] %v7604_v37 }
 0xb44   : > { %v7529_v38 = vpop.f32.mrf.mxu1 }
 0xb45   : > { %v7530_v43 = vadd.f32 %v15391_v60, %v7529_v38 }
 0xb47   : > { %v7579_v4 = vadd.f32 %v7578_v58, %v7530_v43 }
 0xb48   : > { %v7581_v10 = vpop.f32.mrf.mxu2 }
 0xb49   : > { %v7605_v56 = vadd.f32 %v7579_v4, %v16525_v3 }
 0xb4b   : > { %7621 = vst [vmem:[#allocation23 + $0x48] sm:$0xff] %v7605_v56 }
 0xb4c   : > { %v7532_v2 = vpop.f32.mrf.mxu1 }
 0xb4d   : > { %v7533_v12 = vadd.f32 %v15391_v60, %v7532_v2 }
 0xb4f   : > { %v7582_v42 = vadd.f32 %v7581_v10, %v7533_v12 }
 0xb50   : > { %v7583_v23 = vpop.f32.mrf.mxu2 }
 0xb51   : > { %v7606_v63 = vadd.f32 %v7582_v42, %v16526_v34 }
 0xb53   : > { %7622 = vst [vmem:[#allocation23 + $0x50] sm:$0xff] %v7606_v63 }
 0xb54   : > { %v7534_v21 = vpop.f32.mrf.mxu1 }
 0xb55   : > { %v7535_v41 = vadd.f32 %v15391_v60, %v7534_v21 }
 0xb57   : > { %v7584_v5 = vadd.f32 %v7583_v23, %v7535_v41 }
 0xb59   : > { %v7607_v53 = vadd.f32 %v7584_v5, %v16527_v25 }
 0xb5b   : > { %7623 = vst [vmem:[#allocation23 + $0x58] sm:$0xff] %v7607_v53 }
 0xb60   : > { %v7586_v33 = vpop.f32.mrf.mxu2 }
 0xb66   : > { %v7537_v51 = vpop.f32.mrf.mxu1 }
 0xb67   : > { %v7538_v1 = vadd.f32 %v15391_v60, %v7537_v51 }
 0xb68   : > { %v7588_v16 = vpop.f32.mrf.mxu2 }
 0xb69   : > { %v7587_v11 = vadd.f32 %v7586_v33, %v7538_v1 }
 0xb6b   : > { %v7608_v47 = vadd.f32 %v7587_v11, %v16528_v19 }
 0xb6d   : > { %7624 = vst [vmem:[#allocation23 + $0x60] sm:$0xff] %v7608_v47 }
 0xb6e   : > { %v7539_v18 = vpop.f32.mrf.mxu1 }
 0xb6f   : > { %v7540_v57 = vadd.f32 %v15391_v60, %v7539_v18 }
 0xb71   : > { %v7589_v27 = vadd.f32 %v7588_v16, %v7540_v57 }
 0xb73   : > { %v7609_v59 = vadd.f32 %v7589_v27, %v16529_v48 }
 0xb75   : > { %7625 = vst [vmem:[#allocation23 + $0x68] sm:$0xff] %v7609_v59 }
 0xb93   : > { %v7542_v46 = vpop.f32.mrf.mxu1 }
 0xb94   : > { %v7543_v15 = vadd.f32 %v15391_v60, %v7542_v46 }
 0xb97   : > { %v7591_v28 = vpop.f32.mrf.mxu2 }
 0xb98   : > { %v7592_v39 = vadd.f32 %v7591_v28, %v7543_v15 }
 0xb9a   : > { %v7610_v20 = vadd.f32 %v7592_v39, %v16530_v35 }
 0xb9b   : > { %v7544_v26 = vpop.f32.mrf.mxu1 }
 0xb9c   : > { %7626 = vst [vmem:[#allocation23 + $0x70] sm:$0xff] %v7610_v20  ;;  %v7545_v61 = vadd.f32 %v15391_v60, %v7544_v26 }
 0xb9f   : > { %v7593_v14 = vpop.f32.mrf.mxu2 }
 0xba0   : > { %v7594_v7 = vadd.f32 %v7593_v14, %v7545_v61 }
 0xba2   : > { %v7611_v40 = vadd.f32 %v7594_v7, %v16532_v8 }
 0xba4   : > { %7627 = vst [vmem:[#allocation23 + $0x78] sm:$0xff] %v7611_v40 }
 0xba5   : > { %8410 = dma.vmem_to_hbm [thread:$0]  (%p8460_p3), %s7638_s4, 2048, %s7640_s30, [#allocation4], %s9535_s0, %s9535_s0, %s9536_s21  }
 0xba6   : > { %9493 = dma.done.wait (%p8460_p3), [#allocation4], 2048  }
 0xba7   : > { %9495 = vsyncadd (%p8460_p3), [#allocation4], 4294965248 }
 0xba8 PF: > { %s42_s23 = sadd.s32 1, %s9518_s23   ;;  %s16533_s17 = sld [smem:[#allocation34_spill]] }
 0xba9   : > { %p39_p4 = scmp.ge.s32.totalorder %s42_s23, 4   ;;  %s16534_s20 = sld [smem:[#allocation37_spill]] }
 0xbaa   : > { %s16535_s27 = sld [smem:[#allocation36_spill]]  ;;  %s16536_s18 = smov %s9502_s19 }
 0xbab   : > { %s16538_s21 = smov %s9514_s22 }
 0xbac   :  { %41 = sbr.rel (!%p39_p4) target bundleno = 28 (0x1c), region = 234 }
 0xbae   : > { %s16537_s19 = smov %s16533_s17 }
 0xbb0   : > { %s16539_s22 = smov %s16535_s27 }
 0xbb1   :  { %7656 = vsyncpa [#allocation3], 1 }
 0xbb2   :  { %7658 = vsyncpa [#allocation3 + $0x1], 1 }
 0xbb3   :  { %7659 = vsyncpa [#allocation8], 1 }
 0xbb4   :  { %7661 = vsyncpa [#allocation8 + $0x1], 1 }
 0xbb5   :  { %7662 = vsyncpa [#allocation11], 1 }
 0xbb6   :  { %7664 = vsyncpa [#allocation11 + $0x1], 1 }
 0xbb7   :  { %7665 = vsyncpa [#allocation18], 1 }
 0xbb8   :  { %7667 = vsyncpa [#allocation18 + $0x1], 1 }
 0xbb9   :  { %7668 = vsyncpa [#allocation21], 1 }
 0xbba   :  { %7670 = vsyncpa [#allocation21 + $0x1], 1 }
 0xbbb   :  { %7671 = vsyncpa [#allocation4], 1 }
 0xbbc   :  { %7673 = vsyncpa [#allocation4 + $0x1], 1 }
 0xbbd   :  { %7674 = vsyncpa [#allocation5], 1 }
 0xbbe   :  { %7676 = vsyncpa [#allocation5 + $0x1], 1 }
 0xbbf   :  { %7677 = vsyncpa [#allocation15], 1 }
 0xbc0   :  { %7678 = vsyncpa [#allocation6], 1 }
 0xbc1   :  { %7680 = vsyncpa [#allocation6 + $0x1], 1 }

</bundles_post_ra>
